<compile_context>
chip_gen: v7x
topology: tpu7x:2x2x1
jax: 0.10.0
libtpu: 0.0.40
codegen_flags: <defaults>
</compile_context>

<pallas_src>
import math

import jax
import jax.numpy as jnp
from jax import lax
from jax.experimental import pallas as pl
from jax.experimental.pallas import tpu as pltpu

EPS = 1e-5
ACT_DTYPE = jnp.bfloat16  # HBM storage dtype for activations


# ----------------------------------------------------------------------------
# small helpers
# ----------------------------------------------------------------------------
def _tree_sum(vals):
    """Pairwise tree reduction (shorter dependent VALU chain than a serial sum)."""
    vals = list(vals)
    while len(vals) > 1:
        nxt = [vals[i] + vals[i + 1] for i in range(0, len(vals) - 1, 2)]
        if len(vals) % 2:
            nxt.append(vals[-1])
        vals = nxt
    return vals[0]


def fold_bn(gamma, beta, mean, var):
    scale = gamma / jnp.sqrt(var + EPS)
    return scale, beta - mean * scale


def _out_size(h, pad, stride):
    return (h + 2 * pad - 3) // stride + 1


def _pad_and_phase(x, stride, padding):
    """Pad NHWC activation; split columns into `stride` phases (layout glue only).

    Column phase-splitting turns the strided 3x3 taps into contiguous static
    slices inside the kernel (rows handled with a plain index), so no strided
    VMEM loads are needed.
    """
    xp = jnp.pad(x, ((0, 0), (padding, padding), (padding, padding), (0, 0)))
    if stride == 1:
        return (xp,)
    return tuple(xp[:, :, q::stride, :] for q in range(stride))


# ----------------------------------------------------------------------------
# Pallas kernels
# ----------------------------------------------------------------------------
def _make_block_kernel(stride, ho, wo):
    """Fused depthwise-3x3 + BN + ReLU + pointwise-1x1 + BN + ReLU kernel.

    Ref layout: [phase refs (stride of them)], dw_w(9,Cin), dw_b(1,Cin),
                pw_w(Cin,Cout), pw_b(1,Cout), out(1,Ho,Wo,Cout).
    """
    nph = stride

    def kernel(*args):
        xrefs = args[:nph]
        dww_ref, dwb_ref, pww_ref, pwb_ref, o_ref = args[nph:]
        dww = dww_ref[...]   # (9, Cin)   f32, BN scale folded
        dwb = dwb_ref[...]   # (1, Cin)   f32
        pww = pww_ref[...]   # (Cin, Cout) f32, BN scale folded
        pwb = pwb_ref[...]   # (1, Cout)  f32

        def row_body(h):
            prods = []
            for ky in range(3):
                for kx in range(3):
                    pr = xrefs[kx % stride]
                    off = kx // stride
                    tap = pr[0, h * stride + ky, off:off + wo, :]      # (wo, Cin) bf16
                    k = 3 * ky + kx
                    prods.append(tap.astype(jnp.float32) * dww[k:k + 1, :])
            acc = _tree_sum(prods)                                      # (wo, Cin) f32
            dwrow = jnp.maximum(acc + dwb, 0.0)                         # dw BN bias + ReLU
            yrow = jnp.dot(dwrow, pww, preferred_element_type=jnp.float32)
            yrow = jnp.maximum(yrow + pwb, 0.0)                         # pw BN bias + ReLU
            o_ref[0, h, :, :] = yrow.astype(o_ref.dtype)

        if ho <= 32:                       # small spatial: fully static unroll
            for h in range(ho):
                row_body(h)
        else:                              # large spatial: rolled loop
            def _loop(h, carry):
                row_body(h)
                return carry
            lax.fori_loop(0, ho, _loop, 0)

    return kernel


def _matmul_bias_relu_kernel(x_ref, w_ref, b_ref, o_ref):
    # (tm, K) @ (K, N) on the MXU, fused add-bias + ReLU epilogue (BN scale is
    # pre-folded into the weights on the wrapper side).
    acc = jnp.dot(x_ref[...].astype(jnp.float32), w_ref[...],
                  preferred_element_type=jnp.float32)
    o_ref[...] = jnp.maximum(acc + b_ref[...], 0.0).astype(o_ref.dtype)


# ----------------------------------------------------------------------------
# Pallas wrappers
# ----------------------------------------------------------------------------
def fused_block(x, dw_w9c, dw_bias, pw_w, pw_bias, stride, padding):
    """One MobileNetV1Block: x (N,H,W,Cin) bf16 -> (N,Ho,Wo,Cout) bf16."""
    n, h, w, cin = x.shape
    cout = pw_w.shape[1]
    ho = _out_size(h, padding, stride)
    wo = _out_size(w, padding, stride)
    phases = _pad_and_phase(x, stride, padding)

    in_specs = [pl.BlockSpec((1,) + p.shape[1:], lambda b: (b, 0, 0, 0))
                for p in phases]
    in_specs += [
        pl.BlockSpec((9, cin), lambda b: (0, 0)),
        pl.BlockSpec((1, cin), lambda b: (0, 0)),
        pl.BlockSpec((cin, cout), lambda b: (0, 0)),
        pl.BlockSpec((1, cout), lambda b: (0, 0)),
    ]

    flops = 2 * n * ho * wo * (9 * cin + cin * cout)
    bytes_accessed = (sum(int(p.size) for p in phases) * 2      # bf16 activations in
                      + n * ho * wo * cout * 2                  # bf16 activations out
                      + (9 * cin + cin + cin * cout + cout) * 4)  # f32 weights/bias

    return pl.pallas_call(
        _make_block_kernel(stride, ho, wo),
        out_shape=jax.ShapeDtypeStruct((n, ho, wo, cout), ACT_DTYPE),
        grid=(n,),
        in_specs=in_specs,
        out_specs=pl.BlockSpec((1, ho, wo, cout), lambda b: (b, 0, 0, 0)),
        compiler_params=pltpu.CompilerParams(dimension_semantics=("parallel",)),
        cost_estimate=pl.CostEstimate(flops=int(flops), transcendentals=0,
                                      bytes_accessed=int(bytes_accessed)),
    )(*phases, dw_w9c, dw_bias, pw_w, pw_bias)


def _matmul_bias_relu(x2d, w2d, bias):
    """y = relu(x2d @ w2d + bias); handles any M via cdiv row tiling + zero pad."""
    m, k = x2d.shape
    n = w2d.shape[1]
    tm = 512 if m >= 512 else max(8, ((m + 7) // 8) * 8)
    mp = pl.cdiv(m, tm) * tm
    if mp != m:
        x2d = jnp.pad(x2d, ((0, mp - m), (0, 0)))

    out = pl.pallas_call(
        _matmul_bias_relu_kernel,
        out_shape=jax.ShapeDtypeStruct((mp, n), ACT_DTYPE),
        grid=(mp // tm,),
        in_specs=[
            pl.BlockSpec((tm, k), lambda i: (i, 0)),
            pl.BlockSpec((k, n), lambda i: (0, 0)),
            pl.BlockSpec((1, n), lambda i: (0, 0)),
        ],
        out_specs=pl.BlockSpec((tm, n), lambda i: (i, 0)),
        compiler_params=pltpu.CompilerParams(dimension_semantics=("parallel",)),
        cost_estimate=pl.CostEstimate(flops=2 * int(mp) * k * n, transcendentals=0,
                                      bytes_accessed=int(mp * k * 2 + k * n * 4
                                                         + n * 4 + mp * n * 2)),
    )(x2d, w2d, bias)
    return out[:m] if mp != m else out


def _im2col_3x3(x, stride, padding):
    """Stem-only im2col (3 input channels -> negligible HBM traffic)."""
    n, h, w, c = x.shape
    ho, wo = _out_size(h, padding, stride), _out_size(w, padding, stride)
    xp = jnp.pad(x, ((0, 0), (padding, padding), (padding, padding), (0, 0)))
    cols = [xp[:, ky:ky + stride * (ho - 1) + 1:stride,
               kx:kx + stride * (wo - 1) + 1:stride, :]
            for ky in range(3) for kx in range(3)]
    patches = jnp.stack(cols, axis=3).reshape(n * ho * wo, 9 * c)
    return patches, (n, ho, wo)


# ----------------------------------------------------------------------------
# Parameter init (deterministic, synthetic) and forward pass
# ----------------------------------------------------------------------------
def _bn_params(key, c):
    k1, k2, k3, k4 = jax.random.split(key, 4)
    gamma = 1.0 + 0.1 * jax.random.normal(k1, (c,), jnp.float32)
    beta = 0.1 * jax.random.normal(k2, (c,), jnp.float32)
    mean = 0.1 * jax.random.normal(k3, (c,), jnp.float32)
    var = jax.random.uniform(k4, (c,), jnp.float32, minval=0.5, maxval=1.5)
    return gamma, beta, mean, var


def init_params(key, in_channels, base_channels, layer_channels):
    params = {}
    key, kw, kb = jax.random.split(key, 3)
    stem_w = jax.random.normal(kw, (3, 3, in_channels, base_channels),
                               jnp.float32) * math.sqrt(2.0 / (9 * in_channels))
    params["stem"] = (stem_w,) + _bn_params(kb, base_channels)
    cin = base_channels
    for i, cout in enumerate(layer_channels):
        key, k1, k2, k3, k4 = jax.random.split(key, 5)
        dw_w = jax.random.normal(k1, (3, 3, cin), jnp.float32) * math.sqrt(2.0 / 9.0)
        pw_w = jax.random.normal(k2, (cin, cout), jnp.float32) * math.sqrt(2.0 / cin)
        params[f"layer{i + 1}"] = (dw_w,) + _bn_params(k3, cin) + (pw_w,) + _bn_params(k4, cout)
        cin = cout
    return params


def mobilenetv1_forward(x_nchw, params, strides):
    """Pallas-backed forward pass. Input/output: NCHW (PyTorch convention)."""
    x = jnp.transpose(x_nchw, (0, 2, 3, 1)).astype(ACT_DTYPE)   # -> NHWC bf16

    # --- stem: conv3x3 s2 p1 + BN + ReLU (im2col + fused Pallas matmul) ---
    w, g, b, m, v = params["stem"]
    cin, cout = w.shape[2], w.shape[3]
    scale, bias = fold_bn(g, b, m, v)
    w2d = (w * scale).reshape(9 * cin, cout).astype(jnp.float32)  # BN scale folded
    patches, (n, ho, wo) = _im2col_3x3(x, stride=2, padding=1)
    y = _matmul_bias_relu(patches, w2d, bias.reshape(1, cout))
    x = y.reshape(n, ho, wo, cout)

    # --- depthwise-separable blocks: one fused Pallas kernel per block ---
    num_layers = len(strides)
    for i, s in enumerate(strides):
        pad = 4 if i == num_layers - 1 else 1
        (dw_w, dg, db_, dm, dv, pw_w, pg, pb, pm, pv) = params[f"layer{i + 1}"]
        c = dw_w.shape[-1]
        cout = pw_w.shape[-1]
        dsc, dbi = fold_bn(dg, db_, dm, dv)
        psc, pbi = fold_bn(pg, pb, pm, pv)
        dww = (dw_w * dsc).reshape(9, c).astype(jnp.float32)      # dw BN scale folded
        pww = (pw_w * psc).astype(jnp.float32)                    # pw BN scale folded
        x = fused_block(x, dww, dbi.reshape(1, c), pww, pbi.reshape(1, cout), s, pad)

    return jnp.transpose(x.astype(jnp.float32), (0, 3, 1, 2))     # -> NCHW f32


# ----------------------------------------------------------------------------
# Pure-JAX reference (lax.conv, f32) for validation
# ----------------------------------------------------------------------------
def _ref_conv(x, w_hwio, stride, padding, groups=1):
    return jax.lax.conv_general_dilated(
        x, w_hwio, window_strides=(stride, stride),
        padding=[(padding, padding), (padding, padding)],
        dimension_numbers=("NHWC", "HWIO", "NHWC"),
        feature_group_count=groups)


def _ref_bn_relu(x, g, b, m, v):
    return jnp.maximum((x - m) / jnp.sqrt(v + EPS) * g + b, 0.0)


def reference_forward(x_nchw, params, strides):
    x = jnp.transpose(x_nchw, (0, 2, 3, 1)).astype(jnp.float32)
    w, g, b, m, v = params["stem"]
    x = _ref_bn_relu(_ref_conv(x, w, 2, 1), g, b, m, v)
    num_layers = len(strides)
    for i, s in enumerate(strides):
        pad = 4 if i == num_layers - 1 else 1
        (dw_w, dg, db_, dm, dv, pw_w, pg, pb, pm, pv) = params[f"layer{i + 1}"]
        c = x.shape[-1]
        x = _ref_bn_relu(_ref_conv(x, dw_w.reshape(3, 3, 1, c), s, pad, groups=c),
                         dg, db_, dm, dv)
        x = _ref_bn_relu(_ref_conv(x, pw_w.reshape(1, 1, *pw_w.shape), 1, 0),
                         pg, pb, pm, pv)
    return jnp.transpose(x, (0, 3, 1, 2))


# ----------------------------------------------------------------------------
if __name__ == "__main__":
    # Small but structurally faithful config (13 blocks, default strides,
    # padding=4 on the final block, as in MobileNetV1Backbone).
    in_channels = 3
    base_channels = 8
    layer_channels = (8, 16, 16, 32, 32, 64, 64, 64, 64, 64, 64, 128, 128)
    strides = (1, 2, 1, 2, 1, 2, 1, 1, 1, 1, 1, 2, 2)

    key = jax.random.PRNGKey(0)
    pkey, xkey = jax.random.split(key)
    params = init_params(pkey, in_channels, base_channels, layer_channels)
    x = jax.random.normal(xkey, (2, in_channels, 16, 16), jnp.float32)

    fwd = jax.jit(lambda xx, pp: mobilenetv1_forward(xx, pp, strides))
    out = fwd(x, params)
    jax.block_until_ready(out)

    ref = reference_forward(x, params, strides)
    assert out.shape == ref.shape, (out.shape, ref.shape)
    assert bool(jnp.all(jnp.isfinite(out)))
    # Activations are stored in bf16 between blocks; f32 accumulation keeps the
    # error well inside this tolerance vs. the pure-f32 reference.
    assert bool(jnp.allclose(out, ref, rtol=5e-2, atol=5e-2)), float(
        jnp.max(jnp.abs(out - ref)))

    print("KERNEL_OK")
</pallas_src>

<mosaic_0001>
module attributes {stable_mosaic.version = 11 : i64} {
  func.func @_matmul_bias_relu_kernel(%arg0: i32, %arg1: memref<128x27xbf16, #tpu.memory_space<vmem>>, %arg2: memref<27x8xf32, #tpu.memory_space<vmem>>, %arg3: memref<1x8xf32, #tpu.memory_space<vmem>>, %arg4: memref<128x8xbf16, #tpu.memory_space<vmem>>) attributes {dimension_semantics = [#tpu.dimension_semantics<parallel>], iteration_bounds = array<i64: 1>, scalar_prefetch = 0 : i64, scratch_operands = 0 : i64, tpu.core_type = #tpu.core_type<tc>, window_params = [{transform_indices = @transform_0, window_bounds = array<i64: 128, 27>}, {pipeline_mode = #tpu.pipeline_mode<synchronous>, transform_indices = @transform_1, window_bounds = array<i64: 27, 8>}, {pipeline_mode = #tpu.pipeline_mode<synchronous>, transform_indices = @transform_2, window_bounds = array<i64: 1, 8>}, {transform_indices = @transform_3, window_bounds = array<i64: 128, 8>}]} {
    %c0 = arith.constant 0 : index
    %c0_0 = arith.constant 0 : index
    %0 = vector.load %arg1[%c0, %c0_0] : memref<128x27xbf16, #tpu.memory_space<vmem>>, vector<128x27xbf16>
    %1 = arith.extf %0 : vector<128x27xbf16> to vector<128x27xf32>
    %c0_1 = arith.constant 0 : index
    %c0_2 = arith.constant 0 : index
    %2 = vector.load %arg2[%c0_1, %c0_2] : memref<27x8xf32, #tpu.memory_space<vmem>>, vector<27x8xf32>
    %cst = arith.constant dense<0.000000e+00> : vector<128x8xf32>
    %3 = tpu.matmul %1, %2, %cst {dimension_numbers = #tpu.dot_dimension_numbers<[1], [0], [0], [1], [0, 0, 1, 1], [], []>} : vector<128x27xf32>, vector<27x8xf32>, vector<128x8xf32> -> vector<128x8xf32>
    %c0_3 = arith.constant 0 : index
    %c0_4 = arith.constant 0 : index
    %4 = vector.load %arg3[%c0_3, %c0_4] : memref<1x8xf32, #tpu.memory_space<vmem>>, vector<1x8xf32>
    %5 = vector.broadcast %4 : vector<1x8xf32> to vector<128x8xf32>
    %6 = arith.addf %3, %5 : vector<128x8xf32>
    %cst_5 = arith.constant 0.000000e+00 : f32
    %7 = vector.broadcast %cst_5 : f32 to vector<128x8xf32>
    %8 = arith.maximumf %6, %7 : vector<128x8xf32>
    %9 = arith.truncf %8 : vector<128x8xf32> to vector<128x8xbf16>
    %c0_6 = arith.constant 0 : index
    %c0_7 = arith.constant 0 : index
    %10 = vector.load %arg4[%c0_6, %c0_7] : memref<128x8xbf16, #tpu.memory_space<vmem>>, vector<128x8xbf16>
    tpu.vector_store %arg4[%c0_6, %c0_7], %9 {strides = array<i32>} : memref<128x8xbf16, #tpu.memory_space<vmem>>, vector<128x8xbf16>,
    return
  }
  func.func @transform_0(%arg0: i32) -> (i32, i32) {
    %c0_i32 = arith.constant 0 : i32
    %c0_i32_0 = arith.constant 0 : i32
    return %arg0, %c0_i32 : i32, i32
  }
  func.func @transform_1(%arg0: i32) -> (i32, i32) {
    %c0_i32 = arith.constant 0 : i32
    %c0_i32_0 = arith.constant 0 : i32
    %c0_i32_1 = arith.constant 0 : i32
    return %c0_i32, %c0_i32_0 : i32, i32
  }
  func.func @transform_2(%arg0: i32) -> (i32, i32) {
    %c0_i32 = arith.constant 0 : i32
    %c0_i32_0 = arith.constant 0 : i32
    %c0_i32_1 = arith.constant 0 : i32
    return %c0_i32, %c0_i32_0 : i32, i32
  }
  func.func @transform_3(%arg0: i32) -> (i32, i32) {
    %c0_i32 = arith.constant 0 : i32
    %c0_i32_0 = arith.constant 0 : i32
    return %arg0, %c0_i32 : i32, i32
  }
}

module attributes {stable_mosaic.version = 11 : i64} {
  func.func @kernel(%arg0: i32, %arg1: memref<1x10x10x8xbf16, #tpu.memory_space<vmem>>, %arg2: memref<9x8xf32, #tpu.memory_space<vmem>>, %arg3: memref<1x8xf32, #tpu.memory_space<vmem>>, %arg4: memref<8x8xf32, #tpu.memory_space<vmem>>, %arg5: memref<1x8xf32, #tpu.memory_space<vmem>>, %arg6: memref<1x8x8x8xbf16, #tpu.memory_space<vmem>>) attributes {dimension_semantics = [#tpu.dimension_semantics<parallel>], iteration_bounds = array<i64: 2>, scalar_prefetch = 0 : i64, scratch_operands = 0 : i64, tpu.core_type = #tpu.core_type<tc>, window_params = [{transform_indices = @transform_0, window_bounds = array<i64: 1, 10, 10, 8>}, {pipeline_mode = #tpu.pipeline_mode<synchronous>, transform_indices = @transform_1, window_bounds = array<i64: 9, 8>}, {pipeline_mode = #tpu.pipeline_mode<synchronous>, transform_indices = @transform_2, window_bounds = array<i64: 1, 8>}, {pipeline_mode = #tpu.pipeline_mode<synchronous>, transform_indices = @transform_3, window_bounds = array<i64: 8, 8>}, {pipeline_mode = #tpu.pipeline_mode<synchronous>, transform_indices = @transform_4, window_bounds = array<i64: 1, 8>}, {transform_indices = @transform_5, window_bounds = array<i64: 1, 8, 8, 8>}]} {
    %c0 = arith.constant 0 : index
    %c0_0 = arith.constant 0 : index
    %0 = vector.load %arg2[%c0, %c0_0] : memref<9x8xf32, #tpu.memory_space<vmem>>, vector<9x8xf32>
    %c0_1 = arith.constant 0 : index
    %c0_2 = arith.constant 0 : index
    %1 = vector.load %arg3[%c0_1, %c0_2] : memref<1x8xf32, #tpu.memory_space<vmem>>, vector<1x8xf32>
    %c0_3 = arith.constant 0 : index
    %c0_4 = arith.constant 0 : index
    %2 = vector.load %arg4[%c0_3, %c0_4] : memref<8x8xf32, #tpu.memory_space<vmem>>, vector<8x8xf32>
    %c0_5 = arith.constant 0 : index
    %c0_6 = arith.constant 0 : index
    %3 = vector.load %arg5[%c0_5, %c0_6] : memref<1x8xf32, #tpu.memory_space<vmem>>, vector<1x8xf32>
    %c0_7 = arith.constant 0 : index
    %c0_8 = arith.constant 0 : index
    %c0_9 = arith.constant 0 : index
    %c0_10 = arith.constant 0 : index
    %4 = vector.load %arg1[%c0_7, %c0_8, %c0_9, %c0_10] : memref<1x10x10x8xbf16, #tpu.memory_space<vmem>>, vector<1x1x8x8xbf16>
    %5 = vector.shape_cast %4 : vector<1x1x8x8xbf16> to vector<8x8xbf16>
    %6 = arith.extf %5 : vector<8x8xbf16> to vector<8x8xf32>
    %7 = vector.extract_strided_slice %0 {offsets = [0, 0], sizes = [1, 8], strides = [1, 1]} : vector<9x8xf32> to vector<1x8xf32>
    %8 = vector.broadcast %7 : vector<1x8xf32> to vector<8x8xf32>
    %9 = arith.mulf %6, %8 : vector<8x8xf32>
    %c0_11 = arith.constant 0 : index
    %c0_12 = arith.constant 0 : index
    %c1 = arith.constant 1 : index
    %c0_13 = arith.constant 0 : index
    %10 = vector.load %arg1[%c0_11, %c0_12, %c1, %c0_13] : memref<1x10x10x8xbf16, #tpu.memory_space<vmem>>, vector<1x1x8x8xbf16>
    %11 = vector.shape_cast %10 : vector<1x1x8x8xbf16> to vector<8x8xbf16>
    %12 = arith.extf %11 : vector<8x8xbf16> to vector<8x8xf32>
    %13 = vector.extract_strided_slice %0 {offsets = [1, 0], sizes = [1, 8], strides = [1, 1]} : vector<9x8xf32> to vector<1x8xf32>
    %14 = vector.broadcast %13 : vector<1x8xf32> to vector<8x8xf32>
    %15 = arith.mulf %12, %14 : vector<8x8xf32>
    %c0_14 = arith.constant 0 : index
    %c0_15 = arith.constant 0 : index
    %c2 = arith.constant 2 : index
    %c0_16 = arith.constant 0 : index
    %16 = vector.load %arg1[%c0_14, %c0_15, %c2, %c0_16] : memref<1x10x10x8xbf16, #tpu.memory_space<vmem>>, vector<1x1x8x8xbf16>
    %17 = vector.shape_cast %16 : vector<1x1x8x8xbf16> to vector<8x8xbf16>
    %18 = arith.extf %17 : vector<8x8xbf16> to vector<8x8xf32>
    %19 = vector.extract_strided_slice %0 {offsets = [2, 0], sizes = [1, 8], strides = [1, 1]} : vector<9x8xf32> to vector<1x8xf32>
    %20 = vector.broadcast %19 : vector<1x8xf32> to vector<8x8xf32>
    %21 = arith.mulf %18, %20 : vector<8x8xf32>
    %c0_17 = arith.constant 0 : index
    %c1_18 = arith.constant 1 : index
    %c0_19 = arith.constant 0 : index
    %c0_20 = arith.constant 0 : index
    %22 = vector.load %arg1[%c0_17, %c1_18, %c0_19, %c0_20] : memref<1x10x10x8xbf16, #tpu.memory_space<vmem>>, vector<1x1x8x8xbf16>
    %23 = vector.shape_cast %22 : vector<1x1x8x8xbf16> to vector<8x8xbf16>
    %24 = arith.extf %23 : vector<8x8xbf16> to vector<8x8xf32>
    %25 = vector.extract_strided_slice %0 {offsets = [3, 0], sizes = [1, 8], strides = [1, 1]} : vector<9x8xf32> to vector<1x8xf32>
    %26 = vector.broadcast %25 : vector<1x8xf32> to vector<8x8xf32>
    %27 = arith.mulf %24, %26 : vector<8x8xf32>
    %c0_21 = arith.constant 0 : index
    %c1_22 = arith.constant 1 : index
    %c1_23 = arith.constant 1 : index
    %c0_24 = arith.constant 0 : index
    %28 = vector.load %arg1[%c0_21, %c1_22, %c1_23, %c0_24] : memref<1x10x10x8xbf16, #tpu.memory_space<vmem>>, vector<1x1x8x8xbf16>
    %29 = vector.shape_cast %28 : vector<1x1x8x8xbf16> to vector<8x8xbf16>
    %30 = arith.extf %29 : vector<8x8xbf16> to vector<8x8xf32>
    %31 = vector.extract_strided_slice %0 {offsets = [4, 0], sizes = [1, 8], strides = [1, 1]} : vector<9x8xf32> to vector<1x8xf32>
    %32 = vector.broadcast %31 : vector<1x8xf32> to vector<8x8xf32>
    %33 = arith.mulf %30, %32 : vector<8x8xf32>
    %c0_25 = arith.constant 0 : index
    %c1_26 = arith.constant 1 : index
    %c2_27 = arith.constant 2 : index
    %c0_28 = arith.constant 0 : index
    %34 = vector.load %arg1[%c0_25, %c1_26, %c2_27, %c0_28] : memref<1x10x10x8xbf16, #tpu.memory_space<vmem>>, vector<1x1x8x8xbf16>
    %35 = vector.shape_cast %34 : vector<1x1x8x8xbf16> to vector<8x8xbf16>
    %36 = arith.extf %35 : vector<8x8xbf16> to vector<8x8xf32>
    %37 = vector.extract_strided_slice %0 {offsets = [5, 0], sizes = [1, 8], strides = [1, 1]} : vector<9x8xf32> to vector<1x8xf32>
    %38 = vector.broadcast %37 : vector<1x8xf32> to vector<8x8xf32>
    %39 = arith.mulf %36, %38 : vector<8x8xf32>
    %c0_29 = arith.constant 0 : index
    %c2_30 = arith.constant 2 : index
    %c0_31 = arith.constant 0 : index
    %c0_32 = arith.constant 0 : index
    %40 = vector.load %arg1[%c0_29, %c2_30, %c0_31, %c0_32] : memref<1x10x10x8xbf16, #tpu.memory_space<vmem>>, vector<1x1x8x8xbf16>
    %41 = vector.shape_cast %40 : vector<1x1x8x8xbf16> to vector<8x8xbf16>
    %42 = arith.extf %41 : vector<8x8xbf16> to vector<8x8xf32>
    %43 = vector.extract_strided_slice %0 {offsets = [6, 0], sizes = [1, 8], strides = [1, 1]} : vector<9x8xf32> to vector<1x8xf32>
    %44 = vector.broadcast %43 : vector<1x8xf32> to vector<8x8xf32>
    %45 = arith.mulf %42, %44 : vector<8x8xf32>
    %c0_33 = arith.constant 0 : index
    %c2_34 = arith.constant 2 : index
    %c1_35 = arith.constant 1 : index
    %c0_36 = arith.constant 0 : index
    %46 = vector.load %arg1[%c0_33, %c2_34, %c1_35, %c0_36] : memref<1x10x10x8xbf16, #tpu.memory_space<vmem>>, vector<1x1x8x8xbf16>
    %47 = vector.shape_cast %46 : vector<1x1x8x8xbf16> to vector<8x8xbf16>
    %48 = arith.extf %47 : vector<8x8xbf16> to vector<8x8xf32>
    %49 = vector.extract_strided_slice %0 {offsets = [7, 0], sizes = [1, 8], strides = [1, 1]} : vector<9x8xf32> to vector<1x8xf32>
    %50 = vector.broadcast %49 : vector<1x8xf32> to vector<8x8xf32>
    %51 = arith.mulf %48, %50 : vector<8x8xf32>
    %c0_37 = arith.constant 0 : index
    %c2_38 = arith.constant 2 : index
    %c2_39 = arith.constant 2 : index
    %c0_40 = arith.constant 0 : index
    %52 = vector.load %arg1[%c0_37, %c2_38, %c2_39, %c0_40] : memref<1x10x10x8xbf16, #tpu.memory_space<vmem>>, vector<1x1x8x8xbf16>
    %53 = vector.shape_cast %52 : vector<1x1x8x8xbf16> to vector<8x8xbf16>
    %54 = arith.extf %53 : vector<8x8xbf16> to vector<8x8xf32>
    %55 = vector.extract_strided_slice %0 {offsets = [8, 0], sizes = [1, 8], strides = [1, 1]} : vector<9x8xf32> to vector<1x8xf32>
    %56 = vector.broadcast %55 : vector<1x8xf32> to vector<8x8xf32>
    %57 = arith.mulf %54, %56 : vector<8x8xf32>
    %58 = arith.addf %9, %15 : vector<8x8xf32>
    %59 = arith.addf %21, %27 : vector<8x8xf32>
    %60 = arith.addf %33, %39 : vector<8x8xf32>
    %61 = arith.addf %45, %51 : vector<8x8xf32>
    %62 = arith.addf %58, %59 : vector<8x8xf32>
    %63 = arith.addf %60, %61 : vector<8x8xf32>
    %64 = arith.addf %62, %63 : vector<8x8xf32>
    %65 = arith.addf %64, %57 : vector<8x8xf32>
    %66 = vector.broadcast %1 : vector<1x8xf32> to vector<8x8xf32>
    %67 = arith.addf %65, %66 : vector<8x8xf32>
    %cst = arith.constant 0.000000e+00 : f32
    %68 = vector.broadcast %cst : f32 to vector<8x8xf32>
    %69 = arith.maximumf %67, %68 : vector<8x8xf32>
    %cst_41 = arith.constant dense<0.000000e+00> : vector<8x8xf32>
    %70 = tpu.matmul %69, %2, %cst_41 {dimension_numbers = #tpu.dot_dimension_numbers<[1], [0], [0], [1], [0, 0, 1, 1], [], []>} : vector<8x8xf32>, vector<8x8xf32>, vector<8x8xf32> -> vector<8x8xf32>
    %71 = vector.broadcast %3 : vector<1x8xf32> to vector<8x8xf32>
    %72 = arith.addf %70, %71 : vector<8x8xf32>
    %cst_42 = arith.constant 0.000000e+00 : f32
    %73 = vector.broadcast %cst_42 : f32 to vector<8x8xf32>
    %74 = arith.maximumf %72, %73 : vector<8x8xf32>
    %75 = arith.truncf %74 : vector<8x8xf32> to vector<8x8xbf16>
    %c0_43 = arith.constant 0 : index
    %c0_44 = arith.constant 0 : index
    %c0_45 = arith.constant 0 : index
    %c0_46 = arith.constant 0 : index
    %76 = vector.load %arg6[%c0_43, %c0_44, %c0_45, %c0_46] : memref<1x8x8x8xbf16, #tpu.memory_space<vmem>>, vector<1x1x8x8xbf16>
    %77 = vector.shape_cast %76 : vector<1x1x8x8xbf16> to vector<8x8xbf16>
    %78 = vector.shape_cast %75 : vector<8x8xbf16> to vector<1x1x8x8xbf16>
    tpu.vector_store %arg6[%c0_43, %c0_44, %c0_45, %c0_46], %78 {strides = array<i32>} : memref<1x8x8x8xbf16, #tpu.memory_space<vmem>>, vector<1x1x8x8xbf16>,
    %c0_47 = arith.constant 0 : index
    %c1_48 = arith.constant 1 : index
    %c0_49 = arith.constant 0 : index
    %c0_50 = arith.constant 0 : index
    %79 = vector.load %arg1[%c0_47, %c1_48, %c0_49, %c0_50] : memref<1x10x10x8xbf16, #tpu.memory_space<vmem>>, vector<1x1x8x8xbf16>
    %80 = vector.shape_cast %79 : vector<1x1x8x8xbf16> to vector<8x8xbf16>
    %81 = arith.extf %80 : vector<8x8xbf16> to vector<8x8xf32>
    %82 = vector.extract_strided_slice %0 {offsets = [0, 0], sizes = [1, 8], strides = [1, 1]} : vector<9x8xf32> to vector<1x8xf32>
    %83 = vector.broadcast %82 : vector<1x8xf32> to vector<8x8xf32>
    %84 = arith.mulf %81, %83 : vector<8x8xf32>
    %c0_51 = arith.constant 0 : index
    %c1_52 = arith.constant 1 : index
    %c1_53 = arith.constant 1 : index
    %c0_54 = arith.constant 0 : index
    %85 = vector.load %arg1[%c0_51, %c1_52, %c1_53, %c0_54] : memref<1x10x10x8xbf16, #tpu.memory_space<vmem>>, vector<1x1x8x8xbf16>
    %86 = vector.shape_cast %85 : vector<1x1x8x8xbf16> to vector<8x8xbf16>
    %87 = arith.extf %86 : vector<8x8xbf16> to vector<8x8xf32>
    %88 = vector.extract_strided_slice %0 {offsets = [1, 0], sizes = [1, 8], strides = [1, 1]} : vector<9x8xf32> to vector<1x8xf32>
    %89 = vector.broadcast %88 : vector<1x8xf32> to vector<8x8xf32>
    %90 = arith.mulf %87, %89 : vector<8x8xf32>
    %c0_55 = arith.constant 0 : index
    %c1_56 = arith.constant 1 : index
    %c2_57 = arith.constant 2 : index
    %c0_58 = arith.constant 0 : index
    %91 = vector.load %arg1[%c0_55, %c1_56, %c2_57, %c0_58] : memref<1x10x10x8xbf16, #tpu.memory_space<vmem>>, vector<1x1x8x8xbf16>
    %92 = vector.shape_cast %91 : vector<1x1x8x8xbf16> to vector<8x8xbf16>
    %93 = arith.extf %92 : vector<8x8xbf16> to vector<8x8xf32>
    %94 = vector.extract_strided_slice %0 {offsets = [2, 0], sizes = [1, 8], strides = [1, 1]} : vector<9x8xf32> to vector<1x8xf32>
    %95 = vector.broadcast %94 : vector<1x8xf32> to vector<8x8xf32>
    %96 = arith.mulf %93, %95 : vector<8x8xf32>
    %c0_59 = arith.constant 0 : index
    %c2_60 = arith.constant 2 : index
    %c0_61 = arith.constant 0 : index
    %c0_62 = arith.constant 0 : index
    %97 = vector.load %arg1[%c0_59, %c2_60, %c0_61, %c0_62] : memref<1x10x10x8xbf16, #tpu.memory_space<vmem>>, vector<1x1x8x8xbf16>
    %98 = vector.shape_cast %97 : vector<1x1x8x8xbf16> to vector<8x8xbf16>
    %99 = arith.extf %98 : vector<8x8xbf16> to vector<8x8xf32>
    %100 = vector.extract_strided_slice %0 {offsets = [3, 0], sizes = [1, 8], strides = [1, 1]} : vector<9x8xf32> to vector<1x8xf32>
    %101 = vector.broadcast %100 : vector<1x8xf32> to vector<8x8xf32>
    %102 = arith.mulf %99, %101 : vector<8x8xf32>
    %c0_63 = arith.constant 0 : index
    %c2_64 = arith.constant 2 : index
    %c1_65 = arith.constant 1 : index
    %c0_66 = arith.constant 0 : index
    %103 = vector.load %arg1[%c0_63, %c2_64, %c1_65, %c0_66] : memref<1x10x10x8xbf16, #tpu.memory_space<vmem>>, vector<1x1x8x8xbf16>
    %104 = vector.shape_cast %103 : vector<1x1x8x8xbf16> to vector<8x8xbf16>
    %105 = arith.extf %104 : vector<8x8xbf16> to vector<8x8xf32>
    %106 = vector.extract_strided_slice %0 {offsets = [4, 0], sizes = [1, 8], strides = [1, 1]} : vector<9x8xf32> to vector<1x8xf32>
    %107 = vector.broadcast %106 : vector<1x8xf32> to vector<8x8xf32>
    %108 = arith.mulf %105, %107 : vector<8x8xf32>
    %c0_67 = arith.constant 0 : index
    %c2_68 = arith.constant 2 : index
    %c2_69 = arith.constant 2 : index
    %c0_70 = arith.constant 0 : index
    %109 = vector.load %arg1[%c0_67, %c2_68, %c2_69, %c0_70] : memref<1x10x10x8xbf16, #tpu.memory_space<vmem>>, vector<1x1x8x8xbf16>
    %110 = vector.shape_cast %109 : vector<1x1x8x8xbf16> to vector<8x8xbf16>
    %111 = arith.extf %110 : vector<8x8xbf16> to vector<8x8xf32>
    %112 = vector.extract_strided_slice %0 {offsets = [5, 0], sizes = [1, 8], strides = [1, 1]} : vector<9x8xf32> to vector<1x8xf32>
    %113 = vector.broadcast %112 : vector<1x8xf32> to vector<8x8xf32>
    %114 = arith.mulf %111, %113 : vector<8x8xf32>
    %c0_71 = arith.constant 0 : index
    %c3 = arith.constant 3 : index
    %c0_72 = arith.constant 0 : index
    %c0_73 = arith.constant 0 : index
    %115 = vector.load %arg1[%c0_71, %c3, %c0_72, %c0_73] : memref<1x10x10x8xbf16, #tpu.memory_space<vmem>>, vector<1x1x8x8xbf16>
    %116 = vector.shape_cast %115 : vector<1x1x8x8xbf16> to vector<8x8xbf16>
    %117 = arith.extf %116 : vector<8x8xbf16> to vector<8x8xf32>
    %118 = vector.extract_strided_slice %0 {offsets = [6, 0], sizes = [1, 8], strides = [1, 1]} : vector<9x8xf32> to vector<1x8xf32>
    %119 = vector.broadcast %118 : vector<1x8xf32> to vector<8x8xf32>
    %120 = arith.mulf %117, %119 : vector<8x8xf32>
    %c0_74 = arith.constant 0 : index
    %c3_75 = arith.constant 3 : index
    %c1_76 = arith.constant 1 : index
    %c0_77 = arith.constant 0 : index
    %121 = vector.load %arg1[%c0_74, %c3_75, %c1_76, %c0_77] : memref<1x10x10x8xbf16, #tpu.memory_space<vmem>>, vector<1x1x8x8xbf16>
    %122 = vector.shape_cast %121 : vector<1x1x8x8xbf16> to vector<8x8xbf16>
    %123 = arith.extf %122 : vector<8x8xbf16> to vector<8x8xf32>
    %124 = vector.extract_strided_slice %0 {offsets = [7, 0], sizes = [1, 8], strides = [1, 1]} : vector<9x8xf32> to vector<1x8xf32>
    %125 = vector.broadcast %124 : vector<1x8xf32> to vector<8x8xf32>
    %126 = arith.mulf %123, %125 : vector<8x8xf32>
    %c0_78 = arith.constant 0 : index
    %c3_79 = arith.constant 3 : index
    %c2_80 = arith.constant 2 : index
    %c0_81 = arith.constant 0 : index
    %127 = vector.load %arg1[%c0_78, %c3_79, %c2_80, %c0_81] : memref<1x10x10x8xbf16, #tpu.memory_space<vmem>>, vector<1x1x8x8xbf16>
    %128 = vector.shape_cast %127 : vector<1x1x8x8xbf16> to vector<8x8xbf16>
    %129 = arith.extf %128 : vector<8x8xbf16> to vector<8x8xf32>
    %130 = vector.extract_strided_slice %0 {offsets = [8, 0], sizes = [1, 8], strides = [1, 1]} : vector<9x8xf32> to vector<1x8xf32>
    %131 = vector.broadcast %130 : vector<1x8xf32> to vector<8x8xf32>
    %132 = arith.mulf %129, %131 : vector<8x8xf32>
    %133 = arith.addf %84, %90 : vector<8x8xf32>
    %134 = arith.addf %96, %102 : vector<8x8xf32>
    %135 = arith.addf %108, %114 : vector<8x8xf32>
    %136 = arith.addf %120, %126 : vector<8x8xf32>
    %137 = arith.addf %133, %134 : vector<8x8xf32>
    %138 = arith.addf %135, %136 : vector<8x8xf32>
    %139 = arith.addf %137, %138 : vector<8x8xf32>
    %140 = arith.addf %139, %132 : vector<8x8xf32>
    %141 = vector.broadcast %1 : vector<1x8xf32> to vector<8x8xf32>
    %142 = arith.addf %140, %141 : vector<8x8xf32>
    %cst_82 = arith.constant 0.000000e+00 : f32
    %143 = vector.broadcast %cst_82 : f32 to vector<8x8xf32>
    %144 = arith.maximumf %142, %143 : vector<8x8xf32>
    %cst_83 = arith.constant dense<0.000000e+00> : vector<8x8xf32>
    %145 = tpu.matmul %144, %2, %cst_83 {dimension_numbers = #tpu.dot_dimension_numbers<[1], [0], [0], [1], [0, 0, 1, 1], [], []>} : vector<8x8xf32>, vector<8x8xf32>, vector<8x8xf32> -> vector<8x8xf32>
    %146 = vector.broadcast %3 : vector<1x8xf32> to vector<8x8xf32>
    %147 = arith.addf %145, %146 : vector<8x8xf32>
    %cst_84 = arith.constant 0.000000e+00 : f32
    %148 = vector.broadcast %cst_84 : f32 to vector<8x8xf32>
    %149 = arith.maximumf %147, %148 : vector<8x8xf32>
    %150 = arith.truncf %149 : vector<8x8xf32> to vector<8x8xbf16>
    %c0_85 = arith.constant 0 : index
    %c1_86 = arith.constant 1 : index
    %c0_87 = arith.constant 0 : index
    %c0_88 = arith.constant 0 : index
    %151 = vector.load %arg6[%c0_85, %c1_86, %c0_87, %c0_88] : memref<1x8x8x8xbf16, #tpu.memory_space<vmem>>, vector<1x1x8x8xbf16>
    %152 = vector.shape_cast %151 : vector<1x1x8x8xbf16> to vector<8x8xbf16>
    %153 = vector.shape_cast %150 : vector<8x8xbf16> to vector<1x1x8x8xbf16>
    tpu.vector_store %arg6[%c0_85, %c1_86, %c0_87, %c0_88], %153 {strides = array<i32>} : memref<1x8x8x8xbf16, #tpu.memory_space<vmem>>, vector<1x1x8x8xbf16>,
    %c0_89 = arith.constant 0 : index
    %c2_90 = arith.constant 2 : index
    %c0_91 = arith.constant 0 : index
    %c0_92 = arith.constant 0 : index
    %154 = vector.load %arg1[%c0_89, %c2_90, %c0_91, %c0_92] : memref<1x10x10x8xbf16, #tpu.memory_space<vmem>>, vector<1x1x8x8xbf16>
    %155 = vector.shape_cast %154 : vector<1x1x8x8xbf16> to vector<8x8xbf16>
    %156 = arith.extf %155 : vector<8x8xbf16> to vector<8x8xf32>
    %157 = vector.extract_strided_slice %0 {offsets = [0, 0], sizes = [1, 8], strides = [1, 1]} : vector<9x8xf32> to vector<1x8xf32>
    %158 = vector.broadcast %157 : vector<1x8xf32> to vector<8x8xf32>
    %159 = arith.mulf %156, %158 : vector<8x8xf32>
    %c0_93 = arith.constant 0 : index
    %c2_94 = arith.constant 2 : index
    %c1_95 = arith.constant 1 : index
    %c0_96 = arith.constant 0 : index
    %160 = vector.load %arg1[%c0_93, %c2_94, %c1_95, %c0_96] : memref<1x10x10x8xbf16, #tpu.memory_space<vmem>>, vector<1x1x8x8xbf16>
    %161 = vector.shape_cast %160 : vector<1x1x8x8xbf16> to vector<8x8xbf16>
    %162 = arith.extf %161 : vector<8x8xbf16> to vector<8x8xf32>
    %163 = vector.extract_strided_slice %0 {offsets = [1, 0], sizes = [1, 8], strides = [1, 1]} : vector<9x8xf32> to vector<1x8xf32>
    %164 = vector.broadcast %163 : vector<1x8xf32> to vector<8x8xf32>
    %165 = arith.mulf %162, %164 : vector<8x8xf32>
    %c0_97 = arith.constant 0 : index
    %c2_98 = arith.constant 2 : index
    %c2_99 = arith.constant 2 : index
    %c0_100 = arith.constant 0 : index
    %166 = vector.load %arg1[%c0_97, %c2_98, %c2_99, %c0_100] : memref<1x10x10x8xbf16, #tpu.memory_space<vmem>>, vector<1x1x8x8xbf16>
    %167 = vector.shape_cast %166 : vector<1x1x8x8xbf16> to vector<8x8xbf16>
    %168 = arith.extf %167 : vector<8x8xbf16> to vector<8x8xf32>
    %169 = vector.extract_strided_slice %0 {offsets = [2, 0], sizes = [1, 8], strides = [1, 1]} : vector<9x8xf32> to vector<1x8xf32>
    %170 = vector.broadcast %169 : vector<1x8xf32> to vector<8x8xf32>
    %171 = arith.mulf %168, %170 : vector<8x8xf32>
    %c0_101 = arith.constant 0 : index
    %c3_102 = arith.constant 3 : index
    %c0_103 = arith.constant 0 : index
    %c0_104 = arith.constant 0 : index
    %172 = vector.load %arg1[%c0_101, %c3_102, %c0_103, %c0_104] : memref<1x10x10x8xbf16, #tpu.memory_space<vmem>>, vector<1x1x8x8xbf16>
    %173 = vector.shape_cast %172 : vector<1x1x8x8xbf16> to vector<8x8xbf16>
    %174 = arith.extf %173 : vector<8x8xbf16> to vector<8x8xf32>
    %175 = vector.extract_strided_slice %0 {offsets = [3, 0], sizes = [1, 8], strides = [1, 1]} : vector<9x8xf32> to vector<1x8xf32>
    %176 = vector.broadcast %175 : vector<1x8xf32> to vector<8x8xf32>
    %177 = arith.mulf %174, %176 : vector<8x8xf32>
    %c0_105 = arith.constant 0 : index
    %c3_106 = arith.constant 3 : index
    %c1_107 = arith.constant 1 : index
    %c0_108 = arith.constant 0 : index
    %178 = vector.load %arg1[%c0_105, %c3_106, %c1_107, %c0_108] : memref<1x10x10x8xbf16, #tpu.memory_space<vmem>>, vector<1x1x8x8xbf16>
    %179 = vector.shape_cast %178 : vector<1x1x8x8xbf16> to vector<8x8xbf16>
    %180 = arith.extf %179 : vector<8x8xbf16> to vector<8x8xf32>
    %181 = vector.extract_strided_slice %0 {offsets = [4, 0], sizes = [1, 8], strides = [1, 1]} : vector<9x8xf32> to vector<1x8xf32>
    %182 = vector.broadcast %181 : vector<1x8xf32> to vector<8x8xf32>
    %183 = arith.mulf %180, %182 : vector<8x8xf32>
    %c0_109 = arith.constant 0 : index
    %c3_110 = arith.constant 3 : index
    %c2_111 = arith.constant 2 : index
    %c0_112 = arith.constant 0 : index
    %184 = vector.load %arg1[%c0_109, %c3_110, %c2_111, %c0_112] : memref<1x10x10x8xbf16, #tpu.memory_space<vmem>>, vector<1x1x8x8xbf16>
    %185 = vector.shape_cast %184 : vector<1x1x8x8xbf16> to vector<8x8xbf16>
    %186 = arith.extf %185 : vector<8x8xbf16> to vector<8x8xf32>
    %187 = vector.extract_strided_slice %0 {offsets = [5, 0], sizes = [1, 8], strides = [1, 1]} : vector<9x8xf32> to vector<1x8xf32>
    %188 = vector.broadcast %187 : vector<1x8xf32> to vector<8x8xf32>
    %189 = arith.mulf %186, %188 : vector<8x8xf32>
    %c0_113 = arith.constant 0 : index
    %c4 = arith.constant 4 : index
    %c0_114 = arith.constant 0 : index
    %c0_115 = arith.constant 0 : index
    %190 = vector.load %arg1[%c0_113, %c4, %c0_114, %c0_115] : memref<1x10x10x8xbf16, #tpu.memory_space<vmem>>, vector<1x1x8x8xbf16>
    %191 = vector.shape_cast %190 : vector<1x1x8x8xbf16> to vector<8x8xbf16>
    %192 = arith.extf %191 : vector<8x8xbf16> to vector<8x8xf32>
    %193 = vector.extract_strided_slice %0 {offsets = [6, 0], sizes = [1, 8], strides = [1, 1]} : vector<9x8xf32> to vector<1x8xf32>
    %194 = vector.broadcast %193 : vector<1x8xf32> to vector<8x8xf32>
    %195 = arith.mulf %192, %194 : vector<8x8xf32>
    %c0_116 = arith.constant 0 : index
    %c4_117 = arith.constant 4 : index
    %c1_118 = arith.constant 1 : index
    %c0_119 = arith.constant 0 : index
    %196 = vector.load %arg1[%c0_116, %c4_117, %c1_118, %c0_119] : memref<1x10x10x8xbf16, #tpu.memory_space<vmem>>, vector<1x1x8x8xbf16>
    %197 = vector.shape_cast %196 : vector<1x1x8x8xbf16> to vector<8x8xbf16>
    %198 = arith.extf %197 : vector<8x8xbf16> to vector<8x8xf32>
    %199 = vector.extract_strided_slice %0 {offsets = [7, 0], sizes = [1, 8], strides = [1, 1]} : vector<9x8xf32> to vector<1x8xf32>
    %200 = vector.broadcast %199 : vector<1x8xf32> to vector<8x8xf32>
    %201 = arith.mulf %198, %200 : vector<8x8xf32>
    %c0_120 = arith.constant 0 : index
    %c4_121 = arith.constant 4 : index
    %c2_122 = arith.constant 2 : index
    %c0_123 = arith.constant 0 : index
    %202 = vector.load %arg1[%c0_120, %c4_121, %c2_122, %c0_123] : memref<1x10x10x8xbf16, #tpu.memory_space<vmem>>, vector<1x1x8x8xbf16>
    %203 = vector.shape_cast %202 : vector<1x1x8x8xbf16> to vector<8x8xbf16>
    %204 = arith.extf %203 : vector<8x8xbf16> to vector<8x8xf32>
    %205 = vector.extract_strided_slice %0 {offsets = [8, 0], sizes = [1, 8], strides = [1, 1]} : vector<9x8xf32> to vector<1x8xf32>
    %206 = vector.broadcast %205 : vector<1x8xf32> to vector<8x8xf32>
    %207 = arith.mulf %204, %206 : vector<8x8xf32>
    %208 = arith.addf %159, %165 : vector<8x8xf32>
    %209 = arith.addf %171, %177 : vector<8x8xf32>
    %210 = arith.addf %183, %189 : vector<8x8xf32>
    %211 = arith.addf %195, %201 : vector<8x8xf32>
    %212 = arith.addf %208, %209 : vector<8x8xf32>
    %213 = arith.addf %210, %211 : vector<8x8xf32>
    %214 = arith.addf %212, %213 : vector<8x8xf32>
    %215 = arith.addf %214, %207 : vector<8x8xf32>
    %216 = vector.broadcast %1 : vector<1x8xf32> to vector<8x8xf32>
    %217 = arith.addf %215, %216 : vector<8x8xf32>
    %cst_124 = arith.constant 0.000000e+00 : f32
    %218 = vector.broadcast %cst_124 : f32 to vector<8x8xf32>
    %219 = arith.maximumf %217, %218 : vector<8x8xf32>
    %cst_125 = arith.constant dense<0.000000e+00> : vector<8x8xf32>
    %220 = tpu.matmul %219, %2, %cst_125 {dimension_numbers = #tpu.dot_dimension_numbers<[1], [0], [0], [1], [0, 0, 1, 1], [], []>} : vector<8x8xf32>, vector<8x8xf32>, vector<8x8xf32> -> vector<8x8xf32>
    %221 = vector.broadcast %3 : vector<1x8xf32> to vector<8x8xf32>
    %222 = arith.addf %220, %221 : vector<8x8xf32>
    %cst_126 = arith.constant 0.000000e+00 : f32
    %223 = vector.broadcast %cst_126 : f32 to vector<8x8xf32>
    %224 = arith.maximumf %222, %223 : vector<8x8xf32>
    %225 = arith.truncf %224 : vector<8x8xf32> to vector<8x8xbf16>
    %c0_127 = arith.constant 0 : index
    %c2_128 = arith.constant 2 : index
    %c0_129 = arith.constant 0 : index
    %c0_130 = arith.constant 0 : index
    %226 = vector.load %arg6[%c0_127, %c2_128, %c0_129, %c0_130] : memref<1x8x8x8xbf16, #tpu.memory_space<vmem>>, vector<1x1x8x8xbf16>
    %227 = vector.shape_cast %226 : vector<1x1x8x8xbf16> to vector<8x8xbf16>
    %228 = vector.shape_cast %225 : vector<8x8xbf16> to vector<1x1x8x8xbf16>
    tpu.vector_store %arg6[%c0_127, %c2_128, %c0_129, %c0_130], %228 {strides = array<i32>} : memref<1x8x8x8xbf16, #tpu.memory_space<vmem>>, vector<1x1x8x8xbf16>,
    %c0_131 = arith.constant 0 : index
    %c3_132 = arith.constant 3 : index
    %c0_133 = arith.constant 0 : index
    %c0_134 = arith.constant 0 : index
    %229 = vector.load %arg1[%c0_131, %c3_132, %c0_133, %c0_134] : memref<1x10x10x8xbf16, #tpu.memory_space<vmem>>, vector<1x1x8x8xbf16>
    %230 = vector.shape_cast %229 : vector<1x1x8x8xbf16> to vector<8x8xbf16>
    %231 = arith.extf %230 : vector<8x8xbf16> to vector<8x8xf32>
    %232 = vector.extract_strided_slice %0 {offsets = [0, 0], sizes = [1, 8], strides = [1, 1]} : vector<9x8xf32> to vector<1x8xf32>
    %233 = vector.broadcast %232 : vector<1x8xf32> to vector<8x8xf32>
    %234 = arith.mulf %231, %233 : vector<8x8xf32>
    %c0_135 = arith.constant 0 : index
    %c3_136 = arith.constant 3 : index
    %c1_137 = arith.constant 1 : index
    %c0_138 = arith.constant 0 : index
    %235 = vector.load %arg1[%c0_135, %c3_136, %c1_137, %c0_138] : memref<1x10x10x8xbf16, #tpu.memory_space<vmem>>, vector<1x1x8x8xbf16>
    %236 = vector.shape_cast %235 : vector<1x1x8x8xbf16> to vector<8x8xbf16>
    %237 = arith.extf %236 : vector<8x8xbf16> to vector<8x8xf32>
    %238 = vector.extract_strided_slice %0 {offsets = [1, 0], sizes = [1, 8], strides = [1, 1]} : vector<9x8xf32> to vector<1x8xf32>
    %239 = vector.broadcast %238 : vector<1x8xf32> to vector<8x8xf32>
    %240 = arith.mulf %237, %239 : vector<8x8xf32>
    %c0_139 = arith.constant 0 : index
    %c3_140 = arith.constant 3 : index
    %c2_141 = arith.constant 2 : index
    %c0_142 = arith.constant 0 : index
    %241 = vector.load %arg1[%c0_139, %c3_140, %c2_141, %c0_142] : memref<1x10x10x8xbf16, #tpu.memory_space<vmem>>, vector<1x1x8x8xbf16>
    %242 = vector.shape_cast %241 : vector<1x1x8x8xbf16> to vector<8x8xbf16>
    %243 = arith.extf %242 : vector<8x8xbf16> to vector<8x8xf32>
    %244 = vector.extract_strided_slice %0 {offsets = [2, 0], sizes = [1, 8], strides = [1, 1]} : vector<9x8xf32> to vector<1x8xf32>
    %245 = vector.broadcast %244 : vector<1x8xf32> to vector<8x8xf32>
    %246 = arith.mulf %243, %245 : vector<8x8xf32>
    %c0_143 = arith.constant 0 : index
    %c4_144 = arith.constant 4 : index
    %c0_145 = arith.constant 0 : index
    %c0_146 = arith.constant 0 : index
    %247 = vector.load %arg1[%c0_143, %c4_144, %c0_145, %c0_146] : memref<1x10x10x8xbf16, #tpu.memory_space<vmem>>, vector<1x1x8x8xbf16>
    %248 = vector.shape_cast %247 : vector<1x1x8x8xbf16> to vector<8x8xbf16>
    %249 = arith.extf %248 : vector<8x8xbf16> to vector<8x8xf32>
    %250 = vector.extract_strided_slice %0 {offsets = [3, 0], sizes = [1, 8], strides = [1, 1]} : vector<9x8xf32> to vector<1x8xf32>
    %251 = vector.broadcast %250 : vector<1x8xf32> to vector<8x8xf32>
    %252 = arith.mulf %249, %251 : vector<8x8xf32>
    %c0_147 = arith.constant 0 : index
    %c4_148 = arith.constant 4 : index
    %c1_149 = arith.constant 1 : index
    %c0_150 = arith.constant 0 : index
    %253 = vector.load %arg1[%c0_147, %c4_148, %c1_149, %c0_150] : memref<1x10x10x8xbf16, #tpu.memory_space<vmem>>, vector<1x1x8x8xbf16>
    %254 = vector.shape_cast %253 : vector<1x1x8x8xbf16> to vector<8x8xbf16>
    %255 = arith.extf %254 : vector<8x8xbf16> to vector<8x8xf32>
    %256 = vector.extract_strided_slice %0 {offsets = [4, 0], sizes = [1, 8], strides = [1, 1]} : vector<9x8xf32> to vector<1x8xf32>
    %257 = vector.broadcast %256 : vector<1x8xf32> to vector<8x8xf32>
    %258 = arith.mulf %255, %257 : vector<8x8xf32>
    %c0_151 = arith.constant 0 : index
    %c4_152 = arith.constant 4 : index
    %c2_153 = arith.constant 2 : index
    %c0_154 = arith.constant 0 : index
    %259 = vector.load %arg1[%c0_151, %c4_152, %c2_153, %c0_154] : memref<1x10x10x8xbf16, #tpu.memory_space<vmem>>, vector<1x1x8x8xbf16>
    %260 = vector.shape_cast %259 : vector<1x1x8x8xbf16> to vector<8x8xbf16>
    %261 = arith.extf %260 : vector<8x8xbf16> to vector<8x8xf32>
    %262 = vector.extract_strided_slice %0 {offsets = [5, 0], sizes = [1, 8], strides = [1, 1]} : vector<9x8xf32> to vector<1x8xf32>
    %263 = vector.broadcast %262 : vector<1x8xf32> to vector<8x8xf32>
    %264 = arith.mulf %261, %263 : vector<8x8xf32>
    %c0_155 = arith.constant 0 : index
    %c5 = arith.constant 5 : index
    %c0_156 = arith.constant 0 : index
    %c0_157 = arith.constant 0 : index
    %265 = vector.load %arg1[%c0_155, %c5, %c0_156, %c0_157] : memref<1x10x10x8xbf16, #tpu.memory_space<vmem>>, vector<1x1x8x8xbf16>
    %266 = vector.shape_cast %265 : vector<1x1x8x8xbf16> to vector<8x8xbf16>
    %267 = arith.extf %266 : vector<8x8xbf16> to vector<8x8xf32>
    %268 = vector.extract_strided_slice %0 {offsets = [6, 0], sizes = [1, 8], strides = [1, 1]} : vector<9x8xf32> to vector<1x8xf32>
    %269 = vector.broadcast %268 : vector<1x8xf32> to vector<8x8xf32>
    %270 = arith.mulf %267, %269 : vector<8x8xf32>
    %c0_158 = arith.constant 0 : index
    %c5_159 = arith.constant 5 : index
    %c1_160 = arith.constant 1 : index
    %c0_161 = arith.constant 0 : index
    %271 = vector.load %arg1[%c0_158, %c5_159, %c1_160, %c0_161] : memref<1x10x10x8xbf16, #tpu.memory_space<vmem>>, vector<1x1x8x8xbf16>
    %272 = vector.shape_cast %271 : vector<1x1x8x8xbf16> to vector<8x8xbf16>
    %273 = arith.extf %272 : vector<8x8xbf16> to vector<8x8xf32>
    %274 = vector.extract_strided_slice %0 {offsets = [7, 0], sizes = [1, 8], strides = [1, 1]} : vector<9x8xf32> to vector<1x8xf32>
    %275 = vector.broadcast %274 : vector<1x8xf32> to vector<8x8xf32>
    %276 = arith.mulf %273, %275 : vector<8x8xf32>
    %c0_162 = arith.constant 0 : index
    %c5_163 = arith.constant 5 : index
    %c2_164 = arith.constant 2 : index
    %c0_165 = arith.constant 0 : index
    %277 = vector.load %arg1[%c0_162, %c5_163, %c2_164, %c0_165] : memref<1x10x10x8xbf16, #tpu.memory_space<vmem>>, vector<1x1x8x8xbf16>
    %278 = vector.shape_cast %277 : vector<1x1x8x8xbf16> to vector<8x8xbf16>
    %279 = arith.extf %278 : vector<8x8xbf16> to vector<8x8xf32>
    %280 = vector.extract_strided_slice %0 {offsets = [8, 0], sizes = [1, 8], strides = [1, 1]} : vector<9x8xf32> to vector<1x8xf32>
    %281 = vector.broadcast %280 : vector<1x8xf32> to vector<8x8xf32>
    %282 = arith.mulf %279, %281 : vector<8x8xf32>
    %283 = arith.addf %234, %240 : vector<8x8xf32>
    %284 = arith.addf %246, %252 : vector<8x8xf32>
    %285 = arith.addf %258, %264 : vector<8x8xf32>
    %286 = arith.addf %270, %276 : vector<8x8xf32>
    %287 = arith.addf %283, %284 : vector<8x8xf32>
    %288 = arith.addf %285, %286 : vector<8x8xf32>
    %289 = arith.addf %287, %288 : vector<8x8xf32>
    %290 = arith.addf %289, %282 : vector<8x8xf32>
    %291 = vector.broadcast %1 : vector<1x8xf32> to vector<8x8xf32>
    %292 = arith.addf %290, %291 : vector<8x8xf32>
    %cst_166 = arith.constant 0.000000e+00 : f32
    %293 = vector.broadcast %cst_166 : f32 to vector<8x8xf32>
    %294 = arith.maximumf %292, %293 : vector<8x8xf32>
    %cst_167 = arith.constant dense<0.000000e+00> : vector<8x8xf32>
    %295 = tpu.matmul %294, %2, %cst_167 {dimension_numbers = #tpu.dot_dimension_numbers<[1], [0], [0], [1], [0, 0, 1, 1], [], []>} : vector<8x8xf32>, vector<8x8xf32>, vector<8x8xf32> -> vector<8x8xf32>
    %296 = vector.broadcast %3 : vector<1x8xf32> to vector<8x8xf32>
    %297 = arith.addf %295, %296 : vector<8x8xf32>
    %cst_168 = arith.constant 0.000000e+00 : f32
    %298 = vector.broadcast %cst_168 : f32 to vector<8x8xf32>
    %299 = arith.maximumf %297, %298 : vector<8x8xf32>
    %300 = arith.truncf %299 : vector<8x8xf32> to vector<8x8xbf16>
    %c0_169 = arith.constant 0 : index
    %c3_170 = arith.constant 3 : index
    %c0_171 = arith.constant 0 : index
    %c0_172 = arith.constant 0 : index
    %301 = vector.load %arg6[%c0_169, %c3_170, %c0_171, %c0_172] : memref<1x8x8x8xbf16, #tpu.memory_space<vmem>>, vector<1x1x8x8xbf16>
    %302 = vector.shape_cast %301 : vector<1x1x8x8xbf16> to vector<8x8xbf16>
    %303 = vector.shape_cast %300 : vector<8x8xbf16> to vector<1x1x8x8xbf16>
    tpu.vector_store %arg6[%c0_169, %c3_170, %c0_171, %c0_172], %303 {strides = array<i32>} : memref<1x8x8x8xbf16, #tpu.memory_space<vmem>>, vector<1x1x8x8xbf16>,
    %c0_173 = arith.constant 0 : index
    %c4_174 = arith.constant 4 : index
    %c0_175 = arith.constant 0 : index
    %c0_176 = arith.constant 0 : index
    %304 = vector.load %arg1[%c0_173, %c4_174, %c0_175, %c0_176] : memref<1x10x10x8xbf16, #tpu.memory_space<vmem>>, vector<1x1x8x8xbf16>
    %305 = vector.shape_cast %304 : vector<1x1x8x8xbf16> to vector<8x8xbf16>
    %306 = arith.extf %305 : vector<8x8xbf16> to vector<8x8xf32>
    %307 = vector.extract_strided_slice %0 {offsets = [0, 0], sizes = [1, 8], strides = [1, 1]} : vector<9x8xf32> to vector<1x8xf32>
    %308 = vector.broadcast %307 : vector<1x8xf32> to vector<8x8xf32>
    %309 = arith.mulf %306, %308 : vector<8x8xf32>
    %c0_177 = arith.constant 0 : index
    %c4_178 = arith.constant 4 : index
    %c1_179 = arith.constant 1 : index
    %c0_180 = arith.constant 0 : index
    %310 = vector.load %arg1[%c0_177, %c4_178, %c1_179, %c0_180] : memref<1x10x10x8xbf16, #tpu.memory_space<vmem>>, vector<1x1x8x8xbf16>
    %311 = vector.shape_cast %310 : vector<1x1x8x8xbf16> to vector<8x8xbf16>
    %312 = arith.extf %311 : vector<8x8xbf16> to vector<8x8xf32>
    %313 = vector.extract_strided_slice %0 {offsets = [1, 0], sizes = [1, 8], strides = [1, 1]} : vector<9x8xf32> to vector<1x8xf32>
    %314 = vector.broadcast %313 : vector<1x8xf32> to vector<8x8xf32>
    %315 = arith.mulf %312, %314 : vector<8x8xf32>
    %c0_181 = arith.constant 0 : index
    %c4_182 = arith.constant 4 : index
    %c2_183 = arith.constant 2 : index
    %c0_184 = arith.constant 0 : index
    %316 = vector.load %arg1[%c0_181, %c4_182, %c2_183, %c0_184] : memref<1x10x10x8xbf16, #tpu.memory_space<vmem>>, vector<1x1x8x8xbf16>
    %317 = vector.shape_cast %316 : vector<1x1x8x8xbf16> to vector<8x8xbf16>
    %318 = arith.extf %317 : vector<8x8xbf16> to vector<8x8xf32>
    %319 = vector.extract_strided_slice %0 {offsets = [2, 0], sizes = [1, 8], strides = [1, 1]} : vector<9x8xf32> to vector<1x8xf32>
    %320 = vector.broadcast %319 : vector<1x8xf32> to vector<8x8xf32>
    %321 = arith.mulf %318, %320 : vector<8x8xf32>
    %c0_185 = arith.constant 0 : index
    %c5_186 = arith.constant 5 : index
    %c0_187 = arith.constant 0 : index
    %c0_188 = arith.constant 0 : index
    %322 = vector.load %arg1[%c0_185, %c5_186, %c0_187, %c0_188] : memref<1x10x10x8xbf16, #tpu.memory_space<vmem>>, vector<1x1x8x8xbf16>
    %323 = vector.shape_cast %322 : vector<1x1x8x8xbf16> to vector<8x8xbf16>
    %324 = arith.extf %323 : vector<8x8xbf16> to vector<8x8xf32>
    %325 = vector.extract_strided_slice %0 {offsets = [3, 0], sizes = [1, 8], strides = [1, 1]} : vector<9x8xf32> to vector<1x8xf32>
    %326 = vector.broadcast %325 : vector<1x8xf32> to vector<8x8xf32>
    %327 = arith.mulf %324, %326 : vector<8x8xf32>
    %c0_189 = arith.constant 0 : index
    %c5_190 = arith.constant 5 : index
    %c1_191 = arith.constant 1 : index
    %c0_192 = arith.constant 0 : index
    %328 = vector.load %arg1[%c0_189, %c5_190, %c1_191, %c0_192] : memref<1x10x10x8xbf16, #tpu.memory_space<vmem>>, vector<1x1x8x8xbf16>
    %329 = vector.shape_cast %328 : vector<1x1x8x8xbf16> to vector<8x8xbf16>
    %330 = arith.extf %329 : vector<8x8xbf16> to vector<8x8xf32>
    %331 = vector.extract_strided_slice %0 {offsets = [4, 0], sizes = [1, 8], strides = [1, 1]} : vector<9x8xf32> to vector<1x8xf32>
    %332 = vector.broadcast %331 : vector<1x8xf32> to vector<8x8xf32>
    %333 = arith.mulf %330, %332 : vector<8x8xf32>
    %c0_193 = arith.constant 0 : index
    %c5_194 = arith.constant 5 : index
    %c2_195 = arith.constant 2 : index
    %c0_196 = arith.constant 0 : index
    %334 = vector.load %arg1[%c0_193, %c5_194, %c2_195, %c0_196] : memref<1x10x10x8xbf16, #tpu.memory_space<vmem>>, vector<1x1x8x8xbf16>
    %335 = vector.shape_cast %334 : vector<1x1x8x8xbf16> to vector<8x8xbf16>
    %336 = arith.extf %335 : vector<8x8xbf16> to vector<8x8xf32>
    %337 = vector.extract_strided_slice %0 {offsets = [5, 0], sizes = [1, 8], strides = [1, 1]} : vector<9x8xf32> to vector<1x8xf32>
    %338 = vector.broadcast %337 : vector<1x8xf32> to vector<8x8xf32>
    %339 = arith.mulf %336, %338 : vector<8x8xf32>
    %c0_197 = arith.constant 0 : index
    %c6 = arith.constant 6 : index
    %c0_198 = arith.constant 0 : index
    %c0_199 = arith.constant 0 : index
    %340 = vector.load %arg1[%c0_197, %c6, %c0_198, %c0_199] : memref<1x10x10x8xbf16, #tpu.memory_space<vmem>>, vector<1x1x8x8xbf16>
    %341 = vector.shape_cast %340 : vector<1x1x8x8xbf16> to vector<8x8xbf16>
    %342 = arith.extf %341 : vector<8x8xbf16> to vector<8x8xf32>
    %343 = vector.extract_strided_slice %0 {offsets = [6, 0], sizes = [1, 8], strides = [1, 1]} : vector<9x8xf32> to vector<1x8xf32>
    %344 = vector.broadcast %343 : vector<1x8xf32> to vector<8x8xf32>
    %345 = arith.mulf %342, %344 : vector<8x8xf32>
    %c0_200 = arith.constant 0 : index
    %c6_201 = arith.constant 6 : index
    %c1_202 = arith.constant 1 : index
    %c0_203 = arith.constant 0 : index
    %346 = vector.load %arg1[%c0_200, %c6_201, %c1_202, %c0_203] : memref<1x10x10x8xbf16, #tpu.memory_space<vmem>>, vector<1x1x8x8xbf16>
    %347 = vector.shape_cast %346 : vector<1x1x8x8xbf16> to vector<8x8xbf16>
    %348 = arith.extf %347 : vector<8x8xbf16> to vector<8x8xf32>
    %349 = vector.extract_strided_slice %0 {offsets = [7, 0], sizes = [1, 8], strides = [1, 1]} : vector<9x8xf32> to vector<1x8xf32>
    %350 = vector.broadcast %349 : vector<1x8xf32> to vector<8x8xf32>
    %351 = arith.mulf %348, %350 : vector<8x8xf32>
    %c0_204 = arith.constant 0 : index
    %c6_205 = arith.constant 6 : index
    %c2_206 = arith.constant 2 : index
    %c0_207 = arith.constant 0 : index
    %352 = vector.load %arg1[%c0_204, %c6_205, %c2_206, %c0_207] : memref<1x10x10x8xbf16, #tpu.memory_space<vmem>>, vector<1x1x8x8xbf16>
    %353 = vector.shape_cast %352 : vector<1x1x8x8xbf16> to vector<8x8xbf16>
    %354 = arith.extf %353 : vector<8x8xbf16> to vector<8x8xf32>
    %355 = vector.extract_strided_slice %0 {offsets = [8, 0], sizes = [1, 8], strides = [1, 1]} : vector<9x8xf32> to vector<1x8xf32>
    %356 = vector.broadcast %355 : vector<1x8xf32> to vector<8x8xf32>
    %357 = arith.mulf %354, %356 : vector<8x8xf32>
    %358 = arith.addf %309, %315 : vector<8x8xf32>
    %359 = arith.addf %321, %327 : vector<8x8xf32>
    %360 = arith.addf %333, %339 : vector<8x8xf32>
    %361 = arith.addf %345, %351 : vector<8x8xf32>
    %362 = arith.addf %358, %359 : vector<8x8xf32>
    %363 = arith.addf %360, %361 : vector<8x8xf32>
    %364 = arith.addf %362, %363 : vector<8x8xf32>
    %365 = arith.addf %364, %357 : vector<8x8xf32>
    %366 = vector.broadcast %1 : vector<1x8xf32> to vector<8x8xf32>
    %367 = arith.addf %365, %366 : vector<8x8xf32>
    %cst_208 = arith.constant 0.000000e+00 : f32
    %368 = vector.broadcast %cst_208 : f32 to vector<8x8xf32>
    %369 = arith.maximumf %367, %368 : vector<8x8xf32>
    %cst_209 = arith.constant dense<0.000000e+00> : vector<8x8xf32>
    %370 = tpu.matmul %369, %2, %cst_209 {dimension_numbers = #tpu.dot_dimension_numbers<[1], [0], [0], [1], [0, 0, 1, 1], [], []>} : vector<8x8xf32>, vector<8x8xf32>, vector<8x8xf32> -> vector<8x8xf32>
    %371 = vector.broadcast %3 : vector<1x8xf32> to vector<8x8xf32>
    %372 = arith.addf %370, %371 : vector<8x8xf32>
    %cst_210 = arith.constant 0.000000e+00 : f32
    %373 = vector.broadcast %cst_210 : f32 to vector<8x8xf32>
    %374 = arith.maximumf %372, %373 : vector<8x8xf32>
    %375 = arith.truncf %374 : vector<8x8xf32> to vector<8x8xbf16>
    %c0_211 = arith.constant 0 : index
    %c4_212 = arith.constant 4 : index
    %c0_213 = arith.constant 0 : index
    %c0_214 = arith.constant 0 : index
    %376 = vector.load %arg6[%c0_211, %c4_212, %c0_213, %c0_214] : memref<1x8x8x8xbf16, #tpu.memory_space<vmem>>, vector<1x1x8x8xbf16>
    %377 = vector.shape_cast %376 : vector<1x1x8x8xbf16> to vector<8x8xbf16>
    %378 = vector.shape_cast %375 : vector<8x8xbf16> to vector<1x1x8x8xbf16>
    tpu.vector_store %arg6[%c0_211, %c4_212, %c0_213, %c0_214], %378 {strides = array<i32>} : memref<1x8x8x8xbf16, #tpu.memory_space<vmem>>, vector<1x1x8x8xbf16>,
    %c0_215 = arith.constant 0 : index
    %c5_216 = arith.constant 5 : index
    %c0_217 = arith.constant 0 : index
    %c0_218 = arith.constant 0 : index
    %379 = vector.load %arg1[%c0_215, %c5_216, %c0_217, %c0_218] : memref<1x10x10x8xbf16, #tpu.memory_space<vmem>>, vector<1x1x8x8xbf16>
    %380 = vector.shape_cast %379 : vector<1x1x8x8xbf16> to vector<8x8xbf16>
    %381 = arith.extf %380 : vector<8x8xbf16> to vector<8x8xf32>
    %382 = vector.extract_strided_slice %0 {offsets = [0, 0], sizes = [1, 8], strides = [1, 1]} : vector<9x8xf32> to vector<1x8xf32>
    %383 = vector.broadcast %382 : vector<1x8xf32> to vector<8x8xf32>
    %384 = arith.mulf %381, %383 : vector<8x8xf32>
    %c0_219 = arith.constant 0 : index
    %c5_220 = arith.constant 5 : index
    %c1_221 = arith.constant 1 : index
    %c0_222 = arith.constant 0 : index
    %385 = vector.load %arg1[%c0_219, %c5_220, %c1_221, %c0_222] : memref<1x10x10x8xbf16, #tpu.memory_space<vmem>>, vector<1x1x8x8xbf16>
    %386 = vector.shape_cast %385 : vector<1x1x8x8xbf16> to vector<8x8xbf16>
    %387 = arith.extf %386 : vector<8x8xbf16> to vector<8x8xf32>
    %388 = vector.extract_strided_slice %0 {offsets = [1, 0], sizes = [1, 8], strides = [1, 1]} : vector<9x8xf32> to vector<1x8xf32>
    %389 = vector.broadcast %388 : vector<1x8xf32> to vector<8x8xf32>
    %390 = arith.mulf %387, %389 : vector<8x8xf32>
    %c0_223 = arith.constant 0 : index
    %c5_224 = arith.constant 5 : index
    %c2_225 = arith.constant 2 : index
    %c0_226 = arith.constant 0 : index
    %391 = vector.load %arg1[%c0_223, %c5_224, %c2_225, %c0_226] : memref<1x10x10x8xbf16, #tpu.memory_space<vmem>>, vector<1x1x8x8xbf16>
    %392 = vector.shape_cast %391 : vector<1x1x8x8xbf16> to vector<8x8xbf16>
    %393 = arith.extf %392 : vector<8x8xbf16> to vector<8x8xf32>
    %394 = vector.extract_strided_slice %0 {offsets = [2, 0], sizes = [1, 8], strides = [1, 1]} : vector<9x8xf32> to vector<1x8xf32>
    %395 = vector.broadcast %394 : vector<1x8xf32> to vector<8x8xf32>
    %396 = arith.mulf %393, %395 : vector<8x8xf32>
    %c0_227 = arith.constant 0 : index
    %c6_228 = arith.constant 6 : index
    %c0_229 = arith.constant 0 : index
    %c0_230 = arith.constant 0 : index
    %397 = vector.load %arg1[%c0_227, %c6_228, %c0_229, %c0_230] : memref<1x10x10x8xbf16, #tpu.memory_space<vmem>>, vector<1x1x8x8xbf16>
    %398 = vector.shape_cast %397 : vector<1x1x8x8xbf16> to vector<8x8xbf16>
    %399 = arith.extf %398 : vector<8x8xbf16> to vector<8x8xf32>
    %400 = vector.extract_strided_slice %0 {offsets = [3, 0], sizes = [1, 8], strides = [1, 1]} : vector<9x8xf32> to vector<1x8xf32>
    %401 = vector.broadcast %400 : vector<1x8xf32> to vector<8x8xf32>
    %402 = arith.mulf %399, %401 : vector<8x8xf32>
    %c0_231 = arith.constant 0 : index
    %c6_232 = arith.constant 6 : index
    %c1_233 = arith.constant 1 : index
    %c0_234 = arith.constant 0 : index
    %403 = vector.load %arg1[%c0_231, %c6_232, %c1_233, %c0_234] : memref<1x10x10x8xbf16, #tpu.memory_space<vmem>>, vector<1x1x8x8xbf16>
    %404 = vector.shape_cast %403 : vector<1x1x8x8xbf16> to vector<8x8xbf16>
    %405 = arith.extf %404 : vector<8x8xbf16> to vector<8x8xf32>
    %406 = vector.extract_strided_slice %0 {offsets = [4, 0], sizes = [1, 8], strides = [1, 1]} : vector<9x8xf32> to vector<1x8xf32>
    %407 = vector.broadcast %406 : vector<1x8xf32> to vector<8x8xf32>
    %408 = arith.mulf %405, %407 : vector<8x8xf32>
    %c0_235 = arith.constant 0 : index
    %c6_236 = arith.constant 6 : index
    %c2_237 = arith.constant 2 : index
    %c0_238 = arith.constant 0 : index
    %409 = vector.load %arg1[%c0_235, %c6_236, %c2_237, %c0_238] : memref<1x10x10x8xbf16, #tpu.memory_space<vmem>>, vector<1x1x8x8xbf16>
    %410 = vector.shape_cast %409 : vector<1x1x8x8xbf16> to vector<8x8xbf16>
    %411 = arith.extf %410 : vector<8x8xbf16> to vector<8x8xf32>
    %412 = vector.extract_strided_slice %0 {offsets = [5, 0], sizes = [1, 8], strides = [1, 1]} : vector<9x8xf32> to vector<1x8xf32>
    %413 = vector.broadcast %412 : vector<1x8xf32> to vector<8x8xf32>
    %414 = arith.mulf %411, %413 : vector<8x8xf32>
    %c0_239 = arith.constant 0 : index
    %c7 = arith.constant 7 : index
    %c0_240 = arith.constant 0 : index
    %c0_241 = arith.constant 0 : index
    %415 = vector.load %arg1[%c0_239, %c7, %c0_240, %c0_241] : memref<1x10x10x8xbf16, #tpu.memory_space<vmem>>, vector<1x1x8x8xbf16>
    %416 = vector.shape_cast %415 : vector<1x1x8x8xbf16> to vector<8x8xbf16>
    %417 = arith.extf %416 : vector<8x8xbf16> to vector<8x8xf32>
    %418 = vector.extract_strided_slice %0 {offsets = [6, 0], sizes = [1, 8], strides = [1, 1]} : vector<9x8xf32> to vector<1x8xf32>
    %419 = vector.broadcast %418 : vector<1x8xf32> to vector<8x8xf32>
    %420 = arith.mulf %417, %419 : vector<8x8xf32>
    %c0_242 = arith.constant 0 : index
    %c7_243 = arith.constant 7 : index
    %c1_244 = arith.constant 1 : index
    %c0_245 = arith.constant 0 : index
    %421 = vector.load %arg1[%c0_242, %c7_243, %c1_244, %c0_245] : memref<1x10x10x8xbf16, #tpu.memory_space<vmem>>, vector<1x1x8x8xbf16>
    %422 = vector.shape_cast %421 : vector<1x1x8x8xbf16> to vector<8x8xbf16>
    %423 = arith.extf %422 : vector<8x8xbf16> to vector<8x8xf32>
    %424 = vector.extract_strided_slice %0 {offsets = [7, 0], sizes = [1, 8], strides = [1, 1]} : vector<9x8xf32> to vector<1x8xf32>
    %425 = vector.broadcast %424 : vector<1x8xf32> to vector<8x8xf32>
    %426 = arith.mulf %423, %425 : vector<8x8xf32>
    %c0_246 = arith.constant 0 : index
    %c7_247 = arith.constant 7 : index
    %c2_248 = arith.constant 2 : index
    %c0_249 = arith.constant 0 : index
    %427 = vector.load %arg1[%c0_246, %c7_247, %c2_248, %c0_249] : memref<1x10x10x8xbf16, #tpu.memory_space<vmem>>, vector<1x1x8x8xbf16>
    %428 = vector.shape_cast %427 : vector<1x1x8x8xbf16> to vector<8x8xbf16>
    %429 = arith.extf %428 : vector<8x8xbf16> to vector<8x8xf32>
    %430 = vector.extract_strided_slice %0 {offsets = [8, 0], sizes = [1, 8], strides = [1, 1]} : vector<9x8xf32> to vector<1x8xf32>
    %431 = vector.broadcast %430 : vector<1x8xf32> to vector<8x8xf32>
    %432 = arith.mulf %429, %431 : vector<8x8xf32>
    %433 = arith.addf %384, %390 : vector<8x8xf32>
    %434 = arith.addf %396, %402 : vector<8x8xf32>
    %435 = arith.addf %408, %414 : vector<8x8xf32>
    %436 = arith.addf %420, %426 : vector<8x8xf32>
    %437 = arith.addf %433, %434 : vector<8x8xf32>
    %438 = arith.addf %435, %436 : vector<8x8xf32>
    %439 = arith.addf %437, %438 : vector<8x8xf32>
    %440 = arith.addf %439, %432 : vector<8x8xf32>
    %441 = vector.broadcast %1 : vector<1x8xf32> to vector<8x8xf32>
    %442 = arith.addf %440, %441 : vector<8x8xf32>
    %cst_250 = arith.constant 0.000000e+00 : f32
    %443 = vector.broadcast %cst_250 : f32 to vector<8x8xf32>
    %444 = arith.maximumf %442, %443 : vector<8x8xf32>
    %cst_251 = arith.constant dense<0.000000e+00> : vector<8x8xf32>
    %445 = tpu.matmul %444, %2, %cst_251 {dimension_numbers = #tpu.dot_dimension_numbers<[1], [0], [0], [1], [0, 0, 1, 1], [], []>} : vector<8x8xf32>, vector<8x8xf32>, vector<8x8xf32> -> vector<8x8xf32>
    %446 = vector.broadcast %3 : vector<1x8xf32> to vector<8x8xf32>
    %447 = arith.addf %445, %446 : vector<8x8xf32>
    %cst_252 = arith.constant 0.000000e+00 : f32
    %448 = vector.broadcast %cst_252 : f32 to vector<8x8xf32>
    %449 = arith.maximumf %447, %448 : vector<8x8xf32>
    %450 = arith.truncf %449 : vector<8x8xf32> to vector<8x8xbf16>
    %c0_253 = arith.constant 0 : index
    %c5_254 = arith.constant 5 : index
    %c0_255 = arith.constant 0 : index
    %c0_256 = arith.constant 0 : index
    %451 = vector.load %arg6[%c0_253, %c5_254, %c0_255, %c0_256] : memref<1x8x8x8xbf16, #tpu.memory_space<vmem>>, vector<1x1x8x8xbf16>
    %452 = vector.shape_cast %451 : vector<1x1x8x8xbf16> to vector<8x8xbf16>
    %453 = vector.shape_cast %450 : vector<8x8xbf16> to vector<1x1x8x8xbf16>
    tpu.vector_store %arg6[%c0_253, %c5_254, %c0_255, %c0_256], %453 {strides = array<i32>} : memref<1x8x8x8xbf16, #tpu.memory_space<vmem>>, vector<1x1x8x8xbf16>,
    %c0_257 = arith.constant 0 : index
    %c6_258 = arith.constant 6 : index
    %c0_259 = arith.constant 0 : index
    %c0_260 = arith.constant 0 : index
    %454 = vector.load %arg1[%c0_257, %c6_258, %c0_259, %c0_260] : memref<1x10x10x8xbf16, #tpu.memory_space<vmem>>, vector<1x1x8x8xbf16>
    %455 = vector.shape_cast %454 : vector<1x1x8x8xbf16> to vector<8x8xbf16>
    %456 = arith.extf %455 : vector<8x8xbf16> to vector<8x8xf32>
    %457 = vector.extract_strided_slice %0 {offsets = [0, 0], sizes = [1, 8], strides = [1, 1]} : vector<9x8xf32> to vector<1x8xf32>
    %458 = vector.broadcast %457 : vector<1x8xf32> to vector<8x8xf32>
    %459 = arith.mulf %456, %458 : vector<8x8xf32>
    %c0_261 = arith.constant 0 : index
    %c6_262 = arith.constant 6 : index
    %c1_263 = arith.constant 1 : index
    %c0_264 = arith.constant 0 : index
    %460 = vector.load %arg1[%c0_261, %c6_262, %c1_263, %c0_264] : memref<1x10x10x8xbf16, #tpu.memory_space<vmem>>, vector<1x1x8x8xbf16>
    %461 = vector.shape_cast %460 : vector<1x1x8x8xbf16> to vector<8x8xbf16>
    %462 = arith.extf %461 : vector<8x8xbf16> to vector<8x8xf32>
    %463 = vector.extract_strided_slice %0 {offsets = [1, 0], sizes = [1, 8], strides = [1, 1]} : vector<9x8xf32> to vector<1x8xf32>
    %464 = vector.broadcast %463 : vector<1x8xf32> to vector<8x8xf32>
    %465 = arith.mulf %462, %464 : vector<8x8xf32>
    %c0_265 = arith.constant 0 : index
    %c6_266 = arith.constant 6 : index
    %c2_267 = arith.constant 2 : index
    %c0_268 = arith.constant 0 : index
    %466 = vector.load %arg1[%c0_265, %c6_266, %c2_267, %c0_268] : memref<1x10x10x8xbf16, #tpu.memory_space<vmem>>, vector<1x1x8x8xbf16>
    %467 = vector.shape_cast %466 : vector<1x1x8x8xbf16> to vector<8x8xbf16>
    %468 = arith.extf %467 : vector<8x8xbf16> to vector<8x8xf32>
    %469 = vector.extract_strided_slice %0 {offsets = [2, 0], sizes = [1, 8], strides = [1, 1]} : vector<9x8xf32> to vector<1x8xf32>
    %470 = vector.broadcast %469 : vector<1x8xf32> to vector<8x8xf32>
    %471 = arith.mulf %468, %470 : vector<8x8xf32>
    %c0_269 = arith.constant 0 : index
    %c7_270 = arith.constant 7 : index
    %c0_271 = arith.constant 0 : index
    %c0_272 = arith.constant 0 : index
    %472 = vector.load %arg1[%c0_269, %c7_270, %c0_271, %c0_272] : memref<1x10x10x8xbf16, #tpu.memory_space<vmem>>, vector<1x1x8x8xbf16>
    %473 = vector.shape_cast %472 : vector<1x1x8x8xbf16> to vector<8x8xbf16>
    %474 = arith.extf %473 : vector<8x8xbf16> to vector<8x8xf32>
    %475 = vector.extract_strided_slice %0 {offsets = [3, 0], sizes = [1, 8], strides = [1, 1]} : vector<9x8xf32> to vector<1x8xf32>
    %476 = vector.broadcast %475 : vector<1x8xf32> to vector<8x8xf32>
    %477 = arith.mulf %474, %476 : vector<8x8xf32>
    %c0_273 = arith.constant 0 : index
    %c7_274 = arith.constant 7 : index
    %c1_275 = arith.constant 1 : index
    %c0_276 = arith.constant 0 : index
    %478 = vector.load %arg1[%c0_273, %c7_274, %c1_275, %c0_276] : memref<1x10x10x8xbf16, #tpu.memory_space<vmem>>, vector<1x1x8x8xbf16>
    %479 = vector.shape_cast %478 : vector<1x1x8x8xbf16> to vector<8x8xbf16>
    %480 = arith.extf %479 : vector<8x8xbf16> to vector<8x8xf32>
    %481 = vector.extract_strided_slice %0 {offsets = [4, 0], sizes = [1, 8], strides = [1, 1]} : vector<9x8xf32> to vector<1x8xf32>
    %482 = vector.broadcast %481 : vector<1x8xf32> to vector<8x8xf32>
    %483 = arith.mulf %480, %482 : vector<8x8xf32>
    %c0_277 = arith.constant 0 : index
    %c7_278 = arith.constant 7 : index
    %c2_279 = arith.constant 2 : index
    %c0_280 = arith.constant 0 : index
    %484 = vector.load %arg1[%c0_277, %c7_278, %c2_279, %c0_280] : memref<1x10x10x8xbf16, #tpu.memory_space<vmem>>, vector<1x1x8x8xbf16>
    %485 = vector.shape_cast %484 : vector<1x1x8x8xbf16> to vector<8x8xbf16>
    %486 = arith.extf %485 : vector<8x8xbf16> to vector<8x8xf32>
    %487 = vector.extract_strided_slice %0 {offsets = [5, 0], sizes = [1, 8], strides = [1, 1]} : vector<9x8xf32> to vector<1x8xf32>
    %488 = vector.broadcast %487 : vector<1x8xf32> to vector<8x8xf32>
    %489 = arith.mulf %486, %488 : vector<8x8xf32>
    %c0_281 = arith.constant 0 : index
    %c8 = arith.constant 8 : index
    %c0_282 = arith.constant 0 : index
    %c0_283 = arith.constant 0 : index
    %490 = vector.load %arg1[%c0_281, %c8, %c0_282, %c0_283] : memref<1x10x10x8xbf16, #tpu.memory_space<vmem>>, vector<1x1x8x8xbf16>
    %491 = vector.shape_cast %490 : vector<1x1x8x8xbf16> to vector<8x8xbf16>
    %492 = arith.extf %491 : vector<8x8xbf16> to vector<8x8xf32>
    %493 = vector.extract_strided_slice %0 {offsets = [6, 0], sizes = [1, 8], strides = [1, 1]} : vector<9x8xf32> to vector<1x8xf32>
    %494 = vector.broadcast %493 : vector<1x8xf32> to vector<8x8xf32>
    %495 = arith.mulf %492, %494 : vector<8x8xf32>
    %c0_284 = arith.constant 0 : index
    %c8_285 = arith.constant 8 : index
    %c1_286 = arith.constant 1 : index
    %c0_287 = arith.constant 0 : index
    %496 = vector.load %arg1[%c0_284, %c8_285, %c1_286, %c0_287] : memref<1x10x10x8xbf16, #tpu.memory_space<vmem>>, vector<1x1x8x8xbf16>
    %497 = vector.shape_cast %496 : vector<1x1x8x8xbf16> to vector<8x8xbf16>
    %498 = arith.extf %497 : vector<8x8xbf16> to vector<8x8xf32>
    %499 = vector.extract_strided_slice %0 {offsets = [7, 0], sizes = [1, 8], strides = [1, 1]} : vector<9x8xf32> to vector<1x8xf32>
    %500 = vector.broadcast %499 : vector<1x8xf32> to vector<8x8xf32>
    %501 = arith.mulf %498, %500 : vector<8x8xf32>
    %c0_288 = arith.constant 0 : index
    %c8_289 = arith.constant 8 : index
    %c2_290 = arith.constant 2 : index
    %c0_291 = arith.constant 0 : index
    %502 = vector.load %arg1[%c0_288, %c8_289, %c2_290, %c0_291] : memref<1x10x10x8xbf16, #tpu.memory_space<vmem>>, vector<1x1x8x8xbf16>
    %503 = vector.shape_cast %502 : vector<1x1x8x8xbf16> to vector<8x8xbf16>
    %504 = arith.extf %503 : vector<8x8xbf16> to vector<8x8xf32>
    %505 = vector.extract_strided_slice %0 {offsets = [8, 0], sizes = [1, 8], strides = [1, 1]} : vector<9x8xf32> to vector<1x8xf32>
    %506 = vector.broadcast %505 : vector<1x8xf32> to vector<8x8xf32>
    %507 = arith.mulf %504, %506 : vector<8x8xf32>
    %508 = arith.addf %459, %465 : vector<8x8xf32>
    %509 = arith.addf %471, %477 : vector<8x8xf32>
    %510 = arith.addf %483, %489 : vector<8x8xf32>
    %511 = arith.addf %495, %501 : vector<8x8xf32>
    %512 = arith.addf %508, %509 : vector<8x8xf32>
    %513 = arith.addf %510, %511 : vector<8x8xf32>
    %514 = arith.addf %512, %513 : vector<8x8xf32>
    %515 = arith.addf %514, %507 : vector<8x8xf32>
    %516 = vector.broadcast %1 : vector<1x8xf32> to vector<8x8xf32>
    %517 = arith.addf %515, %516 : vector<8x8xf32>
    %cst_292 = arith.constant 0.000000e+00 : f32
    %518 = vector.broadcast %cst_292 : f32 to vector<8x8xf32>
    %519 = arith.maximumf %517, %518 : vector<8x8xf32>
    %cst_293 = arith.constant dense<0.000000e+00> : vector<8x8xf32>
    %520 = tpu.matmul %519, %2, %cst_293 {dimension_numbers = #tpu.dot_dimension_numbers<[1], [0], [0], [1], [0, 0, 1, 1], [], []>} : vector<8x8xf32>, vector<8x8xf32>, vector<8x8xf32> -> vector<8x8xf32>
    %521 = vector.broadcast %3 : vector<1x8xf32> to vector<8x8xf32>
    %522 = arith.addf %520, %521 : vector<8x8xf32>
    %cst_294 = arith.constant 0.000000e+00 : f32
    %523 = vector.broadcast %cst_294 : f32 to vector<8x8xf32>
    %524 = arith.maximumf %522, %523 : vector<8x8xf32>
    %525 = arith.truncf %524 : vector<8x8xf32> to vector<8x8xbf16>
    %c0_295 = arith.constant 0 : index
    %c6_296 = arith.constant 6 : index
    %c0_297 = arith.constant 0 : index
    %c0_298 = arith.constant 0 : index
    %526 = vector.load %arg6[%c0_295, %c6_296, %c0_297, %c0_298] : memref<1x8x8x8xbf16, #tpu.memory_space<vmem>>, vector<1x1x8x8xbf16>
    %527 = vector.shape_cast %526 : vector<1x1x8x8xbf16> to vector<8x8xbf16>
    %528 = vector.shape_cast %525 : vector<8x8xbf16> to vector<1x1x8x8xbf16>
    tpu.vector_store %arg6[%c0_295, %c6_296, %c0_297, %c0_298], %528 {strides = array<i32>} : memref<1x8x8x8xbf16, #tpu.memory_space<vmem>>, vector<1x1x8x8xbf16>,
    %c0_299 = arith.constant 0 : index
    %c7_300 = arith.constant 7 : index
    %c0_301 = arith.constant 0 : index
    %c0_302 = arith.constant 0 : index
    %529 = vector.load %arg1[%c0_299, %c7_300, %c0_301, %c0_302] : memref<1x10x10x8xbf16, #tpu.memory_space<vmem>>, vector<1x1x8x8xbf16>
    %530 = vector.shape_cast %529 : vector<1x1x8x8xbf16> to vector<8x8xbf16>
    %531 = arith.extf %530 : vector<8x8xbf16> to vector<8x8xf32>
    %532 = vector.extract_strided_slice %0 {offsets = [0, 0], sizes = [1, 8], strides = [1, 1]} : vector<9x8xf32> to vector<1x8xf32>
    %533 = vector.broadcast %532 : vector<1x8xf32> to vector<8x8xf32>
    %534 = arith.mulf %531, %533 : vector<8x8xf32>
    %c0_303 = arith.constant 0 : index
    %c7_304 = arith.constant 7 : index
    %c1_305 = arith.constant 1 : index
    %c0_306 = arith.constant 0 : index
    %535 = vector.load %arg1[%c0_303, %c7_304, %c1_305, %c0_306] : memref<1x10x10x8xbf16, #tpu.memory_space<vmem>>, vector<1x1x8x8xbf16>
    %536 = vector.shape_cast %535 : vector<1x1x8x8xbf16> to vector<8x8xbf16>
    %537 = arith.extf %536 : vector<8x8xbf16> to vector<8x8xf32>
    %538 = vector.extract_strided_slice %0 {offsets = [1, 0], sizes = [1, 8], strides = [1, 1]} : vector<9x8xf32> to vector<1x8xf32>
    %539 = vector.broadcast %538 : vector<1x8xf32> to vector<8x8xf32>
    %540 = arith.mulf %537, %539 : vector<8x8xf32>
    %c0_307 = arith.constant 0 : index
    %c7_308 = arith.constant 7 : index
    %c2_309 = arith.constant 2 : index
    %c0_310 = arith.constant 0 : index
    %541 = vector.load %arg1[%c0_307, %c7_308, %c2_309, %c0_310] : memref<1x10x10x8xbf16, #tpu.memory_space<vmem>>, vector<1x1x8x8xbf16>
    %542 = vector.shape_cast %541 : vector<1x1x8x8xbf16> to vector<8x8xbf16>
    %543 = arith.extf %542 : vector<8x8xbf16> to vector<8x8xf32>
    %544 = vector.extract_strided_slice %0 {offsets = [2, 0], sizes = [1, 8], strides = [1, 1]} : vector<9x8xf32> to vector<1x8xf32>
    %545 = vector.broadcast %544 : vector<1x8xf32> to vector<8x8xf32>
    %546 = arith.mulf %543, %545 : vector<8x8xf32>
    %c0_311 = arith.constant 0 : index
    %c8_312 = arith.constant 8 : index
    %c0_313 = arith.constant 0 : index
    %c0_314 = arith.constant 0 : index
    %547 = vector.load %arg1[%c0_311, %c8_312, %c0_313, %c0_314] : memref<1x10x10x8xbf16, #tpu.memory_space<vmem>>, vector<1x1x8x8xbf16>
    %548 = vector.shape_cast %547 : vector<1x1x8x8xbf16> to vector<8x8xbf16>
    %549 = arith.extf %548 : vector<8x8xbf16> to vector<8x8xf32>
    %550 = vector.extract_strided_slice %0 {offsets = [3, 0], sizes = [1, 8], strides = [1, 1]} : vector<9x8xf32> to vector<1x8xf32>
    %551 = vector.broadcast %550 : vector<1x8xf32> to vector<8x8xf32>
    %552 = arith.mulf %549, %551 : vector<8x8xf32>
    %c0_315 = arith.constant 0 : index
    %c8_316 = arith.constant 8 : index
    %c1_317 = arith.constant 1 : index
    %c0_318 = arith.constant 0 : index
    %553 = vector.load %arg1[%c0_315, %c8_316, %c1_317, %c0_318] : memref<1x10x10x8xbf16, #tpu.memory_space<vmem>>, vector<1x1x8x8xbf16>
    %554 = vector.shape_cast %553 : vector<1x1x8x8xbf16> to vector<8x8xbf16>
    %555 = arith.extf %554 : vector<8x8xbf16> to vector<8x8xf32>
    %556 = vector.extract_strided_slice %0 {offsets = [4, 0], sizes = [1, 8], strides = [1, 1]} : vector<9x8xf32> to vector<1x8xf32>
    %557 = vector.broadcast %556 : vector<1x8xf32> to vector<8x8xf32>
    %558 = arith.mulf %555, %557 : vector<8x8xf32>
    %c0_319 = arith.constant 0 : index
    %c8_320 = arith.constant 8 : index
    %c2_321 = arith.constant 2 : index
    %c0_322 = arith.constant 0 : index
    %559 = vector.load %arg1[%c0_319, %c8_320, %c2_321, %c0_322] : memref<1x10x10x8xbf16, #tpu.memory_space<vmem>>, vector<1x1x8x8xbf16>
    %560 = vector.shape_cast %559 : vector<1x1x8x8xbf16> to vector<8x8xbf16>
    %561 = arith.extf %560 : vector<8x8xbf16> to vector<8x8xf32>
    %562 = vector.extract_strided_slice %0 {offsets = [5, 0], sizes = [1, 8], strides = [1, 1]} : vector<9x8xf32> to vector<1x8xf32>
    %563 = vector.broadcast %562 : vector<1x8xf32> to vector<8x8xf32>
    %564 = arith.mulf %561, %563 : vector<8x8xf32>
    %c0_323 = arith.constant 0 : index
    %c9 = arith.constant 9 : index
    %c0_324 = arith.constant 0 : index
    %c0_325 = arith.constant 0 : index
    %565 = vector.load %arg1[%c0_323, %c9, %c0_324, %c0_325] : memref<1x10x10x8xbf16, #tpu.memory_space<vmem>>, vector<1x1x8x8xbf16>
    %566 = vector.shape_cast %565 : vector<1x1x8x8xbf16> to vector<8x8xbf16>
    %567 = arith.extf %566 : vector<8x8xbf16> to vector<8x8xf32>
    %568 = vector.extract_strided_slice %0 {offsets = [6, 0], sizes = [1, 8], strides = [1, 1]} : vector<9x8xf32> to vector<1x8xf32>
    %569 = vector.broadcast %568 : vector<1x8xf32> to vector<8x8xf32>
    %570 = arith.mulf %567, %569 : vector<8x8xf32>
    %c0_326 = arith.constant 0 : index
    %c9_327 = arith.constant 9 : index
    %c1_328 = arith.constant 1 : index
    %c0_329 = arith.constant 0 : index
    %571 = vector.load %arg1[%c0_326, %c9_327, %c1_328, %c0_329] : memref<1x10x10x8xbf16, #tpu.memory_space<vmem>>, vector<1x1x8x8xbf16>
    %572 = vector.shape_cast %571 : vector<1x1x8x8xbf16> to vector<8x8xbf16>
    %573 = arith.extf %572 : vector<8x8xbf16> to vector<8x8xf32>
    %574 = vector.extract_strided_slice %0 {offsets = [7, 0], sizes = [1, 8], strides = [1, 1]} : vector<9x8xf32> to vector<1x8xf32>
    %575 = vector.broadcast %574 : vector<1x8xf32> to vector<8x8xf32>
    %576 = arith.mulf %573, %575 : vector<8x8xf32>
    %c0_330 = arith.constant 0 : index
    %c9_331 = arith.constant 9 : index
    %c2_332 = arith.constant 2 : index
    %c0_333 = arith.constant 0 : index
    %577 = vector.load %arg1[%c0_330, %c9_331, %c2_332, %c0_333] : memref<1x10x10x8xbf16, #tpu.memory_space<vmem>>, vector<1x1x8x8xbf16>
    %578 = vector.shape_cast %577 : vector<1x1x8x8xbf16> to vector<8x8xbf16>
    %579 = arith.extf %578 : vector<8x8xbf16> to vector<8x8xf32>
    %580 = vector.extract_strided_slice %0 {offsets = [8, 0], sizes = [1, 8], strides = [1, 1]} : vector<9x8xf32> to vector<1x8xf32>
    %581 = vector.broadcast %580 : vector<1x8xf32> to vector<8x8xf32>
    %582 = arith.mulf %579, %581 : vector<8x8xf32>
    %583 = arith.addf %534, %540 : vector<8x8xf32>
    %584 = arith.addf %546, %552 : vector<8x8xf32>
    %585 = arith.addf %558, %564 : vector<8x8xf32>
    %586 = arith.addf %570, %576 : vector<8x8xf32>
    %587 = arith.addf %583, %584 : vector<8x8xf32>
    %588 = arith.addf %585, %586 : vector<8x8xf32>
    %589 = arith.addf %587, %588 : vector<8x8xf32>
    %590 = arith.addf %589, %582 : vector<8x8xf32>
    %591 = vector.broadcast %1 : vector<1x8xf32> to vector<8x8xf32>
    %592 = arith.addf %590, %591 : vector<8x8xf32>
    %cst_334 = arith.constant 0.000000e+00 : f32
    %593 = vector.broadcast %cst_334 : f32 to vector<8x8xf32>
    %594 = arith.maximumf %592, %593 : vector<8x8xf32>
    %cst_335 = arith.constant dense<0.000000e+00> : vector<8x8xf32>
    %595 = tpu.matmul %594, %2, %cst_335 {dimension_numbers = #tpu.dot_dimension_numbers<[1], [0], [0], [1], [0, 0, 1, 1], [], []>} : vector<8x8xf32>, vector<8x8xf32>, vector<8x8xf32> -> vector<8x8xf32>
    %596 = vector.broadcast %3 : vector<1x8xf32> to vector<8x8xf32>
    %597 = arith.addf %595, %596 : vector<8x8xf32>
    %cst_336 = arith.constant 0.000000e+00 : f32
    %598 = vector.broadcast %cst_336 : f32 to vector<8x8xf32>
    %599 = arith.maximumf %597, %598 : vector<8x8xf32>
    %600 = arith.truncf %599 : vector<8x8xf32> to vector<8x8xbf16>
    %c0_337 = arith.constant 0 : index
    %c7_338 = arith.constant 7 : index
    %c0_339 = arith.constant 0 : index
    %c0_340 = arith.constant 0 : index
    %601 = vector.load %arg6[%c0_337, %c7_338, %c0_339, %c0_340] : memref<1x8x8x8xbf16, #tpu.memory_space<vmem>>, vector<1x1x8x8xbf16>
    %602 = vector.shape_cast %601 : vector<1x1x8x8xbf16> to vector<8x8xbf16>
    %603 = vector.shape_cast %600 : vector<8x8xbf16> to vector<1x1x8x8xbf16>
    tpu.vector_store %arg6[%c0_337, %c7_338, %c0_339, %c0_340], %603 {strides = array<i32>} : memref<1x8x8x8xbf16, #tpu.memory_space<vmem>>, vector<1x1x8x8xbf16>,
    return
  }
  func.func @transform_0(%arg0: i32) -> (i32, i32, i32, i32) {
    %c0_i32 = arith.constant 0 : i32
    %c0_i32_0 = arith.constant 0 : i32
    %c0_i32_1 = arith.constant 0 : i32
    %c0_i32_2 = arith.constant 0 : i32
    return %arg0, %c0_i32, %c0_i32_0, %c0_i32_1 : i32, i32, i32, i32
  }
  func.func @transform_1(%arg0: i32) -> (i32, i32) {
    %c0_i32 = arith.constant 0 : i32
    %c0_i32_0 = arith.constant 0 : i32
    %c0_i32_1 = arith.constant 0 : i32
    return %c0_i32, %c0_i32_0 : i32, i32
  }
  func.func @transform_2(%arg0: i32) -> (i32, i32) {
    %c0_i32 = arith.constant 0 : i32
    %c0_i32_0 = arith.constant 0 : i32
    %c0_i32_1 = arith.constant 0 : i32
    return %c0_i32, %c0_i32_0 : i32, i32
  }
  func.func @transform_3(%arg0: i32) -> (i32, i32) {
    %c0_i32 = arith.constant 0 : i32
    %c0_i32_0 = arith.constant 0 : i32
    %c0_i32_1 = arith.constant 0 : i32
    return %c0_i32, %c0_i32_0 : i32, i32
  }
  func.func @transform_4(%arg0: i32) -> (i32, i32) {
    %c0_i32 = arith.constant 0 : i32
    %c0_i32_0 = arith.constant 0 : i32
    %c0_i32_1 = arith.constant 0 : i32
    return %c0_i32, %c0_i32_0 : i32, i32
  }
  func.func @transform_5(%arg0: i32) -> (i32, i32, i32, i32) {
    %c0_i32 = arith.constant 0 : i32
    %c0_i32_0 = arith.constant 0 : i32
    %c0_i32_1 = arith.constant 0 : i32
    %c0_i32_2 = arith.constant 0 : i32
    return %arg0, %c0_i32, %c0_i32_0, %c0_i32_1 : i32, i32, i32, i32
  }
}

module attributes {stable_mosaic.version = 11 : i64} {
  func.func @kernel(%arg0: i32, %arg1: memref<1x6x6x16xbf16, #tpu.memory_space<vmem>>, %arg2: memref<9x16xf32, #tpu.memory_space<vmem>>, %arg3: memref<1x16xf32, #tpu.memory_space<vmem>>, %arg4: memref<16x16xf32, #tpu.memory_space<vmem>>, %arg5: memref<1x16xf32, #tpu.memory_space<vmem>>, %arg6: memref<1x4x4x16xbf16, #tpu.memory_space<vmem>>) attributes {dimension_semantics = [#tpu.dimension_semantics<parallel>], iteration_bounds = array<i64: 2>, scalar_prefetch = 0 : i64, scratch_operands = 0 : i64, tpu.core_type = #tpu.core_type<tc>, window_params = [{transform_indices = @transform_0, window_bounds = array<i64: 1, 6, 6, 16>}, {pipeline_mode = #tpu.pipeline_mode<synchronous>, transform_indices = @transform_1, window_bounds = array<i64: 9, 16>}, {pipeline_mode = #tpu.pipeline_mode<synchronous>, transform_indices = @transform_2, window_bounds = array<i64: 1, 16>}, {pipeline_mode = #tpu.pipeline_mode<synchronous>, transform_indices = @transform_3, window_bounds = array<i64: 16, 16>}, {pipeline_mode = #tpu.pipeline_mode<synchronous>, transform_indices = @transform_4, window_bounds = array<i64: 1, 16>}, {transform_indices = @transform_5, window_bounds = array<i64: 1, 4, 4, 16>}]} {
    %c0 = arith.constant 0 : index
    %c0_0 = arith.constant 0 : index
    %0 = vector.load %arg2[%c0, %c0_0] : memref<9x16xf32, #tpu.memory_space<vmem>>, vector<9x16xf32>
    %c0_1 = arith.constant 0 : index
    %c0_2 = arith.constant 0 : index
    %1 = vector.load %arg3[%c0_1, %c0_2] : memref<1x16xf32, #tpu.memory_space<vmem>>, vector<1x16xf32>
    %c0_3 = arith.constant 0 : index
    %c0_4 = arith.constant 0 : index
    %2 = vector.load %arg4[%c0_3, %c0_4] : memref<16x16xf32, #tpu.memory_space<vmem>>, vector<16x16xf32>
    %c0_5 = arith.constant 0 : index
    %c0_6 = arith.constant 0 : index
    %3 = vector.load %arg5[%c0_5, %c0_6] : memref<1x16xf32, #tpu.memory_space<vmem>>, vector<1x16xf32>
    %c0_7 = arith.constant 0 : index
    %c0_8 = arith.constant 0 : index
    %c0_9 = arith.constant 0 : index
    %c0_10 = arith.constant 0 : index
    %4 = vector.load %arg1[%c0_7, %c0_8, %c0_9, %c0_10] : memref<1x6x6x16xbf16, #tpu.memory_space<vmem>>, vector<1x1x4x16xbf16>
    %5 = vector.shape_cast %4 : vector<1x1x4x16xbf16> to vector<4x16xbf16>
    %6 = arith.extf %5 : vector<4x16xbf16> to vector<4x16xf32>
    %7 = vector.extract_strided_slice %0 {offsets = [0, 0], sizes = [1, 16], strides = [1, 1]} : vector<9x16xf32> to vector<1x16xf32>
    %8 = vector.broadcast %7 : vector<1x16xf32> to vector<4x16xf32>
    %9 = arith.mulf %6, %8 : vector<4x16xf32>
    %c0_11 = arith.constant 0 : index
    %c0_12 = arith.constant 0 : index
    %c1 = arith.constant 1 : index
    %c0_13 = arith.constant 0 : index
    %10 = vector.load %arg1[%c0_11, %c0_12, %c1, %c0_13] : memref<1x6x6x16xbf16, #tpu.memory_space<vmem>>, vector<1x1x4x16xbf16>
    %11 = vector.shape_cast %10 : vector<1x1x4x16xbf16> to vector<4x16xbf16>
    %12 = arith.extf %11 : vector<4x16xbf16> to vector<4x16xf32>
    %13 = vector.extract_strided_slice %0 {offsets = [1, 0], sizes = [1, 16], strides = [1, 1]} : vector<9x16xf32> to vector<1x16xf32>
    %14 = vector.broadcast %13 : vector<1x16xf32> to vector<4x16xf32>
    %15 = arith.mulf %12, %14 : vector<4x16xf32>
    %c0_14 = arith.constant 0 : index
    %c0_15 = arith.constant 0 : index
    %c2 = arith.constant 2 : index
    %c0_16 = arith.constant 0 : index
    %16 = vector.load %arg1[%c0_14, %c0_15, %c2, %c0_16] : memref<1x6x6x16xbf16, #tpu.memory_space<vmem>>, vector<1x1x4x16xbf16>
    %17 = vector.shape_cast %16 : vector<1x1x4x16xbf16> to vector<4x16xbf16>
    %18 = arith.extf %17 : vector<4x16xbf16> to vector<4x16xf32>
    %19 = vector.extract_strided_slice %0 {offsets = [2, 0], sizes = [1, 16], strides = [1, 1]} : vector<9x16xf32> to vector<1x16xf32>
    %20 = vector.broadcast %19 : vector<1x16xf32> to vector<4x16xf32>
    %21 = arith.mulf %18, %20 : vector<4x16xf32>
    %c0_17 = arith.constant 0 : index
    %c1_18 = arith.constant 1 : index
    %c0_19 = arith.constant 0 : index
    %c0_20 = arith.constant 0 : index
    %22 = vector.load %arg1[%c0_17, %c1_18, %c0_19, %c0_20] : memref<1x6x6x16xbf16, #tpu.memory_space<vmem>>, vector<1x1x4x16xbf16>
    %23 = vector.shape_cast %22 : vector<1x1x4x16xbf16> to vector<4x16xbf16>
    %24 = arith.extf %23 : vector<4x16xbf16> to vector<4x16xf32>
    %25 = vector.extract_strided_slice %0 {offsets = [3, 0], sizes = [1, 16], strides = [1, 1]} : vector<9x16xf32> to vector<1x16xf32>
    %26 = vector.broadcast %25 : vector<1x16xf32> to vector<4x16xf32>
    %27 = arith.mulf %24, %26 : vector<4x16xf32>
    %c0_21 = arith.constant 0 : index
    %c1_22 = arith.constant 1 : index
    %c1_23 = arith.constant 1 : index
    %c0_24 = arith.constant 0 : index
    %28 = vector.load %arg1[%c0_21, %c1_22, %c1_23, %c0_24] : memref<1x6x6x16xbf16, #tpu.memory_space<vmem>>, vector<1x1x4x16xbf16>
    %29 = vector.shape_cast %28 : vector<1x1x4x16xbf16> to vector<4x16xbf16>
    %30 = arith.extf %29 : vector<4x16xbf16> to vector<4x16xf32>
    %31 = vector.extract_strided_slice %0 {offsets = [4, 0], sizes = [1, 16], strides = [1, 1]} : vector<9x16xf32> to vector<1x16xf32>
    %32 = vector.broadcast %31 : vector<1x16xf32> to vector<4x16xf32>
    %33 = arith.mulf %30, %32 : vector<4x16xf32>
    %c0_25 = arith.constant 0 : index
    %c1_26 = arith.constant 1 : index
    %c2_27 = arith.constant 2 : index
    %c0_28 = arith.constant 0 : index
    %34 = vector.load %arg1[%c0_25, %c1_26, %c2_27, %c0_28] : memref<1x6x6x16xbf16, #tpu.memory_space<vmem>>, vector<1x1x4x16xbf16>
    %35 = vector.shape_cast %34 : vector<1x1x4x16xbf16> to vector<4x16xbf16>
    %36 = arith.extf %35 : vector<4x16xbf16> to vector<4x16xf32>
    %37 = vector.extract_strided_slice %0 {offsets = [5, 0], sizes = [1, 16], strides = [1, 1]} : vector<9x16xf32> to vector<1x16xf32>
    %38 = vector.broadcast %37 : vector<1x16xf32> to vector<4x16xf32>
    %39 = arith.mulf %36, %38 : vector<4x16xf32>
    %c0_29 = arith.constant 0 : index
    %c2_30 = arith.constant 2 : index
    %c0_31 = arith.constant 0 : index
    %c0_32 = arith.constant 0 : index
    %40 = vector.load %arg1[%c0_29, %c2_30, %c0_31, %c0_32] : memref<1x6x6x16xbf16, #tpu.memory_space<vmem>>, vector<1x1x4x16xbf16>
    %41 = vector.shape_cast %40 : vector<1x1x4x16xbf16> to vector<4x16xbf16>
    %42 = arith.extf %41 : vector<4x16xbf16> to vector<4x16xf32>
    %43 = vector.extract_strided_slice %0 {offsets = [6, 0], sizes = [1, 16], strides = [1, 1]} : vector<9x16xf32> to vector<1x16xf32>
    %44 = vector.broadcast %43 : vector<1x16xf32> to vector<4x16xf32>
    %45 = arith.mulf %42, %44 : vector<4x16xf32>
    %c0_33 = arith.constant 0 : index
    %c2_34 = arith.constant 2 : index
    %c1_35 = arith.constant 1 : index
    %c0_36 = arith.constant 0 : index
    %46 = vector.load %arg1[%c0_33, %c2_34, %c1_35, %c0_36] : memref<1x6x6x16xbf16, #tpu.memory_space<vmem>>, vector<1x1x4x16xbf16>
    %47 = vector.shape_cast %46 : vector<1x1x4x16xbf16> to vector<4x16xbf16>
    %48 = arith.extf %47 : vector<4x16xbf16> to vector<4x16xf32>
    %49 = vector.extract_strided_slice %0 {offsets = [7, 0], sizes = [1, 16], strides = [1, 1]} : vector<9x16xf32> to vector<1x16xf32>
    %50 = vector.broadcast %49 : vector<1x16xf32> to vector<4x16xf32>
    %51 = arith.mulf %48, %50 : vector<4x16xf32>
    %c0_37 = arith.constant 0 : index
    %c2_38 = arith.constant 2 : index
    %c2_39 = arith.constant 2 : index
    %c0_40 = arith.constant 0 : index
    %52 = vector.load %arg1[%c0_37, %c2_38, %c2_39, %c0_40] : memref<1x6x6x16xbf16, #tpu.memory_space<vmem>>, vector<1x1x4x16xbf16>
    %53 = vector.shape_cast %52 : vector<1x1x4x16xbf16> to vector<4x16xbf16>
    %54 = arith.extf %53 : vector<4x16xbf16> to vector<4x16xf32>
    %55 = vector.extract_strided_slice %0 {offsets = [8, 0], sizes = [1, 16], strides = [1, 1]} : vector<9x16xf32> to vector<1x16xf32>
    %56 = vector.broadcast %55 : vector<1x16xf32> to vector<4x16xf32>
    %57 = arith.mulf %54, %56 : vector<4x16xf32>
    %58 = arith.addf %9, %15 : vector<4x16xf32>
    %59 = arith.addf %21, %27 : vector<4x16xf32>
    %60 = arith.addf %33, %39 : vector<4x16xf32>
    %61 = arith.addf %45, %51 : vector<4x16xf32>
    %62 = arith.addf %58, %59 : vector<4x16xf32>
    %63 = arith.addf %60, %61 : vector<4x16xf32>
    %64 = arith.addf %62, %63 : vector<4x16xf32>
    %65 = arith.addf %64, %57 : vector<4x16xf32>
    %66 = vector.broadcast %1 : vector<1x16xf32> to vector<4x16xf32>
    %67 = arith.addf %65, %66 : vector<4x16xf32>
    %cst = arith.constant 0.000000e+00 : f32
    %68 = vector.broadcast %cst : f32 to vector<4x16xf32>
    %69 = arith.maximumf %67, %68 : vector<4x16xf32>
    %cst_41 = arith.constant dense<0.000000e+00> : vector<4x16xf32>
    %70 = tpu.matmul %69, %2, %cst_41 {dimension_numbers = #tpu.dot_dimension_numbers<[1], [0], [0], [1], [0, 0, 1, 1], [], []>} : vector<4x16xf32>, vector<16x16xf32>, vector<4x16xf32> -> vector<4x16xf32>
    %71 = vector.broadcast %3 : vector<1x16xf32> to vector<4x16xf32>
    %72 = arith.addf %70, %71 : vector<4x16xf32>
    %cst_42 = arith.constant 0.000000e+00 : f32
    %73 = vector.broadcast %cst_42 : f32 to vector<4x16xf32>
    %74 = arith.maximumf %72, %73 : vector<4x16xf32>
    %75 = arith.truncf %74 : vector<4x16xf32> to vector<4x16xbf16>
    %c0_43 = arith.constant 0 : index
    %c0_44 = arith.constant 0 : index
    %c0_45 = arith.constant 0 : index
    %c0_46 = arith.constant 0 : index
    %76 = vector.load %arg6[%c0_43, %c0_44, %c0_45, %c0_46] : memref<1x4x4x16xbf16, #tpu.memory_space<vmem>>, vector<1x1x4x16xbf16>
    %77 = vector.shape_cast %76 : vector<1x1x4x16xbf16> to vector<4x16xbf16>
    %78 = vector.shape_cast %75 : vector<4x16xbf16> to vector<1x1x4x16xbf16>
    tpu.vector_store %arg6[%c0_43, %c0_44, %c0_45, %c0_46], %78 {strides = array<i32>} : memref<1x4x4x16xbf16, #tpu.memory_space<vmem>>, vector<1x1x4x16xbf16>,
    %c0_47 = arith.constant 0 : index
    %c1_48 = arith.constant 1 : index
    %c0_49 = arith.constant 0 : index
    %c0_50 = arith.constant 0 : index
    %79 = vector.load %arg1[%c0_47, %c1_48, %c0_49, %c0_50] : memref<1x6x6x16xbf16, #tpu.memory_space<vmem>>, vector<1x1x4x16xbf16>
    %80 = vector.shape_cast %79 : vector<1x1x4x16xbf16> to vector<4x16xbf16>
    %81 = arith.extf %80 : vector<4x16xbf16> to vector<4x16xf32>
    %82 = vector.extract_strided_slice %0 {offsets = [0, 0], sizes = [1, 16], strides = [1, 1]} : vector<9x16xf32> to vector<1x16xf32>
    %83 = vector.broadcast %82 : vector<1x16xf32> to vector<4x16xf32>
    %84 = arith.mulf %81, %83 : vector<4x16xf32>
    %c0_51 = arith.constant 0 : index
    %c1_52 = arith.constant 1 : index
    %c1_53 = arith.constant 1 : index
    %c0_54 = arith.constant 0 : index
    %85 = vector.load %arg1[%c0_51, %c1_52, %c1_53, %c0_54] : memref<1x6x6x16xbf16, #tpu.memory_space<vmem>>, vector<1x1x4x16xbf16>
    %86 = vector.shape_cast %85 : vector<1x1x4x16xbf16> to vector<4x16xbf16>
    %87 = arith.extf %86 : vector<4x16xbf16> to vector<4x16xf32>
    %88 = vector.extract_strided_slice %0 {offsets = [1, 0], sizes = [1, 16], strides = [1, 1]} : vector<9x16xf32> to vector<1x16xf32>
    %89 = vector.broadcast %88 : vector<1x16xf32> to vector<4x16xf32>
    %90 = arith.mulf %87, %89 : vector<4x16xf32>
    %c0_55 = arith.constant 0 : index
    %c1_56 = arith.constant 1 : index
    %c2_57 = arith.constant 2 : index
    %c0_58 = arith.constant 0 : index
    %91 = vector.load %arg1[%c0_55, %c1_56, %c2_57, %c0_58] : memref<1x6x6x16xbf16, #tpu.memory_space<vmem>>, vector<1x1x4x16xbf16>
    %92 = vector.shape_cast %91 : vector<1x1x4x16xbf16> to vector<4x16xbf16>
    %93 = arith.extf %92 : vector<4x16xbf16> to vector<4x16xf32>
    %94 = vector.extract_strided_slice %0 {offsets = [2, 0], sizes = [1, 16], strides = [1, 1]} : vector<9x16xf32> to vector<1x16xf32>
    %95 = vector.broadcast %94 : vector<1x16xf32> to vector<4x16xf32>
    %96 = arith.mulf %93, %95 : vector<4x16xf32>
    %c0_59 = arith.constant 0 : index
    %c2_60 = arith.constant 2 : index
    %c0_61 = arith.constant 0 : index
    %c0_62 = arith.constant 0 : index
    %97 = vector.load %arg1[%c0_59, %c2_60, %c0_61, %c0_62] : memref<1x6x6x16xbf16, #tpu.memory_space<vmem>>, vector<1x1x4x16xbf16>
    %98 = vector.shape_cast %97 : vector<1x1x4x16xbf16> to vector<4x16xbf16>
    %99 = arith.extf %98 : vector<4x16xbf16> to vector<4x16xf32>
    %100 = vector.extract_strided_slice %0 {offsets = [3, 0], sizes = [1, 16], strides = [1, 1]} : vector<9x16xf32> to vector<1x16xf32>
    %101 = vector.broadcast %100 : vector<1x16xf32> to vector<4x16xf32>
    %102 = arith.mulf %99, %101 : vector<4x16xf32>
    %c0_63 = arith.constant 0 : index
    %c2_64 = arith.constant 2 : index
    %c1_65 = arith.constant 1 : index
    %c0_66 = arith.constant 0 : index
    %103 = vector.load %arg1[%c0_63, %c2_64, %c1_65, %c0_66] : memref<1x6x6x16xbf16, #tpu.memory_space<vmem>>, vector<1x1x4x16xbf16>
    %104 = vector.shape_cast %103 : vector<1x1x4x16xbf16> to vector<4x16xbf16>
    %105 = arith.extf %104 : vector<4x16xbf16> to vector<4x16xf32>
    %106 = vector.extract_strided_slice %0 {offsets = [4, 0], sizes = [1, 16], strides = [1, 1]} : vector<9x16xf32> to vector<1x16xf32>
    %107 = vector.broadcast %106 : vector<1x16xf32> to vector<4x16xf32>
    %108 = arith.mulf %105, %107 : vector<4x16xf32>
    %c0_67 = arith.constant 0 : index
    %c2_68 = arith.constant 2 : index
    %c2_69 = arith.constant 2 : index
    %c0_70 = arith.constant 0 : index
    %109 = vector.load %arg1[%c0_67, %c2_68, %c2_69, %c0_70] : memref<1x6x6x16xbf16, #tpu.memory_space<vmem>>, vector<1x1x4x16xbf16>
    %110 = vector.shape_cast %109 : vector<1x1x4x16xbf16> to vector<4x16xbf16>
    %111 = arith.extf %110 : vector<4x16xbf16> to vector<4x16xf32>
    %112 = vector.extract_strided_slice %0 {offsets = [5, 0], sizes = [1, 16], strides = [1, 1]} : vector<9x16xf32> to vector<1x16xf32>
    %113 = vector.broadcast %112 : vector<1x16xf32> to vector<4x16xf32>
    %114 = arith.mulf %111, %113 : vector<4x16xf32>
    %c0_71 = arith.constant 0 : index
    %c3 = arith.constant 3 : index
    %c0_72 = arith.constant 0 : index
    %c0_73 = arith.constant 0 : index
    %115 = vector.load %arg1[%c0_71, %c3, %c0_72, %c0_73] : memref<1x6x6x16xbf16, #tpu.memory_space<vmem>>, vector<1x1x4x16xbf16>
    %116 = vector.shape_cast %115 : vector<1x1x4x16xbf16> to vector<4x16xbf16>
    %117 = arith.extf %116 : vector<4x16xbf16> to vector<4x16xf32>
    %118 = vector.extract_strided_slice %0 {offsets = [6, 0], sizes = [1, 16], strides = [1, 1]} : vector<9x16xf32> to vector<1x16xf32>
    %119 = vector.broadcast %118 : vector<1x16xf32> to vector<4x16xf32>
    %120 = arith.mulf %117, %119 : vector<4x16xf32>
    %c0_74 = arith.constant 0 : index
    %c3_75 = arith.constant 3 : index
    %c1_76 = arith.constant 1 : index
    %c0_77 = arith.constant 0 : index
    %121 = vector.load %arg1[%c0_74, %c3_75, %c1_76, %c0_77] : memref<1x6x6x16xbf16, #tpu.memory_space<vmem>>, vector<1x1x4x16xbf16>
    %122 = vector.shape_cast %121 : vector<1x1x4x16xbf16> to vector<4x16xbf16>
    %123 = arith.extf %122 : vector<4x16xbf16> to vector<4x16xf32>
    %124 = vector.extract_strided_slice %0 {offsets = [7, 0], sizes = [1, 16], strides = [1, 1]} : vector<9x16xf32> to vector<1x16xf32>
    %125 = vector.broadcast %124 : vector<1x16xf32> to vector<4x16xf32>
    %126 = arith.mulf %123, %125 : vector<4x16xf32>
    %c0_78 = arith.constant 0 : index
    %c3_79 = arith.constant 3 : index
    %c2_80 = arith.constant 2 : index
    %c0_81 = arith.constant 0 : index
    %127 = vector.load %arg1[%c0_78, %c3_79, %c2_80, %c0_81] : memref<1x6x6x16xbf16, #tpu.memory_space<vmem>>, vector<1x1x4x16xbf16>
    %128 = vector.shape_cast %127 : vector<1x1x4x16xbf16> to vector<4x16xbf16>
    %129 = arith.extf %128 : vector<4x16xbf16> to vector<4x16xf32>
    %130 = vector.extract_strided_slice %0 {offsets = [8, 0], sizes = [1, 16], strides = [1, 1]} : vector<9x16xf32> to vector<1x16xf32>
    %131 = vector.broadcast %130 : vector<1x16xf32> to vector<4x16xf32>
    %132 = arith.mulf %129, %131 : vector<4x16xf32>
    %133 = arith.addf %84, %90 : vector<4x16xf32>
    %134 = arith.addf %96, %102 : vector<4x16xf32>
    %135 = arith.addf %108, %114 : vector<4x16xf32>
    %136 = arith.addf %120, %126 : vector<4x16xf32>
    %137 = arith.addf %133, %134 : vector<4x16xf32>
    %138 = arith.addf %135, %136 : vector<4x16xf32>
    %139 = arith.addf %137, %138 : vector<4x16xf32>
    %140 = arith.addf %139, %132 : vector<4x16xf32>
    %141 = vector.broadcast %1 : vector<1x16xf32> to vector<4x16xf32>
    %142 = arith.addf %140, %141 : vector<4x16xf32>
    %cst_82 = arith.constant 0.000000e+00 : f32
    %143 = vector.broadcast %cst_82 : f32 to vector<4x16xf32>
    %144 = arith.maximumf %142, %143 : vector<4x16xf32>
    %cst_83 = arith.constant dense<0.000000e+00> : vector<4x16xf32>
    %145 = tpu.matmul %144, %2, %cst_83 {dimension_numbers = #tpu.dot_dimension_numbers<[1], [0], [0], [1], [0, 0, 1, 1], [], []>} : vector<4x16xf32>, vector<16x16xf32>, vector<4x16xf32> -> vector<4x16xf32>
    %146 = vector.broadcast %3 : vector<1x16xf32> to vector<4x16xf32>
    %147 = arith.addf %145, %146 : vector<4x16xf32>
    %cst_84 = arith.constant 0.000000e+00 : f32
    %148 = vector.broadcast %cst_84 : f32 to vector<4x16xf32>
    %149 = arith.maximumf %147, %148 : vector<4x16xf32>
    %150 = arith.truncf %149 : vector<4x16xf32> to vector<4x16xbf16>
    %c0_85 = arith.constant 0 : index
    %c1_86 = arith.constant 1 : index
    %c0_87 = arith.constant 0 : index
    %c0_88 = arith.constant 0 : index
    %151 = vector.load %arg6[%c0_85, %c1_86, %c0_87, %c0_88] : memref<1x4x4x16xbf16, #tpu.memory_space<vmem>>, vector<1x1x4x16xbf16>
    %152 = vector.shape_cast %151 : vector<1x1x4x16xbf16> to vector<4x16xbf16>
    %153 = vector.shape_cast %150 : vector<4x16xbf16> to vector<1x1x4x16xbf16>
    tpu.vector_store %arg6[%c0_85, %c1_86, %c0_87, %c0_88], %153 {strides = array<i32>} : memref<1x4x4x16xbf16, #tpu.memory_space<vmem>>, vector<1x1x4x16xbf16>,
    %c0_89 = arith.constant 0 : index
    %c2_90 = arith.constant 2 : index
    %c0_91 = arith.constant 0 : index
    %c0_92 = arith.constant 0 : index
    %154 = vector.load %arg1[%c0_89, %c2_90, %c0_91, %c0_92] : memref<1x6x6x16xbf16, #tpu.memory_space<vmem>>, vector<1x1x4x16xbf16>
    %155 = vector.shape_cast %154 : vector<1x1x4x16xbf16> to vector<4x16xbf16>
    %156 = arith.extf %155 : vector<4x16xbf16> to vector<4x16xf32>
    %157 = vector.extract_strided_slice %0 {offsets = [0, 0], sizes = [1, 16], strides = [1, 1]} : vector<9x16xf32> to vector<1x16xf32>
    %158 = vector.broadcast %157 : vector<1x16xf32> to vector<4x16xf32>
    %159 = arith.mulf %156, %158 : vector<4x16xf32>
    %c0_93 = arith.constant 0 : index
    %c2_94 = arith.constant 2 : index
    %c1_95 = arith.constant 1 : index
    %c0_96 = arith.constant 0 : index
    %160 = vector.load %arg1[%c0_93, %c2_94, %c1_95, %c0_96] : memref<1x6x6x16xbf16, #tpu.memory_space<vmem>>, vector<1x1x4x16xbf16>
    %161 = vector.shape_cast %160 : vector<1x1x4x16xbf16> to vector<4x16xbf16>
    %162 = arith.extf %161 : vector<4x16xbf16> to vector<4x16xf32>
    %163 = vector.extract_strided_slice %0 {offsets = [1, 0], sizes = [1, 16], strides = [1, 1]} : vector<9x16xf32> to vector<1x16xf32>
    %164 = vector.broadcast %163 : vector<1x16xf32> to vector<4x16xf32>
    %165 = arith.mulf %162, %164 : vector<4x16xf32>
    %c0_97 = arith.constant 0 : index
    %c2_98 = arith.constant 2 : index
    %c2_99 = arith.constant 2 : index
    %c0_100 = arith.constant 0 : index
    %166 = vector.load %arg1[%c0_97, %c2_98, %c2_99, %c0_100] : memref<1x6x6x16xbf16, #tpu.memory_space<vmem>>, vector<1x1x4x16xbf16>
    %167 = vector.shape_cast %166 : vector<1x1x4x16xbf16> to vector<4x16xbf16>
    %168 = arith.extf %167 : vector<4x16xbf16> to vector<4x16xf32>
    %169 = vector.extract_strided_slice %0 {offsets = [2, 0], sizes = [1, 16], strides = [1, 1]} : vector<9x16xf32> to vector<1x16xf32>
    %170 = vector.broadcast %169 : vector<1x16xf32> to vector<4x16xf32>
    %171 = arith.mulf %168, %170 : vector<4x16xf32>
    %c0_101 = arith.constant 0 : index
    %c3_102 = arith.constant 3 : index
    %c0_103 = arith.constant 0 : index
    %c0_104 = arith.constant 0 : index
    %172 = vector.load %arg1[%c0_101, %c3_102, %c0_103, %c0_104] : memref<1x6x6x16xbf16, #tpu.memory_space<vmem>>, vector<1x1x4x16xbf16>
    %173 = vector.shape_cast %172 : vector<1x1x4x16xbf16> to vector<4x16xbf16>
    %174 = arith.extf %173 : vector<4x16xbf16> to vector<4x16xf32>
    %175 = vector.extract_strided_slice %0 {offsets = [3, 0], sizes = [1, 16], strides = [1, 1]} : vector<9x16xf32> to vector<1x16xf32>
    %176 = vector.broadcast %175 : vector<1x16xf32> to vector<4x16xf32>
    %177 = arith.mulf %174, %176 : vector<4x16xf32>
    %c0_105 = arith.constant 0 : index
    %c3_106 = arith.constant 3 : index
    %c1_107 = arith.constant 1 : index
    %c0_108 = arith.constant 0 : index
    %178 = vector.load %arg1[%c0_105, %c3_106, %c1_107, %c0_108] : memref<1x6x6x16xbf16, #tpu.memory_space<vmem>>, vector<1x1x4x16xbf16>
    %179 = vector.shape_cast %178 : vector<1x1x4x16xbf16> to vector<4x16xbf16>
    %180 = arith.extf %179 : vector<4x16xbf16> to vector<4x16xf32>
    %181 = vector.extract_strided_slice %0 {offsets = [4, 0], sizes = [1, 16], strides = [1, 1]} : vector<9x16xf32> to vector<1x16xf32>
    %182 = vector.broadcast %181 : vector<1x16xf32> to vector<4x16xf32>
    %183 = arith.mulf %180, %182 : vector<4x16xf32>
    %c0_109 = arith.constant 0 : index
    %c3_110 = arith.constant 3 : index
    %c2_111 = arith.constant 2 : index
    %c0_112 = arith.constant 0 : index
    %184 = vector.load %arg1[%c0_109, %c3_110, %c2_111, %c0_112] : memref<1x6x6x16xbf16, #tpu.memory_space<vmem>>, vector<1x1x4x16xbf16>
    %185 = vector.shape_cast %184 : vector<1x1x4x16xbf16> to vector<4x16xbf16>
    %186 = arith.extf %185 : vector<4x16xbf16> to vector<4x16xf32>
    %187 = vector.extract_strided_slice %0 {offsets = [5, 0], sizes = [1, 16], strides = [1, 1]} : vector<9x16xf32> to vector<1x16xf32>
    %188 = vector.broadcast %187 : vector<1x16xf32> to vector<4x16xf32>
    %189 = arith.mulf %186, %188 : vector<4x16xf32>
    %c0_113 = arith.constant 0 : index
    %c4 = arith.constant 4 : index
    %c0_114 = arith.constant 0 : index
    %c0_115 = arith.constant 0 : index
    %190 = vector.load %arg1[%c0_113, %c4, %c0_114, %c0_115] : memref<1x6x6x16xbf16, #tpu.memory_space<vmem>>, vector<1x1x4x16xbf16>
    %191 = vector.shape_cast %190 : vector<1x1x4x16xbf16> to vector<4x16xbf16>
    %192 = arith.extf %191 : vector<4x16xbf16> to vector<4x16xf32>
    %193 = vector.extract_strided_slice %0 {offsets = [6, 0], sizes = [1, 16], strides = [1, 1]} : vector<9x16xf32> to vector<1x16xf32>
    %194 = vector.broadcast %193 : vector<1x16xf32> to vector<4x16xf32>
    %195 = arith.mulf %192, %194 : vector<4x16xf32>
    %c0_116 = arith.constant 0 : index
    %c4_117 = arith.constant 4 : index
    %c1_118 = arith.constant 1 : index
    %c0_119 = arith.constant 0 : index
    %196 = vector.load %arg1[%c0_116, %c4_117, %c1_118, %c0_119] : memref<1x6x6x16xbf16, #tpu.memory_space<vmem>>, vector<1x1x4x16xbf16>
    %197 = vector.shape_cast %196 : vector<1x1x4x16xbf16> to vector<4x16xbf16>
    %198 = arith.extf %197 : vector<4x16xbf16> to vector<4x16xf32>
    %199 = vector.extract_strided_slice %0 {offsets = [7, 0], sizes = [1, 16], strides = [1, 1]} : vector<9x16xf32> to vector<1x16xf32>
    %200 = vector.broadcast %199 : vector<1x16xf32> to vector<4x16xf32>
    %201 = arith.mulf %198, %200 : vector<4x16xf32>
    %c0_120 = arith.constant 0 : index
    %c4_121 = arith.constant 4 : index
    %c2_122 = arith.constant 2 : index
    %c0_123 = arith.constant 0 : index
    %202 = vector.load %arg1[%c0_120, %c4_121, %c2_122, %c0_123] : memref<1x6x6x16xbf16, #tpu.memory_space<vmem>>, vector<1x1x4x16xbf16>
    %203 = vector.shape_cast %202 : vector<1x1x4x16xbf16> to vector<4x16xbf16>
    %204 = arith.extf %203 : vector<4x16xbf16> to vector<4x16xf32>
    %205 = vector.extract_strided_slice %0 {offsets = [8, 0], sizes = [1, 16], strides = [1, 1]} : vector<9x16xf32> to vector<1x16xf32>
    %206 = vector.broadcast %205 : vector<1x16xf32> to vector<4x16xf32>
    %207 = arith.mulf %204, %206 : vector<4x16xf32>
    %208 = arith.addf %159, %165 : vector<4x16xf32>
    %209 = arith.addf %171, %177 : vector<4x16xf32>
    %210 = arith.addf %183, %189 : vector<4x16xf32>
    %211 = arith.addf %195, %201 : vector<4x16xf32>
    %212 = arith.addf %208, %209 : vector<4x16xf32>
    %213 = arith.addf %210, %211 : vector<4x16xf32>
    %214 = arith.addf %212, %213 : vector<4x16xf32>
    %215 = arith.addf %214, %207 : vector<4x16xf32>
    %216 = vector.broadcast %1 : vector<1x16xf32> to vector<4x16xf32>
    %217 = arith.addf %215, %216 : vector<4x16xf32>
    %cst_124 = arith.constant 0.000000e+00 : f32
    %218 = vector.broadcast %cst_124 : f32 to vector<4x16xf32>
    %219 = arith.maximumf %217, %218 : vector<4x16xf32>
    %cst_125 = arith.constant dense<0.000000e+00> : vector<4x16xf32>
    %220 = tpu.matmul %219, %2, %cst_125 {dimension_numbers = #tpu.dot_dimension_numbers<[1], [0], [0], [1], [0, 0, 1, 1], [], []>} : vector<4x16xf32>, vector<16x16xf32>, vector<4x16xf32> -> vector<4x16xf32>
    %221 = vector.broadcast %3 : vector<1x16xf32> to vector<4x16xf32>
    %222 = arith.addf %220, %221 : vector<4x16xf32>
    %cst_126 = arith.constant 0.000000e+00 : f32
    %223 = vector.broadcast %cst_126 : f32 to vector<4x16xf32>
    %224 = arith.maximumf %222, %223 : vector<4x16xf32>
    %225 = arith.truncf %224 : vector<4x16xf32> to vector<4x16xbf16>
    %c0_127 = arith.constant 0 : index
    %c2_128 = arith.constant 2 : index
    %c0_129 = arith.constant 0 : index
    %c0_130 = arith.constant 0 : index
    %226 = vector.load %arg6[%c0_127, %c2_128, %c0_129, %c0_130] : memref<1x4x4x16xbf16, #tpu.memory_space<vmem>>, vector<1x1x4x16xbf16>
    %227 = vector.shape_cast %226 : vector<1x1x4x16xbf16> to vector<4x16xbf16>
    %228 = vector.shape_cast %225 : vector<4x16xbf16> to vector<1x1x4x16xbf16>
    tpu.vector_store %arg6[%c0_127, %c2_128, %c0_129, %c0_130], %228 {strides = array<i32>} : memref<1x4x4x16xbf16, #tpu.memory_space<vmem>>, vector<1x1x4x16xbf16>,
    %c0_131 = arith.constant 0 : index
    %c3_132 = arith.constant 3 : index
    %c0_133 = arith.constant 0 : index
    %c0_134 = arith.constant 0 : index
    %229 = vector.load %arg1[%c0_131, %c3_132, %c0_133, %c0_134] : memref<1x6x6x16xbf16, #tpu.memory_space<vmem>>, vector<1x1x4x16xbf16>
    %230 = vector.shape_cast %229 : vector<1x1x4x16xbf16> to vector<4x16xbf16>
    %231 = arith.extf %230 : vector<4x16xbf16> to vector<4x16xf32>
    %232 = vector.extract_strided_slice %0 {offsets = [0, 0], sizes = [1, 16], strides = [1, 1]} : vector<9x16xf32> to vector<1x16xf32>
    %233 = vector.broadcast %232 : vector<1x16xf32> to vector<4x16xf32>
    %234 = arith.mulf %231, %233 : vector<4x16xf32>
    %c0_135 = arith.constant 0 : index
    %c3_136 = arith.constant 3 : index
    %c1_137 = arith.constant 1 : index
    %c0_138 = arith.constant 0 : index
    %235 = vector.load %arg1[%c0_135, %c3_136, %c1_137, %c0_138] : memref<1x6x6x16xbf16, #tpu.memory_space<vmem>>, vector<1x1x4x16xbf16>
    %236 = vector.shape_cast %235 : vector<1x1x4x16xbf16> to vector<4x16xbf16>
    %237 = arith.extf %236 : vector<4x16xbf16> to vector<4x16xf32>
    %238 = vector.extract_strided_slice %0 {offsets = [1, 0], sizes = [1, 16], strides = [1, 1]} : vector<9x16xf32> to vector<1x16xf32>
    %239 = vector.broadcast %238 : vector<1x16xf32> to vector<4x16xf32>
    %240 = arith.mulf %237, %239 : vector<4x16xf32>
    %c0_139 = arith.constant 0 : index
    %c3_140 = arith.constant 3 : index
    %c2_141 = arith.constant 2 : index
    %c0_142 = arith.constant 0 : index
    %241 = vector.load %arg1[%c0_139, %c3_140, %c2_141, %c0_142] : memref<1x6x6x16xbf16, #tpu.memory_space<vmem>>, vector<1x1x4x16xbf16>
    %242 = vector.shape_cast %241 : vector<1x1x4x16xbf16> to vector<4x16xbf16>
    %243 = arith.extf %242 : vector<4x16xbf16> to vector<4x16xf32>
    %244 = vector.extract_strided_slice %0 {offsets = [2, 0], sizes = [1, 16], strides = [1, 1]} : vector<9x16xf32> to vector<1x16xf32>
    %245 = vector.broadcast %244 : vector<1x16xf32> to vector<4x16xf32>
    %246 = arith.mulf %243, %245 : vector<4x16xf32>
    %c0_143 = arith.constant 0 : index
    %c4_144 = arith.constant 4 : index
    %c0_145 = arith.constant 0 : index
    %c0_146 = arith.constant 0 : index
    %247 = vector.load %arg1[%c0_143, %c4_144, %c0_145, %c0_146] : memref<1x6x6x16xbf16, #tpu.memory_space<vmem>>, vector<1x1x4x16xbf16>
    %248 = vector.shape_cast %247 : vector<1x1x4x16xbf16> to vector<4x16xbf16>
    %249 = arith.extf %248 : vector<4x16xbf16> to vector<4x16xf32>
    %250 = vector.extract_strided_slice %0 {offsets = [3, 0], sizes = [1, 16], strides = [1, 1]} : vector<9x16xf32> to vector<1x16xf32>
    %251 = vector.broadcast %250 : vector<1x16xf32> to vector<4x16xf32>
    %252 = arith.mulf %249, %251 : vector<4x16xf32>
    %c0_147 = arith.constant 0 : index
    %c4_148 = arith.constant 4 : index
    %c1_149 = arith.constant 1 : index
    %c0_150 = arith.constant 0 : index
    %253 = vector.load %arg1[%c0_147, %c4_148, %c1_149, %c0_150] : memref<1x6x6x16xbf16, #tpu.memory_space<vmem>>, vector<1x1x4x16xbf16>
    %254 = vector.shape_cast %253 : vector<1x1x4x16xbf16> to vector<4x16xbf16>
    %255 = arith.extf %254 : vector<4x16xbf16> to vector<4x16xf32>
    %256 = vector.extract_strided_slice %0 {offsets = [4, 0], sizes = [1, 16], strides = [1, 1]} : vector<9x16xf32> to vector<1x16xf32>
    %257 = vector.broadcast %256 : vector<1x16xf32> to vector<4x16xf32>
    %258 = arith.mulf %255, %257 : vector<4x16xf32>
    %c0_151 = arith.constant 0 : index
    %c4_152 = arith.constant 4 : index
    %c2_153 = arith.constant 2 : index
    %c0_154 = arith.constant 0 : index
    %259 = vector.load %arg1[%c0_151, %c4_152, %c2_153, %c0_154] : memref<1x6x6x16xbf16, #tpu.memory_space<vmem>>, vector<1x1x4x16xbf16>
    %260 = vector.shape_cast %259 : vector<1x1x4x16xbf16> to vector<4x16xbf16>
    %261 = arith.extf %260 : vector<4x16xbf16> to vector<4x16xf32>
    %262 = vector.extract_strided_slice %0 {offsets = [5, 0], sizes = [1, 16], strides = [1, 1]} : vector<9x16xf32> to vector<1x16xf32>
    %263 = vector.broadcast %262 : vector<1x16xf32> to vector<4x16xf32>
    %264 = arith.mulf %261, %263 : vector<4x16xf32>
    %c0_155 = arith.constant 0 : index
    %c5 = arith.constant 5 : index
    %c0_156 = arith.constant 0 : index
    %c0_157 = arith.constant 0 : index
    %265 = vector.load %arg1[%c0_155, %c5, %c0_156, %c0_157] : memref<1x6x6x16xbf16, #tpu.memory_space<vmem>>, vector<1x1x4x16xbf16>
    %266 = vector.shape_cast %265 : vector<1x1x4x16xbf16> to vector<4x16xbf16>
    %267 = arith.extf %266 : vector<4x16xbf16> to vector<4x16xf32>
    %268 = vector.extract_strided_slice %0 {offsets = [6, 0], sizes = [1, 16], strides = [1, 1]} : vector<9x16xf32> to vector<1x16xf32>
    %269 = vector.broadcast %268 : vector<1x16xf32> to vector<4x16xf32>
    %270 = arith.mulf %267, %269 : vector<4x16xf32>
    %c0_158 = arith.constant 0 : index
    %c5_159 = arith.constant 5 : index
    %c1_160 = arith.constant 1 : index
    %c0_161 = arith.constant 0 : index
    %271 = vector.load %arg1[%c0_158, %c5_159, %c1_160, %c0_161] : memref<1x6x6x16xbf16, #tpu.memory_space<vmem>>, vector<1x1x4x16xbf16>
    %272 = vector.shape_cast %271 : vector<1x1x4x16xbf16> to vector<4x16xbf16>
    %273 = arith.extf %272 : vector<4x16xbf16> to vector<4x16xf32>
    %274 = vector.extract_strided_slice %0 {offsets = [7, 0], sizes = [1, 16], strides = [1, 1]} : vector<9x16xf32> to vector<1x16xf32>
    %275 = vector.broadcast %274 : vector<1x16xf32> to vector<4x16xf32>
    %276 = arith.mulf %273, %275 : vector<4x16xf32>
    %c0_162 = arith.constant 0 : index
    %c5_163 = arith.constant 5 : index
    %c2_164 = arith.constant 2 : index
    %c0_165 = arith.constant 0 : index
    %277 = vector.load %arg1[%c0_162, %c5_163, %c2_164, %c0_165] : memref<1x6x6x16xbf16, #tpu.memory_space<vmem>>, vector<1x1x4x16xbf16>
    %278 = vector.shape_cast %277 : vector<1x1x4x16xbf16> to vector<4x16xbf16>
    %279 = arith.extf %278 : vector<4x16xbf16> to vector<4x16xf32>
    %280 = vector.extract_strided_slice %0 {offsets = [8, 0], sizes = [1, 16], strides = [1, 1]} : vector<9x16xf32> to vector<1x16xf32>
    %281 = vector.broadcast %280 : vector<1x16xf32> to vector<4x16xf32>
    %282 = arith.mulf %279, %281 : vector<4x16xf32>
    %283 = arith.addf %234, %240 : vector<4x16xf32>
    %284 = arith.addf %246, %252 : vector<4x16xf32>
    %285 = arith.addf %258, %264 : vector<4x16xf32>
    %286 = arith.addf %270, %276 : vector<4x16xf32>
    %287 = arith.addf %283, %284 : vector<4x16xf32>
    %288 = arith.addf %285, %286 : vector<4x16xf32>
    %289 = arith.addf %287, %288 : vector<4x16xf32>
    %290 = arith.addf %289, %282 : vector<4x16xf32>
    %291 = vector.broadcast %1 : vector<1x16xf32> to vector<4x16xf32>
    %292 = arith.addf %290, %291 : vector<4x16xf32>
    %cst_166 = arith.constant 0.000000e+00 : f32
    %293 = vector.broadcast %cst_166 : f32 to vector<4x16xf32>
    %294 = arith.maximumf %292, %293 : vector<4x16xf32>
    %cst_167 = arith.constant dense<0.000000e+00> : vector<4x16xf32>
    %295 = tpu.matmul %294, %2, %cst_167 {dimension_numbers = #tpu.dot_dimension_numbers<[1], [0], [0], [1], [0, 0, 1, 1], [], []>} : vector<4x16xf32>, vector<16x16xf32>, vector<4x16xf32> -> vector<4x16xf32>
    %296 = vector.broadcast %3 : vector<1x16xf32> to vector<4x16xf32>
    %297 = arith.addf %295, %296 : vector<4x16xf32>
    %cst_168 = arith.constant 0.000000e+00 : f32
    %298 = vector.broadcast %cst_168 : f32 to vector<4x16xf32>
    %299 = arith.maximumf %297, %298 : vector<4x16xf32>
    %300 = arith.truncf %299 : vector<4x16xf32> to vector<4x16xbf16>
    %c0_169 = arith.constant 0 : index
    %c3_170 = arith.constant 3 : index
    %c0_171 = arith.constant 0 : index
    %c0_172 = arith.constant 0 : index
    %301 = vector.load %arg6[%c0_169, %c3_170, %c0_171, %c0_172] : memref<1x4x4x16xbf16, #tpu.memory_space<vmem>>, vector<1x1x4x16xbf16>
    %302 = vector.shape_cast %301 : vector<1x1x4x16xbf16> to vector<4x16xbf16>
    %303 = vector.shape_cast %300 : vector<4x16xbf16> to vector<1x1x4x16xbf16>
    tpu.vector_store %arg6[%c0_169, %c3_170, %c0_171, %c0_172], %303 {strides = array<i32>} : memref<1x4x4x16xbf16, #tpu.memory_space<vmem>>, vector<1x1x4x16xbf16>,
    return
  }
  func.func @transform_0(%arg0: i32) -> (i32, i32, i32, i32) {
    %c0_i32 = arith.constant 0 : i32
    %c0_i32_0 = arith.constant 0 : i32
    %c0_i32_1 = arith.constant 0 : i32
    %c0_i32_2 = arith.constant 0 : i32
    return %arg0, %c0_i32, %c0_i32_0, %c0_i32_1 : i32, i32, i32, i32
  }
  func.func @transform_1(%arg0: i32) -> (i32, i32) {
    %c0_i32 = arith.constant 0 : i32
    %c0_i32_0 = arith.constant 0 : i32
    %c0_i32_1 = arith.constant 0 : i32
    return %c0_i32, %c0_i32_0 : i32, i32
  }
  func.func @transform_2(%arg0: i32) -> (i32, i32) {
    %c0_i32 = arith.constant 0 : i32
    %c0_i32_0 = arith.constant 0 : i32
    %c0_i32_1 = arith.constant 0 : i32
    return %c0_i32, %c0_i32_0 : i32, i32
  }
  func.func @transform_3(%arg0: i32) -> (i32, i32) {
    %c0_i32 = arith.constant 0 : i32
    %c0_i32_0 = arith.constant 0 : i32
    %c0_i32_1 = arith.constant 0 : i32
    return %c0_i32, %c0_i32_0 : i32, i32
  }
  func.func @transform_4(%arg0: i32) -> (i32, i32) {
    %c0_i32 = arith.constant 0 : i32
    %c0_i32_0 = arith.constant 0 : i32
    %c0_i32_1 = arith.constant 0 : i32
    return %c0_i32, %c0_i32_0 : i32, i32
  }
  func.func @transform_5(%arg0: i32) -> (i32, i32, i32, i32) {
    %c0_i32 = arith.constant 0 : i32
    %c0_i32_0 = arith.constant 0 : i32
    %c0_i32_1 = arith.constant 0 : i32
    %c0_i32_2 = arith.constant 0 : i32
    return %arg0, %c0_i32, %c0_i32_0, %c0_i32_1 : i32, i32, i32, i32
  }
}

module attributes {stable_mosaic.version = 11 : i64} {
  func.func @kernel(%arg0: i32, %arg1: memref<1x10x5x8xbf16, #tpu.memory_space<vmem>>, %arg2: memref<1x10x5x8xbf16, #tpu.memory_space<vmem>>, %arg3: memref<9x8xf32, #tpu.memory_space<vmem>>, %arg4: memref<1x8xf32, #tpu.memory_space<vmem>>, %arg5: memref<8x16xf32, #tpu.memory_space<vmem>>, %arg6: memref<1x16xf32, #tpu.memory_space<vmem>>, %arg7: memref<1x4x4x16xbf16, #tpu.memory_space<vmem>>) attributes {dimension_semantics = [#tpu.dimension_semantics<parallel>], iteration_bounds = array<i64: 2>, scalar_prefetch = 0 : i64, scratch_operands = 0 : i64, tpu.core_type = #tpu.core_type<tc>, window_params = [{transform_indices = @transform_0, window_bounds = array<i64: 1, 10, 5, 8>}, {transform_indices = @transform_1, window_bounds = array<i64: 1, 10, 5, 8>}, {pipeline_mode = #tpu.pipeline_mode<synchronous>, transform_indices = @transform_2, window_bounds = array<i64: 9, 8>}, {pipeline_mode = #tpu.pipeline_mode<synchronous>, transform_indices = @transform_3, window_bounds = array<i64: 1, 8>}, {pipeline_mode = #tpu.pipeline_mode<synchronous>, transform_indices = @transform_4, window_bounds = array<i64: 8, 16>}, {pipeline_mode = #tpu.pipeline_mode<synchronous>, transform_indices = @transform_5, window_bounds = array<i64: 1, 16>}, {transform_indices = @transform_6, window_bounds = array<i64: 1, 4, 4, 16>}]} {
    %c0 = arith.constant 0 : index
    %c0_0 = arith.constant 0 : index
    %0 = vector.load %arg3[%c0, %c0_0] : memref<9x8xf32, #tpu.memory_space<vmem>>, vector<9x8xf32>
    %c0_1 = arith.constant 0 : index
    %c0_2 = arith.constant 0 : index
    %1 = vector.load %arg4[%c0_1, %c0_2] : memref<1x8xf32, #tpu.memory_space<vmem>>, vector<1x8xf32>
    %c0_3 = arith.constant 0 : index
    %c0_4 = arith.constant 0 : index
    %2 = vector.load %arg5[%c0_3, %c0_4] : memref<8x16xf32, #tpu.memory_space<vmem>>, vector<8x16xf32>
    %c0_5 = arith.constant 0 : index
    %c0_6 = arith.constant 0 : index
    %3 = vector.load %arg6[%c0_5, %c0_6] : memref<1x16xf32, #tpu.memory_space<vmem>>, vector<1x16xf32>
    %c0_7 = arith.constant 0 : index
    %c0_8 = arith.constant 0 : index
    %c0_9 = arith.constant 0 : index
    %c0_10 = arith.constant 0 : index
    %4 = vector.load %arg1[%c0_7, %c0_8, %c0_9, %c0_10] : memref<1x10x5x8xbf16, #tpu.memory_space<vmem>>, vector<1x1x4x8xbf16>
    %5 = vector.shape_cast %4 : vector<1x1x4x8xbf16> to vector<4x8xbf16>
    %6 = arith.extf %5 : vector<4x8xbf16> to vector<4x8xf32>
    %7 = vector.extract_strided_slice %0 {offsets = [0, 0], sizes = [1, 8], strides = [1, 1]} : vector<9x8xf32> to vector<1x8xf32>
    %8 = vector.broadcast %7 : vector<1x8xf32> to vector<4x8xf32>
    %9 = arith.mulf %6, %8 : vector<4x8xf32>
    %c0_11 = arith.constant 0 : index
    %c0_12 = arith.constant 0 : index
    %c0_13 = arith.constant 0 : index
    %c0_14 = arith.constant 0 : index
    %10 = vector.load %arg2[%c0_11, %c0_12, %c0_13, %c0_14] : memref<1x10x5x8xbf16, #tpu.memory_space<vmem>>, vector<1x1x4x8xbf16>
    %11 = vector.shape_cast %10 : vector<1x1x4x8xbf16> to vector<4x8xbf16>
    %12 = arith.extf %11 : vector<4x8xbf16> to vector<4x8xf32>
    %13 = vector.extract_strided_slice %0 {offsets = [1, 0], sizes = [1, 8], strides = [1, 1]} : vector<9x8xf32> to vector<1x8xf32>
    %14 = vector.broadcast %13 : vector<1x8xf32> to vector<4x8xf32>
    %15 = arith.mulf %12, %14 : vector<4x8xf32>
    %c0_15 = arith.constant 0 : index
    %c0_16 = arith.constant 0 : index
    %c1 = arith.constant 1 : index
    %c0_17 = arith.constant 0 : index
    %16 = vector.load %arg1[%c0_15, %c0_16, %c1, %c0_17] : memref<1x10x5x8xbf16, #tpu.memory_space<vmem>>, vector<1x1x4x8xbf16>
    %17 = vector.shape_cast %16 : vector<1x1x4x8xbf16> to vector<4x8xbf16>
    %18 = arith.extf %17 : vector<4x8xbf16> to vector<4x8xf32>
    %19 = vector.extract_strided_slice %0 {offsets = [2, 0], sizes = [1, 8], strides = [1, 1]} : vector<9x8xf32> to vector<1x8xf32>
    %20 = vector.broadcast %19 : vector<1x8xf32> to vector<4x8xf32>
    %21 = arith.mulf %18, %20 : vector<4x8xf32>
    %c0_18 = arith.constant 0 : index
    %c1_19 = arith.constant 1 : index
    %c0_20 = arith.constant 0 : index
    %c0_21 = arith.constant 0 : index
    %22 = vector.load %arg1[%c0_18, %c1_19, %c0_20, %c0_21] : memref<1x10x5x8xbf16, #tpu.memory_space<vmem>>, vector<1x1x4x8xbf16>
    %23 = vector.shape_cast %22 : vector<1x1x4x8xbf16> to vector<4x8xbf16>
    %24 = arith.extf %23 : vector<4x8xbf16> to vector<4x8xf32>
    %25 = vector.extract_strided_slice %0 {offsets = [3, 0], sizes = [1, 8], strides = [1, 1]} : vector<9x8xf32> to vector<1x8xf32>
    %26 = vector.broadcast %25 : vector<1x8xf32> to vector<4x8xf32>
    %27 = arith.mulf %24, %26 : vector<4x8xf32>
    %c0_22 = arith.constant 0 : index
    %c1_23 = arith.constant 1 : index
    %c0_24 = arith.constant 0 : index
    %c0_25 = arith.constant 0 : index
    %28 = vector.load %arg2[%c0_22, %c1_23, %c0_24, %c0_25] : memref<1x10x5x8xbf16, #tpu.memory_space<vmem>>, vector<1x1x4x8xbf16>
    %29 = vector.shape_cast %28 : vector<1x1x4x8xbf16> to vector<4x8xbf16>
    %30 = arith.extf %29 : vector<4x8xbf16> to vector<4x8xf32>
    %31 = vector.extract_strided_slice %0 {offsets = [4, 0], sizes = [1, 8], strides = [1, 1]} : vector<9x8xf32> to vector<1x8xf32>
    %32 = vector.broadcast %31 : vector<1x8xf32> to vector<4x8xf32>
    %33 = arith.mulf %30, %32 : vector<4x8xf32>
    %c0_26 = arith.constant 0 : index
    %c1_27 = arith.constant 1 : index
    %c1_28 = arith.constant 1 : index
    %c0_29 = arith.constant 0 : index
    %34 = vector.load %arg1[%c0_26, %c1_27, %c1_28, %c0_29] : memref<1x10x5x8xbf16, #tpu.memory_space<vmem>>, vector<1x1x4x8xbf16>
    %35 = vector.shape_cast %34 : vector<1x1x4x8xbf16> to vector<4x8xbf16>
    %36 = arith.extf %35 : vector<4x8xbf16> to vector<4x8xf32>
    %37 = vector.extract_strided_slice %0 {offsets = [5, 0], sizes = [1, 8], strides = [1, 1]} : vector<9x8xf32> to vector<1x8xf32>
    %38 = vector.broadcast %37 : vector<1x8xf32> to vector<4x8xf32>
    %39 = arith.mulf %36, %38 : vector<4x8xf32>
    %c0_30 = arith.constant 0 : index
    %c2 = arith.constant 2 : index
    %c0_31 = arith.constant 0 : index
    %c0_32 = arith.constant 0 : index
    %40 = vector.load %arg1[%c0_30, %c2, %c0_31, %c0_32] : memref<1x10x5x8xbf16, #tpu.memory_space<vmem>>, vector<1x1x4x8xbf16>
    %41 = vector.shape_cast %40 : vector<1x1x4x8xbf16> to vector<4x8xbf16>
    %42 = arith.extf %41 : vector<4x8xbf16> to vector<4x8xf32>
    %43 = vector.extract_strided_slice %0 {offsets = [6, 0], sizes = [1, 8], strides = [1, 1]} : vector<9x8xf32> to vector<1x8xf32>
    %44 = vector.broadcast %43 : vector<1x8xf32> to vector<4x8xf32>
    %45 = arith.mulf %42, %44 : vector<4x8xf32>
    %c0_33 = arith.constant 0 : index
    %c2_34 = arith.constant 2 : index
    %c0_35 = arith.constant 0 : index
    %c0_36 = arith.constant 0 : index
    %46 = vector.load %arg2[%c0_33, %c2_34, %c0_35, %c0_36] : memref<1x10x5x8xbf16, #tpu.memory_space<vmem>>, vector<1x1x4x8xbf16>
    %47 = vector.shape_cast %46 : vector<1x1x4x8xbf16> to vector<4x8xbf16>
    %48 = arith.extf %47 : vector<4x8xbf16> to vector<4x8xf32>
    %49 = vector.extract_strided_slice %0 {offsets = [7, 0], sizes = [1, 8], strides = [1, 1]} : vector<9x8xf32> to vector<1x8xf32>
    %50 = vector.broadcast %49 : vector<1x8xf32> to vector<4x8xf32>
    %51 = arith.mulf %48, %50 : vector<4x8xf32>
    %c0_37 = arith.constant 0 : index
    %c2_38 = arith.constant 2 : index
    %c1_39 = arith.constant 1 : index
    %c0_40 = arith.constant 0 : index
    %52 = vector.load %arg1[%c0_37, %c2_38, %c1_39, %c0_40] : memref<1x10x5x8xbf16, #tpu.memory_space<vmem>>, vector<1x1x4x8xbf16>
    %53 = vector.shape_cast %52 : vector<1x1x4x8xbf16> to vector<4x8xbf16>
    %54 = arith.extf %53 : vector<4x8xbf16> to vector<4x8xf32>
    %55 = vector.extract_strided_slice %0 {offsets = [8, 0], sizes = [1, 8], strides = [1, 1]} : vector<9x8xf32> to vector<1x8xf32>
    %56 = vector.broadcast %55 : vector<1x8xf32> to vector<4x8xf32>
    %57 = arith.mulf %54, %56 : vector<4x8xf32>
    %58 = arith.addf %9, %15 : vector<4x8xf32>
    %59 = arith.addf %21, %27 : vector<4x8xf32>
    %60 = arith.addf %33, %39 : vector<4x8xf32>
    %61 = arith.addf %45, %51 : vector<4x8xf32>
    %62 = arith.addf %58, %59 : vector<4x8xf32>
    %63 = arith.addf %60, %61 : vector<4x8xf32>
    %64 = arith.addf %62, %63 : vector<4x8xf32>
    %65 = arith.addf %64, %57 : vector<4x8xf32>
    %66 = vector.broadcast %1 : vector<1x8xf32> to vector<4x8xf32>
    %67 = arith.addf %65, %66 : vector<4x8xf32>
    %cst = arith.constant 0.000000e+00 : f32
    %68 = vector.broadcast %cst : f32 to vector<4x8xf32>
    %69 = arith.maximumf %67, %68 : vector<4x8xf32>
    %cst_41 = arith.constant dense<0.000000e+00> : vector<4x16xf32>
    %70 = tpu.matmul %69, %2, %cst_41 {dimension_numbers = #tpu.dot_dimension_numbers<[1], [0], [0], [1], [0, 0, 1, 1], [], []>} : vector<4x8xf32>, vector<8x16xf32>, vector<4x16xf32> -> vector<4x16xf32>
    %71 = vector.broadcast %3 : vector<1x16xf32> to vector<4x16xf32>
    %72 = arith.addf %70, %71 : vector<4x16xf32>
    %cst_42 = arith.constant 0.000000e+00 : f32
    %73 = vector.broadcast %cst_42 : f32 to vector<4x16xf32>
    %74 = arith.maximumf %72, %73 : vector<4x16xf32>
    %75 = arith.truncf %74 : vector<4x16xf32> to vector<4x16xbf16>
    %c0_43 = arith.constant 0 : index
    %c0_44 = arith.constant 0 : index
    %c0_45 = arith.constant 0 : index
    %c0_46 = arith.constant 0 : index
    %76 = vector.load %arg7[%c0_43, %c0_44, %c0_45, %c0_46] : memref<1x4x4x16xbf16, #tpu.memory_space<vmem>>, vector<1x1x4x16xbf16>
    %77 = vector.shape_cast %76 : vector<1x1x4x16xbf16> to vector<4x16xbf16>
    %78 = vector.shape_cast %75 : vector<4x16xbf16> to vector<1x1x4x16xbf16>
    tpu.vector_store %arg7[%c0_43, %c0_44, %c0_45, %c0_46], %78 {strides = array<i32>} : memref<1x4x4x16xbf16, #tpu.memory_space<vmem>>, vector<1x1x4x16xbf16>,
    %c0_47 = arith.constant 0 : index
    %c2_48 = arith.constant 2 : index
    %c0_49 = arith.constant 0 : index
    %c0_50 = arith.constant 0 : index
    %79 = vector.load %arg1[%c0_47, %c2_48, %c0_49, %c0_50] : memref<1x10x5x8xbf16, #tpu.memory_space<vmem>>, vector<1x1x4x8xbf16>
    %80 = vector.shape_cast %79 : vector<1x1x4x8xbf16> to vector<4x8xbf16>
    %81 = arith.extf %80 : vector<4x8xbf16> to vector<4x8xf32>
    %82 = vector.extract_strided_slice %0 {offsets = [0, 0], sizes = [1, 8], strides = [1, 1]} : vector<9x8xf32> to vector<1x8xf32>
    %83 = vector.broadcast %82 : vector<1x8xf32> to vector<4x8xf32>
    %84 = arith.mulf %81, %83 : vector<4x8xf32>
    %c0_51 = arith.constant 0 : index
    %c2_52 = arith.constant 2 : index
    %c0_53 = arith.constant 0 : index
    %c0_54 = arith.constant 0 : index
    %85 = vector.load %arg2[%c0_51, %c2_52, %c0_53, %c0_54] : memref<1x10x5x8xbf16, #tpu.memory_space<vmem>>, vector<1x1x4x8xbf16>
    %86 = vector.shape_cast %85 : vector<1x1x4x8xbf16> to vector<4x8xbf16>
    %87 = arith.extf %86 : vector<4x8xbf16> to vector<4x8xf32>
    %88 = vector.extract_strided_slice %0 {offsets = [1, 0], sizes = [1, 8], strides = [1, 1]} : vector<9x8xf32> to vector<1x8xf32>
    %89 = vector.broadcast %88 : vector<1x8xf32> to vector<4x8xf32>
    %90 = arith.mulf %87, %89 : vector<4x8xf32>
    %c0_55 = arith.constant 0 : index
    %c2_56 = arith.constant 2 : index
    %c1_57 = arith.constant 1 : index
    %c0_58 = arith.constant 0 : index
    %91 = vector.load %arg1[%c0_55, %c2_56, %c1_57, %c0_58] : memref<1x10x5x8xbf16, #tpu.memory_space<vmem>>, vector<1x1x4x8xbf16>
    %92 = vector.shape_cast %91 : vector<1x1x4x8xbf16> to vector<4x8xbf16>
    %93 = arith.extf %92 : vector<4x8xbf16> to vector<4x8xf32>
    %94 = vector.extract_strided_slice %0 {offsets = [2, 0], sizes = [1, 8], strides = [1, 1]} : vector<9x8xf32> to vector<1x8xf32>
    %95 = vector.broadcast %94 : vector<1x8xf32> to vector<4x8xf32>
    %96 = arith.mulf %93, %95 : vector<4x8xf32>
    %c0_59 = arith.constant 0 : index
    %c3 = arith.constant 3 : index
    %c0_60 = arith.constant 0 : index
    %c0_61 = arith.constant 0 : index
    %97 = vector.load %arg1[%c0_59, %c3, %c0_60, %c0_61] : memref<1x10x5x8xbf16, #tpu.memory_space<vmem>>, vector<1x1x4x8xbf16>
    %98 = vector.shape_cast %97 : vector<1x1x4x8xbf16> to vector<4x8xbf16>
    %99 = arith.extf %98 : vector<4x8xbf16> to vector<4x8xf32>
    %100 = vector.extract_strided_slice %0 {offsets = [3, 0], sizes = [1, 8], strides = [1, 1]} : vector<9x8xf32> to vector<1x8xf32>
    %101 = vector.broadcast %100 : vector<1x8xf32> to vector<4x8xf32>
    %102 = arith.mulf %99, %101 : vector<4x8xf32>
    %c0_62 = arith.constant 0 : index
    %c3_63 = arith.constant 3 : index
    %c0_64 = arith.constant 0 : index
    %c0_65 = arith.constant 0 : index
    %103 = vector.load %arg2[%c0_62, %c3_63, %c0_64, %c0_65] : memref<1x10x5x8xbf16, #tpu.memory_space<vmem>>, vector<1x1x4x8xbf16>
    %104 = vector.shape_cast %103 : vector<1x1x4x8xbf16> to vector<4x8xbf16>
    %105 = arith.extf %104 : vector<4x8xbf16> to vector<4x8xf32>
    %106 = vector.extract_strided_slice %0 {offsets = [4, 0], sizes = [1, 8], strides = [1, 1]} : vector<9x8xf32> to vector<1x8xf32>
    %107 = vector.broadcast %106 : vector<1x8xf32> to vector<4x8xf32>
    %108 = arith.mulf %105, %107 : vector<4x8xf32>
    %c0_66 = arith.constant 0 : index
    %c3_67 = arith.constant 3 : index
    %c1_68 = arith.constant 1 : index
    %c0_69 = arith.constant 0 : index
    %109 = vector.load %arg1[%c0_66, %c3_67, %c1_68, %c0_69] : memref<1x10x5x8xbf16, #tpu.memory_space<vmem>>, vector<1x1x4x8xbf16>
    %110 = vector.shape_cast %109 : vector<1x1x4x8xbf16> to vector<4x8xbf16>
    %111 = arith.extf %110 : vector<4x8xbf16> to vector<4x8xf32>
    %112 = vector.extract_strided_slice %0 {offsets = [5, 0], sizes = [1, 8], strides = [1, 1]} : vector<9x8xf32> to vector<1x8xf32>
    %113 = vector.broadcast %112 : vector<1x8xf32> to vector<4x8xf32>
    %114 = arith.mulf %111, %113 : vector<4x8xf32>
    %c0_70 = arith.constant 0 : index
    %c4 = arith.constant 4 : index
    %c0_71 = arith.constant 0 : index
    %c0_72 = arith.constant 0 : index
    %115 = vector.load %arg1[%c0_70, %c4, %c0_71, %c0_72] : memref<1x10x5x8xbf16, #tpu.memory_space<vmem>>, vector<1x1x4x8xbf16>
    %116 = vector.shape_cast %115 : vector<1x1x4x8xbf16> to vector<4x8xbf16>
    %117 = arith.extf %116 : vector<4x8xbf16> to vector<4x8xf32>
    %118 = vector.extract_strided_slice %0 {offsets = [6, 0], sizes = [1, 8], strides = [1, 1]} : vector<9x8xf32> to vector<1x8xf32>
    %119 = vector.broadcast %118 : vector<1x8xf32> to vector<4x8xf32>
    %120 = arith.mulf %117, %119 : vector<4x8xf32>
    %c0_73 = arith.constant 0 : index
    %c4_74 = arith.constant 4 : index
    %c0_75 = arith.constant 0 : index
    %c0_76 = arith.constant 0 : index
    %121 = vector.load %arg2[%c0_73, %c4_74, %c0_75, %c0_76] : memref<1x10x5x8xbf16, #tpu.memory_space<vmem>>, vector<1x1x4x8xbf16>
    %122 = vector.shape_cast %121 : vector<1x1x4x8xbf16> to vector<4x8xbf16>
    %123 = arith.extf %122 : vector<4x8xbf16> to vector<4x8xf32>
    %124 = vector.extract_strided_slice %0 {offsets = [7, 0], sizes = [1, 8], strides = [1, 1]} : vector<9x8xf32> to vector<1x8xf32>
    %125 = vector.broadcast %124 : vector<1x8xf32> to vector<4x8xf32>
    %126 = arith.mulf %123, %125 : vector<4x8xf32>
    %c0_77 = arith.constant 0 : index
    %c4_78 = arith.constant 4 : index
    %c1_79 = arith.constant 1 : index
    %c0_80 = arith.constant 0 : index
    %127 = vector.load %arg1[%c0_77, %c4_78, %c1_79, %c0_80] : memref<1x10x5x8xbf16, #tpu.memory_space<vmem>>, vector<1x1x4x8xbf16>
    %128 = vector.shape_cast %127 : vector<1x1x4x8xbf16> to vector<4x8xbf16>
    %129 = arith.extf %128 : vector<4x8xbf16> to vector<4x8xf32>
    %130 = vector.extract_strided_slice %0 {offsets = [8, 0], sizes = [1, 8], strides = [1, 1]} : vector<9x8xf32> to vector<1x8xf32>
    %131 = vector.broadcast %130 : vector<1x8xf32> to vector<4x8xf32>
    %132 = arith.mulf %129, %131 : vector<4x8xf32>
    %133 = arith.addf %84, %90 : vector<4x8xf32>
    %134 = arith.addf %96, %102 : vector<4x8xf32>
    %135 = arith.addf %108, %114 : vector<4x8xf32>
    %136 = arith.addf %120, %126 : vector<4x8xf32>
    %137 = arith.addf %133, %134 : vector<4x8xf32>
    %138 = arith.addf %135, %136 : vector<4x8xf32>
    %139 = arith.addf %137, %138 : vector<4x8xf32>
    %140 = arith.addf %139, %132 : vector<4x8xf32>
    %141 = vector.broadcast %1 : vector<1x8xf32> to vector<4x8xf32>
    %142 = arith.addf %140, %141 : vector<4x8xf32>
    %cst_81 = arith.constant 0.000000e+00 : f32
    %143 = vector.broadcast %cst_81 : f32 to vector<4x8xf32>
    %144 = arith.maximumf %142, %143 : vector<4x8xf32>
    %cst_82 = arith.constant dense<0.000000e+00> : vector<4x16xf32>
    %145 = tpu.matmul %144, %2, %cst_82 {dimension_numbers = #tpu.dot_dimension_numbers<[1], [0], [0], [1], [0, 0, 1, 1], [], []>} : vector<4x8xf32>, vector<8x16xf32>, vector<4x16xf32> -> vector<4x16xf32>
    %146 = vector.broadcast %3 : vector<1x16xf32> to vector<4x16xf32>
    %147 = arith.addf %145, %146 : vector<4x16xf32>
    %cst_83 = arith.constant 0.000000e+00 : f32
    %148 = vector.broadcast %cst_83 : f32 to vector<4x16xf32>
    %149 = arith.maximumf %147, %148 : vector<4x16xf32>
    %150 = arith.truncf %149 : vector<4x16xf32> to vector<4x16xbf16>
    %c0_84 = arith.constant 0 : index
    %c1_85 = arith.constant 1 : index
    %c0_86 = arith.constant 0 : index
    %c0_87 = arith.constant 0 : index
    %151 = vector.load %arg7[%c0_84, %c1_85, %c0_86, %c0_87] : memref<1x4x4x16xbf16, #tpu.memory_space<vmem>>, vector<1x1x4x16xbf16>
    %152 = vector.shape_cast %151 : vector<1x1x4x16xbf16> to vector<4x16xbf16>
    %153 = vector.shape_cast %150 : vector<4x16xbf16> to vector<1x1x4x16xbf16>
    tpu.vector_store %arg7[%c0_84, %c1_85, %c0_86, %c0_87], %153 {strides = array<i32>} : memref<1x4x4x16xbf16, #tpu.memory_space<vmem>>, vector<1x1x4x16xbf16>,
    %c0_88 = arith.constant 0 : index
    %c4_89 = arith.constant 4 : index
    %c0_90 = arith.constant 0 : index
    %c0_91 = arith.constant 0 : index
    %154 = vector.load %arg1[%c0_88, %c4_89, %c0_90, %c0_91] : memref<1x10x5x8xbf16, #tpu.memory_space<vmem>>, vector<1x1x4x8xbf16>
    %155 = vector.shape_cast %154 : vector<1x1x4x8xbf16> to vector<4x8xbf16>
    %156 = arith.extf %155 : vector<4x8xbf16> to vector<4x8xf32>
    %157 = vector.extract_strided_slice %0 {offsets = [0, 0], sizes = [1, 8], strides = [1, 1]} : vector<9x8xf32> to vector<1x8xf32>
    %158 = vector.broadcast %157 : vector<1x8xf32> to vector<4x8xf32>
    %159 = arith.mulf %156, %158 : vector<4x8xf32>
    %c0_92 = arith.constant 0 : index
    %c4_93 = arith.constant 4 : index
    %c0_94 = arith.constant 0 : index
    %c0_95 = arith.constant 0 : index
    %160 = vector.load %arg2[%c0_92, %c4_93, %c0_94, %c0_95] : memref<1x10x5x8xbf16, #tpu.memory_space<vmem>>, vector<1x1x4x8xbf16>
    %161 = vector.shape_cast %160 : vector<1x1x4x8xbf16> to vector<4x8xbf16>
    %162 = arith.extf %161 : vector<4x8xbf16> to vector<4x8xf32>
    %163 = vector.extract_strided_slice %0 {offsets = [1, 0], sizes = [1, 8], strides = [1, 1]} : vector<9x8xf32> to vector<1x8xf32>
    %164 = vector.broadcast %163 : vector<1x8xf32> to vector<4x8xf32>
    %165 = arith.mulf %162, %164 : vector<4x8xf32>
    %c0_96 = arith.constant 0 : index
    %c4_97 = arith.constant 4 : index
    %c1_98 = arith.constant 1 : index
    %c0_99 = arith.constant 0 : index
    %166 = vector.load %arg1[%c0_96, %c4_97, %c1_98, %c0_99] : memref<1x10x5x8xbf16, #tpu.memory_space<vmem>>, vector<1x1x4x8xbf16>
    %167 = vector.shape_cast %166 : vector<1x1x4x8xbf16> to vector<4x8xbf16>
    %168 = arith.extf %167 : vector<4x8xbf16> to vector<4x8xf32>
    %169 = vector.extract_strided_slice %0 {offsets = [2, 0], sizes = [1, 8], strides = [1, 1]} : vector<9x8xf32> to vector<1x8xf32>
    %170 = vector.broadcast %169 : vector<1x8xf32> to vector<4x8xf32>
    %171 = arith.mulf %168, %170 : vector<4x8xf32>
    %c0_100 = arith.constant 0 : index
    %c5 = arith.constant 5 : index
    %c0_101 = arith.constant 0 : index
    %c0_102 = arith.constant 0 : index
    %172 = vector.load %arg1[%c0_100, %c5, %c0_101, %c0_102] : memref<1x10x5x8xbf16, #tpu.memory_space<vmem>>, vector<1x1x4x8xbf16>
    %173 = vector.shape_cast %172 : vector<1x1x4x8xbf16> to vector<4x8xbf16>
    %174 = arith.extf %173 : vector<4x8xbf16> to vector<4x8xf32>
    %175 = vector.extract_strided_slice %0 {offsets = [3, 0], sizes = [1, 8], strides = [1, 1]} : vector<9x8xf32> to vector<1x8xf32>
    %176 = vector.broadcast %175 : vector<1x8xf32> to vector<4x8xf32>
    %177 = arith.mulf %174, %176 : vector<4x8xf32>
    %c0_103 = arith.constant 0 : index
    %c5_104 = arith.constant 5 : index
    %c0_105 = arith.constant 0 : index
    %c0_106 = arith.constant 0 : index
    %178 = vector.load %arg2[%c0_103, %c5_104, %c0_105, %c0_106] : memref<1x10x5x8xbf16, #tpu.memory_space<vmem>>, vector<1x1x4x8xbf16>
    %179 = vector.shape_cast %178 : vector<1x1x4x8xbf16> to vector<4x8xbf16>
    %180 = arith.extf %179 : vector<4x8xbf16> to vector<4x8xf32>
    %181 = vector.extract_strided_slice %0 {offsets = [4, 0], sizes = [1, 8], strides = [1, 1]} : vector<9x8xf32> to vector<1x8xf32>
    %182 = vector.broadcast %181 : vector<1x8xf32> to vector<4x8xf32>
    %183 = arith.mulf %180, %182 : vector<4x8xf32>
    %c0_107 = arith.constant 0 : index
    %c5_108 = arith.constant 5 : index
    %c1_109 = arith.constant 1 : index
    %c0_110 = arith.constant 0 : index
    %184 = vector.load %arg1[%c0_107, %c5_108, %c1_109, %c0_110] : memref<1x10x5x8xbf16, #tpu.memory_space<vmem>>, vector<1x1x4x8xbf16>
    %185 = vector.shape_cast %184 : vector<1x1x4x8xbf16> to vector<4x8xbf16>
    %186 = arith.extf %185 : vector<4x8xbf16> to vector<4x8xf32>
    %187 = vector.extract_strided_slice %0 {offsets = [5, 0], sizes = [1, 8], strides = [1, 1]} : vector<9x8xf32> to vector<1x8xf32>
    %188 = vector.broadcast %187 : vector<1x8xf32> to vector<4x8xf32>
    %189 = arith.mulf %186, %188 : vector<4x8xf32>
    %c0_111 = arith.constant 0 : index
    %c6 = arith.constant 6 : index
    %c0_112 = arith.constant 0 : index
    %c0_113 = arith.constant 0 : index
    %190 = vector.load %arg1[%c0_111, %c6, %c0_112, %c0_113] : memref<1x10x5x8xbf16, #tpu.memory_space<vmem>>, vector<1x1x4x8xbf16>
    %191 = vector.shape_cast %190 : vector<1x1x4x8xbf16> to vector<4x8xbf16>
    %192 = arith.extf %191 : vector<4x8xbf16> to vector<4x8xf32>
    %193 = vector.extract_strided_slice %0 {offsets = [6, 0], sizes = [1, 8], strides = [1, 1]} : vector<9x8xf32> to vector<1x8xf32>
    %194 = vector.broadcast %193 : vector<1x8xf32> to vector<4x8xf32>
    %195 = arith.mulf %192, %194 : vector<4x8xf32>
    %c0_114 = arith.constant 0 : index
    %c6_115 = arith.constant 6 : index
    %c0_116 = arith.constant 0 : index
    %c0_117 = arith.constant 0 : index
    %196 = vector.load %arg2[%c0_114, %c6_115, %c0_116, %c0_117] : memref<1x10x5x8xbf16, #tpu.memory_space<vmem>>, vector<1x1x4x8xbf16>
    %197 = vector.shape_cast %196 : vector<1x1x4x8xbf16> to vector<4x8xbf16>
    %198 = arith.extf %197 : vector<4x8xbf16> to vector<4x8xf32>
    %199 = vector.extract_strided_slice %0 {offsets = [7, 0], sizes = [1, 8], strides = [1, 1]} : vector<9x8xf32> to vector<1x8xf32>
    %200 = vector.broadcast %199 : vector<1x8xf32> to vector<4x8xf32>
    %201 = arith.mulf %198, %200 : vector<4x8xf32>
    %c0_118 = arith.constant 0 : index
    %c6_119 = arith.constant 6 : index
    %c1_120 = arith.constant 1 : index
    %c0_121 = arith.constant 0 : index
    %202 = vector.load %arg1[%c0_118, %c6_119, %c1_120, %c0_121] : memref<1x10x5x8xbf16, #tpu.memory_space<vmem>>, vector<1x1x4x8xbf16>
    %203 = vector.shape_cast %202 : vector<1x1x4x8xbf16> to vector<4x8xbf16>
    %204 = arith.extf %203 : vector<4x8xbf16> to vector<4x8xf32>
    %205 = vector.extract_strided_slice %0 {offsets = [8, 0], sizes = [1, 8], strides = [1, 1]} : vector<9x8xf32> to vector<1x8xf32>
    %206 = vector.broadcast %205 : vector<1x8xf32> to vector<4x8xf32>
    %207 = arith.mulf %204, %206 : vector<4x8xf32>
    %208 = arith.addf %159, %165 : vector<4x8xf32>
    %209 = arith.addf %171, %177 : vector<4x8xf32>
    %210 = arith.addf %183, %189 : vector<4x8xf32>
    %211 = arith.addf %195, %201 : vector<4x8xf32>
    %212 = arith.addf %208, %209 : vector<4x8xf32>
    %213 = arith.addf %210, %211 : vector<4x8xf32>
    %214 = arith.addf %212, %213 : vector<4x8xf32>
    %215 = arith.addf %214, %207 : vector<4x8xf32>
    %216 = vector.broadcast %1 : vector<1x8xf32> to vector<4x8xf32>
    %217 = arith.addf %215, %216 : vector<4x8xf32>
    %cst_122 = arith.constant 0.000000e+00 : f32
    %218 = vector.broadcast %cst_122 : f32 to vector<4x8xf32>
    %219 = arith.maximumf %217, %218 : vector<4x8xf32>
    %cst_123 = arith.constant dense<0.000000e+00> : vector<4x16xf32>
    %220 = tpu.matmul %219, %2, %cst_123 {dimension_numbers = #tpu.dot_dimension_numbers<[1], [0], [0], [1], [0, 0, 1, 1], [], []>} : vector<4x8xf32>, vector<8x16xf32>, vector<4x16xf32> -> vector<4x16xf32>
    %221 = vector.broadcast %3 : vector<1x16xf32> to vector<4x16xf32>
    %222 = arith.addf %220, %221 : vector<4x16xf32>
    %cst_124 = arith.constant 0.000000e+00 : f32
    %223 = vector.broadcast %cst_124 : f32 to vector<4x16xf32>
    %224 = arith.maximumf %222, %223 : vector<4x16xf32>
    %225 = arith.truncf %224 : vector<4x16xf32> to vector<4x16xbf16>
    %c0_125 = arith.constant 0 : index
    %c2_126 = arith.constant 2 : index
    %c0_127 = arith.constant 0 : index
    %c0_128 = arith.constant 0 : index
    %226 = vector.load %arg7[%c0_125, %c2_126, %c0_127, %c0_128] : memref<1x4x4x16xbf16, #tpu.memory_space<vmem>>, vector<1x1x4x16xbf16>
    %227 = vector.shape_cast %226 : vector<1x1x4x16xbf16> to vector<4x16xbf16>
    %228 = vector.shape_cast %225 : vector<4x16xbf16> to vector<1x1x4x16xbf16>
    tpu.vector_store %arg7[%c0_125, %c2_126, %c0_127, %c0_128], %228 {strides = array<i32>} : memref<1x4x4x16xbf16, #tpu.memory_space<vmem>>, vector<1x1x4x16xbf16>,
    %c0_129 = arith.constant 0 : index
    %c6_130 = arith.constant 6 : index
    %c0_131 = arith.constant 0 : index
    %c0_132 = arith.constant 0 : index
    %229 = vector.load %arg1[%c0_129, %c6_130, %c0_131, %c0_132] : memref<1x10x5x8xbf16, #tpu.memory_space<vmem>>, vector<1x1x4x8xbf16>
    %230 = vector.shape_cast %229 : vector<1x1x4x8xbf16> to vector<4x8xbf16>
    %231 = arith.extf %230 : vector<4x8xbf16> to vector<4x8xf32>
    %232 = vector.extract_strided_slice %0 {offsets = [0, 0], sizes = [1, 8], strides = [1, 1]} : vector<9x8xf32> to vector<1x8xf32>
    %233 = vector.broadcast %232 : vector<1x8xf32> to vector<4x8xf32>
    %234 = arith.mulf %231, %233 : vector<4x8xf32>
    %c0_133 = arith.constant 0 : index
    %c6_134 = arith.constant 6 : index
    %c0_135 = arith.constant 0 : index
    %c0_136 = arith.constant 0 : index
    %235 = vector.load %arg2[%c0_133, %c6_134, %c0_135, %c0_136] : memref<1x10x5x8xbf16, #tpu.memory_space<vmem>>, vector<1x1x4x8xbf16>
    %236 = vector.shape_cast %235 : vector<1x1x4x8xbf16> to vector<4x8xbf16>
    %237 = arith.extf %236 : vector<4x8xbf16> to vector<4x8xf32>
    %238 = vector.extract_strided_slice %0 {offsets = [1, 0], sizes = [1, 8], strides = [1, 1]} : vector<9x8xf32> to vector<1x8xf32>
    %239 = vector.broadcast %238 : vector<1x8xf32> to vector<4x8xf32>
    %240 = arith.mulf %237, %239 : vector<4x8xf32>
    %c0_137 = arith.constant 0 : index
    %c6_138 = arith.constant 6 : index
    %c1_139 = arith.constant 1 : index
    %c0_140 = arith.constant 0 : index
    %241 = vector.load %arg1[%c0_137, %c6_138, %c1_139, %c0_140] : memref<1x10x5x8xbf16, #tpu.memory_space<vmem>>, vector<1x1x4x8xbf16>
    %242 = vector.shape_cast %241 : vector<1x1x4x8xbf16> to vector<4x8xbf16>
    %243 = arith.extf %242 : vector<4x8xbf16> to vector<4x8xf32>
    %244 = vector.extract_strided_slice %0 {offsets = [2, 0], sizes = [1, 8], strides = [1, 1]} : vector<9x8xf32> to vector<1x8xf32>
    %245 = vector.broadcast %244 : vector<1x8xf32> to vector<4x8xf32>
    %246 = arith.mulf %243, %245 : vector<4x8xf32>
    %c0_141 = arith.constant 0 : index
    %c7 = arith.constant 7 : index
    %c0_142 = arith.constant 0 : index
    %c0_143 = arith.constant 0 : index
    %247 = vector.load %arg1[%c0_141, %c7, %c0_142, %c0_143] : memref<1x10x5x8xbf16, #tpu.memory_space<vmem>>, vector<1x1x4x8xbf16>
    %248 = vector.shape_cast %247 : vector<1x1x4x8xbf16> to vector<4x8xbf16>
    %249 = arith.extf %248 : vector<4x8xbf16> to vector<4x8xf32>
    %250 = vector.extract_strided_slice %0 {offsets = [3, 0], sizes = [1, 8], strides = [1, 1]} : vector<9x8xf32> to vector<1x8xf32>
    %251 = vector.broadcast %250 : vector<1x8xf32> to vector<4x8xf32>
    %252 = arith.mulf %249, %251 : vector<4x8xf32>
    %c0_144 = arith.constant 0 : index
    %c7_145 = arith.constant 7 : index
    %c0_146 = arith.constant 0 : index
    %c0_147 = arith.constant 0 : index
    %253 = vector.load %arg2[%c0_144, %c7_145, %c0_146, %c0_147] : memref<1x10x5x8xbf16, #tpu.memory_space<vmem>>, vector<1x1x4x8xbf16>
    %254 = vector.shape_cast %253 : vector<1x1x4x8xbf16> to vector<4x8xbf16>
    %255 = arith.extf %254 : vector<4x8xbf16> to vector<4x8xf32>
    %256 = vector.extract_strided_slice %0 {offsets = [4, 0], sizes = [1, 8], strides = [1, 1]} : vector<9x8xf32> to vector<1x8xf32>
    %257 = vector.broadcast %256 : vector<1x8xf32> to vector<4x8xf32>
    %258 = arith.mulf %255, %257 : vector<4x8xf32>
    %c0_148 = arith.constant 0 : index
    %c7_149 = arith.constant 7 : index
    %c1_150 = arith.constant 1 : index
    %c0_151 = arith.constant 0 : index
    %259 = vector.load %arg1[%c0_148, %c7_149, %c1_150, %c0_151] : memref<1x10x5x8xbf16, #tpu.memory_space<vmem>>, vector<1x1x4x8xbf16>
    %260 = vector.shape_cast %259 : vector<1x1x4x8xbf16> to vector<4x8xbf16>
    %261 = arith.extf %260 : vector<4x8xbf16> to vector<4x8xf32>
    %262 = vector.extract_strided_slice %0 {offsets = [5, 0], sizes = [1, 8], strides = [1, 1]} : vector<9x8xf32> to vector<1x8xf32>
    %263 = vector.broadcast %262 : vector<1x8xf32> to vector<4x8xf32>
    %264 = arith.mulf %261, %263 : vector<4x8xf32>
    %c0_152 = arith.constant 0 : index
    %c8 = arith.constant 8 : index
    %c0_153 = arith.constant 0 : index
    %c0_154 = arith.constant 0 : index
    %265 = vector.load %arg1[%c0_152, %c8, %c0_153, %c0_154] : memref<1x10x5x8xbf16, #tpu.memory_space<vmem>>, vector<1x1x4x8xbf16>
    %266 = vector.shape_cast %265 : vector<1x1x4x8xbf16> to vector<4x8xbf16>
    %267 = arith.extf %266 : vector<4x8xbf16> to vector<4x8xf32>
    %268 = vector.extract_strided_slice %0 {offsets = [6, 0], sizes = [1, 8], strides = [1, 1]} : vector<9x8xf32> to vector<1x8xf32>
    %269 = vector.broadcast %268 : vector<1x8xf32> to vector<4x8xf32>
    %270 = arith.mulf %267, %269 : vector<4x8xf32>
    %c0_155 = arith.constant 0 : index
    %c8_156 = arith.constant 8 : index
    %c0_157 = arith.constant 0 : index
    %c0_158 = arith.constant 0 : index
    %271 = vector.load %arg2[%c0_155, %c8_156, %c0_157, %c0_158] : memref<1x10x5x8xbf16, #tpu.memory_space<vmem>>, vector<1x1x4x8xbf16>
    %272 = vector.shape_cast %271 : vector<1x1x4x8xbf16> to vector<4x8xbf16>
    %273 = arith.extf %272 : vector<4x8xbf16> to vector<4x8xf32>
    %274 = vector.extract_strided_slice %0 {offsets = [7, 0], sizes = [1, 8], strides = [1, 1]} : vector<9x8xf32> to vector<1x8xf32>
    %275 = vector.broadcast %274 : vector<1x8xf32> to vector<4x8xf32>
    %276 = arith.mulf %273, %275 : vector<4x8xf32>
    %c0_159 = arith.constant 0 : index
    %c8_160 = arith.constant 8 : index
    %c1_161 = arith.constant 1 : index
    %c0_162 = arith.constant 0 : index
    %277 = vector.load %arg1[%c0_159, %c8_160, %c1_161, %c0_162] : memref<1x10x5x8xbf16, #tpu.memory_space<vmem>>, vector<1x1x4x8xbf16>
    %278 = vector.shape_cast %277 : vector<1x1x4x8xbf16> to vector<4x8xbf16>
    %279 = arith.extf %278 : vector<4x8xbf16> to vector<4x8xf32>
    %280 = vector.extract_strided_slice %0 {offsets = [8, 0], sizes = [1, 8], strides = [1, 1]} : vector<9x8xf32> to vector<1x8xf32>
    %281 = vector.broadcast %280 : vector<1x8xf32> to vector<4x8xf32>
    %282 = arith.mulf %279, %281 : vector<4x8xf32>
    %283 = arith.addf %234, %240 : vector<4x8xf32>
    %284 = arith.addf %246, %252 : vector<4x8xf32>
    %285 = arith.addf %258, %264 : vector<4x8xf32>
    %286 = arith.addf %270, %276 : vector<4x8xf32>
    %287 = arith.addf %283, %284 : vector<4x8xf32>
    %288 = arith.addf %285, %286 : vector<4x8xf32>
    %289 = arith.addf %287, %288 : vector<4x8xf32>
    %290 = arith.addf %289, %282 : vector<4x8xf32>
    %291 = vector.broadcast %1 : vector<1x8xf32> to vector<4x8xf32>
    %292 = arith.addf %290, %291 : vector<4x8xf32>
    %cst_163 = arith.constant 0.000000e+00 : f32
    %293 = vector.broadcast %cst_163 : f32 to vector<4x8xf32>
    %294 = arith.maximumf %292, %293 : vector<4x8xf32>
    %cst_164 = arith.constant dense<0.000000e+00> : vector<4x16xf32>
    %295 = tpu.matmul %294, %2, %cst_164 {dimension_numbers = #tpu.dot_dimension_numbers<[1], [0], [0], [1], [0, 0, 1, 1], [], []>} : vector<4x8xf32>, vector<8x16xf32>, vector<4x16xf32> -> vector<4x16xf32>
    %296 = vector.broadcast %3 : vector<1x16xf32> to vector<4x16xf32>
    %297 = arith.addf %295, %296 : vector<4x16xf32>
    %cst_165 = arith.constant 0.000000e+00 : f32
    %298 = vector.broadcast %cst_165 : f32 to vector<4x16xf32>
    %299 = arith.maximumf %297, %298 : vector<4x16xf32>
    %300 = arith.truncf %299 : vector<4x16xf32> to vector<4x16xbf16>
    %c0_166 = arith.constant 0 : index
    %c3_167 = arith.constant 3 : index
    %c0_168 = arith.constant 0 : index
    %c0_169 = arith.constant 0 : index
    %301 = vector.load %arg7[%c0_166, %c3_167, %c0_168, %c0_169] : memref<1x4x4x16xbf16, #tpu.memory_space<vmem>>, vector<1x1x4x16xbf16>
    %302 = vector.shape_cast %301 : vector<1x1x4x16xbf16> to vector<4x16xbf16>
    %303 = vector.shape_cast %300 : vector<4x16xbf16> to vector<1x1x4x16xbf16>
    tpu.vector_store %arg7[%c0_166, %c3_167, %c0_168, %c0_169], %303 {strides = array<i32>} : memref<1x4x4x16xbf16, #tpu.memory_space<vmem>>, vector<1x1x4x16xbf16>,
    return
  }
  func.func @transform_0(%arg0: i32) -> (i32, i32, i32, i32) {
    %c0_i32 = arith.constant 0 : i32
    %c0_i32_0 = arith.constant 0 : i32
    %c0_i32_1 = arith.constant 0 : i32
    %c0_i32_2 = arith.constant 0 : i32
    return %arg0, %c0_i32, %c0_i32_0, %c0_i32_1 : i32, i32, i32, i32
  }
  func.func @transform_1(%arg0: i32) -> (i32, i32, i32, i32) {
    %c0_i32 = arith.constant 0 : i32
    %c0_i32_0 = arith.constant 0 : i32
    %c0_i32_1 = arith.constant 0 : i32
    %c0_i32_2 = arith.constant 0 : i32
    return %arg0, %c0_i32, %c0_i32_0, %c0_i32_1 : i32, i32, i32, i32
  }
  func.func @transform_2(%arg0: i32) -> (i32, i32) {
    %c0_i32 = arith.constant 0 : i32
    %c0_i32_0 = arith.constant 0 : i32
    %c0_i32_1 = arith.constant 0 : i32
    return %c0_i32, %c0_i32_0 : i32, i32
  }
  func.func @transform_3(%arg0: i32) -> (i32, i32) {
    %c0_i32 = arith.constant 0 : i32
    %c0_i32_0 = arith.constant 0 : i32
    %c0_i32_1 = arith.constant 0 : i32
    return %c0_i32, %c0_i32_0 : i32, i32
  }
  func.func @transform_4(%arg0: i32) -> (i32, i32) {
    %c0_i32 = arith.constant 0 : i32
    %c0_i32_0 = arith.constant 0 : i32
    %c0_i32_1 = arith.constant 0 : i32
    return %c0_i32, %c0_i32_0 : i32, i32
  }
  func.func @transform_5(%arg0: i32) -> (i32, i32) {
    %c0_i32 = arith.constant 0 : i32
    %c0_i32_0 = arith.constant 0 : i32
    %c0_i32_1 = arith.constant 0 : i32
    return %c0_i32, %c0_i32_0 : i32, i32
  }
  func.func @transform_6(%arg0: i32) -> (i32, i32, i32, i32) {
    %c0_i32 = arith.constant 0 : i32
    %c0_i32_0 = arith.constant 0 : i32
    %c0_i32_1 = arith.constant 0 : i32
    %c0_i32_2 = arith.constant 0 : i32
    return %arg0, %c0_i32, %c0_i32_0, %c0_i32_1 : i32, i32, i32, i32
  }
}

module attributes {stable_mosaic.version = 11 : i64} {
  func.func @kernel(%arg0: i32, %arg1: memref<1x4x4x32xbf16, #tpu.memory_space<vmem>>, %arg2: memref<9x32xf32, #tpu.memory_space<vmem>>, %arg3: memref<1x32xf32, #tpu.memory_space<vmem>>, %arg4: memref<32x32xf32, #tpu.memory_space<vmem>>, %arg5: memref<1x32xf32, #tpu.memory_space<vmem>>, %arg6: memref<1x2x2x32xbf16, #tpu.memory_space<vmem>>) attributes {dimension_semantics = [#tpu.dimension_semantics<parallel>], iteration_bounds = array<i64: 2>, scalar_prefetch = 0 : i64, scratch_operands = 0 : i64, tpu.core_type = #tpu.core_type<tc>, window_params = [{transform_indices = @transform_0, window_bounds = array<i64: 1, 4, 4, 32>}, {pipeline_mode = #tpu.pipeline_mode<synchronous>, transform_indices = @transform_1, window_bounds = array<i64: 9, 32>}, {pipeline_mode = #tpu.pipeline_mode<synchronous>, transform_indices = @transform_2, window_bounds = array<i64: 1, 32>}, {pipeline_mode = #tpu.pipeline_mode<synchronous>, transform_indices = @transform_3, window_bounds = array<i64: 32, 32>}, {pipeline_mode = #tpu.pipeline_mode<synchronous>, transform_indices = @transform_4, window_bounds = array<i64: 1, 32>}, {transform_indices = @transform_5, window_bounds = array<i64: 1, 2, 2, 32>}]} {
    %c0 = arith.constant 0 : index
    %c0_0 = arith.constant 0 : index
    %0 = vector.load %arg2[%c0, %c0_0] : memref<9x32xf32, #tpu.memory_space<vmem>>, vector<9x32xf32>
    %c0_1 = arith.constant 0 : index
    %c0_2 = arith.constant 0 : index
    %1 = vector.load %arg3[%c0_1, %c0_2] : memref<1x32xf32, #tpu.memory_space<vmem>>, vector<1x32xf32>
    %c0_3 = arith.constant 0 : index
    %c0_4 = arith.constant 0 : index
    %2 = vector.load %arg4[%c0_3, %c0_4] : memref<32x32xf32, #tpu.memory_space<vmem>>, vector<32x32xf32>
    %c0_5 = arith.constant 0 : index
    %c0_6 = arith.constant 0 : index
    %3 = vector.load %arg5[%c0_5, %c0_6] : memref<1x32xf32, #tpu.memory_space<vmem>>, vector<1x32xf32>
    %c0_7 = arith.constant 0 : index
    %c0_8 = arith.constant 0 : index
    %c0_9 = arith.constant 0 : index
    %c0_10 = arith.constant 0 : index
    %4 = vector.load %arg1[%c0_7, %c0_8, %c0_9, %c0_10] : memref<1x4x4x32xbf16, #tpu.memory_space<vmem>>, vector<1x1x2x32xbf16>
    %5 = vector.shape_cast %4 : vector<1x1x2x32xbf16> to vector<2x32xbf16>
    %6 = arith.extf %5 : vector<2x32xbf16> to vector<2x32xf32>
    %7 = vector.extract_strided_slice %0 {offsets = [0, 0], sizes = [1, 32], strides = [1, 1]} : vector<9x32xf32> to vector<1x32xf32>
    %8 = vector.broadcast %7 : vector<1x32xf32> to vector<2x32xf32>
    %9 = arith.mulf %6, %8 : vector<2x32xf32>
    %c0_11 = arith.constant 0 : index
    %c0_12 = arith.constant 0 : index
    %c1 = arith.constant 1 : index
    %c0_13 = arith.constant 0 : index
    %10 = vector.load %arg1[%c0_11, %c0_12, %c1, %c0_13] : memref<1x4x4x32xbf16, #tpu.memory_space<vmem>>, vector<1x1x2x32xbf16>
    %11 = vector.shape_cast %10 : vector<1x1x2x32xbf16> to vector<2x32xbf16>
    %12 = arith.extf %11 : vector<2x32xbf16> to vector<2x32xf32>
    %13 = vector.extract_strided_slice %0 {offsets = [1, 0], sizes = [1, 32], strides = [1, 1]} : vector<9x32xf32> to vector<1x32xf32>
    %14 = vector.broadcast %13 : vector<1x32xf32> to vector<2x32xf32>
    %15 = arith.mulf %12, %14 : vector<2x32xf32>
    %c0_14 = arith.constant 0 : index
    %c0_15 = arith.constant 0 : index
    %c2 = arith.constant 2 : index
    %c0_16 = arith.constant 0 : index
    %16 = vector.load %arg1[%c0_14, %c0_15, %c2, %c0_16] : memref<1x4x4x32xbf16, #tpu.memory_space<vmem>>, vector<1x1x2x32xbf16>
    %17 = vector.shape_cast %16 : vector<1x1x2x32xbf16> to vector<2x32xbf16>
    %18 = arith.extf %17 : vector<2x32xbf16> to vector<2x32xf32>
    %19 = vector.extract_strided_slice %0 {offsets = [2, 0], sizes = [1, 32], strides = [1, 1]} : vector<9x32xf32> to vector<1x32xf32>
    %20 = vector.broadcast %19 : vector<1x32xf32> to vector<2x32xf32>
    %21 = arith.mulf %18, %20 : vector<2x32xf32>
    %c0_17 = arith.constant 0 : index
    %c1_18 = arith.constant 1 : index
    %c0_19 = arith.constant 0 : index
    %c0_20 = arith.constant 0 : index
    %22 = vector.load %arg1[%c0_17, %c1_18, %c0_19, %c0_20] : memref<1x4x4x32xbf16, #tpu.memory_space<vmem>>, vector<1x1x2x32xbf16>
    %23 = vector.shape_cast %22 : vector<1x1x2x32xbf16> to vector<2x32xbf16>
    %24 = arith.extf %23 : vector<2x32xbf16> to vector<2x32xf32>
    %25 = vector.extract_strided_slice %0 {offsets = [3, 0], sizes = [1, 32], strides = [1, 1]} : vector<9x32xf32> to vector<1x32xf32>
    %26 = vector.broadcast %25 : vector<1x32xf32> to vector<2x32xf32>
    %27 = arith.mulf %24, %26 : vector<2x32xf32>
    %c0_21 = arith.constant 0 : index
    %c1_22 = arith.constant 1 : index
    %c1_23 = arith.constant 1 : index
    %c0_24 = arith.constant 0 : index
    %28 = vector.load %arg1[%c0_21, %c1_22, %c1_23, %c0_24] : memref<1x4x4x32xbf16, #tpu.memory_space<vmem>>, vector<1x1x2x32xbf16>
    %29 = vector.shape_cast %28 : vector<1x1x2x32xbf16> to vector<2x32xbf16>
    %30 = arith.extf %29 : vector<2x32xbf16> to vector<2x32xf32>
    %31 = vector.extract_strided_slice %0 {offsets = [4, 0], sizes = [1, 32], strides = [1, 1]} : vector<9x32xf32> to vector<1x32xf32>
    %32 = vector.broadcast %31 : vector<1x32xf32> to vector<2x32xf32>
    %33 = arith.mulf %30, %32 : vector<2x32xf32>
    %c0_25 = arith.constant 0 : index
    %c1_26 = arith.constant 1 : index
    %c2_27 = arith.constant 2 : index
    %c0_28 = arith.constant 0 : index
    %34 = vector.load %arg1[%c0_25, %c1_26, %c2_27, %c0_28] : memref<1x4x4x32xbf16, #tpu.memory_space<vmem>>, vector<1x1x2x32xbf16>
    %35 = vector.shape_cast %34 : vector<1x1x2x32xbf16> to vector<2x32xbf16>
    %36 = arith.extf %35 : vector<2x32xbf16> to vector<2x32xf32>
    %37 = vector.extract_strided_slice %0 {offsets = [5, 0], sizes = [1, 32], strides = [1, 1]} : vector<9x32xf32> to vector<1x32xf32>
    %38 = vector.broadcast %37 : vector<1x32xf32> to vector<2x32xf32>
    %39 = arith.mulf %36, %38 : vector<2x32xf32>
    %c0_29 = arith.constant 0 : index
    %c2_30 = arith.constant 2 : index
    %c0_31 = arith.constant 0 : index
    %c0_32 = arith.constant 0 : index
    %40 = vector.load %arg1[%c0_29, %c2_30, %c0_31, %c0_32] : memref<1x4x4x32xbf16, #tpu.memory_space<vmem>>, vector<1x1x2x32xbf16>
    %41 = vector.shape_cast %40 : vector<1x1x2x32xbf16> to vector<2x32xbf16>
    %42 = arith.extf %41 : vector<2x32xbf16> to vector<2x32xf32>
    %43 = vector.extract_strided_slice %0 {offsets = [6, 0], sizes = [1, 32], strides = [1, 1]} : vector<9x32xf32> to vector<1x32xf32>
    %44 = vector.broadcast %43 : vector<1x32xf32> to vector<2x32xf32>
    %45 = arith.mulf %42, %44 : vector<2x32xf32>
    %c0_33 = arith.constant 0 : index
    %c2_34 = arith.constant 2 : index
    %c1_35 = arith.constant 1 : index
    %c0_36 = arith.constant 0 : index
    %46 = vector.load %arg1[%c0_33, %c2_34, %c1_35, %c0_36] : memref<1x4x4x32xbf16, #tpu.memory_space<vmem>>, vector<1x1x2x32xbf16>
    %47 = vector.shape_cast %46 : vector<1x1x2x32xbf16> to vector<2x32xbf16>
    %48 = arith.extf %47 : vector<2x32xbf16> to vector<2x32xf32>
    %49 = vector.extract_strided_slice %0 {offsets = [7, 0], sizes = [1, 32], strides = [1, 1]} : vector<9x32xf32> to vector<1x32xf32>
    %50 = vector.broadcast %49 : vector<1x32xf32> to vector<2x32xf32>
    %51 = arith.mulf %48, %50 : vector<2x32xf32>
    %c0_37 = arith.constant 0 : index
    %c2_38 = arith.constant 2 : index
    %c2_39 = arith.constant 2 : index
    %c0_40 = arith.constant 0 : index
    %52 = vector.load %arg1[%c0_37, %c2_38, %c2_39, %c0_40] : memref<1x4x4x32xbf16, #tpu.memory_space<vmem>>, vector<1x1x2x32xbf16>
    %53 = vector.shape_cast %52 : vector<1x1x2x32xbf16> to vector<2x32xbf16>
    %54 = arith.extf %53 : vector<2x32xbf16> to vector<2x32xf32>
    %55 = vector.extract_strided_slice %0 {offsets = [8, 0], sizes = [1, 32], strides = [1, 1]} : vector<9x32xf32> to vector<1x32xf32>
    %56 = vector.broadcast %55 : vector<1x32xf32> to vector<2x32xf32>
    %57 = arith.mulf %54, %56 : vector<2x32xf32>
    %58 = arith.addf %9, %15 : vector<2x32xf32>
    %59 = arith.addf %21, %27 : vector<2x32xf32>
    %60 = arith.addf %33, %39 : vector<2x32xf32>
    %61 = arith.addf %45, %51 : vector<2x32xf32>
    %62 = arith.addf %58, %59 : vector<2x32xf32>
    %63 = arith.addf %60, %61 : vector<2x32xf32>
    %64 = arith.addf %62, %63 : vector<2x32xf32>
    %65 = arith.addf %64, %57 : vector<2x32xf32>
    %66 = vector.broadcast %1 : vector<1x32xf32> to vector<2x32xf32>
    %67 = arith.addf %65, %66 : vector<2x32xf32>
    %cst = arith.constant 0.000000e+00 : f32
    %68 = vector.broadcast %cst : f32 to vector<2x32xf32>
    %69 = arith.maximumf %67, %68 : vector<2x32xf32>
    %cst_41 = arith.constant dense<0.000000e+00> : vector<2x32xf32>
    %70 = tpu.matmul %69, %2, %cst_41 {dimension_numbers = #tpu.dot_dimension_numbers<[1], [0], [0], [1], [0, 0, 1, 1], [], []>} : vector<2x32xf32>, vector<32x32xf32>, vector<2x32xf32> -> vector<2x32xf32>
    %71 = vector.broadcast %3 : vector<1x32xf32> to vector<2x32xf32>
    %72 = arith.addf %70, %71 : vector<2x32xf32>
    %cst_42 = arith.constant 0.000000e+00 : f32
    %73 = vector.broadcast %cst_42 : f32 to vector<2x32xf32>
    %74 = arith.maximumf %72, %73 : vector<2x32xf32>
    %75 = arith.truncf %74 : vector<2x32xf32> to vector<2x32xbf16>
    %c0_43 = arith.constant 0 : index
    %c0_44 = arith.constant 0 : index
    %c0_45 = arith.constant 0 : index
    %c0_46 = arith.constant 0 : index
    %76 = vector.load %arg6[%c0_43, %c0_44, %c0_45, %c0_46] : memref<1x2x2x32xbf16, #tpu.memory_space<vmem>>, vector<1x1x2x32xbf16>
    %77 = vector.shape_cast %76 : vector<1x1x2x32xbf16> to vector<2x32xbf16>
    %78 = vector.shape_cast %75 : vector<2x32xbf16> to vector<1x1x2x32xbf16>
    tpu.vector_store %arg6[%c0_43, %c0_44, %c0_45, %c0_46], %78 {strides = array<i32>} : memref<1x2x2x32xbf16, #tpu.memory_space<vmem>>, vector<1x1x2x32xbf16>,
    %c0_47 = arith.constant 0 : index
    %c1_48 = arith.constant 1 : index
    %c0_49 = arith.constant 0 : index
    %c0_50 = arith.constant 0 : index
    %79 = vector.load %arg1[%c0_47, %c1_48, %c0_49, %c0_50] : memref<1x4x4x32xbf16, #tpu.memory_space<vmem>>, vector<1x1x2x32xbf16>
    %80 = vector.shape_cast %79 : vector<1x1x2x32xbf16> to vector<2x32xbf16>
    %81 = arith.extf %80 : vector<2x32xbf16> to vector<2x32xf32>
    %82 = vector.extract_strided_slice %0 {offsets = [0, 0], sizes = [1, 32], strides = [1, 1]} : vector<9x32xf32> to vector<1x32xf32>
    %83 = vector.broadcast %82 : vector<1x32xf32> to vector<2x32xf32>
    %84 = arith.mulf %81, %83 : vector<2x32xf32>
    %c0_51 = arith.constant 0 : index
    %c1_52 = arith.constant 1 : index
    %c1_53 = arith.constant 1 : index
    %c0_54 = arith.constant 0 : index
    %85 = vector.load %arg1[%c0_51, %c1_52, %c1_53, %c0_54] : memref<1x4x4x32xbf16, #tpu.memory_space<vmem>>, vector<1x1x2x32xbf16>
    %86 = vector.shape_cast %85 : vector<1x1x2x32xbf16> to vector<2x32xbf16>
    %87 = arith.extf %86 : vector<2x32xbf16> to vector<2x32xf32>
    %88 = vector.extract_strided_slice %0 {offsets = [1, 0], sizes = [1, 32], strides = [1, 1]} : vector<9x32xf32> to vector<1x32xf32>
    %89 = vector.broadcast %88 : vector<1x32xf32> to vector<2x32xf32>
    %90 = arith.mulf %87, %89 : vector<2x32xf32>
    %c0_55 = arith.constant 0 : index
    %c1_56 = arith.constant 1 : index
    %c2_57 = arith.constant 2 : index
    %c0_58 = arith.constant 0 : index
    %91 = vector.load %arg1[%c0_55, %c1_56, %c2_57, %c0_58] : memref<1x4x4x32xbf16, #tpu.memory_space<vmem>>, vector<1x1x2x32xbf16>
    %92 = vector.shape_cast %91 : vector<1x1x2x32xbf16> to vector<2x32xbf16>
    %93 = arith.extf %92 : vector<2x32xbf16> to vector<2x32xf32>
    %94 = vector.extract_strided_slice %0 {offsets = [2, 0], sizes = [1, 32], strides = [1, 1]} : vector<9x32xf32> to vector<1x32xf32>
    %95 = vector.broadcast %94 : vector<1x32xf32> to vector<2x32xf32>
    %96 = arith.mulf %93, %95 : vector<2x32xf32>
    %c0_59 = arith.constant 0 : index
    %c2_60 = arith.constant 2 : index
    %c0_61 = arith.constant 0 : index
    %c0_62 = arith.constant 0 : index
    %97 = vector.load %arg1[%c0_59, %c2_60, %c0_61, %c0_62] : memref<1x4x4x32xbf16, #tpu.memory_space<vmem>>, vector<1x1x2x32xbf16>
    %98 = vector.shape_cast %97 : vector<1x1x2x32xbf16> to vector<2x32xbf16>
    %99 = arith.extf %98 : vector<2x32xbf16> to vector<2x32xf32>
    %100 = vector.extract_strided_slice %0 {offsets = [3, 0], sizes = [1, 32], strides = [1, 1]} : vector<9x32xf32> to vector<1x32xf32>
    %101 = vector.broadcast %100 : vector<1x32xf32> to vector<2x32xf32>
    %102 = arith.mulf %99, %101 : vector<2x32xf32>
    %c0_63 = arith.constant 0 : index
    %c2_64 = arith.constant 2 : index
    %c1_65 = arith.constant 1 : index
    %c0_66 = arith.constant 0 : index
    %103 = vector.load %arg1[%c0_63, %c2_64, %c1_65, %c0_66] : memref<1x4x4x32xbf16, #tpu.memory_space<vmem>>, vector<1x1x2x32xbf16>
    %104 = vector.shape_cast %103 : vector<1x1x2x32xbf16> to vector<2x32xbf16>
    %105 = arith.extf %104 : vector<2x32xbf16> to vector<2x32xf32>
    %106 = vector.extract_strided_slice %0 {offsets = [4, 0], sizes = [1, 32], strides = [1, 1]} : vector<9x32xf32> to vector<1x32xf32>
    %107 = vector.broadcast %106 : vector<1x32xf32> to vector<2x32xf32>
    %108 = arith.mulf %105, %107 : vector<2x32xf32>
    %c0_67 = arith.constant 0 : index
    %c2_68 = arith.constant 2 : index
    %c2_69 = arith.constant 2 : index
    %c0_70 = arith.constant 0 : index
    %109 = vector.load %arg1[%c0_67, %c2_68, %c2_69, %c0_70] : memref<1x4x4x32xbf16, #tpu.memory_space<vmem>>, vector<1x1x2x32xbf16>
    %110 = vector.shape_cast %109 : vector<1x1x2x32xbf16> to vector<2x32xbf16>
    %111 = arith.extf %110 : vector<2x32xbf16> to vector<2x32xf32>
    %112 = vector.extract_strided_slice %0 {offsets = [5, 0], sizes = [1, 32], strides = [1, 1]} : vector<9x32xf32> to vector<1x32xf32>
    %113 = vector.broadcast %112 : vector<1x32xf32> to vector<2x32xf32>
    %114 = arith.mulf %111, %113 : vector<2x32xf32>
    %c0_71 = arith.constant 0 : index
    %c3 = arith.constant 3 : index
    %c0_72 = arith.constant 0 : index
    %c0_73 = arith.constant 0 : index
    %115 = vector.load %arg1[%c0_71, %c3, %c0_72, %c0_73] : memref<1x4x4x32xbf16, #tpu.memory_space<vmem>>, vector<1x1x2x32xbf16>
    %116 = vector.shape_cast %115 : vector<1x1x2x32xbf16> to vector<2x32xbf16>
    %117 = arith.extf %116 : vector<2x32xbf16> to vector<2x32xf32>
    %118 = vector.extract_strided_slice %0 {offsets = [6, 0], sizes = [1, 32], strides = [1, 1]} : vector<9x32xf32> to vector<1x32xf32>
    %119 = vector.broadcast %118 : vector<1x32xf32> to vector<2x32xf32>
    %120 = arith.mulf %117, %119 : vector<2x32xf32>
    %c0_74 = arith.constant 0 : index
    %c3_75 = arith.constant 3 : index
    %c1_76 = arith.constant 1 : index
    %c0_77 = arith.constant 0 : index
    %121 = vector.load %arg1[%c0_74, %c3_75, %c1_76, %c0_77] : memref<1x4x4x32xbf16, #tpu.memory_space<vmem>>, vector<1x1x2x32xbf16>
    %122 = vector.shape_cast %121 : vector<1x1x2x32xbf16> to vector<2x32xbf16>
    %123 = arith.extf %122 : vector<2x32xbf16> to vector<2x32xf32>
    %124 = vector.extract_strided_slice %0 {offsets = [7, 0], sizes = [1, 32], strides = [1, 1]} : vector<9x32xf32> to vector<1x32xf32>
    %125 = vector.broadcast %124 : vector<1x32xf32> to vector<2x32xf32>
    %126 = arith.mulf %123, %125 : vector<2x32xf32>
    %c0_78 = arith.constant 0 : index
    %c3_79 = arith.constant 3 : index
    %c2_80 = arith.constant 2 : index
    %c0_81 = arith.constant 0 : index
    %127 = vector.load %arg1[%c0_78, %c3_79, %c2_80, %c0_81] : memref<1x4x4x32xbf16, #tpu.memory_space<vmem>>, vector<1x1x2x32xbf16>
    %128 = vector.shape_cast %127 : vector<1x1x2x32xbf16> to vector<2x32xbf16>
    %129 = arith.extf %128 : vector<2x32xbf16> to vector<2x32xf32>
    %130 = vector.extract_strided_slice %0 {offsets = [8, 0], sizes = [1, 32], strides = [1, 1]} : vector<9x32xf32> to vector<1x32xf32>
    %131 = vector.broadcast %130 : vector<1x32xf32> to vector<2x32xf32>
    %132 = arith.mulf %129, %131 : vector<2x32xf32>
    %133 = arith.addf %84, %90 : vector<2x32xf32>
    %134 = arith.addf %96, %102 : vector<2x32xf32>
    %135 = arith.addf %108, %114 : vector<2x32xf32>
    %136 = arith.addf %120, %126 : vector<2x32xf32>
    %137 = arith.addf %133, %134 : vector<2x32xf32>
    %138 = arith.addf %135, %136 : vector<2x32xf32>
    %139 = arith.addf %137, %138 : vector<2x32xf32>
    %140 = arith.addf %139, %132 : vector<2x32xf32>
    %141 = vector.broadcast %1 : vector<1x32xf32> to vector<2x32xf32>
    %142 = arith.addf %140, %141 : vector<2x32xf32>
    %cst_82 = arith.constant 0.000000e+00 : f32
    %143 = vector.broadcast %cst_82 : f32 to vector<2x32xf32>
    %144 = arith.maximumf %142, %143 : vector<2x32xf32>
    %cst_83 = arith.constant dense<0.000000e+00> : vector<2x32xf32>
    %145 = tpu.matmul %144, %2, %cst_83 {dimension_numbers = #tpu.dot_dimension_numbers<[1], [0], [0], [1], [0, 0, 1, 1], [], []>} : vector<2x32xf32>, vector<32x32xf32>, vector<2x32xf32> -> vector<2x32xf32>
    %146 = vector.broadcast %3 : vector<1x32xf32> to vector<2x32xf32>
    %147 = arith.addf %145, %146 : vector<2x32xf32>
    %cst_84 = arith.constant 0.000000e+00 : f32
    %148 = vector.broadcast %cst_84 : f32 to vector<2x32xf32>
    %149 = arith.maximumf %147, %148 : vector<2x32xf32>
    %150 = arith.truncf %149 : vector<2x32xf32> to vector<2x32xbf16>
    %c0_85 = arith.constant 0 : index
    %c1_86 = arith.constant 1 : index
    %c0_87 = arith.constant 0 : index
    %c0_88 = arith.constant 0 : index
    %151 = vector.load %arg6[%c0_85, %c1_86, %c0_87, %c0_88] : memref<1x2x2x32xbf16, #tpu.memory_space<vmem>>, vector<1x1x2x32xbf16>
    %152 = vector.shape_cast %151 : vector<1x1x2x32xbf16> to vector<2x32xbf16>
    %153 = vector.shape_cast %150 : vector<2x32xbf16> to vector<1x1x2x32xbf16>
    tpu.vector_store %arg6[%c0_85, %c1_86, %c0_87, %c0_88], %153 {strides = array<i32>} : memref<1x2x2x32xbf16, #tpu.memory_space<vmem>>, vector<1x1x2x32xbf16>,
    return
  }
  func.func @transform_0(%arg0: i32) -> (i32, i32, i32, i32) {
    %c0_i32 = arith.constant 0 : i32
    %c0_i32_0 = arith.constant 0 : i32
    %c0_i32_1 = arith.constant 0 : i32
    %c0_i32_2 = arith.constant 0 : i32
    return %arg0, %c0_i32, %c0_i32_0, %c0_i32_1 : i32, i32, i32, i32
  }
  func.func @transform_1(%arg0: i32) -> (i32, i32) {
    %c0_i32 = arith.constant 0 : i32
    %c0_i32_0 = arith.constant 0 : i32
    %c0_i32_1 = arith.constant 0 : i32
    return %c0_i32, %c0_i32_0 : i32, i32
  }
  func.func @transform_2(%arg0: i32) -> (i32, i32) {
    %c0_i32 = arith.constant 0 : i32
    %c0_i32_0 = arith.constant 0 : i32
    %c0_i32_1 = arith.constant 0 : i32
    return %c0_i32, %c0_i32_0 : i32, i32
  }
  func.func @transform_3(%arg0: i32) -> (i32, i32) {
    %c0_i32 = arith.constant 0 : i32
    %c0_i32_0 = arith.constant 0 : i32
    %c0_i32_1 = arith.constant 0 : i32
    return %c0_i32, %c0_i32_0 : i32, i32
  }
  func.func @transform_4(%arg0: i32) -> (i32, i32) {
    %c0_i32 = arith.constant 0 : i32
    %c0_i32_0 = arith.constant 0 : i32
    %c0_i32_1 = arith.constant 0 : i32
    return %c0_i32, %c0_i32_0 : i32, i32
  }
  func.func @transform_5(%arg0: i32) -> (i32, i32, i32, i32) {
    %c0_i32 = arith.constant 0 : i32
    %c0_i32_0 = arith.constant 0 : i32
    %c0_i32_1 = arith.constant 0 : i32
    %c0_i32_2 = arith.constant 0 : i32
    return %arg0, %c0_i32, %c0_i32_0, %c0_i32_1 : i32, i32, i32, i32
  }
}

module attributes {stable_mosaic.version = 11 : i64} {
  func.func @kernel(%arg0: i32, %arg1: memref<1x4x2x32xbf16, #tpu.memory_space<vmem>>, %arg2: memref<1x4x2x32xbf16, #tpu.memory_space<vmem>>, %arg3: memref<9x32xf32, #tpu.memory_space<vmem>>, %arg4: memref<1x32xf32, #tpu.memory_space<vmem>>, %arg5: memref<32x64xf32, #tpu.memory_space<vmem>>, %arg6: memref<1x64xf32, #tpu.memory_space<vmem>>, %arg7: memref<1x1x1x64xbf16, #tpu.memory_space<vmem>>) attributes {dimension_semantics = [#tpu.dimension_semantics<parallel>], iteration_bounds = array<i64: 2>, scalar_prefetch = 0 : i64, scratch_operands = 0 : i64, tpu.core_type = #tpu.core_type<tc>, window_params = [{transform_indices = @transform_0, window_bounds = array<i64: 1, 4, 2, 32>}, {transform_indices = @transform_1, window_bounds = array<i64: 1, 4, 2, 32>}, {pipeline_mode = #tpu.pipeline_mode<synchronous>, transform_indices = @transform_2, window_bounds = array<i64: 9, 32>}, {pipeline_mode = #tpu.pipeline_mode<synchronous>, transform_indices = @transform_3, window_bounds = array<i64: 1, 32>}, {pipeline_mode = #tpu.pipeline_mode<synchronous>, transform_indices = @transform_4, window_bounds = array<i64: 32, 64>}, {pipeline_mode = #tpu.pipeline_mode<synchronous>, transform_indices = @transform_5, window_bounds = array<i64: 1, 64>}, {transform_indices = @transform_6, window_bounds = array<i64: 1, 1, 1, 64>}]} {
    %c0 = arith.constant 0 : index
    %c0_0 = arith.constant 0 : index
    %0 = vector.load %arg3[%c0, %c0_0] : memref<9x32xf32, #tpu.memory_space<vmem>>, vector<9x32xf32>
    %c0_1 = arith.constant 0 : index
    %c0_2 = arith.constant 0 : index
    %1 = vector.load %arg4[%c0_1, %c0_2] : memref<1x32xf32, #tpu.memory_space<vmem>>, vector<1x32xf32>
    %c0_3 = arith.constant 0 : index
    %c0_4 = arith.constant 0 : index
    %2 = vector.load %arg5[%c0_3, %c0_4] : memref<32x64xf32, #tpu.memory_space<vmem>>, vector<32x64xf32>
    %c0_5 = arith.constant 0 : index
    %c0_6 = arith.constant 0 : index
    %3 = vector.load %arg6[%c0_5, %c0_6] : memref<1x64xf32, #tpu.memory_space<vmem>>, vector<1x64xf32>
    %c0_7 = arith.constant 0 : index
    %c0_8 = arith.constant 0 : index
    %c0_9 = arith.constant 0 : index
    %c0_10 = arith.constant 0 : index
    %4 = vector.load %arg1[%c0_7, %c0_8, %c0_9, %c0_10] : memref<1x4x2x32xbf16, #tpu.memory_space<vmem>>, vector<1x1x1x32xbf16>
    %5 = vector.shape_cast %4 : vector<1x1x1x32xbf16> to vector<1x32xbf16>
    %6 = arith.extf %5 : vector<1x32xbf16> to vector<1x32xf32>
    %7 = vector.extract_strided_slice %0 {offsets = [0, 0], sizes = [1, 32], strides = [1, 1]} : vector<9x32xf32> to vector<1x32xf32>
    %8 = arith.mulf %6, %7 : vector<1x32xf32>
    %c0_11 = arith.constant 0 : index
    %c0_12 = arith.constant 0 : index
    %c0_13 = arith.constant 0 : index
    %c0_14 = arith.constant 0 : index
    %9 = vector.load %arg2[%c0_11, %c0_12, %c0_13, %c0_14] : memref<1x4x2x32xbf16, #tpu.memory_space<vmem>>, vector<1x1x1x32xbf16>
    %10 = vector.shape_cast %9 : vector<1x1x1x32xbf16> to vector<1x32xbf16>
    %11 = arith.extf %10 : vector<1x32xbf16> to vector<1x32xf32>
    %12 = vector.extract_strided_slice %0 {offsets = [1, 0], sizes = [1, 32], strides = [1, 1]} : vector<9x32xf32> to vector<1x32xf32>
    %13 = arith.mulf %11, %12 : vector<1x32xf32>
    %c0_15 = arith.constant 0 : index
    %c0_16 = arith.constant 0 : index
    %c1 = arith.constant 1 : index
    %c0_17 = arith.constant 0 : index
    %14 = vector.load %arg1[%c0_15, %c0_16, %c1, %c0_17] : memref<1x4x2x32xbf16, #tpu.memory_space<vmem>>, vector<1x1x1x32xbf16>
    %15 = vector.shape_cast %14 : vector<1x1x1x32xbf16> to vector<1x32xbf16>
    %16 = arith.extf %15 : vector<1x32xbf16> to vector<1x32xf32>
    %17 = vector.extract_strided_slice %0 {offsets = [2, 0], sizes = [1, 32], strides = [1, 1]} : vector<9x32xf32> to vector<1x32xf32>
    %18 = arith.mulf %16, %17 : vector<1x32xf32>
    %c0_18 = arith.constant 0 : index
    %c1_19 = arith.constant 1 : index
    %c0_20 = arith.constant 0 : index
    %c0_21 = arith.constant 0 : index
    %19 = vector.load %arg1[%c0_18, %c1_19, %c0_20, %c0_21] : memref<1x4x2x32xbf16, #tpu.memory_space<vmem>>, vector<1x1x1x32xbf16>
    %20 = vector.shape_cast %19 : vector<1x1x1x32xbf16> to vector<1x32xbf16>
    %21 = arith.extf %20 : vector<1x32xbf16> to vector<1x32xf32>
    %22 = vector.extract_strided_slice %0 {offsets = [3, 0], sizes = [1, 32], strides = [1, 1]} : vector<9x32xf32> to vector<1x32xf32>
    %23 = arith.mulf %21, %22 : vector<1x32xf32>
    %c0_22 = arith.constant 0 : index
    %c1_23 = arith.constant 1 : index
    %c0_24 = arith.constant 0 : index
    %c0_25 = arith.constant 0 : index
    %24 = vector.load %arg2[%c0_22, %c1_23, %c0_24, %c0_25] : memref<1x4x2x32xbf16, #tpu.memory_space<vmem>>, vector<1x1x1x32xbf16>
    %25 = vector.shape_cast %24 : vector<1x1x1x32xbf16> to vector<1x32xbf16>
    %26 = arith.extf %25 : vector<1x32xbf16> to vector<1x32xf32>
    %27 = vector.extract_strided_slice %0 {offsets = [4, 0], sizes = [1, 32], strides = [1, 1]} : vector<9x32xf32> to vector<1x32xf32>
    %28 = arith.mulf %26, %27 : vector<1x32xf32>
    %c0_26 = arith.constant 0 : index
    %c1_27 = arith.constant 1 : index
    %c1_28 = arith.constant 1 : index
    %c0_29 = arith.constant 0 : index
    %29 = vector.load %arg1[%c0_26, %c1_27, %c1_28, %c0_29] : memref<1x4x2x32xbf16, #tpu.memory_space<vmem>>, vector<1x1x1x32xbf16>
    %30 = vector.shape_cast %29 : vector<1x1x1x32xbf16> to vector<1x32xbf16>
    %31 = arith.extf %30 : vector<1x32xbf16> to vector<1x32xf32>
    %32 = vector.extract_strided_slice %0 {offsets = [5, 0], sizes = [1, 32], strides = [1, 1]} : vector<9x32xf32> to vector<1x32xf32>
    %33 = arith.mulf %31, %32 : vector<1x32xf32>
    %c0_30 = arith.constant 0 : index
    %c2 = arith.constant 2 : index
    %c0_31 = arith.constant 0 : index
    %c0_32 = arith.constant 0 : index
    %34 = vector.load %arg1[%c0_30, %c2, %c0_31, %c0_32] : memref<1x4x2x32xbf16, #tpu.memory_space<vmem>>, vector<1x1x1x32xbf16>
    %35 = vector.shape_cast %34 : vector<1x1x1x32xbf16> to vector<1x32xbf16>
    %36 = arith.extf %35 : vector<1x32xbf16> to vector<1x32xf32>
    %37 = vector.extract_strided_slice %0 {offsets = [6, 0], sizes = [1, 32], strides = [1, 1]} : vector<9x32xf32> to vector<1x32xf32>
    %38 = arith.mulf %36, %37 : vector<1x32xf32>
    %c0_33 = arith.constant 0 : index
    %c2_34 = arith.constant 2 : index
    %c0_35 = arith.constant 0 : index
    %c0_36 = arith.constant 0 : index
    %39 = vector.load %arg2[%c0_33, %c2_34, %c0_35, %c0_36] : memref<1x4x2x32xbf16, #tpu.memory_space<vmem>>, vector<1x1x1x32xbf16>
    %40 = vector.shape_cast %39 : vector<1x1x1x32xbf16> to vector<1x32xbf16>
    %41 = arith.extf %40 : vector<1x32xbf16> to vector<1x32xf32>
    %42 = vector.extract_strided_slice %0 {offsets = [7, 0], sizes = [1, 32], strides = [1, 1]} : vector<9x32xf32> to vector<1x32xf32>
    %43 = arith.mulf %41, %42 : vector<1x32xf32>
    %c0_37 = arith.constant 0 : index
    %c2_38 = arith.constant 2 : index
    %c1_39 = arith.constant 1 : index
    %c0_40 = arith.constant 0 : index
    %44 = vector.load %arg1[%c0_37, %c2_38, %c1_39, %c0_40] : memref<1x4x2x32xbf16, #tpu.memory_space<vmem>>, vector<1x1x1x32xbf16>
    %45 = vector.shape_cast %44 : vector<1x1x1x32xbf16> to vector<1x32xbf16>
    %46 = arith.extf %45 : vector<1x32xbf16> to vector<1x32xf32>
    %47 = vector.extract_strided_slice %0 {offsets = [8, 0], sizes = [1, 32], strides = [1, 1]} : vector<9x32xf32> to vector<1x32xf32>
    %48 = arith.mulf %46, %47 : vector<1x32xf32>
    %49 = arith.addf %8, %13 : vector<1x32xf32>
    %50 = arith.addf %18, %23 : vector<1x32xf32>
    %51 = arith.addf %28, %33 : vector<1x32xf32>
    %52 = arith.addf %38, %43 : vector<1x32xf32>
    %53 = arith.addf %49, %50 : vector<1x32xf32>
    %54 = arith.addf %51, %52 : vector<1x32xf32>
    %55 = arith.addf %53, %54 : vector<1x32xf32>
    %56 = arith.addf %55, %48 : vector<1x32xf32>
    %57 = arith.addf %56, %1 : vector<1x32xf32>
    %cst = arith.constant 0.000000e+00 : f32
    %58 = vector.broadcast %cst : f32 to vector<1x32xf32>
    %59 = arith.maximumf %57, %58 : vector<1x32xf32>
    %cst_41 = arith.constant dense<0.000000e+00> : vector<1x64xf32>
    %60 = tpu.matmul %59, %2, %cst_41 {dimension_numbers = #tpu.dot_dimension_numbers<[1], [0], [0], [1], [0, 0, 1, 1], [], []>} : vector<1x32xf32>, vector<32x64xf32>, vector<1x64xf32> -> vector<1x64xf32>
    %61 = arith.addf %60, %3 : vector<1x64xf32>
    %cst_42 = arith.constant 0.000000e+00 : f32
    %62 = vector.broadcast %cst_42 : f32 to vector<1x64xf32>
    %63 = arith.maximumf %61, %62 : vector<1x64xf32>
    %64 = arith.truncf %63 : vector<1x64xf32> to vector<1x64xbf16>
    %c0_43 = arith.constant 0 : index
    %c0_44 = arith.constant 0 : index
    %c0_45 = arith.constant 0 : index
    %c0_46 = arith.constant 0 : index
    %65 = vector.load %arg7[%c0_43, %c0_44, %c0_45, %c0_46] : memref<1x1x1x64xbf16, #tpu.memory_space<vmem>>, vector<1x1x1x64xbf16>
    %66 = vector.shape_cast %65 : vector<1x1x1x64xbf16> to vector<1x64xbf16>
    %67 = vector.shape_cast %64 : vector<1x64xbf16> to vector<1x1x1x64xbf16>
    tpu.vector_store %arg7[%c0_43, %c0_44, %c0_45, %c0_46], %67 {strides = array<i32>} : memref<1x1x1x64xbf16, #tpu.memory_space<vmem>>, vector<1x1x1x64xbf16>,
    return
  }
  func.func @transform_0(%arg0: i32) -> (i32, i32, i32, i32) {
    %c0_i32 = arith.constant 0 : i32
    %c0_i32_0 = arith.constant 0 : i32
    %c0_i32_1 = arith.constant 0 : i32
    %c0_i32_2 = arith.constant 0 : i32
    return %arg0, %c0_i32, %c0_i32_0, %c0_i32_1 : i32, i32, i32, i32
  }
  func.func @transform_1(%arg0: i32) -> (i32, i32, i32, i32) {
    %c0_i32 = arith.constant 0 : i32
    %c0_i32_0 = arith.constant 0 : i32
    %c0_i32_1 = arith.constant 0 : i32
    %c0_i32_2 = arith.constant 0 : i32
    return %arg0, %c0_i32, %c0_i32_0, %c0_i32_1 : i32, i32, i32, i32
  }
  func.func @transform_2(%arg0: i32) -> (i32, i32) {
    %c0_i32 = arith.constant 0 : i32
    %c0_i32_0 = arith.constant 0 : i32
    %c0_i32_1 = arith.constant 0 : i32
    return %c0_i32, %c0_i32_0 : i32, i32
  }
  func.func @transform_3(%arg0: i32) -> (i32, i32) {
    %c0_i32 = arith.constant 0 : i32
    %c0_i32_0 = arith.constant 0 : i32
    %c0_i32_1 = arith.constant 0 : i32
    return %c0_i32, %c0_i32_0 : i32, i32
  }
  func.func @transform_4(%arg0: i32) -> (i32, i32) {
    %c0_i32 = arith.constant 0 : i32
    %c0_i32_0 = arith.constant 0 : i32
    %c0_i32_1 = arith.constant 0 : i32
    return %c0_i32, %c0_i32_0 : i32, i32
  }
  func.func @transform_5(%arg0: i32) -> (i32, i32) {
    %c0_i32 = arith.constant 0 : i32
    %c0_i32_0 = arith.constant 0 : i32
    %c0_i32_1 = arith.constant 0 : i32
    return %c0_i32, %c0_i32_0 : i32, i32
  }
  func.func @transform_6(%arg0: i32) -> (i32, i32, i32, i32) {
    %c0_i32 = arith.constant 0 : i32
    %c0_i32_0 = arith.constant 0 : i32
    %c0_i32_1 = arith.constant 0 : i32
    %c0_i32_2 = arith.constant 0 : i32
    return %arg0, %c0_i32, %c0_i32_0, %c0_i32_1 : i32, i32, i32, i32
  }
}

module attributes {stable_mosaic.version = 11 : i64} {
  func.func @kernel(%arg0: i32, %arg1: memref<1x6x3x16xbf16, #tpu.memory_space<vmem>>, %arg2: memref<1x6x3x16xbf16, #tpu.memory_space<vmem>>, %arg3: memref<9x16xf32, #tpu.memory_space<vmem>>, %arg4: memref<1x16xf32, #tpu.memory_space<vmem>>, %arg5: memref<16x32xf32, #tpu.memory_space<vmem>>, %arg6: memref<1x32xf32, #tpu.memory_space<vmem>>, %arg7: memref<1x2x2x32xbf16, #tpu.memory_space<vmem>>) attributes {dimension_semantics = [#tpu.dimension_semantics<parallel>], iteration_bounds = array<i64: 2>, scalar_prefetch = 0 : i64, scratch_operands = 0 : i64, tpu.core_type = #tpu.core_type<tc>, window_params = [{transform_indices = @transform_0, window_bounds = array<i64: 1, 6, 3, 16>}, {transform_indices = @transform_1, window_bounds = array<i64: 1, 6, 3, 16>}, {pipeline_mode = #tpu.pipeline_mode<synchronous>, transform_indices = @transform_2, window_bounds = array<i64: 9, 16>}, {pipeline_mode = #tpu.pipeline_mode<synchronous>, transform_indices = @transform_3, window_bounds = array<i64: 1, 16>}, {pipeline_mode = #tpu.pipeline_mode<synchronous>, transform_indices = @transform_4, window_bounds = array<i64: 16, 32>}, {pipeline_mode = #tpu.pipeline_mode<synchronous>, transform_indices = @transform_5, window_bounds = array<i64: 1, 32>}, {transform_indices = @transform_6, window_bounds = array<i64: 1, 2, 2, 32>}]} {
    %c0 = arith.constant 0 : index
    %c0_0 = arith.constant 0 : index
    %0 = vector.load %arg3[%c0, %c0_0] : memref<9x16xf32, #tpu.memory_space<vmem>>, vector<9x16xf32>
    %c0_1 = arith.constant 0 : index
    %c0_2 = arith.constant 0 : index
    %1 = vector.load %arg4[%c0_1, %c0_2] : memref<1x16xf32, #tpu.memory_space<vmem>>, vector<1x16xf32>
    %c0_3 = arith.constant 0 : index
    %c0_4 = arith.constant 0 : index
    %2 = vector.load %arg5[%c0_3, %c0_4] : memref<16x32xf32, #tpu.memory_space<vmem>>, vector<16x32xf32>
    %c0_5 = arith.constant 0 : index
    %c0_6 = arith.constant 0 : index
    %3 = vector.load %arg6[%c0_5, %c0_6] : memref<1x32xf32, #tpu.memory_space<vmem>>, vector<1x32xf32>
    %c0_7 = arith.constant 0 : index
    %c0_8 = arith.constant 0 : index
    %c0_9 = arith.constant 0 : index
    %c0_10 = arith.constant 0 : index
    %4 = vector.load %arg1[%c0_7, %c0_8, %c0_9, %c0_10] : memref<1x6x3x16xbf16, #tpu.memory_space<vmem>>, vector<1x1x2x16xbf16>
    %5 = vector.shape_cast %4 : vector<1x1x2x16xbf16> to vector<2x16xbf16>
    %6 = arith.extf %5 : vector<2x16xbf16> to vector<2x16xf32>
    %7 = vector.extract_strided_slice %0 {offsets = [0, 0], sizes = [1, 16], strides = [1, 1]} : vector<9x16xf32> to vector<1x16xf32>
    %8 = vector.broadcast %7 : vector<1x16xf32> to vector<2x16xf32>
    %9 = arith.mulf %6, %8 : vector<2x16xf32>
    %c0_11 = arith.constant 0 : index
    %c0_12 = arith.constant 0 : index
    %c0_13 = arith.constant 0 : index
    %c0_14 = arith.constant 0 : index
    %10 = vector.load %arg2[%c0_11, %c0_12, %c0_13, %c0_14] : memref<1x6x3x16xbf16, #tpu.memory_space<vmem>>, vector<1x1x2x16xbf16>
    %11 = vector.shape_cast %10 : vector<1x1x2x16xbf16> to vector<2x16xbf16>
    %12 = arith.extf %11 : vector<2x16xbf16> to vector<2x16xf32>
    %13 = vector.extract_strided_slice %0 {offsets = [1, 0], sizes = [1, 16], strides = [1, 1]} : vector<9x16xf32> to vector<1x16xf32>
    %14 = vector.broadcast %13 : vector<1x16xf32> to vector<2x16xf32>
    %15 = arith.mulf %12, %14 : vector<2x16xf32>
    %c0_15 = arith.constant 0 : index
    %c0_16 = arith.constant 0 : index
    %c1 = arith.constant 1 : index
    %c0_17 = arith.constant 0 : index
    %16 = vector.load %arg1[%c0_15, %c0_16, %c1, %c0_17] : memref<1x6x3x16xbf16, #tpu.memory_space<vmem>>, vector<1x1x2x16xbf16>
    %17 = vector.shape_cast %16 : vector<1x1x2x16xbf16> to vector<2x16xbf16>
    %18 = arith.extf %17 : vector<2x16xbf16> to vector<2x16xf32>
    %19 = vector.extract_strided_slice %0 {offsets = [2, 0], sizes = [1, 16], strides = [1, 1]} : vector<9x16xf32> to vector<1x16xf32>
    %20 = vector.broadcast %19 : vector<1x16xf32> to vector<2x16xf32>
    %21 = arith.mulf %18, %20 : vector<2x16xf32>
    %c0_18 = arith.constant 0 : index
    %c1_19 = arith.constant 1 : index
    %c0_20 = arith.constant 0 : index
    %c0_21 = arith.constant 0 : index
    %22 = vector.load %arg1[%c0_18, %c1_19, %c0_20, %c0_21] : memref<1x6x3x16xbf16, #tpu.memory_space<vmem>>, vector<1x1x2x16xbf16>
    %23 = vector.shape_cast %22 : vector<1x1x2x16xbf16> to vector<2x16xbf16>
    %24 = arith.extf %23 : vector<2x16xbf16> to vector<2x16xf32>
    %25 = vector.extract_strided_slice %0 {offsets = [3, 0], sizes = [1, 16], strides = [1, 1]} : vector<9x16xf32> to vector<1x16xf32>
    %26 = vector.broadcast %25 : vector<1x16xf32> to vector<2x16xf32>
    %27 = arith.mulf %24, %26 : vector<2x16xf32>
    %c0_22 = arith.constant 0 : index
    %c1_23 = arith.constant 1 : index
    %c0_24 = arith.constant 0 : index
    %c0_25 = arith.constant 0 : index
    %28 = vector.load %arg2[%c0_22, %c1_23, %c0_24, %c0_25] : memref<1x6x3x16xbf16, #tpu.memory_space<vmem>>, vector<1x1x2x16xbf16>
    %29 = vector.shape_cast %28 : vector<1x1x2x16xbf16> to vector<2x16xbf16>
    %30 = arith.extf %29 : vector<2x16xbf16> to vector<2x16xf32>
    %31 = vector.extract_strided_slice %0 {offsets = [4, 0], sizes = [1, 16], strides = [1, 1]} : vector<9x16xf32> to vector<1x16xf32>
    %32 = vector.broadcast %31 : vector<1x16xf32> to vector<2x16xf32>
    %33 = arith.mulf %30, %32 : vector<2x16xf32>
    %c0_26 = arith.constant 0 : index
    %c1_27 = arith.constant 1 : index
    %c1_28 = arith.constant 1 : index
    %c0_29 = arith.constant 0 : index
    %34 = vector.load %arg1[%c0_26, %c1_27, %c1_28, %c0_29] : memref<1x6x3x16xbf16, #tpu.memory_space<vmem>>, vector<1x1x2x16xbf16>
    %35 = vector.shape_cast %34 : vector<1x1x2x16xbf16> to vector<2x16xbf16>
    %36 = arith.extf %35 : vector<2x16xbf16> to vector<2x16xf32>
    %37 = vector.extract_strided_slice %0 {offsets = [5, 0], sizes = [1, 16], strides = [1, 1]} : vector<9x16xf32> to vector<1x16xf32>
    %38 = vector.broadcast %37 : vector<1x16xf32> to vector<2x16xf32>
    %39 = arith.mulf %36, %38 : vector<2x16xf32>
    %c0_30 = arith.constant 0 : index
    %c2 = arith.constant 2 : index
    %c0_31 = arith.constant 0 : index
    %c0_32 = arith.constant 0 : index
    %40 = vector.load %arg1[%c0_30, %c2, %c0_31, %c0_32] : memref<1x6x3x16xbf16, #tpu.memory_space<vmem>>, vector<1x1x2x16xbf16>
    %41 = vector.shape_cast %40 : vector<1x1x2x16xbf16> to vector<2x16xbf16>
    %42 = arith.extf %41 : vector<2x16xbf16> to vector<2x16xf32>
    %43 = vector.extract_strided_slice %0 {offsets = [6, 0], sizes = [1, 16], strides = [1, 1]} : vector<9x16xf32> to vector<1x16xf32>
    %44 = vector.broadcast %43 : vector<1x16xf32> to vector<2x16xf32>
    %45 = arith.mulf %42, %44 : vector<2x16xf32>
    %c0_33 = arith.constant 0 : index
    %c2_34 = arith.constant 2 : index
    %c0_35 = arith.constant 0 : index
    %c0_36 = arith.constant 0 : index
    %46 = vector.load %arg2[%c0_33, %c2_34, %c0_35, %c0_36] : memref<1x6x3x16xbf16, #tpu.memory_space<vmem>>, vector<1x1x2x16xbf16>
    %47 = vector.shape_cast %46 : vector<1x1x2x16xbf16> to vector<2x16xbf16>
    %48 = arith.extf %47 : vector<2x16xbf16> to vector<2x16xf32>
    %49 = vector.extract_strided_slice %0 {offsets = [7, 0], sizes = [1, 16], strides = [1, 1]} : vector<9x16xf32> to vector<1x16xf32>
    %50 = vector.broadcast %49 : vector<1x16xf32> to vector<2x16xf32>
    %51 = arith.mulf %48, %50 : vector<2x16xf32>
    %c0_37 = arith.constant 0 : index
    %c2_38 = arith.constant 2 : index
    %c1_39 = arith.constant 1 : index
    %c0_40 = arith.constant 0 : index
    %52 = vector.load %arg1[%c0_37, %c2_38, %c1_39, %c0_40] : memref<1x6x3x16xbf16, #tpu.memory_space<vmem>>, vector<1x1x2x16xbf16>
    %53 = vector.shape_cast %52 : vector<1x1x2x16xbf16> to vector<2x16xbf16>
    %54 = arith.extf %53 : vector<2x16xbf16> to vector<2x16xf32>
    %55 = vector.extract_strided_slice %0 {offsets = [8, 0], sizes = [1, 16], strides = [1, 1]} : vector<9x16xf32> to vector<1x16xf32>
    %56 = vector.broadcast %55 : vector<1x16xf32> to vector<2x16xf32>
    %57 = arith.mulf %54, %56 : vector<2x16xf32>
    %58 = arith.addf %9, %15 : vector<2x16xf32>
    %59 = arith.addf %21, %27 : vector<2x16xf32>
    %60 = arith.addf %33, %39 : vector<2x16xf32>
    %61 = arith.addf %45, %51 : vector<2x16xf32>
    %62 = arith.addf %58, %59 : vector<2x16xf32>
    %63 = arith.addf %60, %61 : vector<2x16xf32>
    %64 = arith.addf %62, %63 : vector<2x16xf32>
    %65 = arith.addf %64, %57 : vector<2x16xf32>
    %66 = vector.broadcast %1 : vector<1x16xf32> to vector<2x16xf32>
    %67 = arith.addf %65, %66 : vector<2x16xf32>
    %cst = arith.constant 0.000000e+00 : f32
    %68 = vector.broadcast %cst : f32 to vector<2x16xf32>
    %69 = arith.maximumf %67, %68 : vector<2x16xf32>
    %cst_41 = arith.constant dense<0.000000e+00> : vector<2x32xf32>
    %70 = tpu.matmul %69, %2, %cst_41 {dimension_numbers = #tpu.dot_dimension_numbers<[1], [0], [0], [1], [0, 0, 1, 1], [], []>} : vector<2x16xf32>, vector<16x32xf32>, vector<2x32xf32> -> vector<2x32xf32>
    %71 = vector.broadcast %3 : vector<1x32xf32> to vector<2x32xf32>
    %72 = arith.addf %70, %71 : vector<2x32xf32>
    %cst_42 = arith.constant 0.000000e+00 : f32
    %73 = vector.broadcast %cst_42 : f32 to vector<2x32xf32>
    %74 = arith.maximumf %72, %73 : vector<2x32xf32>
    %75 = arith.truncf %74 : vector<2x32xf32> to vector<2x32xbf16>
    %c0_43 = arith.constant 0 : index
    %c0_44 = arith.constant 0 : index
    %c0_45 = arith.constant 0 : index
    %c0_46 = arith.constant 0 : index
    %76 = vector.load %arg7[%c0_43, %c0_44, %c0_45, %c0_46] : memref<1x2x2x32xbf16, #tpu.memory_space<vmem>>, vector<1x1x2x32xbf16>
    %77 = vector.shape_cast %76 : vector<1x1x2x32xbf16> to vector<2x32xbf16>
    %78 = vector.shape_cast %75 : vector<2x32xbf16> to vector<1x1x2x32xbf16>
    tpu.vector_store %arg7[%c0_43, %c0_44, %c0_45, %c0_46], %78 {strides = array<i32>} : memref<1x2x2x32xbf16, #tpu.memory_space<vmem>>, vector<1x1x2x32xbf16>,
    %c0_47 = arith.constant 0 : index
    %c2_48 = arith.constant 2 : index
    %c0_49 = arith.constant 0 : index
    %c0_50 = arith.constant 0 : index
    %79 = vector.load %arg1[%c0_47, %c2_48, %c0_49, %c0_50] : memref<1x6x3x16xbf16, #tpu.memory_space<vmem>>, vector<1x1x2x16xbf16>
    %80 = vector.shape_cast %79 : vector<1x1x2x16xbf16> to vector<2x16xbf16>
    %81 = arith.extf %80 : vector<2x16xbf16> to vector<2x16xf32>
    %82 = vector.extract_strided_slice %0 {offsets = [0, 0], sizes = [1, 16], strides = [1, 1]} : vector<9x16xf32> to vector<1x16xf32>
    %83 = vector.broadcast %82 : vector<1x16xf32> to vector<2x16xf32>
    %84 = arith.mulf %81, %83 : vector<2x16xf32>
    %c0_51 = arith.constant 0 : index
    %c2_52 = arith.constant 2 : index
    %c0_53 = arith.constant 0 : index
    %c0_54 = arith.constant 0 : index
    %85 = vector.load %arg2[%c0_51, %c2_52, %c0_53, %c0_54] : memref<1x6x3x16xbf16, #tpu.memory_space<vmem>>, vector<1x1x2x16xbf16>
    %86 = vector.shape_cast %85 : vector<1x1x2x16xbf16> to vector<2x16xbf16>
    %87 = arith.extf %86 : vector<2x16xbf16> to vector<2x16xf32>
    %88 = vector.extract_strided_slice %0 {offsets = [1, 0], sizes = [1, 16], strides = [1, 1]} : vector<9x16xf32> to vector<1x16xf32>
    %89 = vector.broadcast %88 : vector<1x16xf32> to vector<2x16xf32>
    %90 = arith.mulf %87, %89 : vector<2x16xf32>
    %c0_55 = arith.constant 0 : index
    %c2_56 = arith.constant 2 : index
    %c1_57 = arith.constant 1 : index
    %c0_58 = arith.constant 0 : index
    %91 = vector.load %arg1[%c0_55, %c2_56, %c1_57, %c0_58] : memref<1x6x3x16xbf16, #tpu.memory_space<vmem>>, vector<1x1x2x16xbf16>
    %92 = vector.shape_cast %91 : vector<1x1x2x16xbf16> to vector<2x16xbf16>
    %93 = arith.extf %92 : vector<2x16xbf16> to vector<2x16xf32>
    %94 = vector.extract_strided_slice %0 {offsets = [2, 0], sizes = [1, 16], strides = [1, 1]} : vector<9x16xf32> to vector<1x16xf32>
    %95 = vector.broadcast %94 : vector<1x16xf32> to vector<2x16xf32>
    %96 = arith.mulf %93, %95 : vector<2x16xf32>
    %c0_59 = arith.constant 0 : index
    %c3 = arith.constant 3 : index
    %c0_60 = arith.constant 0 : index
    %c0_61 = arith.constant 0 : index
    %97 = vector.load %arg1[%c0_59, %c3, %c0_60, %c0_61] : memref<1x6x3x16xbf16, #tpu.memory_space<vmem>>, vector<1x1x2x16xbf16>
    %98 = vector.shape_cast %97 : vector<1x1x2x16xbf16> to vector<2x16xbf16>
    %99 = arith.extf %98 : vector<2x16xbf16> to vector<2x16xf32>
    %100 = vector.extract_strided_slice %0 {offsets = [3, 0], sizes = [1, 16], strides = [1, 1]} : vector<9x16xf32> to vector<1x16xf32>
    %101 = vector.broadcast %100 : vector<1x16xf32> to vector<2x16xf32>
    %102 = arith.mulf %99, %101 : vector<2x16xf32>
    %c0_62 = arith.constant 0 : index
    %c3_63 = arith.constant 3 : index
    %c0_64 = arith.constant 0 : index
    %c0_65 = arith.constant 0 : index
    %103 = vector.load %arg2[%c0_62, %c3_63, %c0_64, %c0_65] : memref<1x6x3x16xbf16, #tpu.memory_space<vmem>>, vector<1x1x2x16xbf16>
    %104 = vector.shape_cast %103 : vector<1x1x2x16xbf16> to vector<2x16xbf16>
    %105 = arith.extf %104 : vector<2x16xbf16> to vector<2x16xf32>
    %106 = vector.extract_strided_slice %0 {offsets = [4, 0], sizes = [1, 16], strides = [1, 1]} : vector<9x16xf32> to vector<1x16xf32>
    %107 = vector.broadcast %106 : vector<1x16xf32> to vector<2x16xf32>
    %108 = arith.mulf %105, %107 : vector<2x16xf32>
    %c0_66 = arith.constant 0 : index
    %c3_67 = arith.constant 3 : index
    %c1_68 = arith.constant 1 : index
    %c0_69 = arith.constant 0 : index
    %109 = vector.load %arg1[%c0_66, %c3_67, %c1_68, %c0_69] : memref<1x6x3x16xbf16, #tpu.memory_space<vmem>>, vector<1x1x2x16xbf16>
    %110 = vector.shape_cast %109 : vector<1x1x2x16xbf16> to vector<2x16xbf16>
    %111 = arith.extf %110 : vector<2x16xbf16> to vector<2x16xf32>
    %112 = vector.extract_strided_slice %0 {offsets = [5, 0], sizes = [1, 16], strides = [1, 1]} : vector<9x16xf32> to vector<1x16xf32>
    %113 = vector.broadcast %112 : vector<1x16xf32> to vector<2x16xf32>
    %114 = arith.mulf %111, %113 : vector<2x16xf32>
    %c0_70 = arith.constant 0 : index
    %c4 = arith.constant 4 : index
    %c0_71 = arith.constant 0 : index
    %c0_72 = arith.constant 0 : index
    %115 = vector.load %arg1[%c0_70, %c4, %c0_71, %c0_72] : memref<1x6x3x16xbf16, #tpu.memory_space<vmem>>, vector<1x1x2x16xbf16>
    %116 = vector.shape_cast %115 : vector<1x1x2x16xbf16> to vector<2x16xbf16>
    %117 = arith.extf %116 : vector<2x16xbf16> to vector<2x16xf32>
    %118 = vector.extract_strided_slice %0 {offsets = [6, 0], sizes = [1, 16], strides = [1, 1]} : vector<9x16xf32> to vector<1x16xf32>
    %119 = vector.broadcast %118 : vector<1x16xf32> to vector<2x16xf32>
    %120 = arith.mulf %117, %119 : vector<2x16xf32>
    %c0_73 = arith.constant 0 : index
    %c4_74 = arith.constant 4 : index
    %c0_75 = arith.constant 0 : index
    %c0_76 = arith.constant 0 : index
    %121 = vector.load %arg2[%c0_73, %c4_74, %c0_75, %c0_76] : memref<1x6x3x16xbf16, #tpu.memory_space<vmem>>, vector<1x1x2x16xbf16>
    %122 = vector.shape_cast %121 : vector<1x1x2x16xbf16> to vector<2x16xbf16>
    %123 = arith.extf %122 : vector<2x16xbf16> to vector<2x16xf32>
    %124 = vector.extract_strided_slice %0 {offsets = [7, 0], sizes = [1, 16], strides = [1, 1]} : vector<9x16xf32> to vector<1x16xf32>
    %125 = vector.broadcast %124 : vector<1x16xf32> to vector<2x16xf32>
    %126 = arith.mulf %123, %125 : vector<2x16xf32>
    %c0_77 = arith.constant 0 : index
    %c4_78 = arith.constant 4 : index
    %c1_79 = arith.constant 1 : index
    %c0_80 = arith.constant 0 : index
    %127 = vector.load %arg1[%c0_77, %c4_78, %c1_79, %c0_80] : memref<1x6x3x16xbf16, #tpu.memory_space<vmem>>, vector<1x1x2x16xbf16>
    %128 = vector.shape_cast %127 : vector<1x1x2x16xbf16> to vector<2x16xbf16>
    %129 = arith.extf %128 : vector<2x16xbf16> to vector<2x16xf32>
    %130 = vector.extract_strided_slice %0 {offsets = [8, 0], sizes = [1, 16], strides = [1, 1]} : vector<9x16xf32> to vector<1x16xf32>
    %131 = vector.broadcast %130 : vector<1x16xf32> to vector<2x16xf32>
    %132 = arith.mulf %129, %131 : vector<2x16xf32>
    %133 = arith.addf %84, %90 : vector<2x16xf32>
    %134 = arith.addf %96, %102 : vector<2x16xf32>
    %135 = arith.addf %108, %114 : vector<2x16xf32>
    %136 = arith.addf %120, %126 : vector<2x16xf32>
    %137 = arith.addf %133, %134 : vector<2x16xf32>
    %138 = arith.addf %135, %136 : vector<2x16xf32>
    %139 = arith.addf %137, %138 : vector<2x16xf32>
    %140 = arith.addf %139, %132 : vector<2x16xf32>
    %141 = vector.broadcast %1 : vector<1x16xf32> to vector<2x16xf32>
    %142 = arith.addf %140, %141 : vector<2x16xf32>
    %cst_81 = arith.constant 0.000000e+00 : f32
    %143 = vector.broadcast %cst_81 : f32 to vector<2x16xf32>
    %144 = arith.maximumf %142, %143 : vector<2x16xf32>
    %cst_82 = arith.constant dense<0.000000e+00> : vector<2x32xf32>
    %145 = tpu.matmul %144, %2, %cst_82 {dimension_numbers = #tpu.dot_dimension_numbers<[1], [0], [0], [1], [0, 0, 1, 1], [], []>} : vector<2x16xf32>, vector<16x32xf32>, vector<2x32xf32> -> vector<2x32xf32>
    %146 = vector.broadcast %3 : vector<1x32xf32> to vector<2x32xf32>
    %147 = arith.addf %145, %146 : vector<2x32xf32>
    %cst_83 = arith.constant 0.000000e+00 : f32
    %148 = vector.broadcast %cst_83 : f32 to vector<2x32xf32>
    %149 = arith.maximumf %147, %148 : vector<2x32xf32>
    %150 = arith.truncf %149 : vector<2x32xf32> to vector<2x32xbf16>
    %c0_84 = arith.constant 0 : index
    %c1_85 = arith.constant 1 : index
    %c0_86 = arith.constant 0 : index
    %c0_87 = arith.constant 0 : index
    %151 = vector.load %arg7[%c0_84, %c1_85, %c0_86, %c0_87] : memref<1x2x2x32xbf16, #tpu.memory_space<vmem>>, vector<1x1x2x32xbf16>
    %152 = vector.shape_cast %151 : vector<1x1x2x32xbf16> to vector<2x32xbf16>
    %153 = vector.shape_cast %150 : vector<2x32xbf16> to vector<1x1x2x32xbf16>
    tpu.vector_store %arg7[%c0_84, %c1_85, %c0_86, %c0_87], %153 {strides = array<i32>} : memref<1x2x2x32xbf16, #tpu.memory_space<vmem>>, vector<1x1x2x32xbf16>,
    return
  }
  func.func @transform_0(%arg0: i32) -> (i32, i32, i32, i32) {
    %c0_i32 = arith.constant 0 : i32
    %c0_i32_0 = arith.constant 0 : i32
    %c0_i32_1 = arith.constant 0 : i32
    %c0_i32_2 = arith.constant 0 : i32
    return %arg0, %c0_i32, %c0_i32_0, %c0_i32_1 : i32, i32, i32, i32
  }
  func.func @transform_1(%arg0: i32) -> (i32, i32, i32, i32) {
    %c0_i32 = arith.constant 0 : i32
    %c0_i32_0 = arith.constant 0 : i32
    %c0_i32_1 = arith.constant 0 : i32
    %c0_i32_2 = arith.constant 0 : i32
    return %arg0, %c0_i32, %c0_i32_0, %c0_i32_1 : i32, i32, i32, i32
  }
  func.func @transform_2(%arg0: i32) -> (i32, i32) {
    %c0_i32 = arith.constant 0 : i32
    %c0_i32_0 = arith.constant 0 : i32
    %c0_i32_1 = arith.constant 0 : i32
    return %c0_i32, %c0_i32_0 : i32, i32
  }
  func.func @transform_3(%arg0: i32) -> (i32, i32) {
    %c0_i32 = arith.constant 0 : i32
    %c0_i32_0 = arith.constant 0 : i32
    %c0_i32_1 = arith.constant 0 : i32
    return %c0_i32, %c0_i32_0 : i32, i32
  }
  func.func @transform_4(%arg0: i32) -> (i32, i32) {
    %c0_i32 = arith.constant 0 : i32
    %c0_i32_0 = arith.constant 0 : i32
    %c0_i32_1 = arith.constant 0 : i32
    return %c0_i32, %c0_i32_0 : i32, i32
  }
  func.func @transform_5(%arg0: i32) -> (i32, i32) {
    %c0_i32 = arith.constant 0 : i32
    %c0_i32_0 = arith.constant 0 : i32
    %c0_i32_1 = arith.constant 0 : i32
    return %c0_i32, %c0_i32_0 : i32, i32
  }
  func.func @transform_6(%arg0: i32) -> (i32, i32, i32, i32) {
    %c0_i32 = arith.constant 0 : i32
    %c0_i32_0 = arith.constant 0 : i32
    %c0_i32_1 = arith.constant 0 : i32
    %c0_i32_2 = arith.constant 0 : i32
    return %arg0, %c0_i32, %c0_i32_0, %c0_i32_1 : i32, i32, i32, i32
  }
}

module attributes {stable_mosaic.version = 11 : i64} {
  func.func @kernel(%arg0: i32, %arg1: memref<1x3x3x64xbf16, #tpu.memory_space<vmem>>, %arg2: memref<9x64xf32, #tpu.memory_space<vmem>>, %arg3: memref<1x64xf32, #tpu.memory_space<vmem>>, %arg4: memref<64x64xf32, #tpu.memory_space<vmem>>, %arg5: memref<1x64xf32, #tpu.memory_space<vmem>>, %arg6: memref<1x1x1x64xbf16, #tpu.memory_space<vmem>>) attributes {dimension_semantics = [#tpu.dimension_semantics<parallel>], iteration_bounds = array<i64: 2>, scalar_prefetch = 0 : i64, scratch_operands = 0 : i64, tpu.core_type = #tpu.core_type<tc>, window_params = [{transform_indices = @transform_0, window_bounds = array<i64: 1, 3, 3, 64>}, {pipeline_mode = #tpu.pipeline_mode<synchronous>, transform_indices = @transform_1, window_bounds = array<i64: 9, 64>}, {pipeline_mode = #tpu.pipeline_mode<synchronous>, transform_indices = @transform_2, window_bounds = array<i64: 1, 64>}, {pipeline_mode = #tpu.pipeline_mode<synchronous>, transform_indices = @transform_3, window_bounds = array<i64: 64, 64>}, {pipeline_mode = #tpu.pipeline_mode<synchronous>, transform_indices = @transform_4, window_bounds = array<i64: 1, 64>}, {transform_indices = @transform_5, window_bounds = array<i64: 1, 1, 1, 64>}]} {
    %c0 = arith.constant 0 : index
    %c0_0 = arith.constant 0 : index
    %0 = vector.load %arg2[%c0, %c0_0] : memref<9x64xf32, #tpu.memory_space<vmem>>, vector<9x64xf32>
    %c0_1 = arith.constant 0 : index
    %c0_2 = arith.constant 0 : index
    %1 = vector.load %arg3[%c0_1, %c0_2] : memref<1x64xf32, #tpu.memory_space<vmem>>, vector<1x64xf32>
    %c0_3 = arith.constant 0 : index
    %c0_4 = arith.constant 0 : index
    %2 = vector.load %arg4[%c0_3, %c0_4] : memref<64x64xf32, #tpu.memory_space<vmem>>, vector<64x64xf32>
    %c0_5 = arith.constant 0 : index
    %c0_6 = arith.constant 0 : index
    %3 = vector.load %arg5[%c0_5, %c0_6] : memref<1x64xf32, #tpu.memory_space<vmem>>, vector<1x64xf32>
    %c0_7 = arith.constant 0 : index
    %c0_8 = arith.constant 0 : index
    %c0_9 = arith.constant 0 : index
    %c0_10 = arith.constant 0 : index
    %4 = vector.load %arg1[%c0_7, %c0_8, %c0_9, %c0_10] : memref<1x3x3x64xbf16, #tpu.memory_space<vmem>>, vector<1x1x1x64xbf16>
    %5 = vector.shape_cast %4 : vector<1x1x1x64xbf16> to vector<1x64xbf16>
    %6 = arith.extf %5 : vector<1x64xbf16> to vector<1x64xf32>
    %7 = vector.extract_strided_slice %0 {offsets = [0, 0], sizes = [1, 64], strides = [1, 1]} : vector<9x64xf32> to vector<1x64xf32>
    %8 = arith.mulf %6, %7 : vector<1x64xf32>
    %c0_11 = arith.constant 0 : index
    %c0_12 = arith.constant 0 : index
    %c1 = arith.constant 1 : index
    %c0_13 = arith.constant 0 : index
    %9 = vector.load %arg1[%c0_11, %c0_12, %c1, %c0_13] : memref<1x3x3x64xbf16, #tpu.memory_space<vmem>>, vector<1x1x1x64xbf16>
    %10 = vector.shape_cast %9 : vector<1x1x1x64xbf16> to vector<1x64xbf16>
    %11 = arith.extf %10 : vector<1x64xbf16> to vector<1x64xf32>
    %12 = vector.extract_strided_slice %0 {offsets = [1, 0], sizes = [1, 64], strides = [1, 1]} : vector<9x64xf32> to vector<1x64xf32>
    %13 = arith.mulf %11, %12 : vector<1x64xf32>
    %c0_14 = arith.constant 0 : index
    %c0_15 = arith.constant 0 : index
    %c2 = arith.constant 2 : index
    %c0_16 = arith.constant 0 : index
    %14 = vector.load %arg1[%c0_14, %c0_15, %c2, %c0_16] : memref<1x3x3x64xbf16, #tpu.memory_space<vmem>>, vector<1x1x1x64xbf16>
    %15 = vector.shape_cast %14 : vector<1x1x1x64xbf16> to vector<1x64xbf16>
    %16 = arith.extf %15 : vector<1x64xbf16> to vector<1x64xf32>
    %17 = vector.extract_strided_slice %0 {offsets = [2, 0], sizes = [1, 64], strides = [1, 1]} : vector<9x64xf32> to vector<1x64xf32>
    %18 = arith.mulf %16, %17 : vector<1x64xf32>
    %c0_17 = arith.constant 0 : index
    %c1_18 = arith.constant 1 : index
    %c0_19 = arith.constant 0 : index
    %c0_20 = arith.constant 0 : index
    %19 = vector.load %arg1[%c0_17, %c1_18, %c0_19, %c0_20] : memref<1x3x3x64xbf16, #tpu.memory_space<vmem>>, vector<1x1x1x64xbf16>
    %20 = vector.shape_cast %19 : vector<1x1x1x64xbf16> to vector<1x64xbf16>
    %21 = arith.extf %20 : vector<1x64xbf16> to vector<1x64xf32>
    %22 = vector.extract_strided_slice %0 {offsets = [3, 0], sizes = [1, 64], strides = [1, 1]} : vector<9x64xf32> to vector<1x64xf32>
    %23 = arith.mulf %21, %22 : vector<1x64xf32>
    %c0_21 = arith.constant 0 : index
    %c1_22 = arith.constant 1 : index
    %c1_23 = arith.constant 1 : index
    %c0_24 = arith.constant 0 : index
    %24 = vector.load %arg1[%c0_21, %c1_22, %c1_23, %c0_24] : memref<1x3x3x64xbf16, #tpu.memory_space<vmem>>, vector<1x1x1x64xbf16>
    %25 = vector.shape_cast %24 : vector<1x1x1x64xbf16> to vector<1x64xbf16>
    %26 = arith.extf %25 : vector<1x64xbf16> to vector<1x64xf32>
    %27 = vector.extract_strided_slice %0 {offsets = [4, 0], sizes = [1, 64], strides = [1, 1]} : vector<9x64xf32> to vector<1x64xf32>
    %28 = arith.mulf %26, %27 : vector<1x64xf32>
    %c0_25 = arith.constant 0 : index
    %c1_26 = arith.constant 1 : index
    %c2_27 = arith.constant 2 : index
    %c0_28 = arith.constant 0 : index
    %29 = vector.load %arg1[%c0_25, %c1_26, %c2_27, %c0_28] : memref<1x3x3x64xbf16, #tpu.memory_space<vmem>>, vector<1x1x1x64xbf16>
    %30 = vector.shape_cast %29 : vector<1x1x1x64xbf16> to vector<1x64xbf16>
    %31 = arith.extf %30 : vector<1x64xbf16> to vector<1x64xf32>
    %32 = vector.extract_strided_slice %0 {offsets = [5, 0], sizes = [1, 64], strides = [1, 1]} : vector<9x64xf32> to vector<1x64xf32>
    %33 = arith.mulf %31, %32 : vector<1x64xf32>
    %c0_29 = arith.constant 0 : index
    %c2_30 = arith.constant 2 : index
    %c0_31 = arith.constant 0 : index
    %c0_32 = arith.constant 0 : index
    %34 = vector.load %arg1[%c0_29, %c2_30, %c0_31, %c0_32] : memref<1x3x3x64xbf16, #tpu.memory_space<vmem>>, vector<1x1x1x64xbf16>
    %35 = vector.shape_cast %34 : vector<1x1x1x64xbf16> to vector<1x64xbf16>
    %36 = arith.extf %35 : vector<1x64xbf16> to vector<1x64xf32>
    %37 = vector.extract_strided_slice %0 {offsets = [6, 0], sizes = [1, 64], strides = [1, 1]} : vector<9x64xf32> to vector<1x64xf32>
    %38 = arith.mulf %36, %37 : vector<1x64xf32>
    %c0_33 = arith.constant 0 : index
    %c2_34 = arith.constant 2 : index
    %c1_35 = arith.constant 1 : index
    %c0_36 = arith.constant 0 : index
    %39 = vector.load %arg1[%c0_33, %c2_34, %c1_35, %c0_36] : memref<1x3x3x64xbf16, #tpu.memory_space<vmem>>, vector<1x1x1x64xbf16>
    %40 = vector.shape_cast %39 : vector<1x1x1x64xbf16> to vector<1x64xbf16>
    %41 = arith.extf %40 : vector<1x64xbf16> to vector<1x64xf32>
    %42 = vector.extract_strided_slice %0 {offsets = [7, 0], sizes = [1, 64], strides = [1, 1]} : vector<9x64xf32> to vector<1x64xf32>
    %43 = arith.mulf %41, %42 : vector<1x64xf32>
    %c0_37 = arith.constant 0 : index
    %c2_38 = arith.constant 2 : index
    %c2_39 = arith.constant 2 : index
    %c0_40 = arith.constant 0 : index
    %44 = vector.load %arg1[%c0_37, %c2_38, %c2_39, %c0_40] : memref<1x3x3x64xbf16, #tpu.memory_space<vmem>>, vector<1x1x1x64xbf16>
    %45 = vector.shape_cast %44 : vector<1x1x1x64xbf16> to vector<1x64xbf16>
    %46 = arith.extf %45 : vector<1x64xbf16> to vector<1x64xf32>
    %47 = vector.extract_strided_slice %0 {offsets = [8, 0], sizes = [1, 64], strides = [1, 1]} : vector<9x64xf32> to vector<1x64xf32>
    %48 = arith.mulf %46, %47 : vector<1x64xf32>
    %49 = arith.addf %8, %13 : vector<1x64xf32>
    %50 = arith.addf %18, %23 : vector<1x64xf32>
    %51 = arith.addf %28, %33 : vector<1x64xf32>
    %52 = arith.addf %38, %43 : vector<1x64xf32>
    %53 = arith.addf %49, %50 : vector<1x64xf32>
    %54 = arith.addf %51, %52 : vector<1x64xf32>
    %55 = arith.addf %53, %54 : vector<1x64xf32>
    %56 = arith.addf %55, %48 : vector<1x64xf32>
    %57 = arith.addf %56, %1 : vector<1x64xf32>
    %cst = arith.constant 0.000000e+00 : f32
    %58 = vector.broadcast %cst : f32 to vector<1x64xf32>
    %59 = arith.maximumf %57, %58 : vector<1x64xf32>
    %cst_41 = arith.constant dense<0.000000e+00> : vector<1x64xf32>
    %60 = tpu.matmul %59, %2, %cst_41 {dimension_numbers = #tpu.dot_dimension_numbers<[1], [0], [0], [1], [0, 0, 1, 1], [], []>} : vector<1x64xf32>, vector<64x64xf32>, vector<1x64xf32> -> vector<1x64xf32>
    %61 = arith.addf %60, %3 : vector<1x64xf32>
    %cst_42 = arith.constant 0.000000e+00 : f32
    %62 = vector.broadcast %cst_42 : f32 to vector<1x64xf32>
    %63 = arith.maximumf %61, %62 : vector<1x64xf32>
    %64 = arith.truncf %63 : vector<1x64xf32> to vector<1x64xbf16>
    %c0_43 = arith.constant 0 : index
    %c0_44 = arith.constant 0 : index
    %c0_45 = arith.constant 0 : index
    %c0_46 = arith.constant 0 : index
    %65 = vector.load %arg6[%c0_43, %c0_44, %c0_45, %c0_46] : memref<1x1x1x64xbf16, #tpu.memory_space<vmem>>, vector<1x1x1x64xbf16>
    %66 = vector.shape_cast %65 : vector<1x1x1x64xbf16> to vector<1x64xbf16>
    %67 = vector.shape_cast %64 : vector<1x64xbf16> to vector<1x1x1x64xbf16>
    tpu.vector_store %arg6[%c0_43, %c0_44, %c0_45, %c0_46], %67 {strides = array<i32>} : memref<1x1x1x64xbf16, #tpu.memory_space<vmem>>, vector<1x1x1x64xbf16>,
    return
  }
  func.func @transform_0(%arg0: i32) -> (i32, i32, i32, i32) {
    %c0_i32 = arith.constant 0 : i32
    %c0_i32_0 = arith.constant 0 : i32
    %c0_i32_1 = arith.constant 0 : i32
    %c0_i32_2 = arith.constant 0 : i32
    return %arg0, %c0_i32, %c0_i32_0, %c0_i32_1 : i32, i32, i32, i32
  }
  func.func @transform_1(%arg0: i32) -> (i32, i32) {
    %c0_i32 = arith.constant 0 : i32
    %c0_i32_0 = arith.constant 0 : i32
    %c0_i32_1 = arith.constant 0 : i32
    return %c0_i32, %c0_i32_0 : i32, i32
  }
  func.func @transform_2(%arg0: i32) -> (i32, i32) {
    %c0_i32 = arith.constant 0 : i32
    %c0_i32_0 = arith.constant 0 : i32
    %c0_i32_1 = arith.constant 0 : i32
    return %c0_i32, %c0_i32_0 : i32, i32
  }
  func.func @transform_3(%arg0: i32) -> (i32, i32) {
    %c0_i32 = arith.constant 0 : i32
    %c0_i32_0 = arith.constant 0 : i32
    %c0_i32_1 = arith.constant 0 : i32
    return %c0_i32, %c0_i32_0 : i32, i32
  }
  func.func @transform_4(%arg0: i32) -> (i32, i32) {
    %c0_i32 = arith.constant 0 : i32
    %c0_i32_0 = arith.constant 0 : i32
    %c0_i32_1 = arith.constant 0 : i32
    return %c0_i32, %c0_i32_0 : i32, i32
  }
  func.func @transform_5(%arg0: i32) -> (i32, i32, i32, i32) {
    %c0_i32 = arith.constant 0 : i32
    %c0_i32_0 = arith.constant 0 : i32
    %c0_i32_1 = arith.constant 0 : i32
    %c0_i32_2 = arith.constant 0 : i32
    return %arg0, %c0_i32, %c0_i32_0, %c0_i32_1 : i32, i32, i32, i32
  }
}

module attributes {stable_mosaic.version = 11 : i64} {
  func.func @kernel(%arg0: i32, %arg1: memref<1x3x2x64xbf16, #tpu.memory_space<vmem>>, %arg2: memref<1x3x1x64xbf16, #tpu.memory_space<vmem>>, %arg3: memref<9x64xf32, #tpu.memory_space<vmem>>, %arg4: memref<1x64xf32, #tpu.memory_space<vmem>>, %arg5: memref<64x128xf32, #tpu.memory_space<vmem>>, %arg6: memref<1x128xf32, #tpu.memory_space<vmem>>, %arg7: memref<1x1x1x128xbf16, #tpu.memory_space<vmem>>) attributes {dimension_semantics = [#tpu.dimension_semantics<parallel>], iteration_bounds = array<i64: 2>, scalar_prefetch = 0 : i64, scratch_operands = 0 : i64, tpu.core_type = #tpu.core_type<tc>, window_params = [{transform_indices = @transform_0, window_bounds = array<i64: 1, 3, 2, 64>}, {transform_indices = @transform_1, window_bounds = array<i64: 1, 3, 1, 64>}, {pipeline_mode = #tpu.pipeline_mode<synchronous>, transform_indices = @transform_2, window_bounds = array<i64: 9, 64>}, {pipeline_mode = #tpu.pipeline_mode<synchronous>, transform_indices = @transform_3, window_bounds = array<i64: 1, 64>}, {pipeline_mode = #tpu.pipeline_mode<synchronous>, transform_indices = @transform_4, window_bounds = array<i64: 64, 128>}, {pipeline_mode = #tpu.pipeline_mode<synchronous>, transform_indices = @transform_5, window_bounds = array<i64: 1, 128>}, {transform_indices = @transform_6, window_bounds = array<i64: 1, 1, 1, 128>}]} {
    %c0 = arith.constant 0 : index
    %c0_0 = arith.constant 0 : index
    %0 = vector.load %arg3[%c0, %c0_0] : memref<9x64xf32, #tpu.memory_space<vmem>>, vector<9x64xf32>
    %c0_1 = arith.constant 0 : index
    %c0_2 = arith.constant 0 : index
    %1 = vector.load %arg4[%c0_1, %c0_2] : memref<1x64xf32, #tpu.memory_space<vmem>>, vector<1x64xf32>
    %c0_3 = arith.constant 0 : index
    %c0_4 = arith.constant 0 : index
    %2 = vector.load %arg5[%c0_3, %c0_4] : memref<64x128xf32, #tpu.memory_space<vmem>>, vector<64x128xf32>
    %c0_5 = arith.constant 0 : index
    %c0_6 = arith.constant 0 : index
    %3 = vector.load %arg6[%c0_5, %c0_6] : memref<1x128xf32, #tpu.memory_space<vmem>>, vector<1x128xf32>
    %c0_7 = arith.constant 0 : index
    %c0_8 = arith.constant 0 : index
    %c0_9 = arith.constant 0 : index
    %c0_10 = arith.constant 0 : index
    %4 = vector.load %arg1[%c0_7, %c0_8, %c0_9, %c0_10] : memref<1x3x2x64xbf16, #tpu.memory_space<vmem>>, vector<1x1x1x64xbf16>
    %5 = vector.shape_cast %4 : vector<1x1x1x64xbf16> to vector<1x64xbf16>
    %6 = arith.extf %5 : vector<1x64xbf16> to vector<1x64xf32>
    %7 = vector.extract_strided_slice %0 {offsets = [0, 0], sizes = [1, 64], strides = [1, 1]} : vector<9x64xf32> to vector<1x64xf32>
    %8 = arith.mulf %6, %7 : vector<1x64xf32>
    %c0_11 = arith.constant 0 : index
    %c0_12 = arith.constant 0 : index
    %c0_13 = arith.constant 0 : index
    %c0_14 = arith.constant 0 : index
    %9 = vector.load %arg2[%c0_11, %c0_12, %c0_13, %c0_14] : memref<1x3x1x64xbf16, #tpu.memory_space<vmem>>, vector<1x1x1x64xbf16>
    %10 = vector.shape_cast %9 : vector<1x1x1x64xbf16> to vector<1x64xbf16>
    %11 = arith.extf %10 : vector<1x64xbf16> to vector<1x64xf32>
    %12 = vector.extract_strided_slice %0 {offsets = [1, 0], sizes = [1, 64], strides = [1, 1]} : vector<9x64xf32> to vector<1x64xf32>
    %13 = arith.mulf %11, %12 : vector<1x64xf32>
    %c0_15 = arith.constant 0 : index
    %c0_16 = arith.constant 0 : index
    %c1 = arith.constant 1 : index
    %c0_17 = arith.constant 0 : index
    %14 = vector.load %arg1[%c0_15, %c0_16, %c1, %c0_17] : memref<1x3x2x64xbf16, #tpu.memory_space<vmem>>, vector<1x1x1x64xbf16>
    %15 = vector.shape_cast %14 : vector<1x1x1x64xbf16> to vector<1x64xbf16>
    %16 = arith.extf %15 : vector<1x64xbf16> to vector<1x64xf32>
    %17 = vector.extract_strided_slice %0 {offsets = [2, 0], sizes = [1, 64], strides = [1, 1]} : vector<9x64xf32> to vector<1x64xf32>
    %18 = arith.mulf %16, %17 : vector<1x64xf32>
    %c0_18 = arith.constant 0 : index
    %c1_19 = arith.constant 1 : index
    %c0_20 = arith.constant 0 : index
    %c0_21 = arith.constant 0 : index
    %19 = vector.load %arg1[%c0_18, %c1_19, %c0_20, %c0_21] : memref<1x3x2x64xbf16, #tpu.memory_space<vmem>>, vector<1x1x1x64xbf16>
    %20 = vector.shape_cast %19 : vector<1x1x1x64xbf16> to vector<1x64xbf16>
    %21 = arith.extf %20 : vector<1x64xbf16> to vector<1x64xf32>
    %22 = vector.extract_strided_slice %0 {offsets = [3, 0], sizes = [1, 64], strides = [1, 1]} : vector<9x64xf32> to vector<1x64xf32>
    %23 = arith.mulf %21, %22 : vector<1x64xf32>
    %c0_22 = arith.constant 0 : index
    %c1_23 = arith.constant 1 : index
    %c0_24 = arith.constant 0 : index
    %c0_25 = arith.constant 0 : index
    %24 = vector.load %arg2[%c0_22, %c1_23, %c0_24, %c0_25] : memref<1x3x1x64xbf16, #tpu.memory_space<vmem>>, vector<1x1x1x64xbf16>
    %25 = vector.shape_cast %24 : vector<1x1x1x64xbf16> to vector<1x64xbf16>
    %26 = arith.extf %25 : vector<1x64xbf16> to vector<1x64xf32>
    %27 = vector.extract_strided_slice %0 {offsets = [4, 0], sizes = [1, 64], strides = [1, 1]} : vector<9x64xf32> to vector<1x64xf32>
    %28 = arith.mulf %26, %27 : vector<1x64xf32>
    %c0_26 = arith.constant 0 : index
    %c1_27 = arith.constant 1 : index
    %c1_28 = arith.constant 1 : index
    %c0_29 = arith.constant 0 : index
    %29 = vector.load %arg1[%c0_26, %c1_27, %c1_28, %c0_29] : memref<1x3x2x64xbf16, #tpu.memory_space<vmem>>, vector<1x1x1x64xbf16>
    %30 = vector.shape_cast %29 : vector<1x1x1x64xbf16> to vector<1x64xbf16>
    %31 = arith.extf %30 : vector<1x64xbf16> to vector<1x64xf32>
    %32 = vector.extract_strided_slice %0 {offsets = [5, 0], sizes = [1, 64], strides = [1, 1]} : vector<9x64xf32> to vector<1x64xf32>
    %33 = arith.mulf %31, %32 : vector<1x64xf32>
    %c0_30 = arith.constant 0 : index
    %c2 = arith.constant 2 : index
    %c0_31 = arith.constant 0 : index
    %c0_32 = arith.constant 0 : index
    %34 = vector.load %arg1[%c0_30, %c2, %c0_31, %c0_32] : memref<1x3x2x64xbf16, #tpu.memory_space<vmem>>, vector<1x1x1x64xbf16>
    %35 = vector.shape_cast %34 : vector<1x1x1x64xbf16> to vector<1x64xbf16>
    %36 = arith.extf %35 : vector<1x64xbf16> to vector<1x64xf32>
    %37 = vector.extract_strided_slice %0 {offsets = [6, 0], sizes = [1, 64], strides = [1, 1]} : vector<9x64xf32> to vector<1x64xf32>
    %38 = arith.mulf %36, %37 : vector<1x64xf32>
    %c0_33 = arith.constant 0 : index
    %c2_34 = arith.constant 2 : index
    %c0_35 = arith.constant 0 : index
    %c0_36 = arith.constant 0 : index
    %39 = vector.load %arg2[%c0_33, %c2_34, %c0_35, %c0_36] : memref<1x3x1x64xbf16, #tpu.memory_space<vmem>>, vector<1x1x1x64xbf16>
    %40 = vector.shape_cast %39 : vector<1x1x1x64xbf16> to vector<1x64xbf16>
    %41 = arith.extf %40 : vector<1x64xbf16> to vector<1x64xf32>
    %42 = vector.extract_strided_slice %0 {offsets = [7, 0], sizes = [1, 64], strides = [1, 1]} : vector<9x64xf32> to vector<1x64xf32>
    %43 = arith.mulf %41, %42 : vector<1x64xf32>
    %c0_37 = arith.constant 0 : index
    %c2_38 = arith.constant 2 : index
    %c1_39 = arith.constant 1 : index
    %c0_40 = arith.constant 0 : index
    %44 = vector.load %arg1[%c0_37, %c2_38, %c1_39, %c0_40] : memref<1x3x2x64xbf16, #tpu.memory_space<vmem>>, vector<1x1x1x64xbf16>
    %45 = vector.shape_cast %44 : vector<1x1x1x64xbf16> to vector<1x64xbf16>
    %46 = arith.extf %45 : vector<1x64xbf16> to vector<1x64xf32>
    %47 = vector.extract_strided_slice %0 {offsets = [8, 0], sizes = [1, 64], strides = [1, 1]} : vector<9x64xf32> to vector<1x64xf32>
    %48 = arith.mulf %46, %47 : vector<1x64xf32>
    %49 = arith.addf %8, %13 : vector<1x64xf32>
    %50 = arith.addf %18, %23 : vector<1x64xf32>
    %51 = arith.addf %28, %33 : vector<1x64xf32>
    %52 = arith.addf %38, %43 : vector<1x64xf32>
    %53 = arith.addf %49, %50 : vector<1x64xf32>
    %54 = arith.addf %51, %52 : vector<1x64xf32>
    %55 = arith.addf %53, %54 : vector<1x64xf32>
    %56 = arith.addf %55, %48 : vector<1x64xf32>
    %57 = arith.addf %56, %1 : vector<1x64xf32>
    %cst = arith.constant 0.000000e+00 : f32
    %58 = vector.broadcast %cst : f32 to vector<1x64xf32>
    %59 = arith.maximumf %57, %58 : vector<1x64xf32>
    %cst_41 = arith.constant dense<0.000000e+00> : vector<1x128xf32>
    %60 = tpu.matmul %59, %2, %cst_41 {dimension_numbers = #tpu.dot_dimension_numbers<[1], [0], [0], [1], [0, 0, 1, 1], [], []>} : vector<1x64xf32>, vector<64x128xf32>, vector<1x128xf32> -> vector<1x128xf32>
    %61 = arith.addf %60, %3 : vector<1x128xf32>
    %cst_42 = arith.constant 0.000000e+00 : f32
    %62 = vector.broadcast %cst_42 : f32 to vector<1x128xf32>
    %63 = arith.maximumf %61, %62 : vector<1x128xf32>
    %64 = arith.truncf %63 : vector<1x128xf32> to vector<1x128xbf16>
    %c0_43 = arith.constant 0 : index
    %c0_44 = arith.constant 0 : index
    %c0_45 = arith.constant 0 : index
    %c0_46 = arith.constant 0 : index
    %65 = vector.load %arg7[%c0_43, %c0_44, %c0_45, %c0_46] : memref<1x1x1x128xbf16, #tpu.memory_space<vmem>>, vector<1x1x1x128xbf16>
    %66 = vector.shape_cast %65 : vector<1x1x1x128xbf16> to vector<1x128xbf16>
    %67 = vector.shape_cast %64 : vector<1x128xbf16> to vector<1x1x1x128xbf16>
    tpu.vector_store %arg7[%c0_43, %c0_44, %c0_45, %c0_46], %67 {strides = array<i32>} : memref<1x1x1x128xbf16, #tpu.memory_space<vmem>>, vector<1x1x1x128xbf16>,
    return
  }
  func.func @transform_0(%arg0: i32) -> (i32, i32, i32, i32) {
    %c0_i32 = arith.constant 0 : i32
    %c0_i32_0 = arith.constant 0 : i32
    %c0_i32_1 = arith.constant 0 : i32
    %c0_i32_2 = arith.constant 0 : i32
    return %arg0, %c0_i32, %c0_i32_0, %c0_i32_1 : i32, i32, i32, i32
  }
  func.func @transform_1(%arg0: i32) -> (i32, i32, i32, i32) {
    %c0_i32 = arith.constant 0 : i32
    %c0_i32_0 = arith.constant 0 : i32
    %c0_i32_1 = arith.constant 0 : i32
    %c0_i32_2 = arith.constant 0 : i32
    return %arg0, %c0_i32, %c0_i32_0, %c0_i32_1 : i32, i32, i32, i32
  }
  func.func @transform_2(%arg0: i32) -> (i32, i32) {
    %c0_i32 = arith.constant 0 : i32
    %c0_i32_0 = arith.constant 0 : i32
    %c0_i32_1 = arith.constant 0 : i32
    return %c0_i32, %c0_i32_0 : i32, i32
  }
  func.func @transform_3(%arg0: i32) -> (i32, i32) {
    %c0_i32 = arith.constant 0 : i32
    %c0_i32_0 = arith.constant 0 : i32
    %c0_i32_1 = arith.constant 0 : i32
    return %c0_i32, %c0_i32_0 : i32, i32
  }
  func.func @transform_4(%arg0: i32) -> (i32, i32) {
    %c0_i32 = arith.constant 0 : i32
    %c0_i32_0 = arith.constant 0 : i32
    %c0_i32_1 = arith.constant 0 : i32
    return %c0_i32, %c0_i32_0 : i32, i32
  }
  func.func @transform_5(%arg0: i32) -> (i32, i32) {
    %c0_i32 = arith.constant 0 : i32
    %c0_i32_0 = arith.constant 0 : i32
    %c0_i32_1 = arith.constant 0 : i32
    return %c0_i32, %c0_i32_0 : i32, i32
  }
  func.func @transform_6(%arg0: i32) -> (i32, i32, i32, i32) {
    %c0_i32 = arith.constant 0 : i32
    %c0_i32_0 = arith.constant 0 : i32
    %c0_i32_1 = arith.constant 0 : i32
    %c0_i32_2 = arith.constant 0 : i32
    return %arg0, %c0_i32, %c0_i32_0, %c0_i32_1 : i32, i32, i32, i32
  }
}

module attributes {stable_mosaic.version = 11 : i64} {
  func.func @kernel(%arg0: i32, %arg1: memref<1x9x5x128xbf16, #tpu.memory_space<vmem>>, %arg2: memref<1x9x4x128xbf16, #tpu.memory_space<vmem>>, %arg3: memref<9x128xf32, #tpu.memory_space<vmem>>, %arg4: memref<1x128xf32, #tpu.memory_space<vmem>>, %arg5: memref<128x128xf32, #tpu.memory_space<vmem>>, %arg6: memref<1x128xf32, #tpu.memory_space<vmem>>, %arg7: memref<1x4x4x128xbf16, #tpu.memory_space<vmem>>) attributes {dimension_semantics = [#tpu.dimension_semantics<parallel>], iteration_bounds = array<i64: 2>, scalar_prefetch = 0 : i64, scratch_operands = 0 : i64, tpu.core_type = #tpu.core_type<tc>, window_params = [{transform_indices = @transform_0, window_bounds = array<i64: 1, 9, 5, 128>}, {transform_indices = @transform_1, window_bounds = array<i64: 1, 9, 4, 128>}, {pipeline_mode = #tpu.pipeline_mode<synchronous>, transform_indices = @transform_2, window_bounds = array<i64: 9, 128>}, {pipeline_mode = #tpu.pipeline_mode<synchronous>, transform_indices = @transform_3, window_bounds = array<i64: 1, 128>}, {pipeline_mode = #tpu.pipeline_mode<synchronous>, transform_indices = @transform_4, window_bounds = array<i64: 128, 128>}, {pipeline_mode = #tpu.pipeline_mode<synchronous>, transform_indices = @transform_5, window_bounds = array<i64: 1, 128>}, {transform_indices = @transform_6, window_bounds = array<i64: 1, 4, 4, 128>}]} {
    %c0 = arith.constant 0 : index
    %c0_0 = arith.constant 0 : index
    %0 = vector.load %arg3[%c0, %c0_0] : memref<9x128xf32, #tpu.memory_space<vmem>>, vector<9x128xf32>
    %c0_1 = arith.constant 0 : index
    %c0_2 = arith.constant 0 : index
    %1 = vector.load %arg4[%c0_1, %c0_2] : memref<1x128xf32, #tpu.memory_space<vmem>>, vector<1x128xf32>
    %c0_3 = arith.constant 0 : index
    %c0_4 = arith.constant 0 : index
    %2 = vector.load %arg5[%c0_3, %c0_4] : memref<128x128xf32, #tpu.memory_space<vmem>>, vector<128x128xf32>
    %c0_5 = arith.constant 0 : index
    %c0_6 = arith.constant 0 : index
    %3 = vector.load %arg6[%c0_5, %c0_6] : memref<1x128xf32, #tpu.memory_space<vmem>>, vector<1x128xf32>
    %c0_7 = arith.constant 0 : index
    %c0_8 = arith.constant 0 : index
    %c0_9 = arith.constant 0 : index
    %c0_10 = arith.constant 0 : index
    %4 = vector.load %arg1[%c0_7, %c0_8, %c0_9, %c0_10] : memref<1x9x5x128xbf16, #tpu.memory_space<vmem>>, vector<1x1x4x128xbf16>
    %5 = vector.shape_cast %4 : vector<1x1x4x128xbf16> to vector<4x128xbf16>
    %6 = arith.extf %5 : vector<4x128xbf16> to vector<4x128xf32>
    %7 = vector.extract_strided_slice %0 {offsets = [0, 0], sizes = [1, 128], strides = [1, 1]} : vector<9x128xf32> to vector<1x128xf32>
    %8 = vector.broadcast %7 : vector<1x128xf32> to vector<4x128xf32>
    %9 = arith.mulf %6, %8 : vector<4x128xf32>
    %c0_11 = arith.constant 0 : index
    %c0_12 = arith.constant 0 : index
    %c0_13 = arith.constant 0 : index
    %c0_14 = arith.constant 0 : index
    %10 = vector.load %arg2[%c0_11, %c0_12, %c0_13, %c0_14] : memref<1x9x4x128xbf16, #tpu.memory_space<vmem>>, vector<1x1x4x128xbf16>
    %11 = vector.shape_cast %10 : vector<1x1x4x128xbf16> to vector<4x128xbf16>
    %12 = arith.extf %11 : vector<4x128xbf16> to vector<4x128xf32>
    %13 = vector.extract_strided_slice %0 {offsets = [1, 0], sizes = [1, 128], strides = [1, 1]} : vector<9x128xf32> to vector<1x128xf32>
    %14 = vector.broadcast %13 : vector<1x128xf32> to vector<4x128xf32>
    %15 = arith.mulf %12, %14 : vector<4x128xf32>
    %c0_15 = arith.constant 0 : index
    %c0_16 = arith.constant 0 : index
    %c1 = arith.constant 1 : index
    %c0_17 = arith.constant 0 : index
    %16 = vector.load %arg1[%c0_15, %c0_16, %c1, %c0_17] : memref<1x9x5x128xbf16, #tpu.memory_space<vmem>>, vector<1x1x4x128xbf16>
    %17 = vector.shape_cast %16 : vector<1x1x4x128xbf16> to vector<4x128xbf16>
    %18 = arith.extf %17 : vector<4x128xbf16> to vector<4x128xf32>
    %19 = vector.extract_strided_slice %0 {offsets = [2, 0], sizes = [1, 128], strides = [1, 1]} : vector<9x128xf32> to vector<1x128xf32>
    %20 = vector.broadcast %19 : vector<1x128xf32> to vector<4x128xf32>
    %21 = arith.mulf %18, %20 : vector<4x128xf32>
    %c0_18 = arith.constant 0 : index
    %c1_19 = arith.constant 1 : index
    %c0_20 = arith.constant 0 : index
    %c0_21 = arith.constant 0 : index
    %22 = vector.load %arg1[%c0_18, %c1_19, %c0_20, %c0_21] : memref<1x9x5x128xbf16, #tpu.memory_space<vmem>>, vector<1x1x4x128xbf16>
    %23 = vector.shape_cast %22 : vector<1x1x4x128xbf16> to vector<4x128xbf16>
    %24 = arith.extf %23 : vector<4x128xbf16> to vector<4x128xf32>
    %25 = vector.extract_strided_slice %0 {offsets = [3, 0], sizes = [1, 128], strides = [1, 1]} : vector<9x128xf32> to vector<1x128xf32>
    %26 = vector.broadcast %25 : vector<1x128xf32> to vector<4x128xf32>
    %27 = arith.mulf %24, %26 : vector<4x128xf32>
    %c0_22 = arith.constant 0 : index
    %c1_23 = arith.constant 1 : index
    %c0_24 = arith.constant 0 : index
    %c0_25 = arith.constant 0 : index
    %28 = vector.load %arg2[%c0_22, %c1_23, %c0_24, %c0_25] : memref<1x9x4x128xbf16, #tpu.memory_space<vmem>>, vector<1x1x4x128xbf16>
    %29 = vector.shape_cast %28 : vector<1x1x4x128xbf16> to vector<4x128xbf16>
    %30 = arith.extf %29 : vector<4x128xbf16> to vector<4x128xf32>
    %31 = vector.extract_strided_slice %0 {offsets = [4, 0], sizes = [1, 128], strides = [1, 1]} : vector<9x128xf32> to vector<1x128xf32>
    %32 = vector.broadcast %31 : vector<1x128xf32> to vector<4x128xf32>
    %33 = arith.mulf %30, %32 : vector<4x128xf32>
    %c0_26 = arith.constant 0 : index
    %c1_27 = arith.constant 1 : index
    %c1_28 = arith.constant 1 : index
    %c0_29 = arith.constant 0 : index
    %34 = vector.load %arg1[%c0_26, %c1_27, %c1_28, %c0_29] : memref<1x9x5x128xbf16, #tpu.memory_space<vmem>>, vector<1x1x4x128xbf16>
    %35 = vector.shape_cast %34 : vector<1x1x4x128xbf16> to vector<4x128xbf16>
    %36 = arith.extf %35 : vector<4x128xbf16> to vector<4x128xf32>
    %37 = vector.extract_strided_slice %0 {offsets = [5, 0], sizes = [1, 128], strides = [1, 1]} : vector<9x128xf32> to vector<1x128xf32>
    %38 = vector.broadcast %37 : vector<1x128xf32> to vector<4x128xf32>
    %39 = arith.mulf %36, %38 : vector<4x128xf32>
    %c0_30 = arith.constant 0 : index
    %c2 = arith.constant 2 : index
    %c0_31 = arith.constant 0 : index
    %c0_32 = arith.constant 0 : index
    %40 = vector.load %arg1[%c0_30, %c2, %c0_31, %c0_32] : memref<1x9x5x128xbf16, #tpu.memory_space<vmem>>, vector<1x1x4x128xbf16>
    %41 = vector.shape_cast %40 : vector<1x1x4x128xbf16> to vector<4x128xbf16>
    %42 = arith.extf %41 : vector<4x128xbf16> to vector<4x128xf32>
    %43 = vector.extract_strided_slice %0 {offsets = [6, 0], sizes = [1, 128], strides = [1, 1]} : vector<9x128xf32> to vector<1x128xf32>
    %44 = vector.broadcast %43 : vector<1x128xf32> to vector<4x128xf32>
    %45 = arith.mulf %42, %44 : vector<4x128xf32>
    %c0_33 = arith.constant 0 : index
    %c2_34 = arith.constant 2 : index
    %c0_35 = arith.constant 0 : index
    %c0_36 = arith.constant 0 : index
    %46 = vector.load %arg2[%c0_33, %c2_34, %c0_35, %c0_36] : memref<1x9x4x128xbf16, #tpu.memory_space<vmem>>, vector<1x1x4x128xbf16>
    %47 = vector.shape_cast %46 : vector<1x1x4x128xbf16> to vector<4x128xbf16>
    %48 = arith.extf %47 : vector<4x128xbf16> to vector<4x128xf32>
    %49 = vector.extract_strided_slice %0 {offsets = [7, 0], sizes = [1, 128], strides = [1, 1]} : vector<9x128xf32> to vector<1x128xf32>
    %50 = vector.broadcast %49 : vector<1x128xf32> to vector<4x128xf32>
    %51 = arith.mulf %48, %50 : vector<4x128xf32>
    %c0_37 = arith.constant 0 : index
    %c2_38 = arith.constant 2 : index
    %c1_39 = arith.constant 1 : index
    %c0_40 = arith.constant 0 : index
    %52 = vector.load %arg1[%c0_37, %c2_38, %c1_39, %c0_40] : memref<1x9x5x128xbf16, #tpu.memory_space<vmem>>, vector<1x1x4x128xbf16>
    %53 = vector.shape_cast %52 : vector<1x1x4x128xbf16> to vector<4x128xbf16>
    %54 = arith.extf %53 : vector<4x128xbf16> to vector<4x128xf32>
    %55 = vector.extract_strided_slice %0 {offsets = [8, 0], sizes = [1, 128], strides = [1, 1]} : vector<9x128xf32> to vector<1x128xf32>
    %56 = vector.broadcast %55 : vector<1x128xf32> to vector<4x128xf32>
    %57 = arith.mulf %54, %56 : vector<4x128xf32>
    %58 = arith.addf %9, %15 : vector<4x128xf32>
    %59 = arith.addf %21, %27 : vector<4x128xf32>
    %60 = arith.addf %33, %39 : vector<4x128xf32>
    %61 = arith.addf %45, %51 : vector<4x128xf32>
    %62 = arith.addf %58, %59 : vector<4x128xf32>
    %63 = arith.addf %60, %61 : vector<4x128xf32>
    %64 = arith.addf %62, %63 : vector<4x128xf32>
    %65 = arith.addf %64, %57 : vector<4x128xf32>
    %66 = vector.broadcast %1 : vector<1x128xf32> to vector<4x128xf32>
    %67 = arith.addf %65, %66 : vector<4x128xf32>
    %cst = arith.constant 0.000000e+00 : f32
    %68 = vector.broadcast %cst : f32 to vector<4x128xf32>
    %69 = arith.maximumf %67, %68 : vector<4x128xf32>
    %cst_41 = arith.constant dense<0.000000e+00> : vector<4x128xf32>
    %70 = tpu.matmul %69, %2, %cst_41 {dimension_numbers = #tpu.dot_dimension_numbers<[1], [0], [0], [1], [0, 0, 1, 1], [], []>} : vector<4x128xf32>, vector<128x128xf32>, vector<4x128xf32> -> vector<4x128xf32>
    %71 = vector.broadcast %3 : vector<1x128xf32> to vector<4x128xf32>
    %72 = arith.addf %70, %71 : vector<4x128xf32>
    %cst_42 = arith.constant 0.000000e+00 : f32
    %73 = vector.broadcast %cst_42 : f32 to vector<4x128xf32>
    %74 = arith.maximumf %72, %73 : vector<4x128xf32>
    %75 = arith.truncf %74 : vector<4x128xf32> to vector<4x128xbf16>
    %c0_43 = arith.constant 0 : index
    %c0_44 = arith.constant 0 : index
    %c0_45 = arith.constant 0 : index
    %c0_46 = arith.constant 0 : index
    %76 = vector.load %arg7[%c0_43, %c0_44, %c0_45, %c0_46] : memref<1x4x4x128xbf16, #tpu.memory_space<vmem>>, vector<1x1x4x128xbf16>
    %77 = vector.shape_cast %76 : vector<1x1x4x128xbf16> to vector<4x128xbf16>
    %78 = vector.shape_cast %75 : vector<4x128xbf16> to vector<1x1x4x128xbf16>
    tpu.vector_store %arg7[%c0_43, %c0_44, %c0_45, %c0_46], %78 {strides = array<i32>} : memref<1x4x4x128xbf16, #tpu.memory_space<vmem>>, vector<1x1x4x128xbf16>,
    %c0_47 = arith.constant 0 : index
    %c2_48 = arith.constant 2 : index
    %c0_49 = arith.constant 0 : index
    %c0_50 = arith.constant 0 : index
    %79 = vector.load %arg1[%c0_47, %c2_48, %c0_49, %c0_50] : memref<1x9x5x128xbf16, #tpu.memory_space<vmem>>, vector<1x1x4x128xbf16>
    %80 = vector.shape_cast %79 : vector<1x1x4x128xbf16> to vector<4x128xbf16>
    %81 = arith.extf %80 : vector<4x128xbf16> to vector<4x128xf32>
    %82 = vector.extract_strided_slice %0 {offsets = [0, 0], sizes = [1, 128], strides = [1, 1]} : vector<9x128xf32> to vector<1x128xf32>
    %83 = vector.broadcast %82 : vector<1x128xf32> to vector<4x128xf32>
    %84 = arith.mulf %81, %83 : vector<4x128xf32>
    %c0_51 = arith.constant 0 : index
    %c2_52 = arith.constant 2 : index
    %c0_53 = arith.constant 0 : index
    %c0_54 = arith.constant 0 : index
    %85 = vector.load %arg2[%c0_51, %c2_52, %c0_53, %c0_54] : memref<1x9x4x128xbf16, #tpu.memory_space<vmem>>, vector<1x1x4x128xbf16>
    %86 = vector.shape_cast %85 : vector<1x1x4x128xbf16> to vector<4x128xbf16>
    %87 = arith.extf %86 : vector<4x128xbf16> to vector<4x128xf32>
    %88 = vector.extract_strided_slice %0 {offsets = [1, 0], sizes = [1, 128], strides = [1, 1]} : vector<9x128xf32> to vector<1x128xf32>
    %89 = vector.broadcast %88 : vector<1x128xf32> to vector<4x128xf32>
    %90 = arith.mulf %87, %89 : vector<4x128xf32>
    %c0_55 = arith.constant 0 : index
    %c2_56 = arith.constant 2 : index
    %c1_57 = arith.constant 1 : index
    %c0_58 = arith.constant 0 : index
    %91 = vector.load %arg1[%c0_55, %c2_56, %c1_57, %c0_58] : memref<1x9x5x128xbf16, #tpu.memory_space<vmem>>, vector<1x1x4x128xbf16>
    %92 = vector.shape_cast %91 : vector<1x1x4x128xbf16> to vector<4x128xbf16>
    %93 = arith.extf %92 : vector<4x128xbf16> to vector<4x128xf32>
    %94 = vector.extract_strided_slice %0 {offsets = [2, 0], sizes = [1, 128], strides = [1, 1]} : vector<9x128xf32> to vector<1x128xf32>
    %95 = vector.broadcast %94 : vector<1x128xf32> to vector<4x128xf32>
    %96 = arith.mulf %93, %95 : vector<4x128xf32>
    %c0_59 = arith.constant 0 : index
    %c3 = arith.constant 3 : index
    %c0_60 = arith.constant 0 : index
    %c0_61 = arith.constant 0 : index
    %97 = vector.load %arg1[%c0_59, %c3, %c0_60, %c0_61] : memref<1x9x5x128xbf16, #tpu.memory_space<vmem>>, vector<1x1x4x128xbf16>
    %98 = vector.shape_cast %97 : vector<1x1x4x128xbf16> to vector<4x128xbf16>
    %99 = arith.extf %98 : vector<4x128xbf16> to vector<4x128xf32>
    %100 = vector.extract_strided_slice %0 {offsets = [3, 0], sizes = [1, 128], strides = [1, 1]} : vector<9x128xf32> to vector<1x128xf32>
    %101 = vector.broadcast %100 : vector<1x128xf32> to vector<4x128xf32>
    %102 = arith.mulf %99, %101 : vector<4x128xf32>
    %c0_62 = arith.constant 0 : index
    %c3_63 = arith.constant 3 : index
    %c0_64 = arith.constant 0 : index
    %c0_65 = arith.constant 0 : index
    %103 = vector.load %arg2[%c0_62, %c3_63, %c0_64, %c0_65] : memref<1x9x4x128xbf16, #tpu.memory_space<vmem>>, vector<1x1x4x128xbf16>
    %104 = vector.shape_cast %103 : vector<1x1x4x128xbf16> to vector<4x128xbf16>
    %105 = arith.extf %104 : vector<4x128xbf16> to vector<4x128xf32>
    %106 = vector.extract_strided_slice %0 {offsets = [4, 0], sizes = [1, 128], strides = [1, 1]} : vector<9x128xf32> to vector<1x128xf32>
    %107 = vector.broadcast %106 : vector<1x128xf32> to vector<4x128xf32>
    %108 = arith.mulf %105, %107 : vector<4x128xf32>
    %c0_66 = arith.constant 0 : index
    %c3_67 = arith.constant 3 : index
    %c1_68 = arith.constant 1 : index
    %c0_69 = arith.constant 0 : index
    %109 = vector.load %arg1[%c0_66, %c3_67, %c1_68, %c0_69] : memref<1x9x5x128xbf16, #tpu.memory_space<vmem>>, vector<1x1x4x128xbf16>
    %110 = vector.shape_cast %109 : vector<1x1x4x128xbf16> to vector<4x128xbf16>
    %111 = arith.extf %110 : vector<4x128xbf16> to vector<4x128xf32>
    %112 = vector.extract_strided_slice %0 {offsets = [5, 0], sizes = [1, 128], strides = [1, 1]} : vector<9x128xf32> to vector<1x128xf32>
    %113 = vector.broadcast %112 : vector<1x128xf32> to vector<4x128xf32>
    %114 = arith.mulf %111, %113 : vector<4x128xf32>
    %c0_70 = arith.constant 0 : index
    %c4 = arith.constant 4 : index
    %c0_71 = arith.constant 0 : index
    %c0_72 = arith.constant 0 : index
    %115 = vector.load %arg1[%c0_70, %c4, %c0_71, %c0_72] : memref<1x9x5x128xbf16, #tpu.memory_space<vmem>>, vector<1x1x4x128xbf16>
    %116 = vector.shape_cast %115 : vector<1x1x4x128xbf16> to vector<4x128xbf16>
    %117 = arith.extf %116 : vector<4x128xbf16> to vector<4x128xf32>
    %118 = vector.extract_strided_slice %0 {offsets = [6, 0], sizes = [1, 128], strides = [1, 1]} : vector<9x128xf32> to vector<1x128xf32>
    %119 = vector.broadcast %118 : vector<1x128xf32> to vector<4x128xf32>
    %120 = arith.mulf %117, %119 : vector<4x128xf32>
    %c0_73 = arith.constant 0 : index
    %c4_74 = arith.constant 4 : index
    %c0_75 = arith.constant 0 : index
    %c0_76 = arith.constant 0 : index
    %121 = vector.load %arg2[%c0_73, %c4_74, %c0_75, %c0_76] : memref<1x9x4x128xbf16, #tpu.memory_space<vmem>>, vector<1x1x4x128xbf16>
    %122 = vector.shape_cast %121 : vector<1x1x4x128xbf16> to vector<4x128xbf16>
    %123 = arith.extf %122 : vector<4x128xbf16> to vector<4x128xf32>
    %124 = vector.extract_strided_slice %0 {offsets = [7, 0], sizes = [1, 128], strides = [1, 1]} : vector<9x128xf32> to vector<1x128xf32>
    %125 = vector.broadcast %124 : vector<1x128xf32> to vector<4x128xf32>
    %126 = arith.mulf %123, %125 : vector<4x128xf32>
    %c0_77 = arith.constant 0 : index
    %c4_78 = arith.constant 4 : index
    %c1_79 = arith.constant 1 : index
    %c0_80 = arith.constant 0 : index
    %127 = vector.load %arg1[%c0_77, %c4_78, %c1_79, %c0_80] : memref<1x9x5x128xbf16, #tpu.memory_space<vmem>>, vector<1x1x4x128xbf16>
    %128 = vector.shape_cast %127 : vector<1x1x4x128xbf16> to vector<4x128xbf16>
    %129 = arith.extf %128 : vector<4x128xbf16> to vector<4x128xf32>
    %130 = vector.extract_strided_slice %0 {offsets = [8, 0], sizes = [1, 128], strides = [1, 1]} : vector<9x128xf32> to vector<1x128xf32>
    %131 = vector.broadcast %130 : vector<1x128xf32> to vector<4x128xf32>
    %132 = arith.mulf %129, %131 : vector<4x128xf32>
    %133 = arith.addf %84, %90 : vector<4x128xf32>
    %134 = arith.addf %96, %102 : vector<4x128xf32>
    %135 = arith.addf %108, %114 : vector<4x128xf32>
    %136 = arith.addf %120, %126 : vector<4x128xf32>
    %137 = arith.addf %133, %134 : vector<4x128xf32>
    %138 = arith.addf %135, %136 : vector<4x128xf32>
    %139 = arith.addf %137, %138 : vector<4x128xf32>
    %140 = arith.addf %139, %132 : vector<4x128xf32>
    %141 = vector.broadcast %1 : vector<1x128xf32> to vector<4x128xf32>
    %142 = arith.addf %140, %141 : vector<4x128xf32>
    %cst_81 = arith.constant 0.000000e+00 : f32
    %143 = vector.broadcast %cst_81 : f32 to vector<4x128xf32>
    %144 = arith.maximumf %142, %143 : vector<4x128xf32>
    %cst_82 = arith.constant dense<0.000000e+00> : vector<4x128xf32>
    %145 = tpu.matmul %144, %2, %cst_82 {dimension_numbers = #tpu.dot_dimension_numbers<[1], [0], [0], [1], [0, 0, 1, 1], [], []>} : vector<4x128xf32>, vector<128x128xf32>, vector<4x128xf32> -> vector<4x128xf32>
    %146 = vector.broadcast %3 : vector<1x128xf32> to vector<4x128xf32>
    %147 = arith.addf %145, %146 : vector<4x128xf32>
    %cst_83 = arith.constant 0.000000e+00 : f32
    %148 = vector.broadcast %cst_83 : f32 to vector<4x128xf32>
    %149 = arith.maximumf %147, %148 : vector<4x128xf32>
    %150 = arith.truncf %149 : vector<4x128xf32> to vector<4x128xbf16>
    %c0_84 = arith.constant 0 : index
    %c1_85 = arith.constant 1 : index
    %c0_86 = arith.constant 0 : index
    %c0_87 = arith.constant 0 : index
    %151 = vector.load %arg7[%c0_84, %c1_85, %c0_86, %c0_87] : memref<1x4x4x128xbf16, #tpu.memory_space<vmem>>, vector<1x1x4x128xbf16>
    %152 = vector.shape_cast %151 : vector<1x1x4x128xbf16> to vector<4x128xbf16>
    %153 = vector.shape_cast %150 : vector<4x128xbf16> to vector<1x1x4x128xbf16>
    tpu.vector_store %arg7[%c0_84, %c1_85, %c0_86, %c0_87], %153 {strides = array<i32>} : memref<1x4x4x128xbf16, #tpu.memory_space<vmem>>, vector<1x1x4x128xbf16>,
    %c0_88 = arith.constant 0 : index
    %c4_89 = arith.constant 4 : index
    %c0_90 = arith.constant 0 : index
    %c0_91 = arith.constant 0 : index
    %154 = vector.load %arg1[%c0_88, %c4_89, %c0_90, %c0_91] : memref<1x9x5x128xbf16, #tpu.memory_space<vmem>>, vector<1x1x4x128xbf16>
    %155 = vector.shape_cast %154 : vector<1x1x4x128xbf16> to vector<4x128xbf16>
    %156 = arith.extf %155 : vector<4x128xbf16> to vector<4x128xf32>
    %157 = vector.extract_strided_slice %0 {offsets = [0, 0], sizes = [1, 128], strides = [1, 1]} : vector<9x128xf32> to vector<1x128xf32>
    %158 = vector.broadcast %157 : vector<1x128xf32> to vector<4x128xf32>
    %159 = arith.mulf %156, %158 : vector<4x128xf32>
    %c0_92 = arith.constant 0 : index
    %c4_93 = arith.constant 4 : index
    %c0_94 = arith.constant 0 : index
    %c0_95 = arith.constant 0 : index
    %160 = vector.load %arg2[%c0_92, %c4_93, %c0_94, %c0_95] : memref<1x9x4x128xbf16, #tpu.memory_space<vmem>>, vector<1x1x4x128xbf16>
    %161 = vector.shape_cast %160 : vector<1x1x4x128xbf16> to vector<4x128xbf16>
    %162 = arith.extf %161 : vector<4x128xbf16> to vector<4x128xf32>
    %163 = vector.extract_strided_slice %0 {offsets = [1, 0], sizes = [1, 128], strides = [1, 1]} : vector<9x128xf32> to vector<1x128xf32>
    %164 = vector.broadcast %163 : vector<1x128xf32> to vector<4x128xf32>
    %165 = arith.mulf %162, %164 : vector<4x128xf32>
    %c0_96 = arith.constant 0 : index
    %c4_97 = arith.constant 4 : index
    %c1_98 = arith.constant 1 : index
    %c0_99 = arith.constant 0 : index
    %166 = vector.load %arg1[%c0_96, %c4_97, %c1_98, %c0_99] : memref<1x9x5x128xbf16, #tpu.memory_space<vmem>>, vector<1x1x4x128xbf16>
    %167 = vector.shape_cast %166 : vector<1x1x4x128xbf16> to vector<4x128xbf16>
    %168 = arith.extf %167 : vector<4x128xbf16> to vector<4x128xf32>
    %169 = vector.extract_strided_slice %0 {offsets = [2, 0], sizes = [1, 128], strides = [1, 1]} : vector<9x128xf32> to vector<1x128xf32>
    %170 = vector.broadcast %169 : vector<1x128xf32> to vector<4x128xf32>
    %171 = arith.mulf %168, %170 : vector<4x128xf32>
    %c0_100 = arith.constant 0 : index
    %c5 = arith.constant 5 : index
    %c0_101 = arith.constant 0 : index
    %c0_102 = arith.constant 0 : index
    %172 = vector.load %arg1[%c0_100, %c5, %c0_101, %c0_102] : memref<1x9x5x128xbf16, #tpu.memory_space<vmem>>, vector<1x1x4x128xbf16>
    %173 = vector.shape_cast %172 : vector<1x1x4x128xbf16> to vector<4x128xbf16>
    %174 = arith.extf %173 : vector<4x128xbf16> to vector<4x128xf32>
    %175 = vector.extract_strided_slice %0 {offsets = [3, 0], sizes = [1, 128], strides = [1, 1]} : vector<9x128xf32> to vector<1x128xf32>
    %176 = vector.broadcast %175 : vector<1x128xf32> to vector<4x128xf32>
    %177 = arith.mulf %174, %176 : vector<4x128xf32>
    %c0_103 = arith.constant 0 : index
    %c5_104 = arith.constant 5 : index
    %c0_105 = arith.constant 0 : index
    %c0_106 = arith.constant 0 : index
    %178 = vector.load %arg2[%c0_103, %c5_104, %c0_105, %c0_106] : memref<1x9x4x128xbf16, #tpu.memory_space<vmem>>, vector<1x1x4x128xbf16>
    %179 = vector.shape_cast %178 : vector<1x1x4x128xbf16> to vector<4x128xbf16>
    %180 = arith.extf %179 : vector<4x128xbf16> to vector<4x128xf32>
    %181 = vector.extract_strided_slice %0 {offsets = [4, 0], sizes = [1, 128], strides = [1, 1]} : vector<9x128xf32> to vector<1x128xf32>
    %182 = vector.broadcast %181 : vector<1x128xf32> to vector<4x128xf32>
    %183 = arith.mulf %180, %182 : vector<4x128xf32>
    %c0_107 = arith.constant 0 : index
    %c5_108 = arith.constant 5 : index
    %c1_109 = arith.constant 1 : index
    %c0_110 = arith.constant 0 : index
    %184 = vector.load %arg1[%c0_107, %c5_108, %c1_109, %c0_110] : memref<1x9x5x128xbf16, #tpu.memory_space<vmem>>, vector<1x1x4x128xbf16>
    %185 = vector.shape_cast %184 : vector<1x1x4x128xbf16> to vector<4x128xbf16>
    %186 = arith.extf %185 : vector<4x128xbf16> to vector<4x128xf32>
    %187 = vector.extract_strided_slice %0 {offsets = [5, 0], sizes = [1, 128], strides = [1, 1]} : vector<9x128xf32> to vector<1x128xf32>
    %188 = vector.broadcast %187 : vector<1x128xf32> to vector<4x128xf32>
    %189 = arith.mulf %186, %188 : vector<4x128xf32>
    %c0_111 = arith.constant 0 : index
    %c6 = arith.constant 6 : index
    %c0_112 = arith.constant 0 : index
    %c0_113 = arith.constant 0 : index
    %190 = vector.load %arg1[%c0_111, %c6, %c0_112, %c0_113] : memref<1x9x5x128xbf16, #tpu.memory_space<vmem>>, vector<1x1x4x128xbf16>
    %191 = vector.shape_cast %190 : vector<1x1x4x128xbf16> to vector<4x128xbf16>
    %192 = arith.extf %191 : vector<4x128xbf16> to vector<4x128xf32>
    %193 = vector.extract_strided_slice %0 {offsets = [6, 0], sizes = [1, 128], strides = [1, 1]} : vector<9x128xf32> to vector<1x128xf32>
    %194 = vector.broadcast %193 : vector<1x128xf32> to vector<4x128xf32>
    %195 = arith.mulf %192, %194 : vector<4x128xf32>
    %c0_114 = arith.constant 0 : index
    %c6_115 = arith.constant 6 : index
    %c0_116 = arith.constant 0 : index
    %c0_117 = arith.constant 0 : index
    %196 = vector.load %arg2[%c0_114, %c6_115, %c0_116, %c0_117] : memref<1x9x4x128xbf16, #tpu.memory_space<vmem>>, vector<1x1x4x128xbf16>
    %197 = vector.shape_cast %196 : vector<1x1x4x128xbf16> to vector<4x128xbf16>
    %198 = arith.extf %197 : vector<4x128xbf16> to vector<4x128xf32>
    %199 = vector.extract_strided_slice %0 {offsets = [7, 0], sizes = [1, 128], strides = [1, 1]} : vector<9x128xf32> to vector<1x128xf32>
    %200 = vector.broadcast %199 : vector<1x128xf32> to vector<4x128xf32>
    %201 = arith.mulf %198, %200 : vector<4x128xf32>
    %c0_118 = arith.constant 0 : index
    %c6_119 = arith.constant 6 : index
    %c1_120 = arith.constant 1 : index
    %c0_121 = arith.constant 0 : index
    %202 = vector.load %arg1[%c0_118, %c6_119, %c1_120, %c0_121] : memref<1x9x5x128xbf16, #tpu.memory_space<vmem>>, vector<1x1x4x128xbf16>
    %203 = vector.shape_cast %202 : vector<1x1x4x128xbf16> to vector<4x128xbf16>
    %204 = arith.extf %203 : vector<4x128xbf16> to vector<4x128xf32>
    %205 = vector.extract_strided_slice %0 {offsets = [8, 0], sizes = [1, 128], strides = [1, 1]} : vector<9x128xf32> to vector<1x128xf32>
    %206 = vector.broadcast %205 : vector<1x128xf32> to vector<4x128xf32>
    %207 = arith.mulf %204, %206 : vector<4x128xf32>
    %208 = arith.addf %159, %165 : vector<4x128xf32>
    %209 = arith.addf %171, %177 : vector<4x128xf32>
    %210 = arith.addf %183, %189 : vector<4x128xf32>
    %211 = arith.addf %195, %201 : vector<4x128xf32>
    %212 = arith.addf %208, %209 : vector<4x128xf32>
    %213 = arith.addf %210, %211 : vector<4x128xf32>
    %214 = arith.addf %212, %213 : vector<4x128xf32>
    %215 = arith.addf %214, %207 : vector<4x128xf32>
    %216 = vector.broadcast %1 : vector<1x128xf32> to vector<4x128xf32>
    %217 = arith.addf %215, %216 : vector<4x128xf32>
    %cst_122 = arith.constant 0.000000e+00 : f32
    %218 = vector.broadcast %cst_122 : f32 to vector<4x128xf32>
    %219 = arith.maximumf %217, %218 : vector<4x128xf32>
    %cst_123 = arith.constant dense<0.000000e+00> : vector<4x128xf32>
    %220 = tpu.matmul %219, %2, %cst_123 {dimension_numbers = #tpu.dot_dimension_numbers<[1], [0], [0], [1], [0, 0, 1, 1], [], []>} : vector<4x128xf32>, vector<128x128xf32>, vector<4x128xf32> -> vector<4x128xf32>
    %221 = vector.broadcast %3 : vector<1x128xf32> to vector<4x128xf32>
    %222 = arith.addf %220, %221 : vector<4x128xf32>
    %cst_124 = arith.constant 0.000000e+00 : f32
    %223 = vector.broadcast %cst_124 : f32 to vector<4x128xf32>
    %224 = arith.maximumf %222, %223 : vector<4x128xf32>
    %225 = arith.truncf %224 : vector<4x128xf32> to vector<4x128xbf16>
    %c0_125 = arith.constant 0 : index
    %c2_126 = arith.constant 2 : index
    %c0_127 = arith.constant 0 : index
    %c0_128 = arith.constant 0 : index
    %226 = vector.load %arg7[%c0_125, %c2_126, %c0_127, %c0_128] : memref<1x4x4x128xbf16, #tpu.memory_space<vmem>>, vector<1x1x4x128xbf16>
    %227 = vector.shape_cast %226 : vector<1x1x4x128xbf16> to vector<4x128xbf16>
    %228 = vector.shape_cast %225 : vector<4x128xbf16> to vector<1x1x4x128xbf16>
    tpu.vector_store %arg7[%c0_125, %c2_126, %c0_127, %c0_128], %228 {strides = array<i32>} : memref<1x4x4x128xbf16, #tpu.memory_space<vmem>>, vector<1x1x4x128xbf16>,
    %c0_129 = arith.constant 0 : index
    %c6_130 = arith.constant 6 : index
    %c0_131 = arith.constant 0 : index
    %c0_132 = arith.constant 0 : index
    %229 = vector.load %arg1[%c0_129, %c6_130, %c0_131, %c0_132] : memref<1x9x5x128xbf16, #tpu.memory_space<vmem>>, vector<1x1x4x128xbf16>
    %230 = vector.shape_cast %229 : vector<1x1x4x128xbf16> to vector<4x128xbf16>
    %231 = arith.extf %230 : vector<4x128xbf16> to vector<4x128xf32>
    %232 = vector.extract_strided_slice %0 {offsets = [0, 0], sizes = [1, 128], strides = [1, 1]} : vector<9x128xf32> to vector<1x128xf32>
    %233 = vector.broadcast %232 : vector<1x128xf32> to vector<4x128xf32>
    %234 = arith.mulf %231, %233 : vector<4x128xf32>
    %c0_133 = arith.constant 0 : index
    %c6_134 = arith.constant 6 : index
    %c0_135 = arith.constant 0 : index
    %c0_136 = arith.constant 0 : index
    %235 = vector.load %arg2[%c0_133, %c6_134, %c0_135, %c0_136] : memref<1x9x4x128xbf16, #tpu.memory_space<vmem>>, vector<1x1x4x128xbf16>
    %236 = vector.shape_cast %235 : vector<1x1x4x128xbf16> to vector<4x128xbf16>
    %237 = arith.extf %236 : vector<4x128xbf16> to vector<4x128xf32>
    %238 = vector.extract_strided_slice %0 {offsets = [1, 0], sizes = [1, 128], strides = [1, 1]} : vector<9x128xf32> to vector<1x128xf32>
    %239 = vector.broadcast %238 : vector<1x128xf32> to vector<4x128xf32>
    %240 = arith.mulf %237, %239 : vector<4x128xf32>
    %c0_137 = arith.constant 0 : index
    %c6_138 = arith.constant 6 : index
    %c1_139 = arith.constant 1 : index
    %c0_140 = arith.constant 0 : index
    %241 = vector.load %arg1[%c0_137, %c6_138, %c1_139, %c0_140] : memref<1x9x5x128xbf16, #tpu.memory_space<vmem>>, vector<1x1x4x128xbf16>
    %242 = vector.shape_cast %241 : vector<1x1x4x128xbf16> to vector<4x128xbf16>
    %243 = arith.extf %242 : vector<4x128xbf16> to vector<4x128xf32>
    %244 = vector.extract_strided_slice %0 {offsets = [2, 0], sizes = [1, 128], strides = [1, 1]} : vector<9x128xf32> to vector<1x128xf32>
    %245 = vector.broadcast %244 : vector<1x128xf32> to vector<4x128xf32>
    %246 = arith.mulf %243, %245 : vector<4x128xf32>
    %c0_141 = arith.constant 0 : index
    %c7 = arith.constant 7 : index
    %c0_142 = arith.constant 0 : index
    %c0_143 = arith.constant 0 : index
    %247 = vector.load %arg1[%c0_141, %c7, %c0_142, %c0_143] : memref<1x9x5x128xbf16, #tpu.memory_space<vmem>>, vector<1x1x4x128xbf16>
    %248 = vector.shape_cast %247 : vector<1x1x4x128xbf16> to vector<4x128xbf16>
    %249 = arith.extf %248 : vector<4x128xbf16> to vector<4x128xf32>
    %250 = vector.extract_strided_slice %0 {offsets = [3, 0], sizes = [1, 128], strides = [1, 1]} : vector<9x128xf32> to vector<1x128xf32>
    %251 = vector.broadcast %250 : vector<1x128xf32> to vector<4x128xf32>
    %252 = arith.mulf %249, %251 : vector<4x128xf32>
    %c0_144 = arith.constant 0 : index
    %c7_145 = arith.constant 7 : index
    %c0_146 = arith.constant 0 : index
    %c0_147 = arith.constant 0 : index
    %253 = vector.load %arg2[%c0_144, %c7_145, %c0_146, %c0_147] : memref<1x9x4x128xbf16, #tpu.memory_space<vmem>>, vector<1x1x4x128xbf16>
    %254 = vector.shape_cast %253 : vector<1x1x4x128xbf16> to vector<4x128xbf16>
    %255 = arith.extf %254 : vector<4x128xbf16> to vector<4x128xf32>
    %256 = vector.extract_strided_slice %0 {offsets = [4, 0], sizes = [1, 128], strides = [1, 1]} : vector<9x128xf32> to vector<1x128xf32>
    %257 = vector.broadcast %256 : vector<1x128xf32> to vector<4x128xf32>
    %258 = arith.mulf %255, %257 : vector<4x128xf32>
    %c0_148 = arith.constant 0 : index
    %c7_149 = arith.constant 7 : index
    %c1_150 = arith.constant 1 : index
    %c0_151 = arith.constant 0 : index
    %259 = vector.load %arg1[%c0_148, %c7_149, %c1_150, %c0_151] : memref<1x9x5x128xbf16, #tpu.memory_space<vmem>>, vector<1x1x4x128xbf16>
    %260 = vector.shape_cast %259 : vector<1x1x4x128xbf16> to vector<4x128xbf16>
    %261 = arith.extf %260 : vector<4x128xbf16> to vector<4x128xf32>
    %262 = vector.extract_strided_slice %0 {offsets = [5, 0], sizes = [1, 128], strides = [1, 1]} : vector<9x128xf32> to vector<1x128xf32>
    %263 = vector.broadcast %262 : vector<1x128xf32> to vector<4x128xf32>
    %264 = arith.mulf %261, %263 : vector<4x128xf32>
    %c0_152 = arith.constant 0 : index
    %c8 = arith.constant 8 : index
    %c0_153 = arith.constant 0 : index
    %c0_154 = arith.constant 0 : index
    %265 = vector.load %arg1[%c0_152, %c8, %c0_153, %c0_154] : memref<1x9x5x128xbf16, #tpu.memory_space<vmem>>, vector<1x1x4x128xbf16>
    %266 = vector.shape_cast %265 : vector<1x1x4x128xbf16> to vector<4x128xbf16>
    %267 = arith.extf %266 : vector<4x128xbf16> to vector<4x128xf32>
    %268 = vector.extract_strided_slice %0 {offsets = [6, 0], sizes = [1, 128], strides = [1, 1]} : vector<9x128xf32> to vector<1x128xf32>
    %269 = vector.broadcast %268 : vector<1x128xf32> to vector<4x128xf32>
    %270 = arith.mulf %267, %269 : vector<4x128xf32>
    %c0_155 = arith.constant 0 : index
    %c8_156 = arith.constant 8 : index
    %c0_157 = arith.constant 0 : index
    %c0_158 = arith.constant 0 : index
    %271 = vector.load %arg2[%c0_155, %c8_156, %c0_157, %c0_158] : memref<1x9x4x128xbf16, #tpu.memory_space<vmem>>, vector<1x1x4x128xbf16>
    %272 = vector.shape_cast %271 : vector<1x1x4x128xbf16> to vector<4x128xbf16>
    %273 = arith.extf %272 : vector<4x128xbf16> to vector<4x128xf32>
    %274 = vector.extract_strided_slice %0 {offsets = [7, 0], sizes = [1, 128], strides = [1, 1]} : vector<9x128xf32> to vector<1x128xf32>
    %275 = vector.broadcast %274 : vector<1x128xf32> to vector<4x128xf32>
    %276 = arith.mulf %273, %275 : vector<4x128xf32>
    %c0_159 = arith.constant 0 : index
    %c8_160 = arith.constant 8 : index
    %c1_161 = arith.constant 1 : index
    %c0_162 = arith.constant 0 : index
    %277 = vector.load %arg1[%c0_159, %c8_160, %c1_161, %c0_162] : memref<1x9x5x128xbf16, #tpu.memory_space<vmem>>, vector<1x1x4x128xbf16>
    %278 = vector.shape_cast %277 : vector<1x1x4x128xbf16> to vector<4x128xbf16>
    %279 = arith.extf %278 : vector<4x128xbf16> to vector<4x128xf32>
    %280 = vector.extract_strided_slice %0 {offsets = [8, 0], sizes = [1, 128], strides = [1, 1]} : vector<9x128xf32> to vector<1x128xf32>
    %281 = vector.broadcast %280 : vector<1x128xf32> to vector<4x128xf32>
    %282 = arith.mulf %279, %281 : vector<4x128xf32>
    %283 = arith.addf %234, %240 : vector<4x128xf32>
    %284 = arith.addf %246, %252 : vector<4x128xf32>
    %285 = arith.addf %258, %264 : vector<4x128xf32>
    %286 = arith.addf %270, %276 : vector<4x128xf32>
    %287 = arith.addf %283, %284 : vector<4x128xf32>
    %288 = arith.addf %285, %286 : vector<4x128xf32>
    %289 = arith.addf %287, %288 : vector<4x128xf32>
    %290 = arith.addf %289, %282 : vector<4x128xf32>
    %291 = vector.broadcast %1 : vector<1x128xf32> to vector<4x128xf32>
    %292 = arith.addf %290, %291 : vector<4x128xf32>
    %cst_163 = arith.constant 0.000000e+00 : f32
    %293 = vector.broadcast %cst_163 : f32 to vector<4x128xf32>
    %294 = arith.maximumf %292, %293 : vector<4x128xf32>
    %cst_164 = arith.constant dense<0.000000e+00> : vector<4x128xf32>
    %295 = tpu.matmul %294, %2, %cst_164 {dimension_numbers = #tpu.dot_dimension_numbers<[1], [0], [0], [1], [0, 0, 1, 1], [], []>} : vector<4x128xf32>, vector<128x128xf32>, vector<4x128xf32> -> vector<4x128xf32>
    %296 = vector.broadcast %3 : vector<1x128xf32> to vector<4x128xf32>
    %297 = arith.addf %295, %296 : vector<4x128xf32>
    %cst_165 = arith.constant 0.000000e+00 : f32
    %298 = vector.broadcast %cst_165 : f32 to vector<4x128xf32>
    %299 = arith.maximumf %297, %298 : vector<4x128xf32>
    %300 = arith.truncf %299 : vector<4x128xf32> to vector<4x128xbf16>
    %c0_166 = arith.constant 0 : index
    %c3_167 = arith.constant 3 : index
    %c0_168 = arith.constant 0 : index
    %c0_169 = arith.constant 0 : index
    %301 = vector.load %arg7[%c0_166, %c3_167, %c0_168, %c0_169] : memref<1x4x4x128xbf16, #tpu.memory_space<vmem>>, vector<1x1x4x128xbf16>
    %302 = vector.shape_cast %301 : vector<1x1x4x128xbf16> to vector<4x128xbf16>
    %303 = vector.shape_cast %300 : vector<4x128xbf16> to vector<1x1x4x128xbf16>
    tpu.vector_store %arg7[%c0_166, %c3_167, %c0_168, %c0_169], %303 {strides = array<i32>} : memref<1x4x4x128xbf16, #tpu.memory_space<vmem>>, vector<1x1x4x128xbf16>,
    return
  }
  func.func @transform_0(%arg0: i32) -> (i32, i32, i32, i32) {
    %c0_i32 = arith.constant 0 : i32
    %c0_i32_0 = arith.constant 0 : i32
    %c0_i32_1 = arith.constant 0 : i32
    %c0_i32_2 = arith.constant 0 : i32
    return %arg0, %c0_i32, %c0_i32_0, %c0_i32_1 : i32, i32, i32, i32
  }
  func.func @transform_1(%arg0: i32) -> (i32, i32, i32, i32) {
    %c0_i32 = arith.constant 0 : i32
    %c0_i32_0 = arith.constant 0 : i32
    %c0_i32_1 = arith.constant 0 : i32
    %c0_i32_2 = arith.constant 0 : i32
    return %arg0, %c0_i32, %c0_i32_0, %c0_i32_1 : i32, i32, i32, i32
  }
  func.func @transform_2(%arg0: i32) -> (i32, i32) {
    %c0_i32 = arith.constant 0 : i32
    %c0_i32_0 = arith.constant 0 : i32
    %c0_i32_1 = arith.constant 0 : i32
    return %c0_i32, %c0_i32_0 : i32, i32
  }
  func.func @transform_3(%arg0: i32) -> (i32, i32) {
    %c0_i32 = arith.constant 0 : i32
    %c0_i32_0 = arith.constant 0 : i32
    %c0_i32_1 = arith.constant 0 : i32
    return %c0_i32, %c0_i32_0 : i32, i32
  }
  func.func @transform_4(%arg0: i32) -> (i32, i32) {
    %c0_i32 = arith.constant 0 : i32
    %c0_i32_0 = arith.constant 0 : i32
    %c0_i32_1 = arith.constant 0 : i32
    return %c0_i32, %c0_i32_0 : i32, i32
  }
  func.func @transform_5(%arg0: i32) -> (i32, i32) {
    %c0_i32 = arith.constant 0 : i32
    %c0_i32_0 = arith.constant 0 : i32
    %c0_i32_1 = arith.constant 0 : i32
    return %c0_i32, %c0_i32_0 : i32, i32
  }
  func.func @transform_6(%arg0: i32) -> (i32, i32, i32, i32) {
    %c0_i32 = arith.constant 0 : i32
    %c0_i32_0 = arith.constant 0 : i32
    %c0_i32_1 = arith.constant 0 : i32
    %c0_i32_2 = arith.constant 0 : i32
    return %arg0, %c0_i32, %c0_i32_0, %c0_i32_1 : i32, i32, i32, i32
  }
}

</mosaic_0001>

<bundles_post_ra>
// kernel: _lambda_.14
= control target key start
LH: loop header
LB: loop body
LE: loop exit
PB: predicated region body
PF: predicated region fallthrough
CT: control target
= control target key end

     0   :  { %vm106_vm0 = vcmask 1042432   ;;  %vm512_vm1 = vmmov 1   ;;  %vm57_vm3 = vcmask 220160   ;;  %vm335_vm4 = vcmask 60416   ;;  %s682_s1 = inlined_call_operand.vmem [shape: f32[27,8], index: 1, kind: input, shape index: {}]   ;;  %s683_s0 = inlined_call_operand.vmem [shape: bf16[128,27], index: 0, kind: input, shape index: {}]   ;;  %s684_s2 = inlined_call_operand.vmem [shape: f32[1,8], index: 2, kind: input, shape index: {}]   ;;  %s685_s3 = inlined_call_operand.vmem [shape: bf16[128,8], index: 3, kind: output, shape index: {}]  }
   0x1   :  { %v46_v0 = vld [vmem:[%s682_s1] sm:$0xff]  ;;  %v47_v1 = vld [vmem:[%s682_s1 + $0x8] sm:$0xff]  ;;  %v48_v2 = vld [vmem:[%s682_s1 + $0x10] sm:$0xff] }
   0x2   :  { %v497_v3 = vpack.c.bf16 %v47_v1, %v46_v0  ;;  %v49_v4 = vld [vmem:[%s682_s1 + $0x18] sm:$0x7]  ;;  %v407_v5 = vld [vmem:[%s683_s0] sm:$0xff]   ;;  %vm548_vm2 = vmpackc.low %vm106_vm0, %vm512_vm1 }
   0x3   :  { %v501_v6 = vpack.c.bf16 %v49_v4, %v48_v2  ;;  %v408_v8 = vunpack.c.l.bf16 %v407_v5  ;;  %v441_v9 = vld [vmem:[%s683_s0 + $0x20] sm:$0xff]   ;;  %v438_v11 = vld [vmem:[%s683_s0 + $0x8] sm:$0xff]   ;;  %v409_v13 = vunpack.c.h.bf16 %v407_v5  ;;  %v439_v17 = vld [vmem:[%s683_s0 + $0x10] sm:$0xff]  }
   0x4   :  { %498 = vmatprep.subr.bf16.mxu0 %v497_v3  ;;  %507 = vmatprep.subr.bf16.mxu1 %v497_v3  ;;  %v424_v10 = vunpack.c.l.bf16 %v441_v9  ;;  %v442_v12 = vld [vmem:[%s683_s0 + $0x28] sm:$0xff]   ;;  %v425_v14 = vunpack.c.h.bf16 %v441_v9  ;;  %v412_v15 = vunpack.c.l.bf16 %v438_v11  ;;  %v443_v18 = vld [vmem:[%s683_s0 + $0x30] sm:$0xff]   ;;  %v413_v19 = vunpack.c.h.bf16 %v438_v11  ;;  %v440_v23 = vld [vmem:[%s683_s0 + $0x18] sm:$0xff]  }
   0x5   :  { %500 = vmatpush3.bf16.msra.mxu0 %v497_v3  ;;  %509 = vmatpush3.bf16.msra.mxu1 %v497_v3  ;;  %v428_v16 = vunpack.c.l.bf16 %v442_v12  ;;  %v429_v20 = vunpack.c.h.bf16 %v442_v12  ;;  %v416_v21 = vunpack.c.l.bf16 %v439_v17  ;;  %v432_v22 = vunpack.c.l.bf16 %v443_v18  ;;  %v444_v24 = vld [vmem:[%s683_s0 + $0x38] sm:$0xff]   ;;  %v600_v31 = vld [vmem:[%s684_s2] ss:$0 sm:$0xff] }
   0x6   :  { %503 = vmatprep.subr.msk.bf16.mxu0 %vm548_vm2, %v501_v6  ;;  %508 = vmatprep.subr.msk.bf16.mxu1 %vm548_vm2, %v501_v6  ;;  %v417_v25 = vunpack.c.h.bf16 %v439_v17  ;;  %v433_v26 = vunpack.c.h.bf16 %v443_v18  ;;  %v420_v27 = vunpack.c.l.bf16 %v440_v23  ;;  %v436_v28 = vunpack.c.l.bf16 %v444_v24 }
   0x7   :  { %473 = vmatprep.mubr.msk.f32.mxu0 %vm57_vm3, %v408_v8  ;;  %485 = vmatprep.mubr.msk.f32.mxu1 %vm57_vm3, %v424_v10  ;;  %v421_v29 = vunpack.c.h.bf16 %v440_v23  ;;  %v437_v30 = vunpack.c.h.bf16 %v444_v24 }
   0x9   :  { %506 = vmatpush3.bf16.msk.msra.mxu0 %vm548_vm2, %v501_v6  ;;  %510 = vmatpush3.bf16.msk.msra.mxu1 %vm548_vm2, %v501_v6 }
   0xc   :  { %474 = vmatmul.mubr.msk.f32.vlgmr.msra.gmra.mrb[0].mxu0 %vm57_vm3, %v409_v13  ;;  %486 = vmatmul.mubr.msk.f32.vlgmr.msra.gmra.mrb[0].mxu1 %vm57_vm3, %v425_v14 }
   0xd   :  { %476 = vmatprep.mubr.msk.f32.mxu0 %vm57_vm3, %v412_v15  ;;  %488 = vmatprep.mubr.msk.f32.mxu1 %vm57_vm3, %v428_v16 }
  0x10   :  { %477 = vmatmul.mubr.msk.f32.gmra.mrb[2].mxu0 %vm57_vm3, %v413_v19  ;;  %489 = vmatmul.mubr.msk.f32.gmra.mrb[2].mxu1 %vm57_vm3, %v429_v20 }
  0x11   :  { %479 = vmatprep.mubr.msk.f32.mxu0 %vm57_vm3, %v416_v21  ;;  %491 = vmatprep.mubr.msk.f32.mxu1 %vm57_vm3, %v432_v22 }
  0x14   :  { %480 = vmatmul.mubr.msk.f32.gmra.mrb[4].mxu0 %vm57_vm3, %v417_v25  ;;  %492 = vmatmul.mubr.msk.f32.gmra.mrb[4].mxu1 %vm57_vm3, %v433_v26 }
  0x15   :  { %482 = vmatprep.mubr.msk.f32.mxu0 %vm57_vm3, %v420_v27  ;;  %494 = vmatprep.mubr.msk.f32.mxu1 %vm57_vm3, %v436_v28 }
  0x18   :  { %483 = vmatmul.mubr.msk.f32.gmra.mrb[6].mxu0 %vm57_vm3, %v421_v29  ;;  %495 = vmatmul.mubr.msk.f32.gmra.mrb[6].mxu1 %vm57_vm3, %v437_v30 }
  0xdf   :  { %v475_v32 = vpop.f32.mrb[0].mxu0  ;;  %v487_v33 = vpop.f32.mrb[0].mxu1 }
  0xe0   :  { %v182_v34 = vadd.f32 %v475_v32, %v600_v31  ;;  %v222_v35 = vadd.f32 %v487_v33, %v600_v31  ;;  %v176_v36 = vpop.f32.mrb[1].mxu0  ;;  %v216_v37 = vpop.f32.mrb[1].mxu1 }
  0xe1   :  { %v177_v38 = vadd.f32 %v600_v31, %v176_v36  ;;  %v217_v39 = vadd.f32 %v600_v31, %v216_v37 }
  0xe2   :  { %v256_v40 = vmax.f32 %v182_v34, 0.0  ;;  %v264_v41 = vmax.f32 %v222_v35, 0.0 }
  0xe3   :  { %v255_v42 = vmax.f32 %v177_v38, 0.0  ;;  %v263_v43 = vmax.f32 %v217_v39, 0.0  ;;  %v478_v44 = vpop.f32.mrb[2].mxu0  ;;  %v490_v45 = vpop.f32.mrb[2].mxu1 }
  0xe4   :  { %v391_v46 = vpack.c.bf16 %v256_v40, %v256_v40  ;;  %v399_v47 = vpack.c.bf16 %v264_v41, %v264_v41  ;;  %v192_v48 = vadd.f32 %v478_v44, %v600_v31  ;;  %v232_v49 = vadd.f32 %v490_v45, %v600_v31  ;;  %v186_v50 = vpop.f32.mrb[3].mxu0  ;;  %v226_v51 = vpop.f32.mrb[3].mxu1 }
  0xe5   :  { %v390_v52 = vpack.c.bf16 %v255_v42, %v255_v42  ;;  %v398_v53 = vpack.c.bf16 %v263_v43, %v263_v43  ;;  %v187_v54 = vadd.f32 %v600_v31, %v186_v50  ;;  %v227_v55 = vadd.f32 %v600_v31, %v226_v51 }
  0xe6   :  { %337 = vst.msk [vmem:[%s685_s3 + $0x4] sm:$0xf] %vm335_vm4, %v391_v46  ;;  %345 = vst.msk [vmem:[%s685_s3 + $0x24] sm:$0xf] %vm335_vm4, %v399_v47  ;;  %v258_v56 = vmax.f32 %v192_v48, 0.0  ;;  %v266_v57 = vmax.f32 %v232_v49, 0.0 }
  0xe7   :  { %336 = vst.msk [vmem:[%s685_s3] sm:$0xf] %vm335_vm4, %v390_v52  ;;  %344 = vst.msk [vmem:[%s685_s3 + $0x20] sm:$0xf] %vm335_vm4, %v398_v53  ;;  %v257_v58 = vmax.f32 %v187_v54, 0.0  ;;  %v265_v59 = vmax.f32 %v227_v55, 0.0 }
  0xe8   :  { %v481_v60 = vpop.f32.mrb[4].mxu0  ;;  %v493_v61 = vpop.f32.mrb[4].mxu1  ;;  %v393_v62 = vpack.c.bf16 %v258_v56, %v258_v56  ;;  %v401_v63 = vpack.c.bf16 %v266_v57, %v266_v57 }
  0xe9   :  { %v202_v0 = vadd.f32 %v481_v60, %v600_v31  ;;  %v242_v1 = vadd.f32 %v493_v61, %v600_v31  ;;  %v196_v2 = vpop.f32.mrb[5].mxu0  ;;  %v236_v3 = vpop.f32.mrb[5].mxu1  ;;  %v392_v4 = vpack.c.bf16 %v257_v58, %v257_v58  ;;  %v400_v5 = vpack.c.bf16 %v265_v59, %v265_v59 }
  0xea   :  { %v197_v6 = vadd.f32 %v600_v31, %v196_v2  ;;  %v237_v7 = vadd.f32 %v600_v31, %v236_v3  ;;  %339 = vst.msk [vmem:[%s685_s3 + $0xc] sm:$0xf] %vm335_vm4, %v393_v62  ;;  %347 = vst.msk [vmem:[%s685_s3 + $0x2c] sm:$0xf] %vm335_vm4, %v401_v63 }
  0xeb   :  { %v260_v8 = vmax.f32 %v202_v0, 0.0  ;;  %v268_v9 = vmax.f32 %v242_v1, 0.0  ;;  %338 = vst.msk [vmem:[%s685_s3 + $0x8] sm:$0xf] %vm335_vm4, %v392_v4  ;;  %346 = vst.msk [vmem:[%s685_s3 + $0x28] sm:$0xf] %vm335_vm4, %v400_v5 }
  0xec   :  { %v259_v10 = vmax.f32 %v197_v6, 0.0  ;;  %v267_v11 = vmax.f32 %v237_v7, 0.0  ;;  %v484_v12 = vpop.f32.mrb[6].mxu0  ;;  %v496_v13 = vpop.f32.mrb[6].mxu1 }
  0xed   :  { %v395_v14 = vpack.c.bf16 %v260_v8, %v260_v8  ;;  %v403_v15 = vpack.c.bf16 %v268_v9, %v268_v9  ;;  %v212_v16 = vadd.f32 %v484_v12, %v600_v31  ;;  %v252_v17 = vadd.f32 %v496_v13, %v600_v31  ;;  %v206_v18 = vpop.f32.mrb[7].mxu0  ;;  %v246_v19 = vpop.f32.mrb[7].mxu1 }
  0xee   :  { %v394_v20 = vpack.c.bf16 %v259_v10, %v259_v10  ;;  %v402_v21 = vpack.c.bf16 %v267_v11, %v267_v11  ;;  %v207_v22 = vadd.f32 %v600_v31, %v206_v18  ;;  %v247_v23 = vadd.f32 %v600_v31, %v246_v19 }
  0xef   :  { %341 = vst.msk [vmem:[%s685_s3 + $0x14] sm:$0xf] %vm335_vm4, %v395_v14  ;;  %349 = vst.msk [vmem:[%s685_s3 + $0x34] sm:$0xf] %vm335_vm4, %v403_v15  ;;  %v262_v24 = vmax.f32 %v212_v16, 0.0  ;;  %v270_v25 = vmax.f32 %v252_v17, 0.0 }
  0xf0   :  { %340 = vst.msk [vmem:[%s685_s3 + $0x10] sm:$0xf] %vm335_vm4, %v394_v20  ;;  %348 = vst.msk [vmem:[%s685_s3 + $0x30] sm:$0xf] %vm335_vm4, %v402_v21  ;;  %v261_v26 = vmax.f32 %v207_v22, 0.0  ;;  %v269_v27 = vmax.f32 %v247_v23, 0.0 }
  0xf1   :  { %v397_v28 = vpack.c.bf16 %v262_v24, %v262_v24  ;;  %v405_v29 = vpack.c.bf16 %v270_v25, %v270_v25 }
  0xf2   :  { %v396_v30 = vpack.c.bf16 %v261_v26, %v261_v26  ;;  %v404_v31 = vpack.c.bf16 %v269_v27, %v269_v27 }
  0xf3   :  { %343 = vst.msk [vmem:[%s685_s3 + $0x1c] sm:$0xf] %vm335_vm4, %v397_v28  ;;  %351 = vst.msk [vmem:[%s685_s3 + $0x3c] sm:$0xf] %vm335_vm4, %v405_v29 }
  0xf4   :  { %342 = vst.msk [vmem:[%s685_s3 + $0x18] sm:$0xf] %vm335_vm4, %v396_v30  ;;  %350 = vst.msk [vmem:[%s685_s3 + $0x38] sm:$0xf] %vm335_vm4, %v404_v31 }

// kernel: _lambda_.17
= control target key start
LH: loop header
LB: loop body
LE: loop exit
PB: predicated region body
PF: predicated region fallthrough
CT: control target
= control target key end

     0   :  { %s1051_s18 = smov 0   ;;  %s1210_s0 = inlined_call_operand.vmem [shape: bf16[2,6,6,16], index: 0, kind: input, shape index: {}]   ;;  %s1211_s1 = inlined_call_operand.vmem [shape: f32[9,16], index: 1, kind: input, shape index: {}]   ;;  %s1212_s2 = inlined_call_operand.vmem [shape: f32[1,16], index: 2, kind: input, shape index: {}]   ;;  %s1213_s3 = inlined_call_operand.vmem [shape: f32[16,16], index: 3, kind: input, shape index: {}]   ;;  %s1214_s4 = inlined_call_operand.vmem [shape: f32[1,16], index: 4, kind: input, shape index: {}]   ;;  %s1215_s5 = inlined_call_operand.vmem [shape: bf16[2,4,4,16], index: 5, kind: output, shape index: {}]  }
   0x1 LB: > { %s892_s19 = sadd.s32 4294967295, %s1016_s18   ;;  %p896_p0 = scmp.ge.s32.totalorder %s1016_s18, 1  ;;  %s1016_s18 = sphi %s1051_s18, %s15_s18  }
   0x2   : > { %p187_p1 = scmp.lt.s32.totalorder %s1016_s18, 3 }
   0x4   : > { %p188_p2 = pnand %p896_p0, %p187_p1 }
   0x5   : > { %v228_v0 = vld [vmem:[%s1213_s3] sm:$0xff] (!%p188_p2)  ;;  %v229_v1 = vld [vmem:[%s1213_s3 + $0x8] sm:$0xff] (!%p188_p2)  ;;  %p215_p3 = scmp.lt.s32.totalorder (!%p188_p2), %s892_s19, 1  ;;  %v233_v2 = vlaneseq (!%p188_p2)  ;;  %v1018_v3 = vmov (!%p188_p2), 0.0|0.0   ;;  %vm1019_vm0 = vmmov (!%p188_p2), 0   ;;  %v1020_v5 = vmov (!%p188_p2), 0.0  }
   0x6   : > { %191 = sbr.rel (%p188_p2) target bundleno = 287 (0x11f), region = 40  ;;  %986 = vmatprep.subr.bf16.mxu0 (!%p188_p2), %v1018_v3  ;;  %989 = vmatprep.subr.bf16.mxu1 (!%p188_p2), %v1018_v3  ;;  %v1065_v4 = vpack.c.bf16 (!%p188_p2), %v229_v1, %v228_v0  ;;  %v225_v11 = vld [vmem:[%s1211_s1] sm:$0xff] (!%p188_p2)  ;;  %v1120_v49 = vld [vmem:[%s1211_s1 + $0x8] ss:$0 sm:$0xff] (!%p188_p2)  ;;  %vm342_vm1 = vcmask (!%p188_p2), 130048   ;;  %vm418_vm2 = vcmask (!%p188_p2), 123904  }
   0x7   : > { %962 = vmatprep.mubr.msk.f32.mxu0 (!%p188_p2), %vm1019_vm0, %v1020_v5  ;;  %969 = vmatprep.mubr.msk.f32.mxu1 (!%p188_p2), %vm1019_vm0, %v1020_v5  ;;  %v234_v6 = vshrl.u32 (!%p188_p2), %v233_v2, 7 }
   0x8   : > { %988 = vmatpush3.bf16.msra.mxu0 (!%p188_p2), %v1065_v4  ;;  %991 = vmatpush3.bf16.msra.mxu1 (!%p188_p2), %v1065_v4 }
   0x9   : > { %992 = vmatprep.subr.bf16.mxu0 (!%p188_p2), %v1018_v3  ;;  %995 = vmatprep.subr.bf16.mxu1 (!%p188_p2), %v1018_v3  ;;  %v235_v7 = vsub.s32 (!%p188_p2), 0, %v234_v6  ;;  %v242_v8 = vsub.s32 (!%p188_p2), 1, %v234_v6  ;;  %v249_v9 = vsub.s32 (!%p188_p2), 2, %v234_v6  ;;  %v257_v10 = vsub.s32 (!%p188_p2), 3, %v234_v6 }
   0xa   : > { %v264_v12 = vsub.s32 (!%p188_p2), 4, %v234_v6  ;;  %v271_v13 = vsub.s32 (!%p188_p2), 5, %v234_v6  ;;  %v279_v14 = vsub.s32 (!%p188_p2), 6, %v234_v6  ;;  %v286_v15 = vsub.s32 (!%p188_p2), 7, %v234_v6 }
   0xb   : > { %v1084_v16 = vrot.slane (!%p188_p2), %v225_v11, %v235_v7  ;;  %v1086_v17 = vrot.slane (!%p188_p2), %v225_v11, %v242_v8  ;;  %v1091_v21 = vrot.slane (!%p188_p2), %v225_v11, %v249_v9  ;;  %v1093_v22 = vrot.slane (!%p188_p2), %v225_v11, %v257_v10 }
   0xc   : > { %v1095_v23 = vrot.slane (!%p188_p2), %v225_v11, %v264_v12  ;;  %v1097_v24 = vrot.slane (!%p188_p2), %v225_v11, %v271_v13  ;;  %v1102_v31 = vrot.slane (!%p188_p2), %v225_v11, %v279_v14  ;;  %v1106_v37 = vrot.slane (!%p188_p2), %v225_v11, %v286_v15 }
   0xd   : > { %s1217_s19 = smov (!%p215_p3, %s892_s19), 1 }
   0xe   : > { %s998_s24 = smul.u32 24, %s1217_s19  ;;  %s945_s11 = sshll.u32 %s1217_s19, 3 }
   0xf   : > { %s224_s14 = scalar_lea.vmem %s1215_s5, %s945_s11 }
  0x10   : > { %s1082_s29 = scalar_lea.vmem %s1210_s0, %s998_s24 }
  0x11   : > { %v231_v18 = vld [vmem:[%s1082_s29] sm:$0x3]  ;;  %v900_v28 = vld [vmem:[%s1082_s29 + $0x4] sm:$0x3]  ;;  %v903_v35 = vld [vmem:[%s1082_s29 + $0x8] sm:$0x3] }
  0x12   : > { %v238_v19 = vld [vmem:[%s1082_s29] sm:$0x7]  ;;  %v232_v25 = vunpack.c.l.bf16 %v231_v18  ;;  %v901_v29 = vld [vmem:[%s1082_s29 + $0x4] sm:$0x7]  ;;  %v254_v32 = vunpack.c.l.bf16 %v900_v28  ;;  %v904_v36 = vld [vmem:[%s1082_s29 + $0x8] sm:$0x7]  ;;  %v276_v41 = vunpack.c.l.bf16 %v903_v35 }
  0x13   : > { %v245_v20 = vld [vmem:[%s1082_s29] sm:$0x6]  ;;  %v239_v26 = vunpack.c.l.bf16 %v238_v19  ;;  %v902_v30 = vld [vmem:[%s1082_s29 + $0x4] sm:$0x6]  ;;  %v261_v33 = vunpack.c.l.bf16 %v901_v29  ;;  %v905_v38 = vld [vmem:[%s1082_s29 + $0x8] sm:$0x6]  ;;  %v283_v46 = vunpack.c.l.bf16 %v904_v36 }
  0x14   : > { %v246_v27 = vunpack.c.l.bf16 %v245_v20  ;;  %v268_v34 = vunpack.c.l.bf16 %v902_v30  ;;  %v237_v39 = vmul.f32 %v1084_v16, %v232_v25  ;;  %v911_v42 = vld [vmem:[%s1082_s29 + $0x4] sm:$0x7]  ;;  %v259_v44 = vmul.f32 %v1093_v22, %v254_v32  ;;  %v913_v58 = vld [vmem:[%s1082_s29 + $0x8] sm:$0x3]  ;;  %v916_v63 = vld [vmem:[%s1082_s29 + $0xc] sm:$0x3] }
  0x15   : > { %v244_v40 = vmul.f32 %v1086_v17, %v239_v26  ;;  %v910_v47 = vld [vmem:[%s1082_s29 + $0x4] sm:$0x3]  ;;  %v266_v50 = vmul.f32 %v1095_v23, %v261_v33  ;;  %v281_v51 = vmul.f32 %v1102_v31, %v276_v41  ;;  %v290_v52 = vunpack.c.l.bf16 %v905_v38  ;;  %v914_v59 = vld [vmem:[%s1082_s29 + $0x8] sm:$0x7]  ;;  %v917_v6 = vld [vmem:[%s1082_s29 + $0xc] sm:$0x7] }
  0x16   : > { %v251_v43 = vmul.f32 %v1091_v21, %v246_v27  ;;  %v273_v45 = vmul.f32 %v1097_v24, %v268_v34  ;;  %v912_v48 = vld [vmem:[%s1082_s29 + $0x4] sm:$0x6]  ;;  %v288_v54 = vmul.f32 %v1106_v37, %v283_v46  ;;  %v301_v55 = vrot.slane %v259_v44, 6  ;;  %v915_v62 = vld [vmem:[%s1082_s29 + $0x8] sm:$0x6] }
  0x17   : > { %v297_v53 = vrot.slane %v244_v40, 1  ;;  %v424_v57 = vunpack.c.l.bf16 %v911_v42  ;;  %v421_v60 = vunpack.c.l.bf16 %v910_v47  ;;  %v427_v61 = vunpack.c.l.bf16 %v912_v48  ;;  %v918_v11 = vld [vmem:[%s1082_s29 + $0xc] sm:$0x6]  ;;  %v922_v26 = vld [vmem:[%s1082_s29 + $0x8] sm:$0x7] }
  0x18   : > { %v305_v56 = vrot.slane %v273_v45, 1  ;;  %v295_v0 = vmul.f32 %v1120_v49, %v290_v52  ;;  %v303_v2 = vadd.f32 %v301_v55, %v251_v43  ;;  %v309_v3 = vrot.slane %v288_v54, 1  ;;  %v921_v32 = vld [vmem:[%s1082_s29 + $0x8] sm:$0x3]  ;;  %v924_v43 = vld [vmem:[%s1082_s29 + $0xc] sm:$0x3] }
  0x19   : > { %v299_v1 = vadd.f32 %v297_v53, %v237_v39  ;;  %v425_v8 = vmul.f32 %v424_v57, %v1086_v17  ;;  %v430_v9 = vunpack.c.l.bf16 %v913_v58  ;;  %v433_v10 = vunpack.c.l.bf16 %v914_v59  ;;  %v923_v42 = vld [vmem:[%s1082_s29 + $0x8] sm:$0x6]  ;;  %v925_v48 = vld [vmem:[%s1082_s29 + $0xc] sm:$0x7]  ;;  %v927_v55 = vld [vmem:[%s1082_s29 + $0x10] sm:$0x3] }
  0x1a   : > { %v307_v7 = vadd.f32 %v305_v56, %v266_v50  ;;  %v311_v12 = vadd.f32 %v309_v3, %v281_v51  ;;  %v313_v13 = vrot.slane %v303_v2, 2  ;;  %v436_v14 = vunpack.c.l.bf16 %v915_v62  ;;  %v926_v50 = vld [vmem:[%s1082_s29 + $0xc] sm:$0x6] }
  0x1b   : > { %v440_v15 = vunpack.c.l.bf16 %v916_v63  ;;  %v422_v18 = vmul.f32 %v421_v60, %v1084_v16  ;;  %v428_v19 = vmul.f32 %v427_v61, %v1091_v21  ;;  %v431_v20 = vmul.f32 %v430_v9, %v1093_v22 }
  0x1c   : > { %v443_v25 = vunpack.c.l.bf16 %v917_v6  ;;  %v317_v27 = vrot.slane %v311_v12, 7  ;;  %v434_v28 = vmul.f32 %v433_v10, %v1095_v23  ;;  %v437_v29 = vmul.f32 %v436_v14, %v1097_v24  ;;  %v929_v12 = vld [vmem:[%s1082_s29 + $0x10] sm:$0x6] }
  0x1d   : > { %v446_v30 = vunpack.c.l.bf16 %v918_v11  ;;  %v441_v33 = vmul.f32 %v440_v15, %v1102_v31  ;;  %v449_v35 = vrot.slane %v425_v8, 1  ;;  %v453_v36 = vrot.slane %v431_v20, 6  ;;  %v933_v20 = vld [vmem:[%s1082_s29 + $0xc] sm:$0x7] }
  0x1e   : > { %v444_v34 = vmul.f32 %v443_v25, %v1106_v37  ;;  %v315_v38 = vadd.f32 %v313_v13, %v299_v1  ;;  %v319_v39 = vadd.f32 %v317_v27, %v307_v7  ;;  %v457_v40 = vrot.slane %v437_v29, 1  ;;  %v1153_v1 = vld [vmem:[%s1212_s2] ss:$0 sm:$0xff]  ;;  %v934_v29 = vld [vmem:[%s1082_s29 + $0xc] sm:$0x6] }
  0x1f   : > { %v563_v41 = vunpack.c.l.bf16 %v922_v26  ;;  %v325_v44 = vrot.slane %v295_v0, 2  ;;  %v455_v45 = vadd.f32 %v453_v36, %v428_v19  ;;  %v560_v47 = vunpack.c.l.bf16 %v921_v32  ;;  %v928_v0 = vld [vmem:[%s1082_s29 + $0x10] sm:$0x7]  ;;  %v932_v19 = vld [vmem:[%s1082_s29 + $0xc] sm:$0x3] }
  0x20   : > { %v461_v46 = vrot.slane %v444_v34, 1  ;;  %v321_v51 = vrot.slane %v319_v39, 1  ;;  %v451_v52 = vadd.f32 %v449_v35, %v422_v18  ;;  %v459_v53 = vadd.f32 %v457_v40, %v434_v28  ;;  %v935_v35 = vld [vmem:[%s1082_s29 + $0x10] sm:$0x3] }
  0x21   : > { %v564_v54 = vmul.f32 %v563_v41, %v1086_v17  ;;  %v465_v57 = vrot.slane %v455_v45, 2  ;;  %v566_v58 = vunpack.c.l.bf16 %v923_v42  ;;  %v569_v59 = vunpack.c.l.bf16 %v924_v43  ;;  %v936_v36 = vld [vmem:[%s1082_s29 + $0x10] sm:$0x7] }
  0x22   : > { %v463_v56 = vadd.f32 %v461_v46, %v441_v33  ;;  %v323_v60 = vadd.f32 %v321_v51, %v315_v38  ;;  %v447_v61 = vmul.f32 %v1120_v49, %v446_v30  ;;  %v572_v62 = vunpack.c.l.bf16 %v925_v48  ;;  %v937_v42 = vld [vmem:[%s1082_s29 + $0x10] sm:$0x6] }
  0x23   : > { %v575_v63 = vunpack.c.l.bf16 %v926_v50  ;;  %v561_v3 = vmul.f32 %v560_v47, %v1084_v16  ;;  %v570_v6 = vmul.f32 %v569_v59, %v1093_v22  ;;  %v579_v7 = vunpack.c.l.bf16 %v927_v55 }
  0x24   : > { %v469_v2 = vrot.slane %v463_v56, 7  ;;  %v327_v8 = vadd.f32 %v325_v44, %v323_v60  ;;  %v467_v9 = vadd.f32 %v465_v57, %v451_v52  ;;  %v567_v10 = vmul.f32 %v566_v58, %v1091_v21  ;;  %v938_v52 = vld [vmem:[%s1082_s29 + $0x14] sm:$0x3] }
  0x25   : > { %v576_v11 = vmul.f32 %v575_v63, %v1097_v24  ;;  %v573_v14 = vmul.f32 %v572_v62, %v1095_v23  ;;  %v582_v15 = vunpack.c.l.bf16 %v928_v0  ;;  %v588_v18 = vrot.slane %v564_v54, 1  ;;  %v939_v57 = vld [vmem:[%s1082_s29 + $0x14] sm:$0x7] }
  0x26   : > { %v471_v13 = vadd.f32 %v469_v2, %v459_v53  ;;  %v334_v25 = vadd.f32 %v1153_v1, %v327_v8  ;;  %v477_v26 = vrot.slane %v447_v61, 2  ;;  %v592_v27 = vrot.slane %v570_v6, 6 }
  0x27   : > { %v596_v28 = vrot.slane %v576_v11, 1  ;;  %v580_v32 = vmul.f32 %v579_v7, %v1102_v31  ;;  %v583_v33 = vmul.f32 %v582_v15, %v1106_v37  ;;  %v585_v34 = vunpack.c.l.bf16 %v929_v12 }
  0x28   : > { %v473_v30 = vrot.slane %v471_v13, 1  ;;  %v335_v38 = vmax.f32 %v334_v25, 0.0  ;;  %v590_v39 = vadd.f32 %v588_v18, %v561_v3  ;;  %v594_v40 = vadd.f32 %v592_v27, %v567_v10  ;;  %v940_v10 = vld [vmem:[%s1082_s29 + $0x14] sm:$0x6] }
  0x29   : > { %v699_v41 = vunpack.c.l.bf16 %v932_v19  ;;  %v598_v44 = vadd.f32 %v596_v28, %v573_v14  ;;  %v600_v45 = vrot.slane %v583_v33, 1  ;;  %v702_v46 = vunpack.c.l.bf16 %v933_v20 }
  0x2a   : > { %v475_v43 = vadd.f32 %v473_v30, %v467_v9  ;;  %963 = vmatmul.mubr.msk.f32.vlgmr.msra.gmra.mrb[0].mxu0 %vm342_vm1, %v335_v38  ;;  %v604_v47 = vrot.slane %v594_v40, 2  ;;  %v705_v48 = vunpack.c.l.bf16 %v934_v29  ;;  %v708_v50 = vunpack.c.l.bf16 %v935_v35 }
  0x2b   : > { %v711_v51 = vunpack.c.l.bf16 %v936_v36  ;;  %994 = vmatpush3.bf16.msra.mxu0 %v1065_v4  ;;  %976 = vmatprep.mubr.msk.f32.mxu0 %vm1019_vm0, %v1020_v5  ;;  %v602_v54 = vadd.f32 %v600_v45, %v580_v32  ;;  %v703_v55 = vmul.f32 %v702_v46, %v1086_v17  ;;  %v714_v56 = vunpack.c.l.bf16 %v937_v42 }
  0x2c   : > { %v479_v53 = vadd.f32 %v477_v26, %v475_v43  ;;  %v586_v58 = vmul.f32 %v1120_v49, %v585_v34  ;;  %v706_v59 = vmul.f32 %v705_v48, %v1091_v21  ;;  %v709_v60 = vmul.f32 %v708_v50, %v1093_v22 }
  0x2d   : > { %v608_v62 = vrot.slane %v602_v54, 7  ;;  %v715_v63 = vmul.f32 %v714_v56, %v1097_v24  ;;  %v718_v0 = vunpack.c.l.bf16 %v938_v52  ;;  %v606_v2 = vadd.f32 %v604_v47, %v590_v39 }
  0x2e   : > { %v480_v61 = vadd.f32 %v1153_v1, %v479_v53  ;;  %v700_v3 = vmul.f32 %v699_v41, %v1084_v16  ;;  %v721_v6 = vunpack.c.l.bf16 %v939_v57  ;;  %v731_v17 = vrot.slane %v709_v60, 6 }
  0x2f   : > { %v610_v8 = vadd.f32 %v608_v62, %v598_v44  ;;  %v712_v9 = vmul.f32 %v711_v51, %v1095_v23  ;;  %v727_v11 = vrot.slane %v703_v55, 1  ;;  %v719_v21 = vmul.f32 %v718_v0, %v1102_v31 }
  0x30   : > { %v481_v7 = vmax.f32 %v480_v61, 0.0  ;;  %v722_v22 = vmul.f32 %v721_v6, %v1106_v37  ;;  %v733_v12 = vadd.f32 %v731_v17, %v706_v59  ;;  %v735_v13 = vrot.slane %v715_v63, 1 }
  0x31   : > { %v612_v24 = vrot.slane %v610_v8, 1  ;;  %v616_v14 = vrot.slane %v586_v58, 2  ;;  %v724_v16 = vunpack.c.l.bf16 %v940_v10  ;;  %v729_v18 = vadd.f32 %v727_v11, %v700_v3 }
  0x32   : > { %970 = vmatmul.mubr.msk.f32.vlgmr.msra.gmra.mrb[0].mxu1 %vm342_vm1, %v481_v7  ;;  %v739_v15 = vrot.slane %v722_v22, 1  ;;  %v737_v19 = vadd.f32 %v735_v13, %v712_v9  ;;  %v743_v31 = vrot.slane %v733_v12, 2 }
  0x33   : > { %997 = vmatpush3.bf16.msra.mxu1 %v1065_v4  ;;  %983 = vmatprep.mubr.msk.f32.mxu1 %vm1019_vm0, %v1020_v5  ;;  %v614_v23 = vadd.f32 %v612_v24, %v606_v2  ;;  %v725_v37 = vmul.f32 %v1120_v49, %v724_v16  ;;  %v908_v49 = vld [vmem:[%s1214_s4] ss:$0 sm:$0xff] }
  0x34   : > { %v741_v20 = vadd.f32 %v739_v15, %v719_v21  ;;  %v745_v28 = vadd.f32 %v743_v31, %v729_v18 }
  0x35   : > { %v618_v25 = vadd.f32 %v616_v14, %v614_v23  ;;  %v755_v32 = vrot.slane %v725_v37, 2 }
  0x36   : > { %v747_v26 = vrot.slane %v741_v20, 7 }
  0x37   : > { %v619_v27 = vadd.f32 %v1153_v1, %v618_v25 }
  0x38   : > { %v749_v29 = vadd.f32 %v747_v26, %v737_v19 }
  0x39   : > { %v620_v4 = vmax.f32 %v619_v27, 0.0 }
  0x3a   : > { %v751_v30 = vrot.slane %v749_v29, 1 }
  0x3b   : > { %977 = vmatmul.mubr.msk.f32.vlgmr.msra.gmra.mrb[2].mxu0 %vm342_vm1, %v620_v4 }
  0x3c   : > { %v753_v5 = vadd.f32 %v751_v30, %v745_v28 }
  0x3e   : > { %v757_v33 = vadd.f32 %v755_v32, %v753_v5 }
  0x40   : > { %v758_v34 = vadd.f32 %v1153_v1, %v757_v33 }
  0x42   : > { %v759_v35 = vmax.f32 %v758_v34, 0.0 }
  0x44   : > { %984 = vmatmul.mubr.msk.f32.vlgmr.msra.gmra.mrb[2].mxu1 %vm342_vm1, %v759_v35 }
  0xfd   : > { %v412_v36 = vpop.f32.mrb[0].mxu0 }
  0xfe   : > { %v413_v38 = vadd.f32 %v908_v49, %v412_v36  ;;  %v964_v39 = vpop.f32.mrb[1].mxu0 }
 0x100   : > { %v416_v40 = vmax.f32 %v413_v38, 0.0 }
 0x102   : > { %v417_v41 = vpack.c.bf16 %v416_v40, %v416_v40 }
 0x104   : > { %419 = vst.msk [vmem:[%s224_s14] sm:$0x3] %vm418_vm2, %v417_v41 }
 0x105   : > { %v551_v1 = vpop.f32.mrb[0].mxu1 }
 0x106   : > { %v552_v42 = vadd.f32 %v908_v49, %v551_v1  ;;  %v971_v43 = vpop.f32.mrb[1].mxu1 }
 0x108   : > { %v555_v44 = vmax.f32 %v552_v42, 0.0 }
 0x10a   : > { %v556_v45 = vpack.c.bf16 %v555_v44, %v555_v44 }
 0x10c   : > { %920 = vst.msk [vmem:[%s224_s14 + $0x2] sm:$0x3] %vm418_vm2, %v556_v45 }
 0x10e   : > { %v690_v46 = vpop.f32.mrb[2].mxu0 }
 0x10f   : > { %v691_v47 = vadd.f32 %v908_v49, %v690_v46  ;;  %v978_v48 = vpop.f32.mrb[3].mxu0 }
 0x111   : > { %v694_v50 = vmax.f32 %v691_v47, 0.0 }
 0x113   : > { %v695_v51 = vpack.c.bf16 %v694_v50, %v694_v50 }
 0x115   : > { %931 = vst.msk [vmem:[%s224_s14 + $0x4] sm:$0x3] %vm418_vm2, %v695_v51 }
 0x117   : > { %v829_v52 = vpop.f32.mrb[2].mxu1 }
 0x118   : > { %v830_v53 = vadd.f32 %v908_v49, %v829_v52  ;;  %v985_v54 = vpop.f32.mrb[3].mxu1 }
 0x11a   : > { %v833_v55 = vmax.f32 %v830_v53, 0.0 }
 0x11c   : > { %v834_v56 = vpack.c.bf16 %v833_v55, %v833_v55 }
 0x11e   : > { %942 = vst.msk [vmem:[%s224_s14 + $0x6] sm:$0x3] %vm418_vm2, %v834_v56 }
 0x11f PF: > { %s15_s18 = sadd.s32 1, %s1016_s18  }
 0x120   : > { %p12_p4 = scmp.ge.s32.totalorder %s15_s18, 4  }
 0x122   :  { %14 = sbr.rel (!%p12_p4) target bundleno = 1 (0x1), region = 78 }

// kernel: _lambda_.16
= control target key start
LH: loop header
LB: loop body
LE: loop exit
PB: predicated region body
PF: predicated region fallthrough
CT: control target
= control target key end

     0   :  { %s1052_s21 = smov 0   ;;  %s1217_s0 = inlined_call_operand.vmem [shape: bf16[2,10,5,8], index: 0, kind: input, shape index: {}]   ;;  %s1218_s1 = inlined_call_operand.vmem [shape: bf16[2,10,5,8], index: 1, kind: input, shape index: {}]   ;;  %s1219_s2 = inlined_call_operand.vmem [shape: f32[9,8], index: 2, kind: input, shape index: {}]   ;;  %s1220_s3 = inlined_call_operand.vmem [shape: f32[1,8], index: 3, kind: input, shape index: {}]   ;;  %s1221_s4 = inlined_call_operand.vmem [shape: f32[8,16], index: 4, kind: input, shape index: {}]   ;;  %s1222_s5 = inlined_call_operand.vmem [shape: f32[1,16], index: 5, kind: input, shape index: {}]   ;;  %s1223_s6 = inlined_call_operand.vmem [shape: bf16[2,4,4,16], index: 6, kind: output, shape index: {}]  }
   0x1 LB: > { %s913_s22 = sadd.s32 4294967295, %s1013_s21   ;;  %p917_p0 = scmp.ge.s32.totalorder %s1013_s21, 1  ;;  %s1013_s21 = sphi %s1052_s21, %s16_s21  }
   0x2   : > { %p222_p1 = scmp.lt.s32.totalorder %s1013_s21, 3 }
   0x4   : > { %p223_p2 = pnand %p917_p0, %p222_p1 }
   0x5   : > { %v1063_v0 = vld [vmem:[%s1221_s4] sm:$0xff] (!%p223_p2)  ;;  %p257_p3 = scmp.lt.s32.totalorder (!%p223_p2), %s913_s22, 1  ;;  %v279_v1 = vlaneseq (!%p223_p2)  ;;  %v1015_v2 = vmov (!%p223_p2), 0.0   ;;  %vm1016_vm0 = vmmov (!%p223_p2), 0   ;;  %v1124_v42 = vld [vmem:[%s1219_s2 + $0x8] ss:$0 sm:$0xff] (!%p223_p2) }
   0x6   : > { %226 = sbr.rel (%p223_p2) target bundleno = 280 (0x118), region = 44  ;;  %976 = vmatprep.subr.mxu0 (!%p223_p2), %v1015_v2  ;;  %981 = vmatprep.subr.mxu1 (!%p223_p2), %v1015_v2  ;;  %v272_v4 = vld [vmem:[%s1219_s2] sm:$0xff] (!%p223_p2)  ;;  %vm378_vm1 = vcmask (!%p223_p2), 64512   ;;  %vm454_vm2 = vcmask (!%p223_p2), 123904  }
   0x7   : > { %977 = vmatpush3.msra.mxu0 (!%p223_p2), %v1063_v0  ;;  %982 = vmatpush3.msra.mxu1 (!%p223_p2), %v1063_v0  ;;  %v280_v3 = vshrl.u32 (!%p223_p2), %v279_v1, 7 }
   0x8   : > { %978 = vmatprep.mubr.msk.f32.mxu0 (!%p223_p2), %vm1016_vm0, %v1015_v2  ;;  %983 = vmatprep.mubr.msk.f32.mxu1 (!%p223_p2), %vm1016_vm0, %v1015_v2 }
   0x9   : > { %986 = vmatprep.subr.mxu0 (!%p223_p2), %v1015_v2  ;;  %991 = vmatprep.subr.mxu1 (!%p223_p2), %v1015_v2  ;;  %v281_v5 = vsub.s32 (!%p223_p2), 0, %v280_v3  ;;  %v288_v6 = vsub.s32 (!%p223_p2), 1, %v280_v3  ;;  %v295_v7 = vsub.s32 (!%p223_p2), 2, %v280_v3  ;;  %v303_v8 = vsub.s32 (!%p223_p2), 3, %v280_v3 }
   0xa   : > { %v311_v9 = vsub.s32 (!%p223_p2), 4, %v280_v3  ;;  %v318_v10 = vsub.s32 (!%p223_p2), 5, %v280_v3  ;;  %v326_v11 = vsub.s32 (!%p223_p2), 6, %v280_v3  ;;  %v334_v12 = vsub.s32 (!%p223_p2), 7, %v280_v3 }
   0xb   : > { %v1091_v13 = vrot.slane (!%p223_p2), %v272_v4, %v281_v5  ;;  %v1093_v14 = vrot.slane (!%p223_p2), %v272_v4, %v288_v6  ;;  %v1095_v15 = vrot.slane (!%p223_p2), %v272_v4, %v295_v7  ;;  %v1100_v19 = vrot.slane (!%p223_p2), %v272_v4, %v303_v8 }
   0xc   : > { %v1102_v20 = vrot.slane (!%p223_p2), %v272_v4, %v311_v9  ;;  %v1104_v21 = vrot.slane (!%p223_p2), %v272_v4, %v318_v10  ;;  %v1109_v28 = vrot.slane (!%p223_p2), %v272_v4, %v326_v11  ;;  %v1113_v34 = vrot.slane (!%p223_p2), %v272_v4, %v334_v12 }
   0xd   : > { %s1225_s22 = smov (!%p257_p3, %s913_s22), 1 }
   0xe   : > { %s996_s25 = smul.u32 40, %s1225_s22  ;;  %s967_s16 = sshll.u32 %s1225_s22, 3 }
   0xf   : > { %s271_s19 = scalar_lea.vmem %s1223_s6, %s967_s16 }
  0x10   : > { %s1084_s30 = scalar_lea.vmem %s1217_s0, %s996_s25  ;;  %s1089_s9 = scalar_lea.vmem %s1218_s1, %s996_s25 }
  0x11   : > { %v277_v16 = vld [vmem:[%s1084_s30] sm:$0x3]  ;;  %v922_v25 = vld [vmem:[%s1084_s30 + $0x4] sm:$0x3]  ;;  %v925_v32 = vld [vmem:[%s1084_s30 + $0x8] sm:$0x3] }
  0x12   : > { %v284_v17 = vld [vmem:[%s1089_s9] sm:$0x3]  ;;  %v278_v22 = vunpack.c.l.bf16 %v277_v16  ;;  %v923_v26 = vld [vmem:[%s1089_s9 + $0x4] sm:$0x3]  ;;  %v300_v29 = vunpack.c.l.bf16 %v922_v25  ;;  %v926_v33 = vld [vmem:[%s1089_s9 + $0x8] sm:$0x3]  ;;  %v323_v39 = vunpack.c.l.bf16 %v925_v32 }
  0x13   : > { %v291_v18 = vld [vmem:[%s1084_s30] sm:$0x7]  ;;  %v285_v23 = vunpack.c.l.bf16 %v284_v17  ;;  %v924_v27 = vld [vmem:[%s1084_s30 + $0x4] sm:$0x7]  ;;  %v308_v30 = vunpack.c.l.bf16 %v923_v26  ;;  %v927_v35 = vld [vmem:[%s1084_s30 + $0x8] sm:$0x7]  ;;  %v331_v46 = vunpack.c.l.bf16 %v926_v33 }
  0x14   : > { %v292_v24 = vunpack.c.l.bf16 %v291_v18  ;;  %v315_v31 = vunpack.c.l.bf16 %v924_v27  ;;  %v283_v36 = vmul.f32 %v1091_v13, %v278_v22  ;;  %v932_v40 = vld [vmem:[%s1084_s30 + $0x8] sm:$0x3]  ;;  %v305_v43 = vmul.f32 %v1100_v19, %v300_v29  ;;  %v935_v48 = vld [vmem:[%s1084_s30 + $0xc] sm:$0x3]  ;;  %v938_v63 = vld [vmem:[%s1084_s30 + $0x10] sm:$0x3] }
  0x15   : > { %v290_v37 = vmul.f32 %v1093_v14, %v285_v23  ;;  %v933_v41 = vld [vmem:[%s1089_s9 + $0x8] sm:$0x3]  ;;  %v313_v44 = vmul.f32 %v1102_v20, %v308_v30  ;;  %v328_v49 = vmul.f32 %v1109_v28, %v323_v39  ;;  %v338_v50 = vunpack.c.l.bf16 %v927_v35  ;;  %v936_v57 = vld [vmem:[%s1089_s9 + $0xc] sm:$0x3]  ;;  %v939_v6 = vld [vmem:[%s1089_s9 + $0x10] sm:$0x3] }
  0x16   : > { %v297_v38 = vmul.f32 %v1095_v15, %v292_v24  ;;  %v320_v45 = vmul.f32 %v1104_v21, %v315_v31  ;;  %v934_v47 = vld [vmem:[%s1084_s30 + $0x8] sm:$0x7]  ;;  %v457_v52 = vunpack.c.l.bf16 %v932_v40  ;;  %v336_v53 = vmul.f32 %v1113_v34, %v331_v46  ;;  %v937_v62 = vld [vmem:[%s1084_s30 + $0xc] sm:$0x7]  ;;  %v940_v7 = vld [vmem:[%s1084_s30 + $0x10] sm:$0x7] }
  0x17   : > { %v344_v51 = vadd.f32 %v290_v37, %v283_v36  ;;  %v346_v54 = vrot.slane %v305_v43, 7  ;;  %v460_v56 = vunpack.c.l.bf16 %v933_v41  ;;  %v343_v58 = vmul.f32 %v1124_v42, %v338_v50  ;;  %v943_v22 = vld [vmem:[%s1084_s30 + $0x10] sm:$0x3]  ;;  %v946_v39 = vld [vmem:[%s1084_s30 + $0x14] sm:$0x3] }
  0x18   : > { %v350_v55 = vrot.slane %v320_v45, 1  ;;  %v458_v59 = vmul.f32 %v457_v52, %v1091_v13  ;;  %v463_v60 = vunpack.c.l.bf16 %v934_v47  ;;  %v467_v61 = vunpack.c.l.bf16 %v935_v48  ;;  %v944_v23 = vld [vmem:[%s1089_s9 + $0x10] sm:$0x3]  ;;  %v947_v40 = vld [vmem:[%s1089_s9 + $0x14] sm:$0x3] }
  0x19   : > { %v348_v1 = vadd.f32 %v346_v54, %v297_v38  ;;  %v353_v4 = vadd.f32 %v336_v53, %v328_v49  ;;  %v461_v5 = vmul.f32 %v460_v56, %v1093_v14  ;;  %v361_v8 = vrot.slane %v343_v58, 1  ;;  %v945_v29 = vld [vmem:[%s1084_s30 + $0x10] sm:$0x7]  ;;  %v948_v46 = vld [vmem:[%s1084_s30 + $0x14] sm:$0x7] }
  0x1a   : > { %v352_v3 = vadd.f32 %v350_v55, %v313_v44  ;;  %v464_v9 = vmul.f32 %v463_v60, %v1095_v15  ;;  %v468_v10 = vmul.f32 %v467_v61, %v1100_v19  ;;  %v471_v11 = vunpack.c.l.bf16 %v936_v57  ;;  %v949_v47 = vld [vmem:[%s1084_s30 + $0x18] sm:$0x3]  ;;  %v1158_v48 = vld [vmem:[%s1220_s3] ss:$0 sm:$0xff] }
  0x1b   : > { %v355_v12 = vrot.slane %v348_v1, 1  ;;  %v474_v17 = vunpack.c.l.bf16 %v937_v62  ;;  %v478_v18 = vunpack.c.l.bf16 %v938_v63  ;;  %v482_v25 = vunpack.c.l.bf16 %v939_v6  ;;  %v950_v53 = vld [vmem:[%s1089_s9 + $0x18] sm:$0x3] }
  0x1c   : > { %v358_v16 = vadd.f32 %v353_v4, %v352_v3  ;;  %v472_v24 = vmul.f32 %v471_v11, %v1102_v20  ;;  %v485_v26 = vunpack.c.l.bf16 %v940_v7  ;;  %v487_v27 = vadd.f32 %v461_v5, %v458_v59  ;;  %v951_v62 = vld [vmem:[%s1084_s30 + $0x18] sm:$0x7] }
  0x1d   : > { %v357_v30 = vadd.f32 %v355_v12, %v344_v51  ;;  %v475_v31 = vmul.f32 %v474_v17, %v1104_v21  ;;  %v479_v32 = vmul.f32 %v478_v18, %v1109_v28  ;;  %v489_v33 = vrot.slane %v468_v10, 7  ;;  %v954_v5 = vld [vmem:[%s1084_s30 + $0x18] sm:$0x3] }
  0x1e   : > { %v483_v35 = vmul.f32 %v482_v25, %v1113_v34  ;;  %v486_v36 = vmul.f32 %v1124_v42, %v485_v26  ;;  %v587_v37 = vunpack.c.l.bf16 %v943_v22  ;;  %v590_v38 = vunpack.c.l.bf16 %v944_v23  ;;  %v955_v10 = vld [vmem:[%s1089_s9 + $0x18] sm:$0x3]  ;;  %v957_v25 = vld [vmem:[%s1084_s30 + $0x1c] sm:$0x3] }
  0x1f   : > { %v359_v41 = vadd.f32 %v358_v16, %v357_v30  ;;  %v491_v43 = vadd.f32 %v489_v33, %v464_v9  ;;  %v493_v44 = vrot.slane %v475_v31, 1  ;;  %v593_v45 = vunpack.c.l.bf16 %v945_v29  ;;  %v956_v18 = vld [vmem:[%s1084_s30 + $0x18] sm:$0x7]  ;;  %v958_v31 = vld [vmem:[%s1089_s9 + $0x1c] sm:$0x3] }
  0x20   : > { %v496_v49 = vadd.f32 %v483_v35, %v479_v32  ;;  %v504_v50 = vrot.slane %v486_v36, 1  ;;  %v588_v51 = vmul.f32 %v587_v37, %v1091_v13  ;;  %v591_v52 = vmul.f32 %v590_v38, %v1093_v14  ;;  %v959_v37 = vld [vmem:[%s1084_s30 + $0x1c] sm:$0x7]  ;;  %v960_v38 = vld [vmem:[%s1084_s30 + $0x20] sm:$0x3] }
  0x21   : > { %v363_v54 = vadd.f32 %v361_v8, %v359_v41  ;;  %v495_v55 = vadd.f32 %v493_v44, %v472_v24  ;;  %v498_v56 = vrot.slane %v491_v43, 1  ;;  %v594_v57 = vmul.f32 %v593_v45, %v1095_v15  ;;  %v961_v44 = vld [vmem:[%s1089_s9 + $0x20] sm:$0x3] }
  0x22   : > { %v597_v58 = vunpack.c.l.bf16 %v946_v39  ;;  %v601_v59 = vunpack.c.l.bf16 %v947_v40  ;;  %v604_v60 = vunpack.c.l.bf16 %v948_v46  ;;  %v608_v61 = vunpack.c.l.bf16 %v949_v47  ;;  %v962_v45 = vld [vmem:[%s1084_s30 + $0x20] sm:$0x7] }
  0x23   : > { %v370_v63 = vadd.f32 %v1158_v48, %v363_v54  ;;  %v500_v1 = vadd.f32 %v498_v56, %v487_v27  ;;  %v501_v3 = vadd.f32 %v496_v49, %v495_v55  ;;  %v612_v4 = vunpack.c.l.bf16 %v950_v53 }
  0x24   : > { %v598_v6 = vmul.f32 %v597_v58, %v1100_v19  ;;  %v602_v7 = vmul.f32 %v601_v59, %v1102_v20  ;;  %v605_v8 = vmul.f32 %v604_v60, %v1104_v21  ;;  %v609_v9 = vmul.f32 %v608_v61, %v1109_v28 }
  0x25   : > { %v371_v11 = vmax.f32 %v370_v63, 0.0  ;;  %v502_v12 = vadd.f32 %v501_v3, %v500_v1  ;;  %v613_v16 = vmul.f32 %v612_v4, %v1113_v34  ;;  %v615_v17 = vunpack.c.l.bf16 %v951_v62 }
  0x26   : > { %v619_v22 = vrot.slane %v598_v6, 7  ;;  %v623_v23 = vrot.slane %v605_v8, 1  ;;  %v717_v24 = vunpack.c.l.bf16 %v954_v5  ;;  %v617_v27 = vadd.f32 %v591_v52, %v588_v51 }
  0x27   : > { %979 = vmatmul.mubr.msk.f32.vlgmr.msra.gmra.mrb[0].mxu0 %vm378_vm1, %v371_v11  ;;  %v506_v26 = vadd.f32 %v504_v50, %v502_v12  ;;  %v626_v29 = vadd.f32 %v613_v16, %v609_v9  ;;  %v720_v30 = vunpack.c.l.bf16 %v955_v10  ;;  %v616_v32 = vmul.f32 %v1124_v42, %v615_v17  ;;  %v930_v9 = vld [vmem:[%s1222_s5] ss:$0 sm:$0xff] }
  0x28   : > { %987 = vmatpush3.msra.mxu0 %v1063_v0  ;;  %988 = vmatprep.mubr.msk.f32.mxu0 %vm1016_vm0, %v1015_v2  ;;  %v621_v33 = vadd.f32 %v619_v22, %v594_v57  ;;  %v625_v35 = vadd.f32 %v623_v23, %v602_v7  ;;  %v723_v36 = vunpack.c.l.bf16 %v956_v18  ;;  %v718_v40 = vmul.f32 %v717_v24, %v1091_v13 }
  0x29   : > { %v507_v39 = vadd.f32 %v1158_v48, %v506_v26  ;;  %v721_v41 = vmul.f32 %v720_v30, %v1093_v14  ;;  %v727_v43 = vunpack.c.l.bf16 %v957_v25  ;;  %v731_v50 = vunpack.c.l.bf16 %v958_v31 }
  0x2a   : > { %v628_v46 = vrot.slane %v621_v33, 1  ;;  %v631_v47 = vadd.f32 %v626_v29, %v625_v35  ;;  %v724_v49 = vmul.f32 %v723_v36, %v1095_v15  ;;  %v734_v53 = vunpack.c.l.bf16 %v959_v37 }
  0x2b   : > { %v508_v51 = vmax.f32 %v507_v39, 0.0  ;;  %v728_v52 = vmul.f32 %v727_v43, %v1100_v19  ;;  %v738_v54 = vunpack.c.l.bf16 %v960_v38  ;;  %v634_v56 = vrot.slane %v616_v32, 1 }
  0x2c   : > { %v630_v55 = vadd.f32 %v628_v46, %v617_v27  ;;  %v742_v57 = vunpack.c.l.bf16 %v961_v44  ;;  %v745_v58 = vunpack.c.l.bf16 %v962_v45  ;;  %v732_v13 = vmul.f32 %v731_v50, %v1102_v20 }
  0x2d   : > { %984 = vmatmul.mubr.msk.f32.vlgmr.msra.gmra.mrb[0].mxu1 %vm378_vm1, %v508_v51  ;;  %v735_v14 = vmul.f32 %v734_v53, %v1104_v21  ;;  %v739_v59 = vmul.f32 %v738_v54, %v1109_v28  ;;  %v749_v60 = vrot.slane %v728_v52, 7  ;;  %v747_v62 = vadd.f32 %v721_v41, %v718_v40 }
  0x2e   : > { %992 = vmatpush3.msra.mxu1 %v1063_v0  ;;  %993 = vmatprep.mubr.msk.f32.mxu1 %vm1016_vm0, %v1015_v2  ;;  %v632_v15 = vadd.f32 %v631_v47, %v630_v55  ;;  %v743_v19 = vmul.f32 %v742_v57, %v1113_v34  ;;  %v746_v61 = vmul.f32 %v1124_v42, %v745_v58 }
  0x2f   : > { %v751_v63 = vadd.f32 %v749_v60, %v724_v49  ;;  %v753_v1 = vrot.slane %v735_v14, 1 }
  0x30   : > { %v636_v3 = vadd.f32 %v634_v56, %v632_v15  ;;  %v756_v20 = vadd.f32 %v743_v19, %v739_v59  ;;  %v764_v6 = vrot.slane %v746_v61, 1 }
  0x31   : > { %v755_v21 = vadd.f32 %v753_v1, %v732_v13  ;;  %v758_v4 = vrot.slane %v751_v63, 1 }
  0x32   : > { %v637_v28 = vadd.f32 %v1158_v48, %v636_v3 }
  0x33   : > { %v760_v5 = vadd.f32 %v758_v4, %v747_v62  ;;  %v761_v0 = vadd.f32 %v756_v20, %v755_v21 }
  0x34   : > { %v638_v7 = vmax.f32 %v637_v28, 0.0 }
  0x35   : > { %v762_v2 = vadd.f32 %v761_v0, %v760_v5 }
  0x36   : > { %989 = vmatmul.mubr.msk.f32.vlgmr.msra.gmra.mrb[2].mxu0 %vm378_vm1, %v638_v7 }
  0x37   : > { %v766_v34 = vadd.f32 %v764_v6, %v762_v2 }
  0x39   : > { %v767_v42 = vadd.f32 %v1158_v48, %v766_v34 }
  0x3b   : > { %v768_v8 = vmax.f32 %v767_v42, 0.0 }
  0x3d   : > { %994 = vmatmul.mubr.msk.f32.vlgmr.msra.gmra.mrb[2].mxu1 %vm378_vm1, %v768_v8 }
  0xfa   : > { %v448_v10 = vpop.f32.mrb[0].mxu0 }
  0xfb   : > { %v449_v11 = vadd.f32 %v930_v9, %v448_v10  ;;  %v980_v12 = vpop.f32.mrb[1].mxu0 }
  0xfd   : > { %v452_v16 = vmax.f32 %v449_v11, 0.0 }
  0xff   : > { %v453_v17 = vpack.c.bf16 %v452_v16, %v452_v16 }
 0x100   : > { %v578_v18 = vpop.f32.mrb[0].mxu1 }
 0x101   : > { %455 = vst.msk [vmem:[%s271_s19] sm:$0x3] %vm454_vm2, %v453_v17  ;;  %v579_v48 = vadd.f32 %v930_v9, %v578_v18  ;;  %v985_v22 = vpop.f32.mrb[1].mxu1 }
 0x103   : > { %v582_v23 = vmax.f32 %v579_v48, 0.0 }
 0x105   : > { %v583_v24 = vpack.c.bf16 %v582_v23, %v582_v23 }
 0x107   : > { %942 = vst.msk [vmem:[%s271_s19 + $0x2] sm:$0x3] %vm454_vm2, %v583_v24 }
 0x109   : > { %v708_v25 = vpop.f32.mrb[2].mxu0 }
 0x10a   : > { %v709_v26 = vadd.f32 %v930_v9, %v708_v25  ;;  %v990_v27 = vpop.f32.mrb[3].mxu0 }
 0x10c   : > { %v712_v29 = vmax.f32 %v709_v26, 0.0 }
 0x10e   : > { %v713_v30 = vpack.c.bf16 %v712_v29, %v712_v29 }
 0x110   : > { %953 = vst.msk [vmem:[%s271_s19 + $0x4] sm:$0x3] %vm454_vm2, %v713_v30  ;;  %v838_v31 = vpop.f32.mrb[2].mxu1 }
 0x111   : > { %v839_v32 = vadd.f32 %v930_v9, %v838_v31  ;;  %v995_v33 = vpop.f32.mrb[3].mxu1 }
 0x113   : > { %v842_v35 = vmax.f32 %v839_v32, 0.0 }
 0x115   : > { %v843_v36 = vpack.c.bf16 %v842_v35, %v842_v35 }
 0x117   : > { %964 = vst.msk [vmem:[%s271_s19 + $0x6] sm:$0x3] %vm454_vm2, %v843_v36 }
 0x118 PF: > { %s16_s21 = sadd.s32 1, %s1013_s21  }
 0x119   : > { %p13_p4 = scmp.ge.s32.totalorder %s16_s21, 4  }
 0x11b   :  { %15 = sbr.rel (!%p13_p4) target bundleno = 1 (0x1), region = 96 }

// kernel: _lambda_.15
= control target key start
LH: loop header
LB: loop body
LE: loop exit
PB: predicated region body
PF: predicated region fallthrough
CT: control target
= control target key end

     0   :  { %s1878_s18 = smov 0   ;;  %s2240_s0 = inlined_call_operand.vmem [shape: bf16[2,10,10,8], index: 0, kind: input, shape index: {}]   ;;  %s2241_s1 = inlined_call_operand.vmem [shape: f32[9,8], index: 1, kind: input, shape index: {}]   ;;  %s2242_s2 = inlined_call_operand.vmem [shape: f32[1,8], index: 2, kind: input, shape index: {}]   ;;  %s2243_s3 = inlined_call_operand.vmem [shape: f32[8,8], index: 3, kind: input, shape index: {}]   ;;  %s2244_s4 = inlined_call_operand.vmem [shape: f32[1,8], index: 4, kind: input, shape index: {}]   ;;  %s2245_s5 = inlined_call_operand.vmem [shape: bf16[2,8,8,8], index: 5, kind: output, shape index: {}]  }
   0x1 LB: > { %s1673_s19 = sadd.s32 4294967295, %s1844_s18   ;;  %p1677_p0 = scmp.ge.s32.totalorder %s1844_s18, 1  ;;  %s1844_s18 = sphi %s1878_s18, %s15_s18  }
   0x2   : > { %p187_p1 = scmp.lt.s32.totalorder %s1844_s18, 3 }
   0x4   : > { %p188_p2 = pnand %p1677_p0, %p187_p1 }
   0x5   : > { %v1889_v0 = vld [vmem:[%s2243_s3] sm:$0xff] (!%p188_p2)  ;;  %p215_p3 = scmp.lt.s32.totalorder (!%p188_p2), %s1673_s19, 1  ;;  %v232_v1 = vlaneseq (!%p188_p2)  ;;  %v1846_v2 = vmov (!%p188_p2), 0.0   ;;  %vm1847_vm0 = vmmov (!%p188_p2), 0   ;;  %vm303_vm1 = vcmask (!%p188_p2), 1046528  }
   0x6   : > { %191 = sbr.rel (%p188_p2) target bundleno = 363 (0x16b), region = 40  ;;  %1787 = vmatprep.subr.mxu0 (!%p188_p2), %v1846_v2  ;;  %1792 = vmatprep.subr.mxu1 (!%p188_p2), %v1846_v2  ;;  %v225_v4 = vld [vmem:[%s2241_s1] sm:$0xff] (!%p188_p2)  ;;  %vm332_vm2 = vcmask (!%p188_p2), 1045504   ;;  %v1943_v41 = vld [vmem:[%s2241_s1 + $0x8] ss:$0 sm:$0xff] (!%p188_p2)  ;;  %vm371_vm3 = vcmask (!%p188_p2), 64512  }
   0x7   : > { %1788 = vmatpush3.msra.mxu0 (!%p188_p2), %v1889_v0  ;;  %1793 = vmatpush3.msra.mxu1 (!%p188_p2), %v1889_v0  ;;  %v233_v3 = vshrl.u32 (!%p188_p2), %v232_v1, 7  ;;  %vm447_vm4 = vcmask (!%p188_p2), 60416  }
   0x8   : > { %1789 = vmatprep.mubr.msk.f32.mxu0 (!%p188_p2), %vm1847_vm0, %v1846_v2  ;;  %1794 = vmatprep.mubr.msk.f32.mxu1 (!%p188_p2), %vm1847_vm0, %v1846_v2 }
   0x9   : > { %1797 = vmatprep.subr.mxu0 (!%p188_p2), %v1846_v2  ;;  %1802 = vmatprep.subr.mxu1 (!%p188_p2), %v1846_v2  ;;  %v234_v5 = vsub.s32 (!%p188_p2), 0, %v233_v3  ;;  %v241_v6 = vsub.s32 (!%p188_p2), 1, %v233_v3  ;;  %v249_v7 = vsub.s32 (!%p188_p2), 2, %v233_v3  ;;  %v258_v8 = vsub.s32 (!%p188_p2), 3, %v233_v3 }
   0xa   : > { %v265_v9 = vsub.s32 (!%p188_p2), 4, %v233_v3  ;;  %v273_v10 = vsub.s32 (!%p188_p2), 5, %v233_v3  ;;  %v282_v11 = vsub.s32 (!%p188_p2), 6, %v233_v3  ;;  %v289_v12 = vsub.s32 (!%p188_p2), 7, %v233_v3 }
   0xb   : > { %v1912_v13 = vrot.slane (!%p188_p2), %v225_v4, %v234_v5  ;;  %v1914_v14 = vrot.slane (!%p188_p2), %v225_v4, %v241_v6  ;;  %v1916_v15 = vrot.slane (!%p188_p2), %v225_v4, %v249_v7  ;;  %v1918_v16 = vrot.slane (!%p188_p2), %v225_v4, %v258_v8 }
   0xc   : > { %v1923_v20 = vrot.slane (!%p188_p2), %v225_v4, %v265_v9  ;;  %v1925_v21 = vrot.slane (!%p188_p2), %v225_v4, %v273_v10  ;;  %v1927_v22 = vrot.slane (!%p188_p2), %v225_v4, %v282_v11  ;;  %v1929_v23 = vrot.slane (!%p188_p2), %v225_v4, %v289_v12 }
   0xd   : > { %s2247_s19 = smov (!%p215_p3, %s1673_s19), 1 }
   0xe   : > { %s1827_s22 = smul.u32 80, %s2247_s19  ;;  %s1770_s9 = sshll.u32 %s2247_s19, 5 }
   0xf   : > { %s2219_s12 = scalar_lea.vmem %s2245_s5, %s1770_s9 }
  0x10   : > { %s1910_s27 = scalar_lea.vmem %s2240_s0, %s1827_s22 }
  0x11   : > { %v230_v17 = vld [vmem:[%s1910_s27] ss:$8 sps:$4 sm:$0xff]   ;;  %v237_v18 = vld [vmem:[%s1910_s27 + $0x4] sm:$0x1]  ;;  %v1682_v28 = vld [vmem:[%s1910_s27 + $0xc] sm:$0x1] }
  0x12   : > { %v245_v19 = vld [vmem:[%s1910_s27] sm:$0xe]  ;;  %v231_v24 = vunpack.c.l.bf16 %v230_v17  ;;  %v238_v25 = vunpack.c.l.bf16 %v237_v18  ;;  %v255_v27 = vunpack.c.h.bf16 %v230_v17  ;;  %v1683_v29 = vld [vmem:[%s1910_s27 + $0x8] sm:$0xe]  ;;  %v262_v31 = vunpack.c.l.bf16 %v1682_v28  ;;  %v1685_v34 = vld [vmem:[%s1910_s27 + $0x14] sm:$0x1] }
  0x13   : > { %v246_v26 = vunpack.c.l.bf16 %v245_v19  ;;  %v1684_v30 = vld [vmem:[%s1910_s27 + $0x8] ss:$8 sps:$4 sm:$0xff]   ;;  %v270_v32 = vunpack.c.l.bf16 %v1683_v29  ;;  %v286_v49 = vunpack.c.l.bf16 %v1685_v34  ;;  %v1692_v4 = vld [vmem:[%s1910_s27 + $0xc] sm:$0x1] }
  0x14   : > { %v279_v33 = vunpack.c.h.bf16 %v1684_v30  ;;  %v450_v35 = vunpack.c.l.bf16 %v1684_v30  ;;  %v236_v36 = vmul.f32 %v1912_v13, %v231_v24  ;;  %v243_v37 = vmul.f32 %v1914_v14, %v231_v24  ;;  %v1686_v40 = vld [vmem:[%s1910_s27 + $0x10] sm:$0xe]  ;;  %v1693_v9 = vld [vmem:[%s1910_s27 + $0x8] sm:$0xe] }
  0x15   : > { %v244_v38 = vmul.f32 %v1914_v14, %v238_v25  ;;  %v251_v39 = vmul.f32 %v1916_v15, %v246_v26  ;;  %v252_v42 = vmul.f32 %v1916_v15, %v238_v25  ;;  %v260_v43 = vmul.f32 %v1918_v16, %v255_v27  ;;  %v1694_v26 = vld [vmem:[%s1910_s27 + $0x10] ss:$8 sps:$4 sm:$0xff]  }
  0x16   : > { %v267_v44 = vmul.f32 %v1923_v20, %v255_v27  ;;  %v268_v45 = vmul.f32 %v1923_v20, %v262_v31  ;;  %v275_v46 = vmul.f32 %v1925_v21, %v270_v32  ;;  %v276_v47 = vmul.f32 %v1925_v21, %v262_v31  ;;  %v1695_v27 = vld [vmem:[%s1910_s27 + $0x14] sm:$0x1]  ;;  %v1696_v32 = vld [vmem:[%s1910_s27 + $0x10] sm:$0xe] }
  0x17   : > { %v284_v48 = vmul.f32 %v1927_v22, %v279_v33  ;;  %v291_v50 = vmul.f32 %v1929_v23, %v279_v33  ;;  %v294_v51 = vunpack.c.l.bf16 %v1686_v40  ;;  %v304_v52 = vrot.slane %v243_v37, 1 }
  0x18   : > { %v305_v53 = vrot.slane %v244_v38, 1  ;;  %v292_v54 = vmul.f32 %v1929_v23, %v286_v49  ;;  %v300_v55 = vmul.f32 %v1943_v41, %v286_v49  ;;  %v310_v56 = vrot.slane %v260_v43, 6  ;;  %v1698_v38 = vld [vmem:[%s1910_s27 + $0x1c] sm:$0x1] }
  0x19   : > { %v316_v57 = vrot.slane %v275_v46, 1  ;;  %v299_v58 = vmul.f32 %v1943_v41, %v294_v51  ;;  %v317_v60 = vrot.slane %v276_v47, 1  ;;  %v325_v61 = vrot.slane %v291_v50, 1 }
  0x1a   : > { %v306_v59 = vsel %vm303_vm1, %v304_v52, %v305_v53  ;;  %v312_v63 = vadd.f32 %v310_v56, %v251_v39  ;;  %v313_v1 = vadd.f32 %v310_v56, %v252_v42  ;;  %v326_v3 = vrot.slane %v292_v54, 1  ;;  %v1699_v39 = vld [vmem:[%s1910_s27 + $0x18] sm:$0xe] }
  0x1b   : > { %v308_v62 = vadd.f32 %v306_v59, %v236_v36  ;;  %v318_v5 = vsel %vm303_vm1, %v316_v57, %v317_v60  ;;  %v322_v6 = vadd.f32 %v317_v60, %v268_v45  ;;  %v352_v7 = vrot.slane %v299_v58, 2 }
  0x1c   : > { %v353_v8 = vrot.slane %v300_v55, 2  ;;  %v321_v10 = vadd.f32 %v318_v5, %v267_v44  ;;  %v327_v11 = vsel %vm303_vm1, %v325_v61, %v326_v3  ;;  %v333_v12 = vrot.slane %v312_v63, 2 }
  0x1d   : > { %v334_v17 = vrot.slane %v313_v1, 2  ;;  %v329_v18 = vadd.f32 %v327_v11, %v284_v48  ;;  %v451_v24 = vmul.f32 %v450_v35, %v1912_v13  ;;  %v453_v25 = vunpack.c.l.bf16 %v1692_v4 }
  0x1e   : > { %v354_v19 = vsel %vm332_vm2, %v352_v7, %v353_v8  ;;  %v454_v29 = vmul.f32 %v450_v35, %v1914_v14  ;;  %v457_v30 = vunpack.c.l.bf16 %v1693_v9  ;;  %v461_v31 = vunpack.c.l.bf16 %v1694_v26 }
  0x1f   : > { %v335_v28 = vsel %vm332_vm2, %v333_v12, %v334_v17  ;;  %v339_v34 = vrot.slane %v329_v18, 7  ;;  %v455_v36 = vmul.f32 %v453_v25, %v1914_v14  ;;  %v459_v37 = vmul.f32 %v453_v25, %v1916_v15  ;;  %v1703_v25 = vld [vmem:[%s1910_s27 + $0x14] sm:$0x1] }
  0x20   : > { %v337_v33 = vadd.f32 %v335_v28, %v308_v62  ;;  %v458_v40 = vmul.f32 %v457_v30, %v1916_v15  ;;  %v462_v42 = vmul.f32 %v461_v31, %v1918_v16  ;;  %v464_v43 = vunpack.c.l.bf16 %v1695_v27 }
  0x21   : > { %v465_v44 = vmul.f32 %v461_v31, %v1923_v20  ;;  %v341_v45 = vadd.f32 %v339_v34, %v321_v10  ;;  %v342_v35 = vadd.f32 %v339_v34, %v322_v6  ;;  %v468_v46 = vunpack.c.l.bf16 %v1696_v32  ;;  %v1987_v6 = vld [vmem:[%s2242_s2] ss:$0 sm:$0xff] }
  0x22   : > { %v473_v47 = vunpack.c.h.bf16 %v1694_v26  ;;  %v466_v48 = vmul.f32 %v464_v43, %v1923_v20  ;;  %v470_v49 = vmul.f32 %v464_v43, %v1925_v21  ;;  %v476_v50 = vunpack.c.l.bf16 %v1698_v38  ;;  %v1704_v26 = vld [vmem:[%s1910_s27 + $0x10] sm:$0xe] }
  0x23   : > { %v480_v51 = vunpack.c.l.bf16 %v1699_v39  ;;  %v345_v52 = vrot.slane %v341_v45, 1  ;;  %v346_v53 = vrot.slane %v342_v35, 1  ;;  %v469_v54 = vmul.f32 %v468_v46, %v1925_v21  ;;  %v1706_v39 = vld [vmem:[%s1910_s27 + $0x1c] sm:$0x1]  ;;  %v2001_v35 = vld [vmem:[%s1910_s27 + $0x18] ss:$8 sps:$4 sm:$0xff]  }
  0x24   : > { %v474_v55 = vmul.f32 %v473_v47, %v1927_v22  ;;  %v477_v56 = vmul.f32 %v473_v47, %v1929_v23  ;;  %v478_v57 = vmul.f32 %v476_v50, %v1929_v23  ;;  %v482_v59 = vmul.f32 %v1943_v41, %v476_v50  ;;  %v1709_v46 = vld [vmem:[%s1910_s27 + $0x24] sm:$0x1] }
  0x25   : > { %v481_v58 = vmul.f32 %v1943_v41, %v480_v51  ;;  %v347_v60 = vsel %vm303_vm1, %v345_v52, %v346_v53  ;;  %v485_v61 = vrot.slane %v454_v29, 1  ;;  %v486_v62 = vrot.slane %v455_v36, 1 }
  0x26   : > { %v491_v63 = vrot.slane %v462_v42, 6  ;;  %v349_v1 = vadd.f32 %v347_v60, %v337_v33  ;;  %v497_v3 = vrot.slane %v469_v54, 1  ;;  %v498_v4 = vrot.slane %v470_v49, 1 }
  0x27   : > { %v506_v5 = vrot.slane %v477_v56, 1  ;;  %v487_v7 = vsel %vm303_vm1, %v485_v61, %v486_v62  ;;  %v507_v10 = vrot.slane %v478_v57, 1  ;;  %v532_v33 = vrot.slane %v481_v58, 2 }
  0x28   : > { %v493_v8 = vadd.f32 %v491_v63, %v458_v40  ;;  %v494_v9 = vadd.f32 %v491_v63, %v459_v37  ;;  %v356_v11 = vadd.f32 %v354_v19, %v349_v1  ;;  %v489_v12 = vadd.f32 %v487_v7, %v451_v24  ;;  %v1702_v24 = vld [vmem:[%s1910_s27 + $0x10] ss:$8 sps:$4 sm:$0xff]  }
  0x29   : > { %v499_v17 = vsel %vm303_vm1, %v497_v3, %v498_v4  ;;  %v503_v18 = vadd.f32 %v498_v4, %v466_v48  ;;  %v508_v28 = vsel %vm303_vm1, %v506_v5, %v507_v10  ;;  %v533_v19 = vrot.slane %v482_v59, 2  ;;  %v1707_v40 = vld [vmem:[%s1910_s27 + $0x18] sm:$0xe]  ;;  %v1710_v59 = vld [vmem:[%s1910_s27 + $0x20] sm:$0xe] }
  0x2a   : > { %v502_v27 = vadd.f32 %v499_v17, %v465_v44  ;;  %v513_v29 = vrot.slane %v493_v8, 2  ;;  %v514_v30 = vrot.slane %v494_v9, 2  ;;  %v363_v31 = vadd.f32 %v1987_v6, %v356_v11 }
  0x2b   : > { %v510_v32 = vadd.f32 %v508_v28, %v474_v55  ;;  %v617_v36 = vunpack.c.l.bf16 %v1702_v24  ;;  %v620_v37 = vunpack.c.l.bf16 %v1703_v25  ;;  %v624_v38 = vunpack.c.l.bf16 %v1704_v26 }
  0x2c   : > { %v515_v34 = vsel %vm332_vm2, %v513_v29, %v514_v30  ;;  %v364_v42 = vmax.f32 %v363_v31, 0.0  ;;  %v534_v45 = vsel %vm332_vm2, %v532_v33, %v533_v19  ;;  %v628_v54 = vunpack.c.h.bf16 %v1702_v24 }
  0x2d   : > { %v517_v43 = vadd.f32 %v515_v34, %v489_v12  ;;  %v519_v44 = vrot.slane %v510_v32, 7  ;;  %v618_v47 = vmul.f32 %v617_v36, %v1912_v13  ;;  %v621_v48 = vmul.f32 %v617_v36, %v1914_v14  ;;  %v1714_v36 = vld [vmem:[%s1910_s27 + $0x1c] sm:$0x1] }
  0x2e   : > { %v622_v49 = vmul.f32 %v620_v37, %v1914_v14  ;;  %v625_v50 = vmul.f32 %v624_v38, %v1916_v15  ;;  %1790 = vmatmul.mubr.msk.f32.vlgmr.msra.gmra.mrb[0].mxu0 %vm371_vm3, %v364_v42  ;;  %v626_v53 = vmul.f32 %v620_v37, %v1916_v15  ;;  %v631_v55 = vunpack.c.l.bf16 %v1706_v39  ;;  %v1715_v42 = vld [vmem:[%s1910_s27 + $0x18] sm:$0xe] }
  0x2f   : > { %v521_v51 = vadd.f32 %v519_v44, %v502_v27  ;;  %v522_v52 = vadd.f32 %v519_v44, %v503_v18  ;;  %1798 = vmatpush3.msra.mxu0 %v1889_v0  ;;  %1799 = vmatprep.mubr.msk.f32.mxu0 %vm1847_vm0, %v1846_v2  ;;  %v635_v56 = vunpack.c.l.bf16 %v1707_v40  ;;  %v640_v57 = vunpack.c.h.bf16 %v2001_v35 }
  0x30   : > { %v643_v58 = vunpack.c.l.bf16 %v1709_v46  ;;  %1807 = vmatprep.subr.mxu0 %v1846_v2  ;;  %v629_v62 = vmul.f32 %v628_v54, %v1918_v16  ;;  %v632_v63 = vmul.f32 %v628_v54, %v1923_v20  ;;  %v633_v1 = vmul.f32 %v631_v55, %v1923_v20 }
  0x31   : > { %v525_v60 = vrot.slane %v521_v51, 1  ;;  %v526_v61 = vrot.slane %v522_v52, 1  ;;  %v636_v3 = vmul.f32 %v635_v56, %v1925_v21  ;;  %v637_v4 = vmul.f32 %v631_v55, %v1925_v21  ;;  %v1716_v51 = vld [vmem:[%s1910_s27 + $0x20] ss:$8 sps:$4 sm:$0xff]   ;;  %v1717_v52 = vld [vmem:[%s1910_s27 + $0x24] sm:$0x1] }
  0x32   : > { %v641_v5 = vmul.f32 %v640_v57, %v1927_v22  ;;  %v644_v8 = vmul.f32 %v640_v57, %v1929_v23  ;;  %v645_v9 = vmul.f32 %v643_v58, %v1929_v23  ;;  %v647_v10 = vunpack.c.l.bf16 %v1710_v59 }
  0x33   : > { %v527_v7 = vsel %vm303_vm1, %v525_v60, %v526_v61  ;;  %v649_v12 = vmul.f32 %v1943_v41, %v643_v58  ;;  %v652_v17 = vrot.slane %v621_v48, 1  ;;  %v653_v18 = vrot.slane %v622_v49, 1 }
  0x34   : > { %v529_v11 = vadd.f32 %v527_v7, %v517_v43  ;;  %v648_v25 = vmul.f32 %v1943_v41, %v647_v10  ;;  %v658_v26 = vrot.slane %v629_v62, 6  ;;  %v664_v27 = vrot.slane %v636_v3, 1  ;;  %v1720_v3 = vld [vmem:[%s1910_s27 + $0x2c] sm:$0x1] }
  0x35   : > { %v665_v28 = vrot.slane %v637_v4, 1  ;;  %v654_v30 = vsel %vm303_vm1, %v652_v17, %v653_v18  ;;  %v673_v31 = vrot.slane %v644_v8, 1  ;;  %v674_v32 = vrot.slane %v645_v9, 1  ;;  %v1721_v4 = vld [vmem:[%s1910_s27 + $0x28] sm:$0xe] }
  0x36   : > { %v536_v29 = vadd.f32 %v534_v45, %v529_v11  ;;  %v656_v33 = vadd.f32 %v654_v30, %v618_v47  ;;  %v660_v19 = vadd.f32 %v658_v26, %v625_v50  ;;  %v661_v24 = vadd.f32 %v658_v26, %v626_v53 }
  0x37   : > { %v666_v34 = vsel %vm303_vm1, %v664_v27, %v665_v28  ;;  %v670_v39 = vadd.f32 %v665_v28, %v633_v1  ;;  %v675_v40 = vsel %vm303_vm1, %v673_v31, %v674_v32  ;;  %v699_v46 = vrot.slane %v648_v25, 2 }
  0x38   : > { %v537_v37 = vadd.f32 %v1987_v6, %v536_v29  ;;  %v669_v38 = vadd.f32 %v666_v34, %v632_v63  ;;  %v677_v43 = vadd.f32 %v675_v40, %v641_v5  ;;  %v680_v44 = vrot.slane %v660_v19, 2 }
  0x39   : > { %v681_v45 = vrot.slane %v661_v24, 2  ;;  %v700_v48 = vrot.slane %v649_v12, 2  ;;  %v784_v49 = vunpack.c.l.bf16 %v2001_v35  ;;  %v787_v50 = vunpack.c.l.bf16 %v1714_v36  ;;  %v1718_v35 = vld [vmem:[%s1910_s27 + $0x20] sm:$0xe] }
  0x3a   : > { %v538_v47 = vmax.f32 %v537_v37, 0.0  ;;  %v686_v54 = vrot.slane %v677_v43, 7  ;;  %v791_v55 = vunpack.c.l.bf16 %v1715_v42  ;;  %v795_v56 = vunpack.c.l.bf16 %v1716_v51 }
  0x3b   : > { %v682_v53 = vsel %vm332_vm2, %v680_v44, %v681_v45  ;;  %v701_v58 = vsel %vm332_vm2, %v699_v46, %v700_v48  ;;  %v785_v59 = vmul.f32 %v784_v49, %v1912_v13  ;;  %v788_v60 = vmul.f32 %v784_v49, %v1914_v14  ;;  %v1724_v48 = vld [vmem:[%s1910_s27 + $0x20] ss:$8 sps:$4 sm:$0xff]  }
  0x3c   : > { %1795 = vmatmul.mubr.msk.f32.vlgmr.msra.gmra.mrb[0].mxu1 %vm371_vm3, %v538_v47  ;;  %v684_v57 = vadd.f32 %v682_v53, %v656_v33  ;;  %v688_v61 = vadd.f32 %v686_v54, %v669_v38  ;;  %v689_v62 = vadd.f32 %v686_v54, %v670_v39  ;;  %v789_v63 = vmul.f32 %v787_v50, %v1914_v14  ;;  %v1725_v53 = vld [vmem:[%s1910_s27 + $0x24] sm:$0x1]  ;;  %v1726_v54 = vld [vmem:[%s1910_s27 + $0x20] sm:$0xe] }
  0x3d   : > { %1803 = vmatpush3.msra.mxu1 %v1889_v0  ;;  %1804 = vmatprep.mubr.msk.f32.mxu1 %vm1847_vm0, %v1846_v2  ;;  %v798_v1 = vunpack.c.l.bf16 %v1717_v52  ;;  %v792_v5 = vmul.f32 %v791_v55, %v1916_v15  ;;  %v793_v7 = vmul.f32 %v787_v50, %v1916_v15  ;;  %v796_v8 = vmul.f32 %v795_v56, %v1918_v16 }
  0x3e   : > { %1812 = vmatprep.subr.mxu1 %v1846_v2  ;;  %v799_v9 = vmul.f32 %v795_v56, %v1923_v20  ;;  %v692_v10 = vrot.slane %v688_v61, 1  ;;  %v693_v11 = vrot.slane %v689_v62, 1  ;;  %v802_v17 = vunpack.c.l.bf16 %v1718_v35  ;;  %v1728_v62 = vld [vmem:[%s1910_s27 + $0x2c] sm:$0x1] }
  0x3f   : > { %v800_v12 = vmul.f32 %v798_v1, %v1923_v20  ;;  %v804_v18 = vmul.f32 %v798_v1, %v1925_v21  ;;  %v807_v25 = vunpack.c.h.bf16 %v1716_v51  ;;  %v810_v26 = vunpack.c.l.bf16 %v1720_v3 }
  0x40   : > { %v814_v27 = vunpack.c.l.bf16 %v1721_v4  ;;  %v694_v28 = vsel %vm303_vm1, %v692_v10, %v693_v11  ;;  %v803_v29 = vmul.f32 %v802_v17, %v1925_v21  ;;  %v819_v30 = vrot.slane %v788_v60, 1  ;;  %v1729_v10 = vld [vmem:[%s1910_s27 + $0x28] sm:$0xe] }
  0x41   : > { %v820_v31 = vrot.slane %v789_v63, 1  ;;  %v696_v32 = vadd.f32 %v694_v28, %v684_v57  ;;  %v808_v33 = vmul.f32 %v807_v25, %v1927_v22  ;;  %v811_v19 = vmul.f32 %v807_v25, %v1929_v23  ;;  %v1730_v25 = vld [vmem:[%s1910_s27 + $0x28] ss:$8 sps:$4 sm:$0xff]  }
  0x42   : > { %v812_v24 = vmul.f32 %v810_v26, %v1929_v23  ;;  %v815_v34 = vmul.f32 %v1943_v41, %v814_v27  ;;  %v816_v36 = vmul.f32 %v1943_v41, %v810_v26  ;;  %v825_v38 = vrot.slane %v796_v8, 6  ;;  %v1731_v26 = vld [vmem:[%s1910_s27 + $0x34] sm:$0x1] }
  0x43   : > { %v821_v37 = vsel %vm303_vm1, %v819_v30, %v820_v31  ;;  %v703_v39 = vadd.f32 %v701_v58, %v696_v32  ;;  %v831_v42 = vrot.slane %v803_v29, 1  ;;  %v832_v43 = vrot.slane %v804_v18, 1  ;;  %v1732_v31 = vld [vmem:[%s1910_s27 + $0x30] sm:$0xe] }
  0x44   : > { %v823_v40 = vadd.f32 %v821_v37, %v785_v59  ;;  %v827_v44 = vadd.f32 %v825_v38, %v792_v5  ;;  %v828_v45 = vadd.f32 %v825_v38, %v793_v7  ;;  %v840_v46 = vrot.slane %v811_v19, 1 }
  0x45   : > { %v841_v47 = vrot.slane %v812_v24, 1  ;;  %v704_v49 = vadd.f32 %v1987_v6, %v703_v39  ;;  %v833_v50 = vsel %vm303_vm1, %v831_v42, %v832_v43  ;;  %v837_v51 = vadd.f32 %v832_v43, %v800_v12 }
  0x46   : > { %v866_v52 = vrot.slane %v815_v34, 2  ;;  %v836_v55 = vadd.f32 %v833_v50, %v799_v9  ;;  %v847_v57 = vrot.slane %v827_v44, 2  ;;  %v848_v58 = vrot.slane %v828_v45, 2 }
  0x47   : > { %v842_v56 = vsel %vm303_vm1, %v840_v46, %v841_v47  ;;  %v705_v59 = vmax.f32 %v704_v49, 0.0  ;;  %v867_v35 = vrot.slane %v816_v36, 2  ;;  %v951_v61 = vunpack.c.l.bf16 %v1724_v48 }
  0x48   : > { %v844_v60 = vadd.f32 %v842_v56, %v808_v33  ;;  %v849_v63 = vsel %vm332_vm2, %v847_v57, %v848_v58  ;;  %v954_v1 = vunpack.c.l.bf16 %v1725_v53  ;;  %v958_v3 = vunpack.c.l.bf16 %v1726_v54 }
  0x49   : > { %v962_v4 = vunpack.c.h.bf16 %v1724_v48  ;;  %1800 = vmatmul.mubr.msk.f32.vlgmr.msra.gmra.mrb[2].mxu0 %vm371_vm3, %v705_v59  ;;  %v851_v5 = vadd.f32 %v849_v63, %v823_v40  ;;  %v868_v8 = vsel %vm332_vm2, %v866_v52, %v867_v35  ;;  %v952_v9 = vmul.f32 %v951_v61, %v1912_v13  ;;  %v1736_v63 = vld [vmem:[%s1910_s27 + $0x2c] sm:$0x1] }
  0x4a   : > { %v853_v7 = vrot.slane %v844_v60, 7  ;;  %1808 = vmatpush3.msra.mxu0 %v1889_v0  ;;  %1809 = vmatprep.mubr.msk.f32.mxu0 %vm1847_vm0, %v1846_v2  ;;  %v955_v11 = vmul.f32 %v951_v61, %v1914_v14  ;;  %v956_v12 = vmul.f32 %v954_v1, %v1914_v14  ;;  %v959_v17 = vmul.f32 %v958_v3, %v1916_v15 }
  0x4b   : > { %v965_v18 = vunpack.c.l.bf16 %v1728_v62  ;;  %1817 = vmatprep.subr.mxu0 %v1846_v2  ;;  %v960_v29 = vmul.f32 %v954_v1, %v1916_v15  ;;  %v963_v30 = vmul.f32 %v962_v4, %v1918_v16  ;;  %v966_v32 = vmul.f32 %v962_v4, %v1923_v20  ;;  %v1737_v1 = vld [vmem:[%s1910_s27 + $0x28] sm:$0xe] }
  0x4c   : > { %v855_v27 = vadd.f32 %v853_v7, %v836_v55  ;;  %v856_v28 = vadd.f32 %v853_v7, %v837_v51  ;;  %v969_v19 = vunpack.c.l.bf16 %v1729_v10  ;;  %v974_v37 = vunpack.c.h.bf16 %v1730_v25 }
  0x4d   : > { %v967_v33 = vmul.f32 %v965_v18, %v1923_v20  ;;  %v971_v24 = vmul.f32 %v965_v18, %v1925_v21  ;;  %v977_v38 = vunpack.c.l.bf16 %v1731_v26  ;;  %v981_v40 = vunpack.c.l.bf16 %v1732_v31 }
  0x4e   : > { %v859_v34 = vrot.slane %v855_v27, 1  ;;  %v860_v36 = vrot.slane %v856_v28, 1  ;;  %v970_v39 = vmul.f32 %v969_v19, %v1925_v21  ;;  %v986_v42 = vrot.slane %v955_v11, 1  ;;  %v1739_v28 = vld [vmem:[%s1910_s27 + $0x34] sm:$0x1] }
  0x4f   : > { %v987_v43 = vrot.slane %v956_v12, 1  ;;  %v975_v45 = vmul.f32 %v974_v37, %v1927_v22  ;;  %v978_v46 = vmul.f32 %v974_v37, %v1929_v23  ;;  %v979_v47 = vmul.f32 %v977_v38, %v1929_v23  ;;  %v1738_v12 = vld [vmem:[%s1910_s27 + $0x30] ss:$8 sps:$4 sm:$0xff]   ;;  %v1742_v19 = vld [vmem:[%s1910_s27 + $0x3c] sm:$0x1] }
  0x50   : > { %v861_v44 = vsel %vm303_vm1, %v859_v34, %v860_v36  ;;  %v982_v49 = vmul.f32 %v1943_v41, %v981_v40  ;;  %v983_v50 = vmul.f32 %v1943_v41, %v977_v38  ;;  %v992_v53 = vrot.slane %v963_v30, 6 }
  0x51   : > { %v863_v48 = vadd.f32 %v861_v44, %v851_v5  ;;  %v988_v51 = vsel %vm303_vm1, %v986_v42, %v987_v43  ;;  %v998_v54 = vrot.slane %v970_v39, 1  ;;  %v999_v55 = vrot.slane %v971_v24, 1  ;;  %v1743_v24 = vld [vmem:[%s1910_s27 + $0x38] sm:$0xe] }
  0x52   : > { %v990_v52 = vadd.f32 %v988_v51, %v952_v9  ;;  %v1007_v57 = vrot.slane %v978_v46, 1  ;;  %v1008_v58 = vrot.slane %v979_v47, 1  ;;  %v1033_v59 = vrot.slane %v982_v49, 2 }
  0x53   : > { %v870_v56 = vadd.f32 %v868_v8, %v863_v48  ;;  %v994_v60 = vadd.f32 %v992_v53, %v959_v17  ;;  %v995_v35 = vadd.f32 %v992_v53, %v960_v29  ;;  %v1000_v61 = vsel %vm303_vm1, %v998_v54, %v999_v55  ;;  %v1740_v29 = vld [vmem:[%s1910_s27 + $0x30] sm:$0xe] }
  0x54   : > { %v1004_v62 = vadd.f32 %v999_v55, %v967_v33  ;;  %v1003_v4 = vadd.f32 %v1000_v61, %v966_v32  ;;  %v1009_v5 = vsel %vm303_vm1, %v1007_v57, %v1008_v58  ;;  %v1034_v7 = vrot.slane %v983_v50, 2 }
  0x55   : > { %v871_v3 = vadd.f32 %v1987_v6, %v870_v56  ;;  %v1011_v8 = vadd.f32 %v1009_v5, %v975_v45  ;;  %v1014_v9 = vrot.slane %v994_v60, 2  ;;  %v1015_v10 = vrot.slane %v995_v35, 2 }
  0x56   : > { %v1118_v11 = vunpack.c.l.bf16 %v1730_v25  ;;  %v1035_v18 = vsel %vm332_vm2, %v1033_v59, %v1034_v7  ;;  %v1121_v26 = vunpack.c.l.bf16 %v1736_v63  ;;  %v1125_v27 = vunpack.c.l.bf16 %v1737_v1 }
  0x57   : > { %v872_v17 = vmax.f32 %v871_v3, 0.0  ;;  %v1016_v30 = vsel %vm332_vm2, %v1014_v9, %v1015_v10  ;;  %v1020_v31 = vrot.slane %v1011_v8, 7  ;;  %v1129_v40 = vunpack.c.l.bf16 %v1738_v12 }
  0x58   : > { %v1119_v32 = vmul.f32 %v1118_v11, %v1912_v13  ;;  %v1122_v33 = vmul.f32 %v1118_v11, %v1914_v14  ;;  %v1018_v25 = vadd.f32 %v1016_v30, %v990_v52  ;;  %v1123_v34 = vmul.f32 %v1121_v26, %v1914_v14 }
  0x59   : > { %1805 = vmatmul.mubr.msk.f32.vlgmr.msra.gmra.mrb[2].mxu1 %vm371_vm3, %v872_v17  ;;  %v1126_v36 = vmul.f32 %v1125_v27, %v1916_v15  ;;  %v1127_v37 = vmul.f32 %v1121_v26, %v1916_v15  ;;  %v1022_v38 = vadd.f32 %v1020_v31, %v1003_v4  ;;  %v1023_v39 = vadd.f32 %v1020_v31, %v1004_v62  ;;  %v1747_v17 = vld [vmem:[%s1910_s27 + $0x34] sm:$0x1]  ;;  %v1748_v26 = vld [vmem:[%s1910_s27 + $0x30] sm:$0xe] }
  0x5a   : > { %1813 = vmatpush3.msra.mxu1 %v1889_v0  ;;  %1814 = vmatprep.mubr.msk.f32.mxu1 %vm1847_vm0, %v1846_v2  ;;  %v1132_v42 = vunpack.c.l.bf16 %v1739_v28  ;;  %v1136_v43 = vunpack.c.l.bf16 %v1740_v29  ;;  %v1141_v44 = vunpack.c.h.bf16 %v1738_v12  ;;  %v1144_v45 = vunpack.c.l.bf16 %v1742_v19 }
  0x5b   : > { %1822 = vmatprep.subr.mxu1 %v1846_v2  ;;  %v1148_v46 = vunpack.c.l.bf16 %v1743_v24  ;;  %v1026_v47 = vrot.slane %v1022_v38, 1  ;;  %v1027_v48 = vrot.slane %v1023_v39, 1  ;;  %v1130_v49 = vmul.f32 %v1129_v40, %v1918_v16 }
  0x5c   : > { %v1133_v50 = vmul.f32 %v1129_v40, %v1923_v20  ;;  %v1134_v51 = vmul.f32 %v1132_v42, %v1923_v20  ;;  %v1137_v52 = vmul.f32 %v1136_v43, %v1925_v21  ;;  %v1138_v53 = vmul.f32 %v1132_v42, %v1925_v21  ;;  %v1751_v42 = vld [vmem:[%s1910_s27 + $0x38] sm:$0xe] }
  0x5d   : > { %v1142_v54 = vmul.f32 %v1141_v44, %v1927_v22  ;;  %v1028_v55 = vsel %vm303_vm1, %v1026_v47, %v1027_v48  ;;  %v1145_v56 = vmul.f32 %v1141_v44, %v1929_v23  ;;  %v1146_v57 = vmul.f32 %v1144_v45, %v1929_v23 }
  0x5e   : > { %v1149_v58 = vmul.f32 %v1943_v41, %v1148_v46  ;;  %v1030_v59 = vadd.f32 %v1028_v55, %v1018_v25  ;;  %v1150_v60 = vmul.f32 %v1943_v41, %v1144_v45  ;;  %v1153_v35 = vrot.slane %v1122_v33, 1 }
  0x5f   : > { %v1154_v61 = vrot.slane %v1123_v34, 1  ;;  %v1159_v62 = vrot.slane %v1130_v49, 6  ;;  %v1165_v63 = vrot.slane %v1137_v52, 1  ;;  %v1166_v1 = vrot.slane %v1138_v53, 1  ;;  %v1753_v52 = vld [vmem:[%s1910_s27 + $0x44] sm:$0x1] }
  0x60   : > { %v1174_v3 = vrot.slane %v1145_v56, 1  ;;  %v1037_v4 = vadd.f32 %v1035_v18, %v1030_v59  ;;  %v1175_v7 = vrot.slane %v1146_v57, 1  ;;  %v1200_v8 = vrot.slane %v1149_v58, 2  ;;  %v1746_v18 = vld [vmem:[%s1910_s27 + $0x30] ss:$8 sps:$4 sm:$0xff]  }
  0x61   : > { %v1155_v5 = vsel %vm303_vm1, %v1153_v35, %v1154_v61  ;;  %v1161_v10 = vadd.f32 %v1159_v62, %v1126_v36  ;;  %v1162_v11 = vadd.f32 %v1159_v62, %v1127_v37  ;;  %v1167_v12 = vsel %vm303_vm1, %v1165_v63, %v1166_v1  ;;  %v1750_v37 = vld [vmem:[%s1910_s27 + $0x3c] sm:$0x1]  ;;  %v1754_v53 = vld [vmem:[%s1910_s27 + $0x40] sm:$0xe] }
  0x62   : > { %v1157_v9 = vadd.f32 %v1155_v5, %v1119_v32  ;;  %v1038_v27 = vadd.f32 %v1987_v6, %v1037_v4  ;;  %v1170_v28 = vadd.f32 %v1167_v12, %v1133_v50  ;;  %v1171_v29 = vadd.f32 %v1166_v1, %v1134_v51  ;;  %v2150_v51 = vld [vmem:[%s1910_s27 + $0x38] ss:$8 sps:$4 sm:$0xff]  }
  0x63   : > { %v1176_v30 = vsel %vm303_vm1, %v1174_v3, %v1175_v7  ;;  %v1181_v33 = vrot.slane %v1161_v10, 2  ;;  %v1182_v19 = vrot.slane %v1162_v11, 2  ;;  %v1201_v24 = vrot.slane %v1150_v60, 2 }
  0x64   : > { %v1178_v31 = vadd.f32 %v1176_v30, %v1142_v54  ;;  %v1039_v32 = vmax.f32 %v1038_v27, 0.0  ;;  %v1285_v25 = vunpack.c.l.bf16 %v1746_v18  ;;  %v1288_v34 = vunpack.c.l.bf16 %v1747_v17 }
  0x65   : > { %v1292_v36 = vunpack.c.l.bf16 %v1748_v26  ;;  %v1183_v38 = vsel %vm332_vm2, %v1181_v33, %v1182_v19  ;;  %v1296_v40 = vunpack.c.h.bf16 %v1746_v18  ;;  %v1202_v44 = vsel %vm332_vm2, %v1200_v8, %v1201_v24 }
  0x66   : > { %v1187_v39 = vrot.slane %v1178_v31, 7  ;;  %1810 = vmatmul.mubr.msk.f32.vlgmr.msra.gmra.mrb[4].mxu0 %vm371_vm3, %v1039_v32  ;;  %v1185_v43 = vadd.f32 %v1183_v38, %v1157_v9  ;;  %v1286_v45 = vmul.f32 %v1285_v25, %v1912_v13  ;;  %v1289_v46 = vmul.f32 %v1285_v25, %v1914_v14 }
  0x67   : > { %1818 = vmatpush3.msra.mxu0 %v1889_v0  ;;  %1819 = vmatprep.mubr.msk.f32.mxu0 %vm1847_vm0, %v1846_v2  ;;  %v1290_v49 = vmul.f32 %v1288_v34, %v1914_v14  ;;  %v1299_v50 = vunpack.c.l.bf16 %v1750_v37  ;;  %v1293_v54 = vmul.f32 %v1292_v36, %v1916_v15  ;;  %v1294_v55 = vmul.f32 %v1288_v34, %v1916_v15  ;;  %v1758_v36 = vld [vmem:[%s1910_s27 + $0x3c] sm:$0x1] }
  0x68   : > { %v1189_v47 = vadd.f32 %v1187_v39, %v1170_v28  ;;  %v1190_v48 = vadd.f32 %v1187_v39, %v1171_v29  ;;  %v1297_v56 = vmul.f32 %v1296_v40, %v1918_v16  ;;  %v1303_v57 = vunpack.c.l.bf16 %v1751_v42  ;;  %v1759_v42 = vld [vmem:[%s1910_s27 + $0x38] sm:$0xe] }
  0x69   : > { %v1300_v60 = vmul.f32 %v1296_v40, %v1923_v20  ;;  %v1305_v35 = vmul.f32 %v1299_v50, %v1925_v21  ;;  %v1308_v62 = vunpack.c.h.bf16 %v2150_v51  ;;  %v1311_v63 = vunpack.c.l.bf16 %v1753_v52 }
  0x6a   : > { %v1193_v58 = vrot.slane %v1189_v47, 1  ;;  %v1194_v59 = vrot.slane %v1190_v48, 1  ;;  %v1304_v61 = vmul.f32 %v1303_v57, %v1925_v21  ;;  %v1315_v1 = vunpack.c.l.bf16 %v1754_v53  ;;  %v1761_v48 = vld [vmem:[%s1910_s27 + $0x44] sm:$0x1]  ;;  %v1760_v53 = vld [vmem:[%s1910_s27 + $0x40] ss:$8 sps:$4 sm:$0xff]  }
  0x6b   : > { %v1320_v4 = vrot.slane %v1289_v46, 1  ;;  %v1321_v5 = vrot.slane %v1290_v49, 1  ;;  %v1326_v7 = vrot.slane %v1297_v56, 6  ;;  %v1301_v9 = vmul.f32 %v1299_v50, %v1923_v20  ;;  %v1762_v49 = vld [vmem:[%s1910_s27 + $0x40] sm:$0xe] }
  0x6c   : > { %v1195_v3 = vsel %vm303_vm1, %v1193_v58, %v1194_v59  ;;  %v1312_v10 = vmul.f32 %v1308_v62, %v1929_v23  ;;  %v1313_v11 = vmul.f32 %v1311_v63, %v1929_v23  ;;  %v1309_v12 = vmul.f32 %v1308_v62, %v1927_v22 }
  0x6d   : > { %v1197_v8 = vadd.f32 %v1195_v3, %v1185_v43  ;;  %v1316_v17 = vmul.f32 %v1943_v41, %v1315_v1  ;;  %v1322_v26 = vsel %vm303_vm1, %v1320_v4, %v1321_v5  ;;  %v1328_v27 = vadd.f32 %v1326_v7, %v1293_v54 }
  0x6e   : > { %v1317_v29 = vmul.f32 %v1943_v41, %v1311_v63  ;;  %v1329_v30 = vadd.f32 %v1326_v7, %v1294_v55  ;;  %v1332_v18 = vrot.slane %v1304_v61, 1  ;;  %v1333_v31 = vrot.slane %v1305_v35, 1 }
  0x6f   : > { %v1204_v28 = vadd.f32 %v1202_v44, %v1197_v8  ;;  %v1341_v33 = vrot.slane %v1312_v10, 1  ;;  %v1342_v19 = vrot.slane %v1313_v11, 1  ;;  %v1348_v24 = vrot.slane %v1328_v27, 2 }
  0x70   : > { %v1324_v25 = vadd.f32 %v1322_v26, %v1286_v45  ;;  %v1349_v34 = vrot.slane %v1329_v30, 2  ;;  %v1334_v37 = vsel %vm303_vm1, %v1332_v18, %v1333_v31  ;;  %v1338_v38 = vadd.f32 %v1333_v31, %v1301_v9  ;;  %v1765_v9 = vld [vmem:[%s1910_s27 + $0x48] sm:$0xe] }
  0x71   : > { %v1205_v32 = vadd.f32 %v1987_v6, %v1204_v28  ;;  %v1343_v39 = vsel %vm303_vm1, %v1341_v33, %v1342_v19  ;;  %v1452_v40 = vunpack.c.l.bf16 %v2150_v51  ;;  %v1337_v44 = vadd.f32 %v1334_v37, %v1300_v60  ;;  %v1764_v60 = vld [vmem:[%s1910_s27 + $0x4c] sm:$0x1] }
  0x72   : > { %v1345_v46 = vadd.f32 %v1343_v39, %v1309_v12  ;;  %v1350_v47 = vsel %vm332_vm2, %v1348_v24, %v1349_v34  ;;  %v1367_v45 = vrot.slane %v1316_v17, 2  ;;  %v1368_v50 = vrot.slane %v1317_v29, 2 }
  0x73   : > { %v1206_v43 = vmax.f32 %v1205_v32, 0.0  ;;  %v1455_v52 = vunpack.c.l.bf16 %v1758_v36  ;;  %v1459_v55 = vunpack.c.l.bf16 %v1759_v42  ;;  %v1463_v56 = vunpack.c.l.bf16 %v1760_v53 }
  0x74   : > { %v1354_v54 = vrot.slane %v1345_v46, 7  ;;  %v1352_v51 = vadd.f32 %v1350_v47, %v1324_v25  ;;  %v1456_v57 = vmul.f32 %v1452_v40, %v1914_v14  ;;  %v1466_v58 = vunpack.c.l.bf16 %v1761_v48 }
  0x75   : > { %1815 = vmatmul.mubr.msk.f32.vlgmr.msra.gmra.mrb[4].mxu1 %vm371_vm3, %v1206_v43  ;;  %v1470_v59 = vunpack.c.l.bf16 %v1762_v49  ;;  %v1457_v62 = vmul.f32 %v1455_v52, %v1914_v14  ;;  %v1464_v63 = vmul.f32 %v1463_v56, %v1918_v16  ;;  %v1369_v1 = vsel %vm332_vm2, %v1367_v45, %v1368_v50 }
  0x76   : > { %1823 = vmatpush3.msra.mxu1 %v1889_v0  ;;  %1824 = vmatprep.mubr.msk.f32.mxu1 %vm1847_vm0, %v1846_v2  ;;  %v1356_v35 = vadd.f32 %v1354_v54, %v1337_v44  ;;  %v1357_v61 = vadd.f32 %v1354_v54, %v1338_v38  ;;  %v1460_v0 = vmul.f32 %v1459_v55, %v1916_v15  ;;  %v1475_v7 = vunpack.c.h.bf16 %v1760_v53 }
  0x77   : > { %v1461_v3 = vmul.f32 %v1455_v52, %v1916_v15  ;;  %v1471_v2 = vmul.f32 %v1470_v59, %v1925_v21  ;;  %v1478_v8 = vunpack.c.l.bf16 %v1764_v60  ;;  %v1453_v10 = vmul.f32 %v1452_v40, %v1912_v13  ;;  %v1689_v59 = vld [vmem:[%s2244_s4] ss:$0 sm:$0xff] }
  0x78   : > { %v1360_v4 = vrot.slane %v1356_v35, 1  ;;  %v1361_v5 = vrot.slane %v1357_v61, 1  ;;  %v1472_v11 = vmul.f32 %v1466_v58, %v1925_v21  ;;  %v1487_v14 = vrot.slane %v1456_v57, 1 }
  0x79   : > { %v1493_v12 = vrot.slane %v1464_v63, 6  ;;  %v1479_v17 = vmul.f32 %v1475_v7, %v1929_v23  ;;  %v1480_v26 = vmul.f32 %v1478_v8, %v1929_v23  ;;  %v1488_v15 = vrot.slane %v1457_v62, 1 }
  0x7a   : > { %v1362_v16 = vsel %vm303_vm1, %v1360_v4, %v1361_v5  ;;  %v1467_v28 = vmul.f32 %v1463_v56, %v1923_v20  ;;  %v1468_v29 = vmul.f32 %v1466_v58, %v1923_v20  ;;  %v1482_v30 = vunpack.c.l.bf16 %v1765_v9 }
  0x7b   : > { %v1364_v27 = vadd.f32 %v1362_v16, %v1352_v51  ;;  %v1476_v18 = vmul.f32 %v1475_v7, %v1927_v22  ;;  %v1495_v13 = vadd.f32 %v1493_v12, %v1460_v0  ;;  %v1496_v31 = vadd.f32 %v1493_v12, %v1461_v3 }
  0x7c   : > { %v1499_v21 = vrot.slane %v1471_v2, 1  ;;  %v1500_v19 = vrot.slane %v1472_v11, 1  ;;  %v1508_v24 = vrot.slane %v1479_v17, 1  ;;  %v1509_v32 = vrot.slane %v1480_v26, 1 }
  0x7d   : > { %v1371_v33 = vadd.f32 %v1369_v1, %v1364_v27  ;;  %v1489_v25 = vsel %vm303_vm1, %v1487_v14, %v1488_v15  ;;  %v1515_v34 = vrot.slane %v1495_v13, 2  ;;  %v1516_v23 = vrot.slane %v1496_v31, 2 }
  0x7e   : > { %v1483_v37 = vmul.f32 %v1943_v41, %v1482_v30  ;;  %v1501_v20 = vsel %vm303_vm1, %v1499_v21, %v1500_v19  ;;  %v1510_v38 = vsel %vm303_vm1, %v1508_v24, %v1509_v32  ;;  %v1484_v22 = vmul.f32 %v1943_v41, %v1478_v8 }
  0x7f   : > { %v1372_v36 = vadd.f32 %v1987_v6, %v1371_v33  ;;  %v1504_v39 = vadd.f32 %v1501_v20, %v1467_v28  ;;  %v1505_v40 = vadd.f32 %v1500_v19, %v1468_v29  ;;  %v1512_v42 = vadd.f32 %v1510_v38, %v1476_v18 }
  0x80   : > { %v1491_v44 = vadd.f32 %v1489_v25, %v1453_v10  ;;  %v1517_v46 = vsel %vm332_vm2, %v1515_v34, %v1516_v23  ;;  %v1534_v45 = vrot.slane %v1483_v37, 2  ;;  %v1535_v50 = vrot.slane %v1484_v22, 2 }
  0x81   : > { %v1373_v43 = vmax.f32 %v1372_v36, 0.0  ;;  %v1521_v47 = vrot.slane %v1512_v42, 7 }
  0x82   : > { %v1519_v52 = vadd.f32 %v1517_v46, %v1491_v44  ;;  %v1536_v55 = vsel %vm332_vm2, %v1534_v45, %v1535_v50 }
  0x83   : > { %1820 = vmatmul.mubr.msk.f32.vlgmr.msra.gmra.mrb[6].mxu0 %vm371_vm3, %v1373_v43  ;;  %v1523_v48 = vadd.f32 %v1521_v47, %v1504_v39  ;;  %v1524_v49 = vadd.f32 %v1521_v47, %v1505_v40 }
  0x85   : > { %v1527_v53 = vrot.slane %v1523_v48, 1  ;;  %v1528_v54 = vrot.slane %v1524_v49, 1 }
  0x87   : > { %v1529_v41 = vsel %vm303_vm1, %v1527_v53, %v1528_v54 }
  0x88   : > { %v1531_v56 = vadd.f32 %v1529_v41, %v1519_v52 }
  0x8a   : > { %v1538_v51 = vadd.f32 %v1536_v55, %v1531_v56 }
  0x8c   : > { %v1539_v57 = vadd.f32 %v1987_v6, %v1538_v51 }
  0x8e   : > { %v1540_v58 = vmax.f32 %v1539_v57, 0.0 }
  0x90   : > { %1825 = vmatmul.mubr.msk.f32.vlgmr.msra.gmra.mrb[6].mxu1 %vm371_vm3, %v1540_v58 }
 0x101   : > { %v441_v60 = vpop.f32.mrb[0].mxu0 }
 0x102   : > { %v442_v35 = vadd.f32 %v1689_v59, %v441_v60  ;;  %v1791_v61 = vpop.f32.mrb[1].mxu0 }
 0x104   : > { %v445_v62 = vmax.f32 %v442_v35, 0.0 }
 0x106   : > { %v446_v6 = vpack.c.bf16 %v445_v62, %v445_v62 }
 0x108   : > { %448 = vst.msk [vmem:[%s2219_s12] sm:$0xf] %vm447_vm4, %v446_v6 }
 0x10f   : > { %v608_v63 = vpop.f32.mrb[0].mxu1 }
 0x110   : > { %v609_v1 = vadd.f32 %v1689_v59, %v608_v63  ;;  %v1796_v0 = vpop.f32.mrb[1].mxu1 }
 0x112   : > { %v612_v3 = vmax.f32 %v609_v1, 0.0 }
 0x114   : > { %v613_v2 = vpack.c.bf16 %v612_v3, %v612_v3 }
 0x116   : > { %1701 = vst.msk [vmem:[%s2219_s12 + $0x4] sm:$0xf] %vm447_vm4, %v613_v2 }
 0x11c   : > { %v775_v4 = vpop.f32.mrb[2].mxu0 }
 0x11d   : > { %v776_v5 = vadd.f32 %v1689_v59, %v775_v4  ;;  %v1801_v7 = vpop.f32.mrb[3].mxu0 }
 0x11f   : > { %v779_v8 = vmax.f32 %v776_v5, 0.0 }
 0x121   : > { %v780_v9 = vpack.c.bf16 %v779_v8, %v779_v8 }
 0x123   : > { %1712 = vst.msk [vmem:[%s2219_s12 + $0x8] sm:$0xf] %vm447_vm4, %v780_v9 }
 0x12c   : > { %v942_v10 = vpop.f32.mrb[2].mxu1 }
 0x12d   : > { %v943_v11 = vadd.f32 %v1689_v59, %v942_v10  ;;  %v1806_v14 = vpop.f32.mrb[3].mxu1 }
 0x12f   : > { %v946_v12 = vmax.f32 %v943_v11, 0.0 }
 0x131   : > { %v947_v16 = vpack.c.bf16 %v946_v12, %v946_v12 }
 0x133   : > { %1723 = vst.msk [vmem:[%s2219_s12 + $0xc] sm:$0xf] %vm447_vm4, %v947_v16 }
 0x139   : > { %v1109_v17 = vpop.f32.mrb[4].mxu0 }
 0x13a   : > { %v1110_v26 = vadd.f32 %v1689_v59, %v1109_v17  ;;  %v1811_v15 = vpop.f32.mrb[5].mxu0 }
 0x13c   : > { %v1113_v27 = vmax.f32 %v1110_v26, 0.0 }
 0x13e   : > { %v1114_v28 = vpack.c.bf16 %v1113_v27, %v1113_v27 }
 0x140   : > { %1734 = vst.msk [vmem:[%s2219_s12 + $0x10] sm:$0xf] %vm447_vm4, %v1114_v28 }
 0x148   : > { %v1276_v29 = vpop.f32.mrb[4].mxu1 }
 0x149   : > { %v1277_v30 = vadd.f32 %v1689_v59, %v1276_v29  ;;  %v1816_v18 = vpop.f32.mrb[5].mxu1 }
 0x14b   : > { %v1280_v13 = vmax.f32 %v1277_v30, 0.0 }
 0x14d   : > { %v1281_v31 = vpack.c.bf16 %v1280_v13, %v1280_v13 }
 0x14f   : > { %1745 = vst.msk [vmem:[%s2219_s12 + $0x14] sm:$0xf] %vm447_vm4, %v1281_v31 }
 0x156   : > { %v1443_v21 = vpop.f32.mrb[6].mxu0 }
 0x157   : > { %v1444_v33 = vadd.f32 %v1689_v59, %v1443_v21  ;;  %v1821_v19 = vpop.f32.mrb[7].mxu0 }
 0x159   : > { %v1447_v24 = vmax.f32 %v1444_v33, 0.0 }
 0x15b   : > { %v1448_v32 = vpack.c.bf16 %v1447_v24, %v1447_v24 }
 0x15d   : > { %1756 = vst.msk [vmem:[%s2219_s12 + $0x18] sm:$0xf] %vm447_vm4, %v1448_v32 }
 0x163   : > { %v1610_v25 = vpop.f32.mrb[6].mxu1 }
 0x164   : > { %v1611_v34 = vadd.f32 %v1689_v59, %v1610_v25  ;;  %v1826_v23 = vpop.f32.mrb[7].mxu1 }
 0x166   : > { %v1614_v36 = vmax.f32 %v1611_v34, 0.0 }
 0x168   : > { %v1615_v37 = vpack.c.bf16 %v1614_v36, %v1614_v36 }
 0x16a   : > { %1767 = vst.msk [vmem:[%s2219_s12 + $0x1c] sm:$0xf] %vm447_vm4, %v1615_v37 }
 0x16b PF: > { %s15_s18 = sadd.s32 1, %s1844_s18  }
 0x16c   : > { %p12_p4 = scmp.ge.s32.totalorder %s15_s18, 4  }
 0x16e   :  { %14 = sbr.rel (!%p12_p4) target bundleno = 1 (0x1), region = 86 }

// kernel: _lambda_.19
= control target key start
LH: loop header
LB: loop body
LE: loop exit
PB: predicated region body
PF: predicated region fallthrough
CT: control target
= control target key end

     0   :  { %s764_s18 = smov 0   ;;  %s833_s0 = inlined_call_operand.vmem [shape: bf16[2,4,4,32], index: 0, kind: input, shape index: {}]   ;;  %s834_s1 = inlined_call_operand.vmem [shape: f32[9,32], index: 1, kind: input, shape index: {}]   ;;  %s835_s2 = inlined_call_operand.vmem [shape: f32[1,32], index: 2, kind: input, shape index: {}]   ;;  %s836_s3 = inlined_call_operand.vmem [shape: f32[32,32], index: 3, kind: input, shape index: {}]   ;;  %s837_s4 = inlined_call_operand.vmem [shape: f32[1,32], index: 4, kind: input, shape index: {}]   ;;  %s838_s5 = inlined_call_operand.vmem [shape: bf16[2,2,2,32], index: 5, kind: output, shape index: {}]  }
   0x1 LB: > { %s624_s19 = sadd.s32 4294967295, %s729_s18   ;;  %p628_p0 = scmp.ge.s32.totalorder %s729_s18, 1  ;;  %s729_s18 = sphi %s764_s18, %s15_s18  }
   0x2   : > { %p187_p1 = scmp.lt.s32.totalorder %s729_s18, 3 }
   0x4   : > { %p188_p2 = pnand %p628_p0, %p187_p1 }
   0x5   : > { %v226_v0 = vld [vmem:[%s836_s3] sm:$0xff] (!%p188_p2)  ;;  %v227_v1 = vld [vmem:[%s836_s3 + $0x8] sm:$0xff] (!%p188_p2)  ;;  %v228_v2 = vld [vmem:[%s836_s3 + $0x10] sm:$0xff] (!%p188_p2)  ;;  %v233_v3 = vlaneseq (!%p188_p2)  ;;  %v731_v4 = vmov (!%p188_p2), 0.0|0.0   ;;  %p214_p3 = scmp.lt.s32.totalorder (!%p188_p2), %s624_s19, 1  ;;  %vm732_vm0 = vmmov (!%p188_p2), 0  }
   0x6   : > { %191 = sbr.rel (%p188_p2) target bundleno = 267 (0x10b), region = 40  ;;  %700 = vmatprep.subr.bf16.mxu0 (!%p188_p2), %v731_v4  ;;  %706 = vmatprep.subr.bf16.mxu1 (!%p188_p2), %v731_v4  ;;  %v701_v5 = vpack.c.bf16 (!%p188_p2), %v227_v1, %v226_v0  ;;  %v229_v6 = vld [vmem:[%s836_s3 + $0x18] sm:$0xff] (!%p188_p2)  ;;  %v733_v7 = vmov (!%p188_p2), 0.0   ;;  %v223_v14 = vld [vmem:[%s834_s1] sm:$0xff] (!%p188_p2)  ;;  %v638_v1 = vld [vmem:[%s834_s1 + $0x8] ss:$0 sm:$0xff] (!%p188_p2) }
   0x7   : > { %686 = vmatprep.mubr.msk.f32.mxu0 (!%p188_p2), %vm732_vm0, %v733_v7  ;;  %697 = vmatprep.mubr.msk.f32.mxu1 (!%p188_p2), %vm732_vm0, %v733_v7  ;;  %v234_v8 = vshrl.u32 (!%p188_p2), %v233_v3, 7  ;;  %v704_v9 = vpack.c.bf16 (!%p188_p2), %v229_v6, %v228_v2  ;;  %vm348_vm1 = vcmask (!%p188_p2), 261120   ;;  %vm424_vm2 = vcmask (!%p188_p2), 253952  }
   0x8   : > { %702 = vmatpush3.bf16.msra.mxu0 (!%p188_p2), %v701_v5  ;;  %708 = vmatpush3.bf16.msra.mxu1 (!%p188_p2), %v701_v5 }
   0x9   : > { %703 = vmatprep.subr.bf16.mxu0 (!%p188_p2), %v731_v4  ;;  %709 = vmatprep.subr.bf16.mxu1 (!%p188_p2), %v731_v4  ;;  %v235_v10 = vsub.s32 (!%p188_p2), 0, %v234_v8  ;;  %v242_v11 = vsub.s32 (!%p188_p2), 1, %v234_v8  ;;  %v249_v12 = vsub.s32 (!%p188_p2), 2, %v234_v8  ;;  %v257_v13 = vsub.s32 (!%p188_p2), 3, %v234_v8 }
   0xa   : > { %v264_v15 = vsub.s32 (!%p188_p2), 4, %v234_v8  ;;  %v271_v16 = vsub.s32 (!%p188_p2), 5, %v234_v8  ;;  %v279_v17 = vsub.s32 (!%p188_p2), 6, %v234_v8  ;;  %v286_v18 = vsub.s32 (!%p188_p2), 7, %v234_v8 }
   0xb   : > { %v795_v19 = vrot.slane (!%p188_p2), %v223_v14, %v235_v10  ;;  %v243_v20 = vrot.slane (!%p188_p2), %v223_v14, %v242_v11  ;;  %v250_v21 = vrot.slane (!%p188_p2), %v223_v14, %v249_v12  ;;  %v258_v25 = vrot.slane (!%p188_p2), %v223_v14, %v257_v13 }
   0xc   : > { %705 = vmatpush3.bf16.msra.mxu0 (!%p188_p2), %v704_v9  ;;  %711 = vmatpush3.bf16.msra.mxu1 (!%p188_p2), %v704_v9  ;;  %v265_v26 = vrot.slane (!%p188_p2), %v223_v14, %v264_v15  ;;  %v272_v27 = vrot.slane (!%p188_p2), %v223_v14, %v271_v16  ;;  %v280_v34 = vrot.slane (!%p188_p2), %v223_v14, %v279_v17 }
   0xd   : > { %s840_s19 = smov (!%p214_p3, %s624_s19), 1  ;;  %v287_v40 = vrot.slane %v223_v14, %v286_v18 }
   0xe   : > { %s667_s28 = sshll.u32 %s840_s19, 3  ;;  %s631_s15 = sshll.u32 %s840_s19, 1 }
   0xf   : > { %s793_s8 = scalar_lea.vmem %s833_s0, %s667_s28  ;;  %s222_s20 = scalar_lea.vmem %s838_s5, %s631_s15 }
  0x10   : > { %v231_v22 = vld [vmem:[%s793_s8] sm:$0x1]  ;;  %v245_v24 = vld [vmem:[%s793_s8] sm:$0x2]  ;;  %v632_v31 = vld [vmem:[%s793_s8 + $0x2] sm:$0x1] }
  0x11   : > { %v238_v23 = vld [vmem:[%s793_s8] sm:$0x3]  ;;  %v232_v28 = vunpack.c.l.bf16 %v231_v22  ;;  %v246_v30 = vunpack.c.l.bf16 %v245_v24  ;;  %v633_v32 = vld [vmem:[%s793_s8 + $0x2] sm:$0x3]  ;;  %v254_v35 = vunpack.c.l.bf16 %v632_v31  ;;  %v635_v38 = vld [vmem:[%s793_s8 + $0x4] sm:$0x1] }
  0x12   : > { %v239_v29 = vunpack.c.l.bf16 %v238_v23  ;;  %v634_v33 = vld [vmem:[%s793_s8 + $0x2] sm:$0x2]  ;;  %v261_v36 = vunpack.c.l.bf16 %v633_v32  ;;  %v636_v39 = vld [vmem:[%s793_s8 + $0x4] sm:$0x3]  ;;  %v276_v43 = vunpack.c.l.bf16 %v635_v38  ;;  %v648_v54 = vld [vmem:[%s793_s8 + $0x2] sm:$0x1] }
  0x13   : > { %v268_v37 = vunpack.c.l.bf16 %v634_v33  ;;  %v237_v41 = vmul.f32 %v795_v19, %v232_v28  ;;  %v649_v44 = vld [vmem:[%s793_s8 + $0x2] sm:$0x3]  ;;  %v251_v45 = vmul.f32 %v250_v21, %v246_v30  ;;  %v259_v46 = vmul.f32 %v258_v25, %v254_v35  ;;  %v637_v49 = vld [vmem:[%s793_s8 + $0x4] sm:$0x2]  ;;  %v651_v59 = vld [vmem:[%s793_s8 + $0x4] sm:$0x1] }
  0x14   : > { %v244_v42 = vmul.f32 %v243_v20, %v239_v29  ;;  %v283_v48 = vunpack.c.l.bf16 %v636_v39  ;;  %v650_v50 = vld [vmem:[%s793_s8 + $0x2] sm:$0x2]  ;;  %v266_v51 = vmul.f32 %v265_v26, %v261_v36  ;;  %v281_v52 = vmul.f32 %v280_v34, %v276_v43  ;;  %v652_v60 = vld [vmem:[%s793_s8 + $0x4] sm:$0x3]  ;;  %v654_v0 = vld [vmem:[%s793_s8 + $0x6] sm:$0x1] }
  0x15   : > { %v273_v47 = vmul.f32 %v272_v27, %v268_v37  ;;  %v302_v56 = vrot.slane %v259_v46, 6  ;;  %v430_v58 = vunpack.c.l.bf16 %v649_v44  ;;  %v290_v61 = vunpack.c.l.bf16 %v637_v49  ;;  %v653_v63 = vld [vmem:[%s793_s8 + $0x4] sm:$0x2]  ;;  %v655_v6 = vld [vmem:[%s793_s8 + $0x6] sm:$0x3] }
  0x16   : > { %v639_v53 = vrot.slane %v244_v42, 9  ;;  %v288_v55 = vmul.f32 %v287_v40, %v283_v48  ;;  %v433_v62 = vunpack.c.l.bf16 %v650_v50  ;;  %v427_v5 = vunpack.c.l.bf16 %v648_v54  ;;  %v656_v29 = vld [vmem:[%s793_s8 + $0x6] sm:$0x2] }
  0x17   : > { %v640_v57 = vrot.slane %v273_v47, 9  ;;  %v304_v3 = vadd.f32 %v302_v56, %v251_v45  ;;  %v431_v8 = vmul.f32 %v430_v58, %v243_v20  ;;  %v436_v9 = vunpack.c.l.bf16 %v651_v59 }
  0x18   : > { %v300_v2 = vadd.f32 %v639_v53, %v237_v41  ;;  %v641_v4 = vrot.slane %v288_v55, 9  ;;  %v439_v10 = vunpack.c.l.bf16 %v652_v60  ;;  %v442_v13 = vunpack.c.l.bf16 %v653_v63  ;;  %v646_v55 = vld [vmem:[%s837_s4] ss:$0 sm:$0xff] }
  0x19   : > { %v309_v7 = vadd.f32 %v640_v57, %v266_v51  ;;  %v642_v12 = vrot.slane %v304_v3, 10  ;;  %v446_v14 = vunpack.c.l.bf16 %v654_v0  ;;  %v295_v15 = vmul.f32 %v638_v1, %v290_v61 }
  0x1a   : > { %v314_v11 = vadd.f32 %v641_v4, %v281_v52  ;;  %v434_v16 = vmul.f32 %v433_v62, %v250_v21  ;;  %v437_v17 = vmul.f32 %v436_v9, %v258_v25  ;;  %v449_v18 = vunpack.c.l.bf16 %v655_v6 }
  0x1b   : > { %v428_v23 = vmul.f32 %v427_v5, %v795_v19  ;;  %v440_v24 = vmul.f32 %v439_v10, %v265_v26  ;;  %v443_v28 = vmul.f32 %v442_v13, %v272_v27  ;;  %v447_v30 = vmul.f32 %v446_v14, %v280_v34  ;;  %v645_v26 = vld [vmem:[%s835_s2] ss:$0 sm:$0xff] }
  0x1c   : > { %v321_v22 = vrot.slane %v314_v11, 7  ;;  %v450_v31 = vmul.f32 %v449_v18, %v287_v40  ;;  %v657_v32 = vrot.slane %v431_v8, 9  ;;  %v460_v20 = vrot.slane %v437_v17, 6 }
  0x1d   : > { %v319_v33 = vadd.f32 %v642_v12, %v300_v2  ;;  %v658_v36 = vrot.slane %v443_v28, 9  ;;  %v452_v37 = vunpack.c.l.bf16 %v656_v29  ;;  %v644_v21 = vrot.slane %v295_v15, 10 }
  0x1e   : > { %v323_v35 = vadd.f32 %v321_v22, %v309_v7  ;;  %v462_v38 = vadd.f32 %v460_v20, %v434_v16  ;;  %v659_v39 = vrot.slane %v450_v31, 9  ;;  %v458_v25 = vadd.f32 %v657_v32, %v428_v23 }
  0x1f   : > { %v467_v42 = vadd.f32 %v658_v36, %v440_v24  ;;  %v453_v27 = vmul.f32 %v638_v1, %v452_v37 }
  0x20   : > { %v643_v41 = vrot.slane %v323_v35, 9  ;;  %v472_v43 = vadd.f32 %v659_v39, %v447_v30  ;;  %v660_v44 = vrot.slane %v462_v38, 10 }
  0x21   : > { %v662_v49 = vrot.slane %v453_v27, 10 }
  0x22   : > { %v328_v19 = vadd.f32 %v643_v41, %v319_v33  ;;  %v479_v34 = vrot.slane %v472_v43, 7  ;;  %v477_v45 = vadd.f32 %v660_v44, %v458_v25 }
  0x24   : > { %v333_v40 = vadd.f32 %v644_v21, %v328_v19  ;;  %v481_v46 = vadd.f32 %v479_v34, %v467_v42 }
  0x26   : > { %v340_v47 = vadd.f32 %v645_v26, %v333_v40  ;;  %v661_v48 = vrot.slane %v481_v46, 9 }
  0x28   : > { %v341_v50 = vmax.f32 %v340_v47, 0.0  ;;  %v486_v51 = vadd.f32 %v661_v48, %v477_v45 }
  0x2a   : > { %687 = vmatmul.mubr.msk.f32.vlgmr.msra.gmra.mrb[0].mxu0 %vm348_vm1, %v341_v50  ;;  %v491_v52 = vadd.f32 %v662_v49, %v486_v51 }
  0x2c   : > { %v492_v53 = vadd.f32 %v645_v26, %v491_v52 }
  0x2e   : > { %v493_v54 = vmax.f32 %v492_v53, 0.0 }
  0x30   : > { %698 = vmatmul.mubr.msk.f32.vlgmr.msra.gmra.mrb[0].mxu1 %vm348_vm1, %v493_v54 }
  0xfd   : > { %v418_v56 = vpop.f32.mrb[0].mxu0 }
  0xfe   : > { %v419_v57 = vadd.f32 %v646_v55, %v418_v56  ;;  %v688_v58 = vpop.f32.mrb[1].mxu0 }
 0x100   : > { %v422_v59 = vmax.f32 %v419_v57, 0.0 }
 0x102   : > { %v423_v60 = vpack.c.bf16 %v422_v59, %v422_v59 }
 0x103   : > { %v563_v61 = vpop.f32.mrb[0].mxu1 }
 0x104   : > { %425 = vst.msk [vmem:[%s222_s20] sm:$0x1] %vm424_vm2, %v423_v60  ;;  %v564_v62 = vadd.f32 %v646_v55, %v563_v61  ;;  %v699_v63 = vpop.f32.mrb[1].mxu1 }
 0x106   : > { %v567_v0 = vmax.f32 %v564_v62, 0.0 }
 0x108   : > { %v568_v1 = vpack.c.bf16 %v567_v0, %v567_v0 }
 0x10a   : > { %664 = vst.msk [vmem:[%s222_s20 + $0x1] sm:$0x1] %vm424_vm2, %v568_v1 }
 0x10b PF: > { %s15_s18 = sadd.s32 1, %s729_s18  }
 0x10c   : > { %p12_p4 = scmp.ge.s32.totalorder %s15_s18, 4  }
 0x10e   :  { %14 = sbr.rel (!%p12_p4) target bundleno = 1 (0x1), region = 74 }

// kernel: _lambda_.20
= control target key start
LH: loop header
LB: loop body
LE: loop exit
PB: predicated region body
PF: predicated region fallthrough
CT: control target
= control target key end

     0   :  { %s603_s21 = smov 0   ;;  %s651_s0 = inlined_call_operand.vmem [shape: bf16[2,4,2,32], index: 0, kind: input, shape index: {}]   ;;  %s652_s1 = inlined_call_operand.vmem [shape: bf16[2,4,2,32], index: 1, kind: input, shape index: {}]   ;;  %s653_s2 = inlined_call_operand.vmem [shape: f32[9,32], index: 2, kind: input, shape index: {}]   ;;  %s654_s3 = inlined_call_operand.vmem [shape: f32[1,32], index: 3, kind: input, shape index: {}]   ;;  %s655_s4 = inlined_call_operand.vmem [shape: f32[32,64], index: 4, kind: input, shape index: {}]   ;;  %s656_s5 = inlined_call_operand.vmem [shape: f32[1,64], index: 5, kind: input, shape index: {}]   ;;  %s657_s6 = inlined_call_operand.vmem [shape: bf16[2,1,1,64], index: 6, kind: output, shape index: {}]  }
   0x1 LB: > { %s501_s22 = sadd.s32 4294967295, %s562_s21   ;;  %p505_p0 = scmp.ge.s32.totalorder %s562_s21, 1  ;;  %s562_s21 = sphi %s603_s21, %s16_s21  }
   0x2   : > { %p220_p1 = scmp.lt.s32.totalorder %s562_s21, 3 }
   0x4   : > { %p221_p2 = pnand %p505_p0, %p220_p1 }
   0x5   : > { %v265_v0 = vld [vmem:[%s655_s4] sm:$0xff] (!%p221_p2)  ;;  %v266_v1 = vld [vmem:[%s655_s4 + $0x8] sm:$0xff] (!%p221_p2)  ;;  %v267_v2 = vld [vmem:[%s655_s4 + $0x10] sm:$0xff] (!%p221_p2)  ;;  %v279_v3 = vlaneseq (!%p221_p2)  ;;  %v564_v4 = vmov (!%p221_p2), 0.0|0.0   ;;  %vm565_vm0 = vmmov (!%p221_p2), 0   ;;  %v566_v7 = vmov (!%p221_p2), 0.0  }
   0x6   : > { %224 = sbr.rel (%p221_p2) target bundleno = 260 (0x104), region = 44  ;;  %537 = vmatprep.subr.bf16.mxu0 (!%p221_p2), %v564_v4  ;;  %v538_v5 = vpack.c.bf16 (!%p221_p2), %v266_v1, %v265_v0  ;;  %v268_v6 = vld [vmem:[%s655_s4 + $0x18] sm:$0xff] (!%p221_p2)  ;;  %534 = vmatprep.mubr.msk.f32.mxu0 (!%p221_p2), %vm565_vm0, %v566_v7  ;;  %p251_p3 = scmp.lt.s32.totalorder (!%p221_p2), %s501_s22, 1  ;;  %v567_v9 = vmov (!%p221_p2), 1983009808   ;;  %v262_v12 = vld [vmem:[%s653_s2] sm:$0xff] (!%p221_p2) }
   0x7   : > { %v541_v8 = vpack.c.bf16 (!%p221_p2), %v268_v6, %v267_v2  ;;  %v277_v10 = vunpack.c.l.s4 (!%p221_p2), %v567_v9  ;;  %v280_v11 = vshrl.u32 (!%p221_p2), %v279_v3, 7  ;;  %v300_v14 = vcombine.high (!%p221_p2), %v262_v12, %v262_v12  ;;  %v514_v31 = vld.sshfl [vmem:[%s653_s2 + $0x8] sm:$0x1 pattern:$0x76325410] (!%p221_p2) }
   0x8   : > { %539 = vmatpush3.bf16.msra.mxu0 (!%p221_p2), %v538_v5  ;;  %v332_v42 = vrot.slane (!%p221_p2), %v514_v31, 7  ;;  %v264_v58 = vld [vmem:[%s654_s3] sm:$0x1] (!%p221_p2)  ;;  %vm360_vm1 = vcmask (!%p221_p2), 261120   ;;  %vm436_vm2 = vcmask (!%p221_p2), 516096  }
   0x9   : > { %540 = vmatprep.subr.bf16.mxu0 (!%p221_p2), %v564_v4  ;;  %v278_v13 = vunpack.c.0.s8 (!%p221_p2), %v277_v10  ;;  %v269_v62 = vld [vmem:[%s656_s5] sm:$0x1] (!%p221_p2)  ;;  %vm437_vm3 = vsmask.f32 (!%p221_p2), 256 }
   0xa   : > { %vm438_vm4 = vmand (!%p221_p2), %vm436_vm2, %vm437_vm3 }
   0xb   : > { %v281_v15 = vsub.s32 (!%p221_p2), %v278_v13, %v280_v11 }
   0xc   : > { %542 = vmatpush3.bf16.msra.mxu0 (!%p221_p2), %v541_v8 }
   0xd   : > { %s659_s22 = smov (!%p251_p3, %s501_s22), 1  ;;  %v282_v19 = vrot.slane %v262_v12, %v281_v15  ;;  %v307_v21 = vrot.slane %v300_v14, %v281_v15 }
   0xe   : > { %s506_s9 = sshll.u32 %s659_s22, 2  ;;  %s261_s26 = scalar_lea.vmem %s657_s6, %s659_s22 }
   0xf   : > { %s254_s12 = scalar_lea.vmem %s651_s0, %s506_s9  ;;  %s258_s15 = scalar_lea.vmem %s652_s1, %s506_s9  ;;  %v287_v25 = vcombine.high %v282_v19, %v282_v19  ;;  %v314_v29 = vcombine.high %v307_v21, %v307_v21  ;;  %v508_v34 = vrot.slane %v282_v19, 9  ;;  %v439_v3 = vld [vmem:[%s261_s26] sm:$0x1] }
  0x10   : > { %v509_v16 = vld [vmem:[%s254_s12 + $0x1] sm:$0x1]  ;;  %v511_v18 = vld [vmem:[%s254_s12 + $0x2] sm:$0x1]  ;;  %v270_v23 = vld [vmem:[%s254_s12] sm:$0x1] }
  0x11   : > { %v510_v17 = vld [vmem:[%s258_s15 + $0x1] sm:$0x1]  ;;  %v293_v20 = vunpack.c.l.bf16 %v509_v16  ;;  %v512_v22 = vld [vmem:[%s258_s15 + $0x2] sm:$0x1]  ;;  %v273_v24 = vld [vmem:[%s258_s15] sm:$0x1]  ;;  %v313_v28 = vunpack.c.l.bf16 %v511_v18  ;;  %v271_v32 = vunpack.c.l.bf16 %v270_v23 }
  0x12   : > { %v299_v26 = vunpack.c.l.bf16 %v510_v17  ;;  %v319_v30 = vunpack.c.l.bf16 %v512_v22  ;;  %v274_v33 = vunpack.c.l.bf16 %v273_v24  ;;  %v288_v35 = vrot.slane %v287_v25, 7 }
  0x13   : > { %v310_v27 = vmul.f32 %v307_v21, %v293_v20  ;;  %v513_v36 = vrot.slane %v314_v29, 9  ;;  %v316_v39 = vmul.f32 %v314_v29, %v313_v28  ;;  %v272_v43 = vmul.f32 %v271_v32, %v262_v12 }
  0x14   : > { %v294_v37 = vrot.slane %v288_v35, 2  ;;  %v309_v38 = vmul.f32 %v307_v21, %v299_v26  ;;  %v286_v44 = vmul.f32 %v508_v34, %v274_v33  ;;  %v290_v45 = vmul.f32 %v288_v35, %v271_v32 }
  0x15   : > { %v515_v40 = vrot.slane %v310_v27, 9  ;;  %v323_v41 = vmul.f32 %v513_v36, %v319_v30  ;;  %v334_v50 = vmul.f32 %v332_v42, %v313_v28 }
  0x16   : > { %v296_v46 = vmul.f32 %v294_v37, %v293_v20  ;;  %v335_v51 = vadd.f32 %v286_v44, %v272_v43 }
  0x17   : > { %v344_v48 = vadd.f32 %v515_v40, %v309_v38  ;;  %v345_v49 = vadd.f32 %v323_v41, %v316_v39  ;;  %v517_v56 = vrot.slane %v334_v50, 9 }
  0x18   : > { %v337_v47 = vrot.slane %v296_v46, 7 }
  0x19   : > { %v351_v54 = vadd.f32 %v345_v49, %v344_v48 }
  0x1a   : > { %v339_v52 = vadd.f32 %v337_v47, %v290_v45 }
  0x1c   : > { %v516_v53 = vrot.slane %v339_v52, 9 }
  0x1e   : > { %v350_v55 = vadd.f32 %v516_v53, %v335_v51 }
  0x20   : > { %v352_v57 = vadd.f32 %v351_v54, %v350_v55 }
  0x22   : > { %v357_v59 = vadd.f32 %v517_v56, %v352_v57 }
  0x24   : > { %v358_v60 = vadd.f32 %v357_v59, %v264_v58 }
  0x26   : > { %v359_v61 = vmax.f32 %v358_v60, 0.0 }
  0x28   : > { %535 = vmatmul.mubr.msk.f32.vlgmr.msra.gmra.mrb[0].mxu0 %vm360_vm1, %v359_v61 }
  0xfb   : > { %v430_v63 = vpop.f32.mrb[0].mxu0 }
  0xfc   : > { %v431_v0 = vadd.f32 %v430_v63, %v269_v62  ;;  %v536_v1 = vpop.f32.mrb[1].mxu0 }
  0xfe   : > { %v434_v2 = vmax.f32 %v431_v0, 0.0 }
 0x100   : > { %v435_v4 = vpack.c.bf16 %v434_v2, %v434_v2 }
 0x102   : > { %v440_v5 = vsel %vm438_vm4, %v435_v4, %v439_v3 }
 0x103   : > { %441 = vst [vmem:[%s261_s26] sm:$0x1] %v440_v5 }
 0x104 PF: > { %s16_s21 = sadd.s32 1, %s562_s21  }
 0x105   : > { %p13_p4 = scmp.ge.s32.totalorder %s16_s21, 4  }
 0x107   :  { %15 = sbr.rel (!%p13_p4) target bundleno = 1 (0x1), region = 81 }

// kernel: _lambda_.18
= control target key start
LH: loop header
LB: loop body
LE: loop exit
PB: predicated region body
PF: predicated region fallthrough
CT: control target
= control target key end

     0   :  { %s777_s21 = smov 0   ;;  %s841_s0 = inlined_call_operand.vmem [shape: bf16[2,6,3,16], index: 0, kind: input, shape index: {}]   ;;  %s842_s1 = inlined_call_operand.vmem [shape: bf16[2,6,3,16], index: 1, kind: input, shape index: {}]   ;;  %s843_s2 = inlined_call_operand.vmem [shape: f32[9,16], index: 2, kind: input, shape index: {}]   ;;  %s844_s3 = inlined_call_operand.vmem [shape: f32[1,16], index: 3, kind: input, shape index: {}]   ;;  %s845_s4 = inlined_call_operand.vmem [shape: f32[16,32], index: 4, kind: input, shape index: {}]   ;;  %s846_s5 = inlined_call_operand.vmem [shape: f32[1,32], index: 5, kind: input, shape index: {}]   ;;  %s847_s6 = inlined_call_operand.vmem [shape: bf16[2,2,2,32], index: 6, kind: output, shape index: {}]  }
   0x1 LB: > { %s656_s22 = sadd.s32 4294967295, %s737_s21   ;;  %p660_p0 = scmp.ge.s32.totalorder %s737_s21, 1  ;;  %s737_s21 = sphi %s777_s21, %s16_s21  }
   0x2   : > { %p222_p1 = scmp.lt.s32.totalorder %s737_s21, 3 }
   0x4   : > { %p223_p2 = pnand %p660_p0, %p222_p1 }
   0x5   : > { %v273_v0 = vld [vmem:[%s845_s4] sm:$0xff] (!%p223_p2)  ;;  %v274_v1 = vld [vmem:[%s845_s4 + $0x8] sm:$0xff] (!%p223_p2)  ;;  %p256_p3 = scmp.lt.s32.totalorder (!%p223_p2), %s656_s22, 1  ;;  %v278_v2 = vlaneseq (!%p223_p2)  ;;  %v739_v3 = vmov (!%p223_p2), 0.0|0.0   ;;  %vm740_vm0 = vmmov (!%p223_p2), 0   ;;  %v741_v5 = vmov (!%p223_p2), 0.0  }
   0x6   : > { %226 = sbr.rel (%p223_p2) target bundleno = 264 (0x108), region = 44  ;;  %713 = vmatprep.subr.bf16.mxu0 (!%p223_p2), %v739_v3  ;;  %716 = vmatprep.subr.bf16.mxu1 (!%p223_p2), %v739_v3  ;;  %v714_v4 = vpack.c.bf16 (!%p223_p2), %v274_v1, %v273_v0  ;;  %v270_v7 = vld [vmem:[%s843_s2] sm:$0xff] (!%p223_p2)  ;;  %v670_v45 = vld [vmem:[%s843_s2 + $0x8] ss:$0 sm:$0xff] (!%p223_p2)  ;;  %vm380_vm1 = vcmask (!%p223_p2), 130048   ;;  %vm456_vm2 = vcmask (!%p223_p2), 253952  }
   0x7   : > { %703 = vmatprep.mubr.msk.f32.mxu0 (!%p223_p2), %vm740_vm0, %v741_v5  ;;  %710 = vmatprep.mubr.msk.f32.mxu1 (!%p223_p2), %vm740_vm0, %v741_v5  ;;  %v279_v6 = vshrl.u32 (!%p223_p2), %v278_v2, 7 }
   0x8   : > { %715 = vmatpush3.bf16.msra.mxu0 (!%p223_p2), %v714_v4  ;;  %718 = vmatpush3.bf16.msra.mxu1 (!%p223_p2), %v714_v4 }
   0x9   : > { %v280_v8 = vsub.s32 (!%p223_p2), 0, %v279_v6  ;;  %v287_v9 = vsub.s32 (!%p223_p2), 1, %v279_v6  ;;  %v294_v10 = vsub.s32 (!%p223_p2), 2, %v279_v6  ;;  %v302_v11 = vsub.s32 (!%p223_p2), 3, %v279_v6 }
   0xa   : > { %v310_v12 = vsub.s32 (!%p223_p2), 4, %v279_v6  ;;  %v317_v13 = vsub.s32 (!%p223_p2), 5, %v279_v6  ;;  %v325_v14 = vsub.s32 (!%p223_p2), 6, %v279_v6  ;;  %v333_v15 = vsub.s32 (!%p223_p2), 7, %v279_v6 }
   0xb   : > { %v281_v16 = vrot.slane (!%p223_p2), %v270_v7, %v280_v8  ;;  %v288_v17 = vrot.slane (!%p223_p2), %v270_v7, %v287_v9  ;;  %v295_v18 = vrot.slane (!%p223_p2), %v270_v7, %v294_v10  ;;  %v303_v22 = vrot.slane (!%p223_p2), %v270_v7, %v302_v11 }
   0xc   : > { %v311_v23 = vrot.slane (!%p223_p2), %v270_v7, %v310_v12  ;;  %v318_v24 = vrot.slane (!%p223_p2), %v270_v7, %v317_v13  ;;  %v326_v31 = vrot.slane (!%p223_p2), %v270_v7, %v325_v14  ;;  %v334_v37 = vrot.slane (!%p223_p2), %v270_v7, %v333_v15 }
   0xd   : > { %s849_s22 = smov (!%p256_p3, %s656_s22), 1 }
   0xe   : > { %s719_s27 = smul.u32 12, %s849_s22  ;;  %s663_s18 = sshll.u32 %s849_s22, 1 }
   0xf   : > { %s269_s23 = scalar_lea.vmem %s847_s6, %s663_s18 }
  0x10   : > { %s800_s8 = scalar_lea.vmem %s841_s0, %s719_s27  ;;  %s805_s11 = scalar_lea.vmem %s842_s1, %s719_s27 }
  0x11   : > { %v276_v19 = vld [vmem:[%s800_s8] sm:$0x1]  ;;  %v664_v28 = vld [vmem:[%s800_s8 + $0x2] sm:$0x1]  ;;  %v667_v35 = vld [vmem:[%s800_s8 + $0x4] sm:$0x1] }
  0x12   : > { %v283_v20 = vld [vmem:[%s805_s11] sm:$0x1]  ;;  %v277_v25 = vunpack.c.l.bf16 %v276_v19  ;;  %v665_v29 = vld [vmem:[%s805_s11 + $0x2] sm:$0x1]  ;;  %v299_v32 = vunpack.c.l.bf16 %v664_v28  ;;  %v668_v36 = vld [vmem:[%s805_s11 + $0x4] sm:$0x1]  ;;  %v322_v42 = vunpack.c.l.bf16 %v667_v35 }
  0x13   : > { %v290_v21 = vld [vmem:[%s800_s8] sm:$0x3]  ;;  %v284_v26 = vunpack.c.l.bf16 %v283_v20  ;;  %v666_v30 = vld [vmem:[%s800_s8 + $0x2] sm:$0x3]  ;;  %v307_v33 = vunpack.c.l.bf16 %v665_v29  ;;  %v669_v38 = vld [vmem:[%s800_s8 + $0x4] sm:$0x3]  ;;  %v330_v49 = vunpack.c.l.bf16 %v668_v36 }
  0x14   : > { %v291_v27 = vunpack.c.l.bf16 %v290_v21  ;;  %v314_v34 = vunpack.c.l.bf16 %v666_v30  ;;  %v282_v39 = vmul.f32 %v281_v16, %v277_v25  ;;  %v677_v43 = vld [vmem:[%s800_s8 + $0x4] sm:$0x1]  ;;  %v304_v46 = vmul.f32 %v303_v22, %v299_v32  ;;  %v680_v51 = vld [vmem:[%s800_s8 + $0x6] sm:$0x1]  ;;  %v683_v1 = vld [vmem:[%s800_s8 + $0x8] sm:$0x1] }
  0x15   : > { %v289_v40 = vmul.f32 %v288_v17, %v284_v26  ;;  %v678_v44 = vld [vmem:[%s805_s11 + $0x4] sm:$0x1]  ;;  %v312_v47 = vmul.f32 %v311_v23, %v307_v33  ;;  %v327_v52 = vmul.f32 %v326_v31, %v322_v42  ;;  %v337_v53 = vunpack.c.l.bf16 %v669_v38  ;;  %v681_v59 = vld [vmem:[%s805_s11 + $0x6] sm:$0x1]  ;;  %v684_v6 = vld [vmem:[%s805_s11 + $0x8] sm:$0x1] }
  0x16   : > { %v296_v41 = vmul.f32 %v295_v18, %v291_v27  ;;  %v319_v48 = vmul.f32 %v318_v24, %v314_v34  ;;  %v679_v50 = vld [vmem:[%s800_s8 + $0x4] sm:$0x3]  ;;  %v459_v54 = vunpack.c.l.bf16 %v677_v43  ;;  %v335_v55 = vmul.f32 %v334_v37, %v330_v49  ;;  %v682_v0 = vld [vmem:[%s800_s8 + $0x6] sm:$0x3]  ;;  %v685_v7 = vld [vmem:[%s800_s8 + $0x8] sm:$0x3] }
  0x17   : > { %v345_v56 = vrot.slane %v304_v46, 7  ;;  %v462_v58 = vunpack.c.l.bf16 %v678_v44  ;;  %v342_v60 = vmul.f32 %v670_v45, %v337_v53  ;;  %v343_v61 = vadd.f32 %v289_v40, %v282_v39  ;;  %v675_v44 = vld [vmem:[%s846_s5] ss:$0 sm:$0xff] }
  0x18   : > { %v671_v57 = vrot.slane %v319_v48, 9  ;;  %v465_v62 = vunpack.c.l.bf16 %v679_v50  ;;  %v469_v63 = vunpack.c.l.bf16 %v680_v51  ;;  %v353_v4 = vadd.f32 %v335_v55, %v327_v52 }
  0x19   : > { %v347_v2 = vadd.f32 %v345_v56, %v296_v41  ;;  %v460_v5 = vmul.f32 %v459_v54, %v281_v16  ;;  %v463_v8 = vmul.f32 %v462_v58, %v288_v17  ;;  %v473_v11 = vunpack.c.l.bf16 %v681_v59 }
  0x1a   : > { %v352_v3 = vadd.f32 %v671_v57, %v312_v47  ;;  %v466_v9 = vmul.f32 %v465_v62, %v295_v18  ;;  %v470_v10 = vmul.f32 %v469_v63, %v303_v22  ;;  %v476_v14 = vunpack.c.l.bf16 %v682_v0  ;;  %v674_v22 = vld [vmem:[%s844_s3] ss:$0 sm:$0xff] }
  0x1b   : > { %v672_v12 = vrot.slane %v347_v2, 9  ;;  %v480_v15 = vunpack.c.l.bf16 %v683_v1  ;;  %v673_v19 = vrot.slane %v342_v60, 9  ;;  %v474_v20 = vmul.f32 %v473_v11, %v311_v23 }
  0x1c   : > { %v359_v13 = vadd.f32 %v353_v4, %v352_v3  ;;  %v484_v21 = vunpack.c.l.bf16 %v684_v6  ;;  %v487_v25 = vunpack.c.l.bf16 %v685_v7  ;;  %v477_v27 = vmul.f32 %v476_v14, %v318_v24 }
  0x1d   : > { %v358_v26 = vadd.f32 %v672_v12, %v343_v61  ;;  %v481_v28 = vmul.f32 %v480_v15, %v326_v31  ;;  %v491_v29 = vrot.slane %v470_v10, 7  ;;  %v489_v16 = vadd.f32 %v463_v8, %v460_v5 }
  0x1e   : > { %v485_v30 = vmul.f32 %v484_v21, %v334_v37  ;;  %v488_v33 = vmul.f32 %v670_v45, %v487_v25  ;;  %v686_v18 = vrot.slane %v477_v27, 9 }
  0x1f   : > { %v360_v32 = vadd.f32 %v359_v13, %v358_v26  ;;  %v493_v17 = vadd.f32 %v491_v29, %v466_v9 }
  0x20   : > { %v499_v34 = vadd.f32 %v485_v30, %v481_v28  ;;  %v498_v36 = vadd.f32 %v686_v18, %v474_v20  ;;  %v688_v31 = vrot.slane %v488_v33, 9 }
  0x21   : > { %v365_v35 = vadd.f32 %v673_v19, %v360_v32  ;;  %v687_v23 = vrot.slane %v493_v17, 9 }
  0x22   : > { %v505_v24 = vadd.f32 %v499_v34, %v498_v36 }
  0x23   : > { %v372_v38 = vadd.f32 %v674_v22, %v365_v35  ;;  %v504_v39 = vadd.f32 %v687_v23, %v489_v16 }
  0x25   : > { %v373_v37 = vmax.f32 %v372_v38, 0.0  ;;  %v506_v40 = vadd.f32 %v505_v24, %v504_v39 }
  0x27   : > { %704 = vmatmul.mubr.msk.f32.vlgmr.msra.gmra.mrb[0].mxu0 %vm380_vm1, %v373_v37  ;;  %v511_v41 = vadd.f32 %v688_v31, %v506_v40 }
  0x29   : > { %v512_v42 = vadd.f32 %v674_v22, %v511_v41 }
  0x2b   : > { %v513_v43 = vmax.f32 %v512_v42, 0.0 }
  0x2d   : > { %711 = vmatmul.mubr.msk.f32.vlgmr.msra.gmra.mrb[0].mxu1 %vm380_vm1, %v513_v43 }
  0xfa   : > { %v450_v45 = vpop.f32.mrb[0].mxu0 }
  0xfb   : > { %v451_v46 = vadd.f32 %v675_v44, %v450_v45  ;;  %v705_v47 = vpop.f32.mrb[1].mxu0 }
  0xfd   : > { %v454_v48 = vmax.f32 %v451_v46, 0.0 }
  0xff   : > { %v455_v49 = vpack.c.bf16 %v454_v48, %v454_v48 }
 0x100   : > { %v583_v50 = vpop.f32.mrb[0].mxu1 }
 0x101   : > { %457 = vst.msk [vmem:[%s269_s23] sm:$0x1] %vm456_vm2, %v455_v49  ;;  %v584_v51 = vadd.f32 %v675_v44, %v583_v50  ;;  %v712_v52 = vpop.f32.mrb[1].mxu1 }
 0x103   : > { %v587_v53 = vmax.f32 %v584_v51, 0.0 }
 0x105   : > { %v588_v54 = vpack.c.bf16 %v587_v53, %v587_v53 }
 0x107   : > { %690 = vst.msk [vmem:[%s269_s23 + $0x1] sm:$0x1] %vm456_vm2, %v588_v54 }
 0x108 PF: > { %s16_s21 = sadd.s32 1, %s737_s21  }
 0x109   : > { %p13_p4 = scmp.ge.s32.totalorder %s16_s21, 4  }
 0x10b   :  { %15 = sbr.rel (!%p13_p4) target bundleno = 1 (0x1), region = 86 }

// kernel: _lambda_.21
= control target key start
LH: loop header
LB: loop body
LE: loop exit
PB: predicated region body
PF: predicated region fallthrough
CT: control target
= control target key end

     0   :  { %s551_s18 = smov 0   ;;  %s608_s0 = inlined_call_operand.vmem [shape: bf16[2,3,3,64], index: 0, kind: input, shape index: {}]   ;;  %s609_s1 = inlined_call_operand.vmem [shape: f32[9,64], index: 1, kind: input, shape index: {}]   ;;  %s610_s2 = inlined_call_operand.vmem [shape: f32[1,64], index: 2, kind: input, shape index: {}]   ;;  %s611_s3 = inlined_call_operand.vmem [shape: f32[64,64], index: 3, kind: input, shape index: {}]   ;;  %s612_s4 = inlined_call_operand.vmem [shape: f32[1,64], index: 4, kind: input, shape index: {}]   ;;  %s613_s5 = inlined_call_operand.vmem [shape: bf16[2,1,1,64], index: 5, kind: output, shape index: {}]  }
   0x1 LB: > { %s436_s19 = sadd.s32 4294967295, %s516_s18   ;;  %p440_p0 = scmp.ge.s32.totalorder %s516_s18, 1  ;;  %s516_s18 = sphi %s551_s18, %s15_s18  }
   0x2   : > { %p187_p1 = scmp.lt.s32.totalorder %s516_s18, 3 }
   0x4   : > { %p188_p2 = pnand %p440_p0, %p187_p1 }
   0x5   : > { %v224_v0 = vld [vmem:[%s611_s3] sm:$0xff] (!%p188_p2)  ;;  %v225_v1 = vld [vmem:[%s611_s3 + $0x8] sm:$0xff] (!%p188_p2)  ;;  %v226_v2 = vld [vmem:[%s611_s3 + $0x10] sm:$0xff] (!%p188_p2)  ;;  %v518_v3 = vmov (!%p188_p2), 0.0|0.0   ;;  %vm519_vm0 = vmmov (!%p188_p2), 0   ;;  %v520_v6 = vmov (!%p188_p2), 0.0  }
   0x6   : > { %191 = sbr.rel (%p188_p2) target bundleno = 261 (0x105), region = 40  ;;  %485 = vmatprep.subr.bf16.mxu0 (!%p188_p2), %v518_v3  ;;  %v486_v4 = vpack.c.bf16 (!%p188_p2), %v225_v1, %v224_v0  ;;  %v227_v5 = vld [vmem:[%s611_s3 + $0x18] sm:$0xff] (!%p188_p2)  ;;  %482 = vmatprep.mubr.msk.f32.mxu0 (!%p188_p2), %vm519_vm0, %v520_v6  ;;  %p213_p3 = scmp.lt.s32.totalorder (!%p188_p2), %s436_s19, 1  ;;  %v221_v7 = vld [vmem:[%s609_s1] sm:$0xff] (!%p188_p2)  ;;  %v229_v11 = vld [vmem:[%s611_s3 + $0x28] sm:$0xff] (!%p188_p2)  ;;  %vm307_vm1 = vcmask (!%p188_p2), 523264  }
   0x7   : > { %v489_v8 = vpack.c.bf16 (!%p188_p2), %v227_v5, %v226_v2  ;;  %v247_v9 = vcombine.high (!%p188_p2), %v221_v7, %v221_v7  ;;  %v228_v10 = vld [vmem:[%s611_s3 + $0x20] sm:$0xff] (!%p188_p2)  ;;  %v230_v13 = vld [vmem:[%s611_s3 + $0x30] sm:$0xff] (!%p188_p2)  ;;  %v231_v14 = vld [vmem:[%s611_s3 + $0x38] sm:$0xff] (!%p188_p2)  ;;  %v443_v15 = vrot.slane (!%p188_p2), %v221_v7, 11  ;;  %vm383_vm2 = vcmask (!%p188_p2), 516096  }
   0x8   : > { %487 = vmatpush3.bf16.msra.mxu0 (!%p188_p2), %v486_v4  ;;  %v492_v12 = vpack.c.bf16 (!%p188_p2), %v229_v11, %v228_v10  ;;  %v495_v28 = vpack.c.bf16 (!%p188_p2), %v231_v14, %v230_v13  ;;  %v222_v29 = vld [vmem:[%s609_s1 + $0x8] sm:$0x1] (!%p188_p2)  ;;  %v223_v55 = vld [vmem:[%s610_s2] sm:$0x1] (!%p188_p2)  ;;  %vm384_vm3 = vsmask.f32 (!%p188_p2), 256 }
   0x9   : > { %488 = vmatprep.subr.bf16.mxu0 (!%p188_p2), %v518_v3  ;;  %v248_v16 = vrot.slane (!%p188_p2), %v247_v9, 7  ;;  %v446_v17 = vrot.slane (!%p188_p2), %v247_v9, 10  ;;  %v264_v40 = vrot.slane (!%p188_p2), %v222_v29, 6  ;;  %v232_v59 = vld [vmem:[%s612_s4] sm:$0x1] (!%p188_p2)  ;;  %vm385_vm4 = vmand (!%p188_p2), %vm383_vm2, %vm384_vm3 }
   0xc   : > { %490 = vmatpush3.bf16.msra.mxu0 (!%p188_p2), %v489_v8 }
   0xd   : > { %s615_s19 = smov (!%p213_p3, %s436_s19), 1  ;;  %491 = vmatprep.subr.bf16.mxu0 %v518_v3 }
   0xe   : > { %s497_s9 = smul.u32 6, %s615_s19  ;;  %s220_s27 = scalar_lea.vmem %s613_s5, %s615_s19 }
   0xf   : > { %v386_v0 = vld [vmem:[%s220_s27] sm:$0x1] }
  0x10   : > { %s217_s16 = scalar_lea.vmem %s608_s0, %s497_s9  ;;  %493 = vmatpush3.bf16.msra.mxu0 %v492_v12 }
  0x11   : > { %v233_v18 = vld [vmem:[%s217_s16] sm:$0x1]  ;;  %v236_v19 = vld [vmem:[%s217_s16] sm:$0x2]  ;;  %v442_v20 = vld [vmem:[%s217_s16 + $0x2] sm:$0x1]  ;;  %494 = vmatprep.subr.bf16.mxu0 %v518_v3 }
  0x12   : > { %v234_v21 = vunpack.c.l.bf16 %v233_v18  ;;  %v237_v22 = vunpack.c.l.bf16 %v236_v19  ;;  %v241_v23 = vunpack.c.l.bf16 %v442_v20  ;;  %v444_v24 = vld [vmem:[%s217_s16 + $0x2] sm:$0x2]  ;;  %v445_v25 = vld [vmem:[%s217_s16 + $0x4] sm:$0x1]  ;;  %v447_v33 = vld [vmem:[%s217_s16 + $0x4] sm:$0x2] }
  0x13   : > { %v252_v26 = vunpack.c.l.bf16 %v444_v24  ;;  %v256_v27 = vunpack.c.l.bf16 %v445_v25  ;;  %v262_v39 = vunpack.c.l.bf16 %v447_v33 }
  0x14   : > { %v235_v30 = vmul.f32 %v234_v21, %v221_v7  ;;  %v238_v31 = vmul.f32 %v237_v22, %v221_v7  ;;  %v246_v32 = vmul.f32 %v443_v15, %v241_v23  ;;  %v250_v34 = vmul.f32 %v248_v16, %v241_v23  ;;  %496 = vmatpush3.bf16.msra.mxu0 %v495_v28 }
  0x15   : > { %v253_v35 = vmul.f32 %v252_v26, %v248_v16  ;;  %v260_v36 = vmul.f32 %v446_v17, %v256_v27  ;;  %v266_v48 = vmul.f32 %v264_v40, %v262_v39 }
  0x16   : > { %v448_v37 = vrot.slane %v235_v30, 9  ;;  %v273_v38 = vrot.slane %v246_v32, 6 }
  0x17   : > { %v449_v41 = vrot.slane %v253_v35, 9  ;;  %v450_v42 = vrot.slane %v260_v36, 9  ;;  %v453_v53 = vrot.slane %v266_v48, 10 }
  0x18   : > { %v275_v43 = vadd.f32 %v273_v38, %v238_v31  ;;  %v271_v44 = vadd.f32 %v448_v37, %v235_v30 }
  0x19   : > { %v280_v45 = vadd.f32 %v449_v41, %v250_v34  ;;  %v285_v46 = vadd.f32 %v450_v42, %v260_v36 }
  0x1a   : > { %v451_v47 = vrot.slane %v275_v43, 10 }
  0x1b   : > { %v292_v49 = vrot.slane %v285_v46, 7 }
  0x1c   : > { %v290_v50 = vadd.f32 %v451_v47, %v271_v44 }
  0x1d   : > { %v294_v51 = vadd.f32 %v292_v49, %v280_v45 }
  0x1f   : > { %v452_v52 = vrot.slane %v294_v51, 9 }
  0x21   : > { %v299_v54 = vadd.f32 %v452_v52, %v290_v50 }
  0x23   : > { %v304_v56 = vadd.f32 %v453_v53, %v299_v54 }
  0x25   : > { %v305_v57 = vadd.f32 %v304_v56, %v223_v55 }
  0x27   : > { %v306_v58 = vmax.f32 %v305_v57, 0.0 }
  0x29   : > { %483 = vmatmul.mubr.msk.f32.vlgmr.msra.gmra.mrb[0].mxu0 %vm307_vm1, %v306_v58 }
  0xfc   : > { %v377_v60 = vpop.f32.mrb[0].mxu0 }
  0xfd   : > { %v378_v61 = vadd.f32 %v377_v60, %v232_v59  ;;  %v484_v62 = vpop.f32.mrb[1].mxu0 }
  0xff   : > { %v381_v63 = vmax.f32 %v378_v61, 0.0 }
 0x101   : > { %v382_v1 = vpack.c.bf16 %v381_v63, %v381_v63 }
 0x103   : > { %v387_v2 = vsel %vm385_vm4, %v382_v1, %v386_v0 }
 0x104   : > { %388 = vst [vmem:[%s220_s27] sm:$0x1] %v387_v2 }
 0x105 PF: > { %s15_s18 = sadd.s32 1, %s516_s18  }
 0x106   : > { %p12_p4 = scmp.ge.s32.totalorder %s15_s18, 4  }
 0x108   :  { %14 = sbr.rel (!%p12_p4) target bundleno = 1 (0x1), region = 72 }

// kernel: _lambda_.26
= control target key start
LH: loop header
LB: loop body
LE: loop exit
PB: predicated region body
PF: predicated region fallthrough
CT: control target
= control target key end

     0   :  { %s624_s21 = smov 0   ;;  %s684_s0 = inlined_call_operand.vmem [shape: bf16[2,3,2,64], index: 0, kind: input, shape index: {}]   ;;  %s685_s1 = inlined_call_operand.vmem [shape: bf16[2,3,1,64], index: 1, kind: input, shape index: {}]   ;;  %s686_s2 = inlined_call_operand.vmem [shape: f32[9,64], index: 2, kind: input, shape index: {}]   ;;  %s687_s3 = inlined_call_operand.vmem [shape: f32[1,64], index: 3, kind: input, shape index: {}]   ;;  %s688_s4 = inlined_call_operand.vmem [shape: f32[64,128], index: 4, kind: input, shape index: {}]   ;;  %s689_s5 = inlined_call_operand.vmem [shape: f32[1,128], index: 5, kind: input, shape index: {}]   ;;  %s690_s6 = inlined_call_operand.vmem [shape: bf16[2,1,1,128], index: 6, kind: output, shape index: {}]  }
   0x1 LB: > { %s505_s22 = sadd.s32 4294967295, %s583_s21   ;;  %p509_p0 = scmp.ge.s32.totalorder %s583_s21, 1  ;;  %s583_s21 = sphi %s624_s21, %s16_s21  }
   0x2   : > { %p220_p1 = scmp.lt.s32.totalorder %s583_s21, 3 }
   0x4   : > { %p221_p2 = pnand %p509_p0, %p220_p1 }
   0x5   : > { %v265_v0 = vld [vmem:[%s688_s4] sm:$0xff] (!%p221_p2)  ;;  %v266_v1 = vld [vmem:[%s688_s4 + $0x8] sm:$0xff] (!%p221_p2)  ;;  %v267_v2 = vld [vmem:[%s688_s4 + $0x10] sm:$0xff] (!%p221_p2)  ;;  %v283_v3 = vlaneseq (!%p221_p2)  ;;  %v585_v4 = vmov (!%p221_p2), 0.0|0.0   ;;  %vm586_vm0 = vmmov (!%p221_p2), 0   ;;  %v587_v7 = vmov (!%p221_p2), 0.0  }
   0x6   : > { %224 = sbr.rel (%p221_p2) target bundleno = 261 (0x105), region = 44  ;;  %551 = vmatprep.subr.bf16.mxu0 (!%p221_p2), %v585_v4  ;;  %v552_v5 = vpack.c.bf16 (!%p221_p2), %v266_v1, %v265_v0  ;;  %v268_v6 = vld [vmem:[%s688_s4 + $0x18] sm:$0xff] (!%p221_p2)  ;;  %548 = vmatprep.mubr.msk.f32.mxu0 (!%p221_p2), %vm586_vm0, %v587_v7  ;;  %p251_p3 = scmp.lt.s32.totalorder (!%p221_p2), %s505_s22, 1  ;;  %v588_v8 = vmov (!%p221_p2), 1983009808   ;;  %v262_v12 = vld [vmem:[%s686_s2] sm:$0xff] (!%p221_p2) }
   0x7   : > { %v281_v9 = vunpack.c.l.s4 (!%p221_p2), %v588_v8  ;;  %v284_v10 = vshrl.u32 (!%p221_p2), %v283_v3, 7  ;;  %v555_v11 = vpack.c.bf16 (!%p221_p2), %v268_v6, %v267_v2  ;;  %v269_v13 = vld [vmem:[%s688_s4 + $0x20] sm:$0xff] (!%p221_p2)  ;;  %v270_v14 = vld [vmem:[%s688_s4 + $0x28] sm:$0xff] (!%p221_p2)  ;;  %v304_v16 = vcombine.high (!%p221_p2), %v262_v12, %v262_v12  ;;  %v271_v19 = vld [vmem:[%s688_s4 + $0x30] sm:$0xff] (!%p221_p2) }
   0x8   : > { %553 = vmatpush3.bf16.msra.mxu0 (!%p221_p2), %v552_v5  ;;  %v558_v18 = vpack.c.bf16 (!%p221_p2), %v270_v14, %v269_v13  ;;  %v272_v20 = vld [vmem:[%s688_s4 + $0x38] sm:$0xff] (!%p221_p2)  ;;  %v516_v37 = vld.sshfl [vmem:[%s686_s2 + $0x8] sm:$0x1 pattern:$0x76325410] (!%p221_p2)  ;;  %vm364_vm1 = vcmask (!%p221_p2), 523264  }
   0x9   : > { %554 = vmatprep.subr.bf16.mxu0 (!%p221_p2), %v585_v4  ;;  %v282_v15 = vunpack.c.0.s8 (!%p221_p2), %v281_v9  ;;  %v561_v33 = vpack.c.bf16 (!%p221_p2), %v272_v20, %v271_v19  ;;  %v336_v48 = vrot.slane (!%p221_p2), %v516_v37, 7  ;;  %v264_v0 = vld [vmem:[%s687_s3] sm:$0x1] (!%p221_p2)  ;;  %vm440_vm2 = vcmask (!%p221_p2), 1040384  }
   0xa   : > { %vm441_vm3 = vsmask.f32 (!%p221_p2), 256 }
   0xb   : > { %v285_v17 = vsub.s32 (!%p221_p2), %v282_v15, %v284_v10  ;;  %vm442_vm4 = vmand (!%p221_p2), %vm440_vm2, %vm441_vm3 }
   0xc   : > { %556 = vmatpush3.bf16.msra.mxu0 (!%p221_p2), %v555_v11 }
   0xd   : > { %s692_s22 = smov (!%p251_p3, %s505_s22), 1  ;;  %557 = vmatprep.subr.bf16.mxu0 %v585_v4  ;;  %v286_v23 = vrot.slane %v262_v12, %v285_v17  ;;  %v311_v25 = vrot.slane %v304_v16, %v285_v17 }
   0xe   : > { %s563_s13 = smul.u32 3, %s692_s22  ;;  %s261_s10 = scalar_lea.vmem %s690_s6, %s692_s22 }
   0xf   : > { %v291_v30 = vcombine.high %v286_v23, %v286_v23  ;;  %v318_v35 = vcombine.high %v311_v25, %v311_v25  ;;  %v510_v40 = vrot.slane %v286_v23, 9  ;;  %v443_v9 = vld [vmem:[%s261_s10] sm:$0x1] }
  0x10   : > { %s254_s20 = scalar_lea.vmem %s684_s0, %s563_s13  ;;  %s258_s25 = scalar_lea.vmem %s685_s1, %s563_s13  ;;  %559 = vmatpush3.bf16.msra.mxu0 %v558_v18 }
  0x11   : > { %v274_v21 = vld [vmem:[%s254_s20] sm:$0x1]  ;;  %v511_v24 = vld [vmem:[%s254_s20 + $0x1] sm:$0x1]  ;;  %v513_v28 = vld [vmem:[%s254_s20 + $0x2] sm:$0x1]  ;;  %560 = vmatprep.subr.bf16.mxu0 %v585_v4 }
  0x12   : > { %v277_v22 = vld [vmem:[%s258_s25] sm:$0x1]  ;;  %v297_v26 = vunpack.c.l.bf16 %v511_v24  ;;  %v512_v27 = vld [vmem:[%s258_s25 + $0x1] sm:$0x1]  ;;  %v514_v29 = vld [vmem:[%s258_s25 + $0x2] sm:$0x1]  ;;  %v317_v32 = vunpack.c.l.bf16 %v513_v28  ;;  %v275_v38 = vunpack.c.l.bf16 %v274_v21 }
  0x13   : > { %v303_v31 = vunpack.c.l.bf16 %v512_v27  ;;  %v323_v36 = vunpack.c.l.bf16 %v514_v29  ;;  %v278_v39 = vunpack.c.l.bf16 %v277_v22  ;;  %v292_v41 = vrot.slane %v291_v30, 7  ;;  %v273_v4 = vld [vmem:[%s689_s5] sm:$0x1] }
  0x14   : > { %v314_v34 = vmul.f32 %v311_v25, %v297_v26  ;;  %v515_v42 = vrot.slane %v318_v35, 9  ;;  %v320_v45 = vmul.f32 %v318_v35, %v317_v32  ;;  %562 = vmatpush3.bf16.msra.mxu0 %v561_v33  ;;  %v276_v49 = vmul.f32 %v275_v38, %v262_v12 }
  0x15   : > { %v298_v43 = vrot.slane %v292_v41, 2  ;;  %v313_v44 = vmul.f32 %v311_v25, %v303_v31  ;;  %v290_v50 = vmul.f32 %v510_v40, %v278_v39  ;;  %v294_v51 = vmul.f32 %v292_v41, %v275_v38 }
  0x16   : > { %v517_v46 = vrot.slane %v314_v34, 9  ;;  %v327_v47 = vmul.f32 %v515_v42, %v323_v36  ;;  %v338_v56 = vmul.f32 %v336_v48, %v317_v32 }
  0x17   : > { %v300_v52 = vmul.f32 %v298_v43, %v297_v26  ;;  %v339_v57 = vadd.f32 %v290_v50, %v276_v49 }
  0x18   : > { %v348_v54 = vadd.f32 %v517_v46, %v313_v44  ;;  %v349_v55 = vadd.f32 %v327_v47, %v320_v45  ;;  %v519_v62 = vrot.slane %v338_v56, 9 }
  0x19   : > { %v341_v53 = vrot.slane %v300_v52, 7 }
  0x1a   : > { %v355_v60 = vadd.f32 %v349_v55, %v348_v54 }
  0x1b   : > { %v343_v58 = vadd.f32 %v341_v53, %v294_v51 }
  0x1d   : > { %v518_v59 = vrot.slane %v343_v58, 9 }
  0x1f   : > { %v354_v61 = vadd.f32 %v518_v59, %v339_v57 }
  0x21   : > { %v356_v63 = vadd.f32 %v355_v60, %v354_v61 }
  0x23   : > { %v361_v1 = vadd.f32 %v519_v62, %v356_v63 }
  0x25   : > { %v362_v2 = vadd.f32 %v361_v1, %v264_v0 }
  0x27   : > { %v363_v3 = vmax.f32 %v362_v2, 0.0 }
  0x29   : > { %549 = vmatmul.mubr.msk.f32.vlgmr.msra.gmra.mrb[0].mxu0 %vm364_vm1, %v363_v3 }
  0xfc   : > { %v434_v5 = vpop.f32.mrb[0].mxu0 }
  0xfd   : > { %v435_v6 = vadd.f32 %v434_v5, %v273_v4  ;;  %v550_v7 = vpop.f32.mrb[1].mxu0 }
  0xff   : > { %v438_v8 = vmax.f32 %v435_v6, 0.0 }
 0x101   : > { %v439_v10 = vpack.c.bf16 %v438_v8, %v438_v8 }
 0x103   : > { %v444_v11 = vsel %vm442_vm4, %v439_v10, %v443_v9 }
 0x104   : > { %445 = vst [vmem:[%s261_s10] sm:$0x1] %v444_v11 }
 0x105 PF: > { %s16_s21 = sadd.s32 1, %s583_s21  }
 0x106   : > { %p13_p4 = scmp.ge.s32.totalorder %s16_s21, 4  }
 0x108   :  { %15 = sbr.rel (!%p13_p4) target bundleno = 1 (0x1), region = 81 }

// kernel: _lambda_.27
= control target key start
LH: loop header
LB: loop body
LE: loop exit
PB: predicated region body
PF: predicated region fallthrough
CT: control target
= control target key end

     0   :  { %s1351_s21 = smov 0   ;;  %s1658_s0 = inlined_call_operand.vmem [shape: bf16[2,9,5,128], index: 0, kind: input, shape index: {}]   ;;  %s1659_s1 = inlined_call_operand.vmem [shape: bf16[2,9,4,128], index: 1, kind: input, shape index: {}]   ;;  %s1660_s2 = inlined_call_operand.vmem [shape: f32[9,128], index: 2, kind: input, shape index: {}]   ;;  %s1661_s3 = inlined_call_operand.vmem [shape: f32[1,128], index: 3, kind: input, shape index: {}]   ;;  %s1662_s4 = inlined_call_operand.vmem [shape: f32[128,128], index: 4, kind: input, shape index: {}]   ;;  %s1663_s5 = inlined_call_operand.vmem [shape: f32[1,128], index: 5, kind: input, shape index: {}]   ;;  %s1664_s6 = inlined_call_operand.vmem [shape: bf16[2,4,4,128], index: 6, kind: output, shape index: {}]  }
   0x1 LB: > { %s933_s22 = sadd.s32 4294967295, %s1311_s21   ;;  %p937_p0 = scmp.ge.s32.totalorder %s1311_s21, 1  ;;  %s1311_s21 = sphi %s1351_s21, %s16_s21  }
   0x2   : > { %p222_p1 = scmp.lt.s32.totalorder %s1311_s21, 3 }
   0x4   : > { %p223_p2 = pnand %p937_p0, %p222_p1 }
   0x5   : > { %v275_v0 = vld [vmem:[%s1662_s4] sm:$0xff] (!%p223_p2)  ;;  %v276_v1 = vld [vmem:[%s1662_s4 + $0x8] sm:$0xff] (!%p223_p2)  ;;  %v277_v2 = vld [vmem:[%s1662_s4 + $0x10] sm:$0xff] (!%p223_p2)  ;;  %v294_v3 = vlaneseq (!%p223_p2)  ;;  %v1313_v4 = vmov (!%p223_p2), 0.0|0.0   ;;  %p257_p3 = scmp.lt.s32.totalorder (!%p223_p2), %s933_s22, 1  ;;  %vm1314_vm0 = vmmov (!%p223_p2), 0  }
   0x6   : > { %226 = sbr.rel (%p223_p2) target bundleno = 299 (0x12b), region = 44  ;;  %1196 = vmatprep.subr.bf16.mxu0 (!%p223_p2), %v1313_v4  ;;  %1220 = vmatprep.subr.bf16.mxu1 (!%p223_p2), %v1313_v4  ;;  %v1370_v5 = vpack.c.bf16 (!%p223_p2), %v276_v1, %v275_v0  ;;  %v278_v6 = vld [vmem:[%s1662_s4 + $0x18] sm:$0xff] (!%p223_p2)  ;;  %v279_v7 = vld [vmem:[%s1662_s4 + $0x20] sm:$0xff] (!%p223_p2)  ;;  %v1315_v8 = vmov (!%p223_p2), 0.0   ;;  %v280_v11 = vld [vmem:[%s1662_s4 + $0x28] sm:$0xff] (!%p223_p2)  ;;  %vm366_vm1 = vcmask (!%p223_p2), 1042432  }
   0x7   : > { %1088 = vmatprep.mubr.msk.f32.mxu0 (!%p223_p2), %vm1314_vm0, %v1315_v8  ;;  %1123 = vmatprep.mubr.msk.f32.mxu1 (!%p223_p2), %vm1314_vm0, %v1315_v8  ;;  %v1382_v9 = vshrl.u32 (!%p223_p2), %v294_v3, 7  ;;  %v1386_v10 = vpack.c.bf16 (!%p223_p2), %v278_v6, %v277_v2  ;;  %v281_v12 = vld [vmem:[%s1662_s4 + $0x30] sm:$0xff] (!%p223_p2)  ;;  %v282_v13 = vld [vmem:[%s1662_s4 + $0x38] sm:$0xff] (!%p223_p2)  ;;  %v1407_v16 = vld [vmem:[%s1660_s2] sm:$0xff] (!%p223_p2)  ;;  %v1410_v18 = vpack.c.bf16 (!%p223_p2), %v280_v11, %v279_v7  ;;  %vm367_vm2 = vcmask (!%p223_p2), 1046532  }
   0x8   : > { %1198 = vmatpush3.bf16.msra.mxu0 (!%p223_p2), %v1370_v5  ;;  %1222 = vmatpush3.bf16.msra.mxu1 (!%p223_p2), %v1370_v5  ;;  %v1412_v19 = vpack.c.bf16 (!%p223_p2), %v282_v13, %v281_v12  ;;  %v283_v20 = vld [vmem:[%s1662_s4 + $0x40] sm:$0xff] (!%p223_p2)  ;;  %v284_v21 = vld [vmem:[%s1662_s4 + $0x48] sm:$0xff] (!%p223_p2)  ;;  %v285_v47 = vld [vmem:[%s1662_s4 + $0x50] sm:$0xff] (!%p223_p2) }
   0x9   : > { %1199 = vmatprep.subr.bf16.mxu0 (!%p223_p2), %v1313_v4  ;;  %1223 = vmatprep.subr.bf16.mxu1 (!%p223_p2), %v1313_v4  ;;  %v296_v14 = vsub.s32 (!%p223_p2), 0, %v1382_v9  ;;  %v303_v15 = vsub.s32 (!%p223_p2), 1, %v1382_v9  ;;  %v310_v17 = vsub.s32 (!%p223_p2), 2, %v1382_v9  ;;  %v318_v22 = vsub.s32 (!%p223_p2), 3, %v1382_v9  ;;  %v286_v48 = vld [vmem:[%s1662_s4 + $0x58] sm:$0xff] (!%p223_p2)  ;;  %vm1507_vm3 = vmor (!%p223_p2), %vm366_vm1, %vm367_vm2 }
   0xa   : > { %v326_v24 = vsub.s32 (!%p223_p2), 4, %v1382_v9  ;;  %v333_v25 = vsub.s32 (!%p223_p2), 5, %v1382_v9  ;;  %v341_v26 = vsub.s32 (!%p223_p2), 6, %v1382_v9  ;;  %v1454_v33 = vpack.c.bf16 (!%p223_p2), %v284_v21, %v283_v20  ;;  %v1495_v1 = vld [vmem:[%s1660_s2 + $0x8] ss:$0 sm:$0xff] (!%p223_p2) }
   0xb   : > { %v1430_v23 = vrot.slane (!%p223_p2), %v1407_v16, %v296_v14  ;;  %v1444_v28 = vrot.slane (!%p223_p2), %v1407_v16, %v303_v15  ;;  %v1448_v30 = vrot.slane (!%p223_p2), %v1407_v16, %v310_v17  ;;  %v1452_v32 = vrot.slane (!%p223_p2), %v1407_v16, %v318_v22 }
   0xc   : > { %1201 = vmatpush3.bf16.msra.mxu0 (!%p223_p2), %v1386_v10  ;;  %1225 = vmatpush3.bf16.msra.mxu1 (!%p223_p2), %v1386_v10  ;;  %v1460_v41 = vrot.slane (!%p223_p2), %v1407_v16, %v326_v24  ;;  %v1463_v43 = vrot.slane (!%p223_p2), %v1407_v16, %v333_v25  ;;  %v1486_v59 = vrot.slane (!%p223_p2), %v1407_v16, %v341_v26  ;;  %v349_v60 = vsub.s32 (!%p223_p2), 7, %v1382_v9 }
   0xd   : > { %s1668_s22 = smov (!%p257_p3, %s933_s22), 1  ;;  %1202 = vmatprep.subr.bf16.mxu0 %v1313_v4  ;;  %1226 = vmatprep.subr.bf16.mxu1 %v1313_v4  ;;  %v1490_v0 = vpack.c.bf16 %v286_v48, %v285_v47 }
   0xe   : > { %s1292_s15 = smul.u32 36, %s1668_s22  ;;  %v1503_v12 = vrot.slane %v1407_v16, %v349_v60  ;;  %v289_v60 = vld [vmem:[%s1662_s4 + $0x70] sm:$0xff] }
   0xf   : > { %s1293_s24 = smul.u32 18, %s1668_s22 }
  0x10   : > { %s1427_s27 = scalar_lea.vmem %s1658_s0, %s1292_s15  ;;  %1204 = vmatpush3.bf16.msra.mxu0 %v1410_v18  ;;  %1228 = vmatpush3.bf16.msra.mxu1 %v1410_v18 }
  0x11   : > { %s1440_s30 = scalar_lea.vmem %s1659_s1, %s1293_s24  ;;  %v292_v27 = vld [vmem:[%s1427_s27] sm:$0x3]  ;;  %v942_v31 = vld [vmem:[%s1427_s27 + $0x4] sm:$0x3]  ;;  %v945_v44 = vld [vmem:[%s1427_s27 + $0x8] sm:$0x3]  ;;  %1205 = vmatprep.subr.bf16.mxu0 %v1313_v4  ;;  %1229 = vmatprep.subr.bf16.mxu1 %v1313_v4 }
  0x12   : > { %v306_v29 = vld [vmem:[%s1427_s27] sm:$0x7]  ;;  %v293_v34 = vunpack.c.l.bf16 %v292_v27  ;;  %v315_v37 = vunpack.c.l.bf16 %v942_v31  ;;  %v944_v39 = vld [vmem:[%s1427_s27 + $0x4] sm:$0x7]  ;;  %v947_v46 = vld [vmem:[%s1427_s27 + $0x8] sm:$0x7]  ;;  %v338_v52 = vunpack.c.l.bf16 %v945_v44 }
  0x13   : > { %v299_v35 = vld [vmem:[%s1440_s30] sm:$0x3]  ;;  %v307_v36 = vunpack.c.l.bf16 %v306_v29  ;;  %v943_v38 = vld [vmem:[%s1440_s30 + $0x2] sm:$0x3]  ;;  %v330_v42 = vunpack.c.l.bf16 %v944_v39  ;;  %v946_v45 = vld [vmem:[%s1440_s30 + $0x4] sm:$0x3]  ;;  %v353_v61 = vunpack.c.l.bf16 %v947_v46 }
  0x14   : > { %v300_v40 = vunpack.c.l.bf16 %v299_v35  ;;  %v298_v49 = vmul.f32 %v1430_v23, %v293_v34  ;;  %v320_v50 = vmul.f32 %v1452_v32, %v315_v37  ;;  %v323_v51 = vunpack.c.l.bf16 %v943_v38  ;;  %v952_v53 = vld [vmem:[%s1427_s27 + $0x8] sm:$0x3]  ;;  %v953_v58 = vld [vmem:[%s1440_s30 + $0x4] sm:$0x3]  ;;  %v955_v7 = vld [vmem:[%s1427_s27 + $0xc] sm:$0x3]  ;;  %1207 = vmatpush3.bf16.msra.mxu0 %v1412_v19  ;;  %1231 = vmatpush3.bf16.msra.mxu1 %v1412_v19 }
  0x15   : > { %v312_v55 = vmul.f32 %v1448_v30, %v307_v36  ;;  %v335_v56 = vmul.f32 %v1463_v43, %v330_v42  ;;  %v346_v57 = vunpack.c.l.bf16 %v946_v45  ;;  %v954_v63 = vld [vmem:[%s1427_s27 + $0x8] sm:$0x7]  ;;  %v474_v6 = vunpack.c.l.bf16 %v952_v53  ;;  %1208 = vmatprep.subr.bf16.mxu0 %v1313_v4  ;;  %1232 = vmatprep.subr.bf16.mxu1 %v1313_v4  ;;  %v957_v22 = vld [vmem:[%s1427_s27 + $0xc] sm:$0x7]  ;;  %v956_v27 = vld [vmem:[%s1440_s30 + $0x6] sm:$0x3] }
  0x16   : > { %v305_v54 = vmul.f32 %v1444_v28, %v300_v40  ;;  %v361_v62 = vrot.slane %v320_v50, 7  ;;  %v328_v9 = vmul.f32 %v1460_v41, %v323_v51  ;;  %v343_v11 = vmul.f32 %v1486_v59, %v338_v52  ;;  %v958_v29 = vld [vmem:[%s1427_s27 + $0x10] sm:$0x3]  ;;  %v959_v31 = vld [vmem:[%s1440_s30 + $0x8] sm:$0x3]  ;;  %v287_v45 = vld [vmem:[%s1662_s4 + $0x60] sm:$0xff] }
  0x17   : > { %v365_v2 = vcombine.high %v335_v56, %v335_v56  ;;  %v949_v3 = vrot.slane %v335_v56, 9  ;;  %v477_v14 = vunpack.c.l.bf16 %v953_v58  ;;  %v480_v21 = vunpack.c.l.bf16 %v954_v63  ;;  %v960_v38 = vld [vmem:[%s1427_s27 + $0x10] sm:$0x7]  ;;  %v288_v46 = vld [vmem:[%s1662_s4 + $0x68] sm:$0xff] }
  0x18   : > { %v359_v15 = vadd.f32 %v305_v54, %v298_v49  ;;  %v363_v17 = vadd.f32 %v361_v62, %v312_v55  ;;  %v351_v16 = vmul.f32 %v1503_v12, %v346_v57  ;;  %v358_v24 = vmul.f32 %v1495_v1, %v353_v61  ;;  %1210 = vmatpush3.bf16.msra.mxu0 %v1454_v33 }
  0x19   : > { %v371_v20 = vrot.slane %v365_v2, 5  ;;  %v475_v25 = vmul.f32 %v474_v6, %v1430_v23  ;;  %v484_v26 = vunpack.c.l.bf16 %v955_v7  ;;  %v478_v36 = vmul.f32 %v477_v14, %v1444_v28  ;;  %1234 = vmatpush3.bf16.msra.mxu1 %v1454_v33  ;;  %1211 = vmatprep.subr.bf16.mxu0 %v1313_v4  ;;  %v966_v2 = vld [vmem:[%s1427_s27 + $0x14] sm:$0x3]  ;;  %v1555_v6 = vld [vmem:[%s1661_s3] ss:$0 sm:$0xff] }
  0x1a   : > { %v377_v35 = vrot.slane %v363_v17, 1  ;;  %v481_v37 = vmul.f32 %v480_v21, %v1448_v30  ;;  %v375_v40 = vadd.f32 %v351_v16, %v343_v11  ;;  %v491_v44 = vunpack.c.l.bf16 %v957_v22  ;;  %1235 = vmatprep.subr.bf16.mxu1 %v1313_v4  ;;  %v968_v14 = vld [vmem:[%s1427_s27 + $0x14] sm:$0x7] }
  0x1b   : > { %v372_v34 = vsel %vm1507_vm3, %v949_v3, %v371_v20  ;;  %v485_v42 = vmul.f32 %v484_v26, %v1452_v32  ;;  %v488_v48 = vunpack.c.l.bf16 %v956_v27  ;;  %v495_v49 = vunpack.c.l.bf16 %v958_v29  ;;  %v290_v3 = vld [vmem:[%s1662_s4 + $0x78] sm:$0xff]  ;;  %v965_v27 = vld [vmem:[%s1427_s27 + $0x10] sm:$0x7] }
  0x1c   : > { %v374_v39 = vadd.f32 %v372_v34, %v328_v9  ;;  %v379_v47 = vadd.f32 %v377_v35, %v359_v15  ;;  %v499_v50 = vunpack.c.l.bf16 %v959_v31  ;;  %v383_v52 = vrot.slane %v358_v24, 1  ;;  %1213 = vmatpush3.bf16.msra.mxu0 %v1490_v0  ;;  %v963_v35 = vld [vmem:[%s1427_s27 + $0x10] sm:$0x3] }
  0x1d   : > { %v492_v53 = vmul.f32 %v491_v44, %v1463_v43  ;;  %v502_v54 = vunpack.c.l.bf16 %v960_v38  ;;  %v496_v55 = vmul.f32 %v495_v49, %v1486_v59  ;;  %v506_v57 = vrot.slane %v485_v42, 7  ;;  %1237 = vmatpush3.bf16.msra.mxu1 %v1490_v0  ;;  %1214 = vmatprep.subr.bf16.mxu0 %v1313_v4  ;;  %v967_v38 = vld [vmem:[%s1440_s30 + $0xa] sm:$0x3] }
  0x1e   : > { %v380_v51 = vadd.f32 %v375_v40, %v374_v39  ;;  %v500_v56 = vmul.f32 %v499_v50, %v1503_v12  ;;  %v1541_v58 = vpack.c.bf16 %v288_v46, %v287_v45  ;;  %1238 = vmatprep.subr.bf16.mxu1 %v1313_v4  ;;  %v489_v7 = vmul.f32 %v488_v48, %v1460_v41  ;;  %v969_v46 = vld [vmem:[%s1427_s27 + $0x18] sm:$0x3] }
  0x1f   : > { %v510_v62 = vcombine.high %v492_v53, %v492_v53  ;;  %v961_v63 = vrot.slane %v492_v53, 9  ;;  %v504_v9 = vadd.f32 %v478_v36, %v475_v25  ;;  %v508_v11 = vadd.f32 %v506_v57, %v481_v37  ;;  %v964_v37 = vld [vmem:[%s1440_s30 + $0x8] sm:$0x3]  ;;  %v977_v53 = vld [vmem:[%s1427_s27 + $0x1c] sm:$0x3] }
  0x20   : > { %v381_v61 = vadd.f32 %v380_v51, %v379_v47  ;;  %v503_v17 = vmul.f32 %v1495_v1, %v502_v54  ;;  %v517_v21 = vadd.f32 %v500_v56, %v496_v55  ;;  %v615_v16 = vunpack.c.l.bf16 %v966_v2  ;;  %1216 = vmatpush3.bf16.msra.mxu0 %v1541_v58  ;;  %v970_v47 = vld [vmem:[%s1440_s30 + $0xc] sm:$0x3]  ;;  %v979_v57 = vld [vmem:[%s1427_s27 + $0x1c] sm:$0x7] }
  0x21   : > { %v513_v20 = vrot.slane %v510_v62, 5  ;;  %v519_v22 = vrot.slane %v508_v11, 1  ;;  %1240 = vmatpush3.bf16.msra.mxu1 %v1541_v58  ;;  %v1562_v24 = vpack.c.bf16 %v290_v3, %v289_v60  ;;  %v622_v29 = vunpack.c.l.bf16 %v968_v14  ;;  %1217 = vmatprep.subr.bf16.mxu0 %v1313_v4  ;;  %v974_v3 = vld [vmem:[%s1427_s27 + $0x18] sm:$0x3] }
  0x22   : > { %v385_v15 = vadd.f32 %v383_v52, %v381_v61  ;;  %1241 = vmatprep.subr.bf16.mxu1 %v1313_v4  ;;  %v525_v36 = vrot.slane %v503_v17, 1  ;;  %v611_v44 = vunpack.c.l.bf16 %v965_v27  ;;  %v616_v45 = vmul.f32 %v615_v16, %v1452_v32  ;;  %v976_v52 = vld [vmem:[%s1427_s27 + $0x18] sm:$0x7]  ;;  %v975_v17 = vld [vmem:[%s1440_s30 + $0xc] sm:$0x3] }
  0x23   : > { %v514_v26 = vsel %vm1507_vm3, %v961_v63, %v513_v20  ;;  %v521_v34 = vadd.f32 %v519_v22, %v504_v9  ;;  %v623_v39 = vmul.f32 %v622_v29, %v1463_v43  ;;  %v605_v50 = vunpack.c.l.bf16 %v963_v35  ;;  %v978_v20 = vld [vmem:[%s1440_s30 + $0xe] sm:$0x3]  ;;  %v980_v27 = vld [vmem:[%s1427_s27 + $0x20] sm:$0x3]  ;;  %v981_v29 = vld [vmem:[%s1440_s30 + $0x10] sm:$0x3] }
  0x24   : > { %v392_v25 = vadd.f32 %v1555_v6, %v385_v15  ;;  %v516_v31 = vadd.f32 %v514_v26, %v489_v7  ;;  %1219 = vmatpush3.bf16.msra.mxu0 %v1562_v24  ;;  %v608_v51 = vunpack.c.l.bf16 %v964_v37  ;;  %v619_v54 = vunpack.c.l.bf16 %v967_v38 }
  0x25   : > { %1243 = vmatpush3.bf16.msra.mxu1 %v1562_v24  ;;  %v641_v48 = vcombine.high %v623_v39, %v623_v39  ;;  %1244 = vmatprep.subr.bf16.mxu0 %v1313_v4  ;;  %v626_v55 = vunpack.c.l.bf16 %v969_v46  ;;  %v630_v56 = vunpack.c.l.bf16 %v970_v47  ;;  %v612_v61 = vmul.f32 %v611_v44, %v1448_v30 }
  0x26   : > { %v393_v40 = vmax.f32 %v392_v25, 0.0  ;;  %v522_v42 = vadd.f32 %v517_v21, %v516_v31  ;;  %1268 = vmatprep.subr.bf16.mxu1 %v1313_v4  ;;  %v637_v62 = vrot.slane %v616_v45, 7  ;;  %v972_v63 = vrot.slane %v623_v39, 9 }
  0x27   : > { %v644_v2 = vrot.slane %v641_v48, 5  ;;  %v742_v7 = vunpack.c.l.bf16 %v976_v52  ;;  %v746_v9 = vunpack.c.l.bf16 %v977_v53  ;;  %v606_v14 = vmul.f32 %v605_v50, %v1430_v23 }
  0x28   : > { %v523_v49 = vadd.f32 %v522_v42, %v521_v34  ;;  %1089 = vmatmul.mubr.f32.vlgmr.msra.gmra.mrb[0].mxu0 %v393_v40  ;;  %v609_v15 = vmul.f32 %v608_v51, %v1444_v28  ;;  %v753_v21 = vunpack.c.l.bf16 %v979_v57  ;;  %v620_v22 = vmul.f32 %v619_v54, %v1460_v41  ;;  %v971_v34 = vld [vmem:[%s1427_s27 + $0x18] sm:$0x7] }
  0x29   : > { %1246 = vmatpush3.bf16.msra.mxu0 %v1370_v5  ;;  %1158 = vmatprep.mubr.msk.f32.mxu0 %vm1314_vm0, %v1315_v8  ;;  %v627_v16 = vmul.f32 %v626_v55, %v1486_v59  ;;  %v631_v25 = vmul.f32 %v630_v56, %v1503_v12  ;;  %v747_v26 = vmul.f32 %v746_v9, %v1452_v32  ;;  %v739_v39 = vunpack.c.l.bf16 %v975_v17  ;;  %v982_v55 = vld [vmem:[%s1427_s27 + $0x20] sm:$0x7]  ;;  %s987_s27 = sshll.u32 %s1668_s22, 3 }
  0x2a   : > { %v527_v60 = vadd.f32 %v525_v36, %v523_v49  ;;  %1247 = vmatprep.subr.bf16.mxu0 %v1313_v4  ;;  %v639_v35 = vadd.f32 %v637_v62, %v612_v61  ;;  %v736_v36 = vunpack.c.l.bf16 %v974_v3  ;;  %v754_v37 = vmul.f32 %v753_v21, %v1463_v43  ;;  %s271_s30 = scalar_lea.vmem %s1664_s6, %s987_s27 }
  0x2b   : > { %v645_v38 = vsel %vm1507_vm3, %v972_v63, %v644_v2  ;;  %v743_v40 = vmul.f32 %v742_v7, %v1448_v30  ;;  %v750_v42 = vunpack.c.l.bf16 %v978_v20  ;;  %v757_v32 = vunpack.c.l.bf16 %v980_v27 }
  0x2c   : > { %v528_v11 = vadd.f32 %v1555_v6, %v527_v60  ;;  %v761_v44 = vunpack.c.l.bf16 %v981_v29  ;;  %v768_v45 = vrot.slane %v747_v26, 7  ;;  %v772_v46 = vcombine.high %v754_v37, %v754_v37 }
  0x2d   : > { %1249 = vmatpush3.bf16.msra.mxu0 %v1386_v10  ;;  %v633_v43 = vunpack.c.l.bf16 %v971_v34  ;;  %v635_v47 = vadd.f32 %v609_v15, %v606_v14  ;;  %v983_v48 = vrot.slane %v754_v37, 9  ;;  %v647_v30 = vadd.f32 %v645_v38, %v620_v22 }
  0x2e   : > { %v529_v31 = vmax.f32 %v528_v11, 0.0  ;;  %1250 = vmatprep.subr.bf16.mxu0 %v1313_v4  ;;  %v648_v49 = vadd.f32 %v631_v25, %v627_v16  ;;  %v650_v50 = vrot.slane %v639_v35, 1  ;;  %v775_v51 = vrot.slane %v772_v46, 5 }
  0x2f   : > { %v737_v52 = vmul.f32 %v736_v36, %v1430_v23  ;;  %v740_v53 = vmul.f32 %v739_v39, %v1444_v28  ;;  %v762_v54 = vmul.f32 %v761_v44, %v1503_v12  ;;  %v770_v56 = vadd.f32 %v768_v45, %v743_v40 }
  0x30   : > { %1124 = vmatmul.mubr.f32.vlgmr.msra.gmra.mrb[0].mxu1 %v529_v31  ;;  %v776_v57 = vsel %vm1507_vm3, %v983_v48, %v775_v51  ;;  %v634_v23 = vmul.f32 %v1495_v1, %v633_v43  ;;  %v652_v28 = vadd.f32 %v650_v50, %v635_v47  ;;  %v653_v60 = vadd.f32 %v648_v49, %v647_v30 }
  0x31   : > { %1270 = vmatpush3.bf16.msra.mxu1 %v1370_v5  ;;  %1193 = vmatprep.mubr.msk.f32.mxu1 %vm1314_vm0, %v1315_v8  ;;  %v751_v5 = vmul.f32 %v750_v42, %v1460_v41  ;;  %v758_v8 = vmul.f32 %v757_v32, %v1486_v59  ;;  %v764_v41 = vunpack.c.l.bf16 %v982_v55  ;;  %v766_v59 = vadd.f32 %v740_v53, %v737_v52 }
  0x32   : > { %1271 = vmatprep.subr.bf16.mxu1 %v1313_v4  ;;  %1252 = vmatpush3.bf16.msra.mxu0 %v1410_v18  ;;  %v781_v62 = vrot.slane %v770_v56, 1  ;;  %v656_v13 = vrot.slane %v634_v23, 1 }
  0x33   : > { %1253 = vmatprep.subr.bf16.mxu0 %v1313_v4  ;;  %v778_v12 = vadd.f32 %v776_v57, %v751_v5  ;;  %v779_v61 = vadd.f32 %v762_v54, %v758_v8  ;;  %v765_v63 = vmul.f32 %v1495_v1, %v764_v41 }
  0x34   : > { %v783_v2 = vadd.f32 %v781_v62, %v766_v59 }
  0x35   : > { %1273 = vmatpush3.bf16.msra.mxu1 %v1386_v10  ;;  %v654_v10 = vadd.f32 %v653_v60, %v652_v28  ;;  %v784_v3 = vadd.f32 %v779_v61, %v778_v12  ;;  %v787_v9 = vrot.slane %v765_v63, 1 }
  0x36   : > { %1274 = vmatprep.subr.bf16.mxu1 %v1313_v4  ;;  %1255 = vmatpush3.bf16.msra.mxu0 %v1412_v19 }
  0x37   : > { %1256 = vmatprep.subr.bf16.mxu0 %v1313_v4  ;;  %v658_v7 = vadd.f32 %v656_v13, %v654_v10 }
  0x39   : > { %1276 = vmatpush3.bf16.msra.mxu1 %v1410_v18  ;;  %v785_v18 = vadd.f32 %v784_v3, %v783_v2  ;;  %v659_v11 = vadd.f32 %v1555_v6, %v658_v7 }
  0x3a   : > { %1277 = vmatprep.subr.bf16.mxu1 %v1313_v4  ;;  %1258 = vmatpush3.bf16.msra.mxu0 %v1454_v33 }
  0x3b   : > { %1259 = vmatprep.subr.bf16.mxu0 %v1313_v4  ;;  %v660_v1 = vmax.f32 %v659_v11, 0.0 }
  0x3d   : > { %1279 = vmatpush3.bf16.msra.mxu1 %v1412_v19  ;;  %v789_v19 = vadd.f32 %v787_v9, %v785_v18 }
  0x3e   : > { %1280 = vmatprep.subr.bf16.mxu1 %v1313_v4  ;;  %1261 = vmatpush3.bf16.msra.mxu0 %v1490_v0 }
  0x3f   : > { %1262 = vmatprep.subr.bf16.mxu0 %v1313_v4  ;;  %v790_v14 = vadd.f32 %v1555_v6, %v789_v19 }
  0x41   : > { %1282 = vmatpush3.bf16.msra.mxu1 %v1454_v33  ;;  %v791_v33 = vmax.f32 %v790_v14, 0.0 }
  0x42   : > { %1283 = vmatprep.subr.bf16.mxu1 %v1313_v4  ;;  %1264 = vmatpush3.bf16.msra.mxu0 %v1541_v58 }
  0x43   : > { %1265 = vmatprep.subr.bf16.mxu0 %v1313_v4 }
  0x45   : > { %1285 = vmatpush3.bf16.msra.mxu1 %v1490_v0  ;;  %v951_v0 = vld [vmem:[%s1663_s5] ss:$0 sm:$0xff] }
  0x46   : > { %1286 = vmatprep.subr.bf16.mxu1 %v1313_v4  ;;  %1267 = vmatpush3.bf16.msra.mxu0 %v1562_v24 }
  0x49   : > { %1288 = vmatpush3.bf16.msra.mxu1 %v1541_v58  ;;  %1159 = vmatmul.mubr.f32.vlgmr.msra.gmra.mrb[2].mxu0 %v660_v1 }
  0x4a   : > { %1289 = vmatprep.subr.bf16.mxu1 %v1313_v4 }
  0x4d   : > { %1291 = vmatpush3.bf16.msra.mxu1 %v1562_v24 }
  0x50   : > { %1194 = vmatmul.mubr.f32.vlgmr.msra.gmra.mrb[2].mxu1 %v791_v33 }
  0xfb   : > { %v466_v15 = vpop.f32.mrb[0].mxu0 }
  0xfc   : > { %v467_v17 = vadd.f32 %v951_v0, %v466_v15  ;;  %v1090_v20 = vpop.f32.mrb[1].mxu0 }
  0xfe   : > { %v470_v21 = vmax.f32 %v467_v17, 0.0 }
 0x100   : > { %v471_v58 = vpack.c.bf16 %v470_v21, %v470_v21 }
 0x102   : > { %472 = vst [vmem:[%s271_s30] sm:$0x3] %v471_v58 }
 0x103   : > { %v596_v4 = vpop.f32.mrb[0].mxu1 }
 0x104   : > { %v597_v6 = vadd.f32 %v951_v0, %v596_v4  ;;  %v1125_v22 = vpop.f32.mrb[1].mxu1 }
 0x106   : > { %v600_v24 = vmax.f32 %v597_v6, 0.0 }
 0x108   : > { %v601_v16 = vpack.c.bf16 %v600_v24, %v600_v24 }
 0x10a   : > { %962 = vst [vmem:[%s271_s30 + $0x2] sm:$0x3] %v601_v16 }
 0x11c   : > { %v727_v25 = vpop.f32.mrb[2].mxu0 }
 0x11d   : > { %v728_v26 = vadd.f32 %v951_v0, %v727_v25  ;;  %v1160_v27 = vpop.f32.mrb[3].mxu0 }
 0x11f   : > { %v731_v29 = vmax.f32 %v728_v26, 0.0 }
 0x121   : > { %v732_v31 = vpack.c.bf16 %v731_v29, %v731_v29 }
 0x123   : > { %v858_v34 = vpop.f32.mrb[2].mxu1  ;;  %973 = vst [vmem:[%s271_s30 + $0x4] sm:$0x3] %v732_v31 }
 0x124   : > { %v859_v35 = vadd.f32 %v951_v0, %v858_v34  ;;  %v1195_v36 = vpop.f32.mrb[3].mxu1 }
 0x126   : > { %v862_v37 = vmax.f32 %v859_v35, 0.0 }
 0x128   : > { %v863_v38 = vpack.c.bf16 %v862_v37, %v862_v37 }
 0x12a   : > { %984 = vst [vmem:[%s271_s30 + $0x6] sm:$0x3] %v863_v38 }
 0x12b PF: > { %s16_s21 = sadd.s32 1, %s1311_s21  }
 0x12c   : > { %p13_p4 = scmp.ge.s32.totalorder %s16_s21, 4  }
 0x12e   :  { %15 = sbr.rel (!%p13_p4) target bundleno = 1 (0x1), region = 96 }

</bundles_post_ra>
